<compile_context>
chip_gen: v5e
topology: v5e:2x2
jax: 0.10.0
libtpu: 0.0.40
codegen_flags: <defaults>
</compile_context>

<pallas_src>
import functools

import jax
import jax.numpy as jnp
from jax.experimental import pallas as pl
from jax.experimental.pallas import tpu as pltpu

INPUT_DIM = 4                          # Hindmarsh-Rose state (3) + 1 -> data.shape[1] + 1
AUGMENT_DIM = 10
HIDDEN_DIM = 1024
NUM_LAYERS = 2                         # exactly one hidden Linear+Tanh block
NET_IN = INPUT_DIM + AUGMENT_DIM + 1   # 15 (t concatenated with the augmented state)
OUTPUT_DIM = INPUT_DIM + AUGMENT_DIM   # 14 (out[:, :output_dim])
LANE = 128                             # TPU lane width (feature padding target)


def _is_v6_or_newer():
    """bf16 EUP/VPU path + bigger batch tile pay off on v6e/v7x but not on v5e."""
    try:
        kind = jax.devices()[0].device_kind.lower()
    except Exception:
        return False
    return any(tag in kind for tag in ("v6", "v7", "6e", "7x"))


_V6_PLUS = _is_v6_or_newer()
_DEF_TILE = 256 if _V6_PLUS else 128   # v6e/v7x: amortize ~0.35us grid-step overhead


def _pick_batch_tile(rows):
    """Largest supported tile ({128, 256}) compatible with `rows`."""
    if rows >= _DEF_TILE and rows % _DEF_TILE == 0:
        return _DEF_TILE
    return 128


# --------------------------------------------------------------------------- kernel
def _aug_odefunc_kernel(z_ref, w1_ref, b1_ref, w2_ref, b2_ref, w3_ref, b3_ref,
                        o_ref, *, bf16_act):
    # Layer 1: z (lanes 0..13, rest zero) @ W1[z-rows]; the time term t*W1[t-row] is
    # already folded into b1_ref, so no t-injection is needed inside the kernel.
    h = jnp.dot(z_ref[...].astype(jnp.bfloat16), w1_ref[...],
                preferred_element_type=jnp.float32) + b1_ref[...]
    h = jnp.tanh(h.astype(jnp.bfloat16)) if bf16_act else jnp.tanh(h).astype(jnp.bfloat16)

    # Hidden block (num_layers - 1 = 1): Linear -> Tanh
    h = jnp.dot(h, w2_ref[...], preferred_element_type=jnp.float32) + b2_ref[...]
    h = jnp.tanh(h.astype(jnp.bfloat16)) if bf16_act else jnp.tanh(h).astype(jnp.bfloat16)

    # Output Linear: only the 14 kept columns are packed, padded output lanes stay
    # exactly zero (no mask multiply, padded layout is closed under the forward map).
    o_ref[...] = jnp.dot(h, w3_ref[...], preferred_element_type=jnp.float32) + b3_ref[...]


# ------------------------------------------------------------------ one-time packing
def pack_params(w1, b1, w2, b2, w3, b3):
    """One-time host-side packing of nn.Linear params (in_features, out_features)."""
    w1 = jnp.asarray(w1, jnp.float32)
    w3 = jnp.asarray(w3, jnp.float32)
    w1_z = jnp.zeros((LANE, HIDDEN_DIM), jnp.bfloat16).at[:OUTPUT_DIM, :].set(
        w1[1:NET_IN, :].astype(jnp.bfloat16))                        # rows for z features
    w3_p = jnp.zeros((HIDDEN_DIM, LANE), jnp.bfloat16).at[:, :OUTPUT_DIM].set(
        w3[:, :OUTPUT_DIM].astype(jnp.bfloat16))                     # kept output columns
    b3_p = jnp.zeros((1, LANE), jnp.float32).at[0, :OUTPUT_DIM].set(
        jnp.asarray(b3, jnp.float32)[:OUTPUT_DIM])
    return {
        "w1_z": w1_z,                                                # (128, 1024) bf16
        "w1_t": w1[0, :].astype(jnp.float32),                        # (1024,) f32, t row
        "b1":   jnp.asarray(b1, jnp.float32).reshape(HIDDEN_DIM),    # (1024,) f32
        "w2":   jnp.asarray(w2, jnp.bfloat16),                       # (1024, 1024) bf16
        "b2":   jnp.asarray(b2, jnp.float32).reshape(1, HIDDEN_DIM), # (1, 1024) f32
        "w3":   w3_p,                                                # (1024, 128) bf16
        "b3":   b3_p,                                                # (1, 128) f32
    }


# -------------------------------------------------------------------- pallas wrapper
def _forward_padded_impl(packed, t_vec, z3d, *, batch_tile, bf16_act):
    """z3d: (E, Bp, 128) f32 padded states, t_vec: (E,) -> (E, Bp, 128) f32 outputs."""
    E, Bp, _ = z3d.shape
    n_tiles = Bp // batch_tile

    # Fold t into the first-layer bias: b1_eff = b1 + t * W1[t-row]   (tiny per-call op)
    b1_eff = (packed["b1"][None, :] +
              t_vec[:, None] * packed["w1_t"][None, :]).reshape(E, 1, HIDDEN_DIM)

    weight_bytes = 2 * (LANE * HIDDEN_DIM + HIDDEN_DIM * HIDDEN_DIM + HIDDEN_DIM * LANE)
    cost = pl.CostEstimate(
        flops=2 * E * Bp * (LANE * HIDDEN_DIM + HIDDEN_DIM * HIDDEN_DIM + HIDDEN_DIM * LANE),
        transcendentals=2 * E * Bp * HIDDEN_DIM,
        bytes_accessed=weight_bytes + 4 * (E * HIDDEN_DIM + HIDDEN_DIM + LANE)
                       + 4 * 2 * E * Bp * LANE)

    kernel = functools.partial(_aug_odefunc_kernel, bf16_act=bf16_act)
    return pl.pallas_call(
        kernel,
        out_shape=jax.ShapeDtypeStruct((E, Bp, LANE), jnp.float32),
        grid=(E, n_tiles),
        in_specs=[
            pl.BlockSpec((None, batch_tile, LANE), lambda e, i: (e, i, 0)),    # z tile
            pl.BlockSpec((LANE, HIDDEN_DIM), lambda e, i: (0, 0)),             # W1 (z rows, resident)
            pl.BlockSpec((None, 1, HIDDEN_DIM), lambda e, i: (e, 0, 0)),       # b1 + t*W1[t row]
            pl.BlockSpec((HIDDEN_DIM, HIDDEN_DIM), lambda e, i: (0, 0)),       # W2 (resident)
            pl.BlockSpec((1, HIDDEN_DIM), lambda e, i: (0, 0)),                # b2 (resident)
            pl.BlockSpec((HIDDEN_DIM, LANE), lambda e, i: (0, 0)),             # W3 (resident)
            pl.BlockSpec((1, LANE), lambda e, i: (0, 0)),                      # b3 (resident)
        ],
        out_specs=pl.BlockSpec((None, batch_tile, LANE), lambda e, i: (e, i, 0)),
        compiler_params=pltpu.CompilerParams(
            dimension_semantics=("parallel", "parallel")),                     # v7x: 2 TCs
        cost_estimate=cost,
    )(z3d, packed["w1_z"], b1_eff, packed["w2"], packed["b2"],
      packed["w3"], packed["b3"])


def augmented_ode_func_forward_padded(packed, t, z_pad, *, batch_tile=None, bf16_act=None):
    """Hot-path forward on padded state.

    z_pad: (Bp, 128) with z in lanes 0..13 (t scalar), or (E, Bp, 128) with t of shape
    (E,) for a fused multi-evaluation call (weights DMA'd HBM->VMEM only once).
    Returns padded outputs of the same shape; lanes 14..127 stay exactly zero, so the
    result can be fed straight back in as the next padded state.
    """
    if bf16_act is None:
        bf16_act = _V6_PLUS
    single = (z_pad.ndim == 2)
    z3d = z_pad[None] if single else z_pad
    t_vec = jnp.asarray(t, jnp.float32).reshape(z3d.shape[0])
    tile = batch_tile or _pick_batch_tile(z3d.shape[1])
    out = _forward_padded_impl(packed, t_vec, z3d, batch_tile=tile, bf16_act=bf16_act)
    return out[0] if single else out


def pad_state(z, batch_tile=None):
    """(B, 14) -> ((Bp, 128) padded canonical layout, B)."""
    B = z.shape[0]
    tile = batch_tile or (_DEF_TILE if B >= _DEF_TILE else 128)
    Bp = pl.cdiv(B, tile) * tile
    z_pad = jnp.zeros((Bp, LANE), jnp.float32).at[:B, :OUTPUT_DIM].set(z.astype(jnp.float32))
    return z_pad, B


def unpad_state(z_pad, B):
    return z_pad[:B, :OUTPUT_DIM]


def augmented_ode_func_forward(packed, t, z):
    """Convenience AugmentedODEFunc.forward(t, z): (B, 14) -> (B, 14) f32.

    For solver loops, prefer pad_state once + augmented_ode_func_forward_padded per
    step (or the fused multi-eval form) + unpad_state once at the end.
    """
    z_pad, B = pad_state(z)
    out_pad = augmented_ode_func_forward_padded(packed, t, z_pad, batch_tile=z_pad.shape[0]
                                                if z_pad.shape[0] <= 128 else None)
    return unpad_state(out_pad, B)


# ----------------------------------------------------------------------- test helpers
def init_params(key):
    """Deterministic init mimicking nn.Linear's U(-1/sqrt(fan_in), 1/sqrt(fan_in))."""
    def linear(k, fan_in, fan_out):
        kw, kb = jax.random.split(k)
        bound = 1.0 / float(fan_in) ** 0.5
        w = jax.random.uniform(kw, (fan_in, fan_out), jnp.float32, -bound, bound)
        b = jax.random.uniform(kb, (fan_out,), jnp.float32, -bound, bound)
        return w, b
    k1, k2, k3 = jax.random.split(key, 3)
    w1, b1 = linear(k1, NET_IN, HIDDEN_DIM)
    w2, b2 = linear(k2, HIDDEN_DIM, HIDDEN_DIM)
    w3, b3 = linear(k3, HIDDEN_DIM, NET_IN)
    return (w1, b1, w2, b2, w3, b3)


def reference_forward(params, t, z):
    """Pure-JAX f32 reference of AugmentedODEFunc.forward (correctness check)."""
    w1, b1, w2, b2, w3, b3 = params
    t_vec = jnp.full((z.shape[0], 1), t, jnp.float32)
    x = jnp.concatenate([t_vec, z.astype(jnp.float32)], axis=1)
    h = jnp.tanh(x @ w1 + b1)
    h = jnp.tanh(h @ w2 + b2)
    o = h @ w3 + b3
    return o[:, :OUTPUT_DIM]


if __name__ == "__main__":
    key = jax.random.PRNGKey(0)
    kp, kz, km = jax.random.split(key, 3)
    params = init_params(kp)
    packed = pack_params(*params)          # one-time packing, hoisted out of the hot path

    # ---- single forward evaluation (module semantics) --------------------------------
    B = 2
    z = jax.random.normal(kz, (B, OUTPUT_DIM), jnp.float32)   # (2, 14) augmented state
    t = jnp.float32(0.5)

    out = jax.block_until_ready(augmented_ode_func_forward(packed, t, z))
    ref = reference_forward(params, t, z)
    assert out.shape == (B, OUTPUT_DIM), out.shape
    max_err = float(jnp.max(jnp.abs(out - ref)))
    # bf16 weight/operand rounding vs. the f32 reference.
    assert jnp.allclose(out, ref, atol=2.5e-2, rtol=2.5e-2), max_err

    # ---- fused multi-evaluation on the padded canonical layout -----------------------
    # (weights DMA'd once for all evaluations; padded output lanes stay zero so it can
    # be fed straight back in as the next solver state)
    # TODO(synk): an actual ODE solver step loop (odeint) lives outside this module.
    E = 3
    ts = jnp.linspace(0.0, 1.0, E).astype(jnp.float32)
    zs = jax.random.normal(km, (E, B, OUTPUT_DIM), jnp.float32)
    z_pad = jnp.zeros((E, 128, LANE), jnp.float32).at[:, :B, :OUTPUT_DIM].set(zs)
    out_pad = jax.block_until_ready(augmented_ode_func_forward_padded(packed, ts, z_pad))
    assert out_pad.shape == (E, 128, LANE)
    for e in range(E):
        ref_e = reference_forward(params, ts[e], zs[e])
        assert jnp.allclose(out_pad[e, :B, :OUTPUT_DIM], ref_e, atol=2.5e-2, rtol=2.5e-2)
        # padded lanes remain exactly zero -> padded layout is closed under the forward map
        assert float(jnp.max(jnp.abs(out_pad[e, :, OUTPUT_DIM:]))) == 0.0

    print("KERNEL_OK")
</pallas_src>

<mosaic_0001>
module attributes {stable_mosaic.version = 11 : i64} {
  func.func @_aug_odefunc_kernel(%arg0: i32, %arg1: i32, %arg2: memref<1x128x128xf32, #tpu.memory_space<vmem>>, %arg3: memref<128x1024xbf16, #tpu.memory_space<vmem>>, %arg4: memref<1x1x1024xf32, #tpu.memory_space<vmem>>, %arg5: memref<1024x1024xbf16, #tpu.memory_space<vmem>>, %arg6: memref<1x1024xf32, #tpu.memory_space<vmem>>, %arg7: memref<1024x128xbf16, #tpu.memory_space<vmem>>, %arg8: memref<1x128xf32, #tpu.memory_space<vmem>>, %arg9: memref<1x128x128xf32, #tpu.memory_space<vmem>>) attributes {dimension_semantics = [#tpu.dimension_semantics<parallel>, #tpu.dimension_semantics<parallel>], iteration_bounds = array<i64: 1, 1>, scalar_prefetch = 0 : i64, scratch_operands = 0 : i64, tpu.core_type = #tpu.core_type<tc>, window_params = [{transform_indices = @transform_0, window_bounds = array<i64: 1, 128, 128>}, {pipeline_mode = #tpu.pipeline_mode<synchronous>, transform_indices = @transform_1, window_bounds = array<i64: 128, 1024>}, {transform_indices = @transform_2, window_bounds = array<i64: 1, 1, 1024>}, {pipeline_mode = #tpu.pipeline_mode<synchronous>, transform_indices = @transform_3, window_bounds = array<i64: 1024, 1024>}, {pipeline_mode = #tpu.pipeline_mode<synchronous>, transform_indices = @transform_4, window_bounds = array<i64: 1, 1024>}, {pipeline_mode = #tpu.pipeline_mode<synchronous>, transform_indices = @transform_5, window_bounds = array<i64: 1024, 128>}, {pipeline_mode = #tpu.pipeline_mode<synchronous>, transform_indices = @transform_6, window_bounds = array<i64: 1, 128>}, {transform_indices = @transform_7, window_bounds = array<i64: 1, 128, 128>}]} {
    %c0 = arith.constant 0 : index
    %c0_0 = arith.constant 0 : index
    %c0_1 = arith.constant 0 : index
    %0 = vector.load %arg2[%c0, %c0_0, %c0_1] : memref<1x128x128xf32, #tpu.memory_space<vmem>>, vector<1x128x128xf32>
    %1 = vector.shape_cast %0 : vector<1x128x128xf32> to vector<128x128xf32>
    %2 = arith.truncf %1 : vector<128x128xf32> to vector<128x128xbf16>
    %c0_2 = arith.constant 0 : index
    %c0_3 = arith.constant 0 : index
    %3 = vector.load %arg3[%c0_2, %c0_3] : memref<128x1024xbf16, #tpu.memory_space<vmem>>, vector<128x1024xbf16>
    %cst = arith.constant dense<0.000000e+00> : vector<128x1024xf32>
    %4 = tpu.matmul %2, %3, %cst {dimension_numbers = #tpu.dot_dimension_numbers<[1], [0], [0], [1], [0, 0, 1, 1], [], []>} : vector<128x128xbf16>, vector<128x1024xbf16>, vector<128x1024xf32> -> vector<128x1024xf32>
    %c0_4 = arith.constant 0 : index
    %c0_5 = arith.constant 0 : index
    %c0_6 = arith.constant 0 : index
    %5 = vector.load %arg4[%c0_4, %c0_5, %c0_6] : memref<1x1x1024xf32, #tpu.memory_space<vmem>>, vector<1x1x1024xf32>
    %6 = vector.shape_cast %5 : vector<1x1x1024xf32> to vector<1x1024xf32>
    %7 = vector.broadcast %6 : vector<1x1024xf32> to vector<128x1024xf32>
    %8 = arith.addf %4, %7 : vector<128x1024xf32>
    %9 = math.tanh %8 : vector<128x1024xf32>
    %10 = arith.truncf %9 : vector<128x1024xf32> to vector<128x1024xbf16>
    %c0_7 = arith.constant 0 : index
    %c0_8 = arith.constant 0 : index
    %11 = vector.load %arg5[%c0_7, %c0_8] : memref<1024x1024xbf16, #tpu.memory_space<vmem>>, vector<1024x1024xbf16>
    %cst_9 = arith.constant dense<0.000000e+00> : vector<128x1024xf32>
    %12 = tpu.matmul %10, %11, %cst_9 {dimension_numbers = #tpu.dot_dimension_numbers<[1], [0], [0], [1], [0, 0, 1, 1], [], []>} : vector<128x1024xbf16>, vector<1024x1024xbf16>, vector<128x1024xf32> -> vector<128x1024xf32>
    %c0_10 = arith.constant 0 : index
    %c0_11 = arith.constant 0 : index
    %13 = vector.load %arg6[%c0_10, %c0_11] : memref<1x1024xf32, #tpu.memory_space<vmem>>, vector<1x1024xf32>
    %14 = vector.broadcast %13 : vector<1x1024xf32> to vector<128x1024xf32>
    %15 = arith.addf %12, %14 : vector<128x1024xf32>
    %16 = math.tanh %15 : vector<128x1024xf32>
    %17 = arith.truncf %16 : vector<128x1024xf32> to vector<128x1024xbf16>
    %c0_12 = arith.constant 0 : index
    %c0_13 = arith.constant 0 : index
    %18 = vector.load %arg7[%c0_12, %c0_13] : memref<1024x128xbf16, #tpu.memory_space<vmem>>, vector<1024x128xbf16>
    %cst_14 = arith.constant dense<0.000000e+00> : vector<128x128xf32>
    %19 = tpu.matmul %17, %18, %cst_14 {dimension_numbers = #tpu.dot_dimension_numbers<[1], [0], [0], [1], [0, 0, 1, 1], [], []>} : vector<128x1024xbf16>, vector<1024x128xbf16>, vector<128x128xf32> -> vector<128x128xf32>
    %c0_15 = arith.constant 0 : index
    %c0_16 = arith.constant 0 : index
    %20 = vector.load %arg8[%c0_15, %c0_16] : memref<1x128xf32, #tpu.memory_space<vmem>>, vector<1x128xf32>
    %21 = vector.broadcast %20 : vector<1x128xf32> to vector<128x128xf32>
    %22 = arith.addf %19, %21 : vector<128x128xf32>
    %c0_17 = arith.constant 0 : index
    %c0_18 = arith.constant 0 : index
    %c0_19 = arith.constant 0 : index
    %23 = vector.load %arg9[%c0_17, %c0_18, %c0_19] : memref<1x128x128xf32, #tpu.memory_space<vmem>>, vector<1x128x128xf32>
    %24 = vector.shape_cast %23 : vector<1x128x128xf32> to vector<128x128xf32>
    %25 = vector.shape_cast %22 : vector<128x128xf32> to vector<1x128x128xf32>
    tpu.vector_store %arg9[%c0_17, %c0_18, %c0_19], %25 {strides = array<i32>} : memref<1x128x128xf32, #tpu.memory_space<vmem>>, vector<1x128x128xf32>,
    return
  }
  func.func @transform_0(%arg0: i32, %arg1: i32) -> (i32, i32, i32) {
    %c0_i32 = arith.constant 0 : i32
    %c0_i32_0 = arith.constant 0 : i32
    return %arg0, %arg1, %c0_i32 : i32, i32, i32
  }
  func.func @transform_1(%arg0: i32, %arg1: i32) -> (i32, i32) {
    %c0_i32 = arith.constant 0 : i32
    %c0_i32_0 = arith.constant 0 : i32
    %c0_i32_1 = arith.constant 0 : i32
    return %c0_i32, %c0_i32_0 : i32, i32
  }
  func.func @transform_2(%arg0: i32, %arg1: i32) -> (i32, i32, i32) {
    %c0_i32 = arith.constant 0 : i32
    %c0_i32_0 = arith.constant 0 : i32
    %c0_i32_1 = arith.constant 0 : i32
    return %arg0, %c0_i32, %c0_i32_0 : i32, i32, i32
  }
  func.func @transform_3(%arg0: i32, %arg1: i32) -> (i32, i32) {
    %c0_i32 = arith.constant 0 : i32
    %c0_i32_0 = arith.constant 0 : i32
    %c0_i32_1 = arith.constant 0 : i32
    return %c0_i32, %c0_i32_0 : i32, i32
  }
  func.func @transform_4(%arg0: i32, %arg1: i32) -> (i32, i32) {
    %c0_i32 = arith.constant 0 : i32
    %c0_i32_0 = arith.constant 0 : i32
    %c0_i32_1 = arith.constant 0 : i32
    return %c0_i32, %c0_i32_0 : i32, i32
  }
  func.func @transform_5(%arg0: i32, %arg1: i32) -> (i32, i32) {
    %c0_i32 = arith.constant 0 : i32
    %c0_i32_0 = arith.constant 0 : i32
    %c0_i32_1 = arith.constant 0 : i32
    return %c0_i32, %c0_i32_0 : i32, i32
  }
  func.func @transform_6(%arg0: i32, %arg1: i32) -> (i32, i32) {
    %c0_i32 = arith.constant 0 : i32
    %c0_i32_0 = arith.constant 0 : i32
    %c0_i32_1 = arith.constant 0 : i32
    return %c0_i32, %c0_i32_0 : i32, i32
  }
  func.func @transform_7(%arg0: i32, %arg1: i32) -> (i32, i32, i32) {
    %c0_i32 = arith.constant 0 : i32
    %c0_i32_0 = arith.constant 0 : i32
    return %arg0, %arg1, %c0_i32 : i32, i32, i32
  }
}

</mosaic_0001>

<bundles_post_ra>
// kernel: tpu_custom_call.1
= control target key start
LH: loop header
LB: loop body
LE: loop exit
PB: predicated region body
PF: predicated region fallthrough
CT: control target
= control target key end

     0   :  { %12 = vsyncpa [#allocation3], 0  ;;  %s14568_s0 = inlined_call_operand.hbm [shape: f32[1,128,128], index: 0, kind: input, shape index: {}]   ;;  %s14569_s1 = inlined_call_operand.hbm [shape: bf16[128,1024], index: 1, kind: input, shape index: {}]   ;;  %s14570_s2 = inlined_call_operand.hbm [shape: f32[1,1,1024], index: 2, kind: input, shape index: {}]   ;;  %s14571_s3 = inlined_call_operand.hbm [shape: bf16[1024,1024], index: 3, kind: input, shape index: {}]   ;;  %s14572_s4 = inlined_call_operand.hbm [shape: f32[1,1024], index: 4, kind: input, shape index: {}]   ;;  %s14573_s5 = inlined_call_operand.hbm [shape: bf16[1024,128], index: 5, kind: input, shape index: {}]   ;;  %s14574_s6 = inlined_call_operand.hbm [shape: f32[1,128], index: 6, kind: input, shape index: {}]   ;;  %s14575_s7 = inlined_call_operand.hbm [shape: f32[1,128,128], index: 7, kind: output, shape index: {}]  }
   0x1   :  { %13 = vsyncpa [#allocation6], 0 }
   0x2   :  { %14 = vsyncpa [#allocation9], 0 }
   0x3   :  { %15 = vsyncpa [#allocation12], 0  ;;  %s34_s26 = sshll.u32 %s14569_s1, 4  ;;  %s35_s26 = int_to_ptr.hbm [resolvable:$true] %s34_s26 }
   0x4   :  { %16 = vsyncpa [#allocation4], 0  ;;  %s12440_s27 = smov [#allocation5]   ;;  %s58_s8 = sshll.u32 %s14571_s3, 4  ;;  %s59_s8 = int_to_ptr.hbm [resolvable:$true] %s58_s8 }
   0x5   :  { %s36_s28 = sshll.u32 %s12440_s27, 4  ;;  %s12441_s9 = smov 512   ;;  %s37_s28 = int_to_ptr.vmem [resolvable:$true] %s36_s28 }
   0x6   :  { %s12442_s10 = smov 32   ;;  %s12443_s11 = smov [#allocation8]  }
   0x7   :  { %42 = dma.hbm_to_vmem [thread:$0]  %s35_s26, 8192, %s37_s28, [#allocation6], %s12441_s9, %s12441_s9, %s12442_s10  }
   0x8   :  { %s60_s12 = sshll.u32 %s12443_s11, 4  ;;  %s82_s15 = sshll.u32 %s14573_s5, 4  ;;  %s61_s12 = int_to_ptr.vmem [resolvable:$true] %s60_s12  ;;  %s83_s15 = int_to_ptr.hbm [resolvable:$true] %s82_s15 }
   0x9   :  { %66 = dma.hbm_to_vmem [thread:$0]  %s59_s8, 65536, %s61_s12, [#allocation9], %s12441_s9, %s12441_s9, %s12442_s10  }
   0xa   :  { %s12444_s1 = smov [#allocation11]   ;;  %s21_s3 = sshll.u32 %s14568_s0, 4  ;;  %s22_s3 = int_to_ptr.hbm [resolvable:$true] %s21_s3 }
   0xb   :  { %s84_s16 = sshll.u32 %s12444_s1, 4  ;;  %s12445_s19 = smov 64   ;;  %s85_s16 = int_to_ptr.vmem [resolvable:$true] %s84_s16 }
   0xc   :  { %s12446_s20 = smov 4   ;;  %s12447_s21 = smov [#allocation2]  }
   0xd   :  { %90 = dma.hbm_to_vmem [thread:$0]  %s83_s15, 8192, %s85_s16, [#allocation12], %s12445_s19, %s12445_s19, %s12446_s20  }
   0xe   :  { %s23_s22 = sshll.u32 %s12447_s21, 4  ;;  %s12448_s23 = smov 128   ;;  %s24_s22 = int_to_ptr.vmem [resolvable:$true] %s23_s22 }
   0xf   :  { %s12449_s24 = smov 8   ;;  %s48_s26 = sshll.u32 %s14570_s2, 4  ;;  %s49_s26 = int_to_ptr.hbm [resolvable:$true] %s48_s26 }
  0x10   :  { %29 = dma.hbm_to_vmem [thread:$0]  %s22_s3, 2048, %s24_s22, [#allocation3], %s12448_s23, %s12448_s23, %s12449_s24  }
  0x11   :  { %s12450_s27 = smov [#allocation7]   ;;  %s72_s30 = sshll.u32 %s14572_s4, 4  ;;  %s73_s30 = int_to_ptr.hbm [resolvable:$true] %s72_s30 }
  0x12   :  { %s50_s0 = sshll.u32 %s12450_s27, 4  ;;  %s12451_s8 = smov [#allocation10]   ;;  %s51_s0 = int_to_ptr.vmem [resolvable:$true] %s50_s0 }
  0x13   :  { %53 = dma.hbm_to_vmem [thread:$0]  %s49_s26, 128, %s51_s0, [#allocation6]  }
  0x14   :  { %s74_s9 = sshll.u32 %s12451_s8, 4  ;;  %s96_s12 = sshll.u32 %s14574_s6, 4  ;;  %s75_s9 = int_to_ptr.vmem [resolvable:$true] %s74_s9  ;;  %s97_s12 = int_to_ptr.hbm [resolvable:$true] %s96_s12 }
  0x15   :  { %77 = dma.hbm_to_vmem [thread:$0]  %s73_s30, 128, %s75_s9, [#allocation9]  }
  0x16   :  { %s12452_s2 = smov [#allocation13]  }
  0x17   :  { %s98_s13 = sshll.u32 %s12452_s2, 4  ;;  %s99_s13 = int_to_ptr.vmem [resolvable:$true] %s98_s13 }
  0x18   :  { %101 = dma.hbm_to_vmem [thread:$0]  %s97_s12, 16, %s99_s13, [#allocation12]  }
  0x19   :  { %12430 = dma.done.wait [#allocation3], 2048  }
  0x1a   :  { %12431 = vsyncadd [#allocation3], 4294965248 }
  0x1b   :  { %12432 = dma.done.wait [#allocation6], 8320  }
  0x1c   :  { %12433 = vsyncadd [#allocation6], 4294958976 }
  0x1d   :  { %12434 = dma.done.wait [#allocation9], 65664  }
  0x1e   :  { %12435 = vsyncadd [#allocation9], 4294901632 }
  0x1f   :  { %12436 = dma.done.wait [#allocation12], 8208  }
  0x20   :  { %12437 = vsyncadd [#allocation12], 4294959088  ;;  %v8730_v0 = vld [vmem:[#allocation5 + $0x1c0] sm:$0xf]  ;;  %v11120_v2 = vld [vmem:[#allocation5 + $0x1c4] sm:$0xf] }
  0x21   :  { %v11124_v1 = vld [vmem:[#allocation5 + $0x1dc] sm:$0xf0]  ;;  %v8732_v4 = vld [vmem:[#allocation5 + $0x1e0] sm:$0xf0]  ;;  %v8738_v5 = vld [vmem:[#allocation5 + $0x1c8] sm:$0xf] }
  0x22   :  { %v8731_v3 = vor.u32 %v11124_v1, %v8730_v0  ;;  %v11125_v6 = vld [vmem:[#allocation5 + $0x1e4] sm:$0xf0]  ;;  %v8735_v7 = vor.u32 %v11120_v2, %v8732_v4  ;;  %v11121_v9 = vld [vmem:[#allocation5 + $0x1cc] sm:$0xf]  ;;  %v8698_v11 = vld [vmem:[#allocation5 + $0x180] sm:$0xf] }
  0x23   :  { %v8739_v8 = vor.u32 %v11125_v6, %v8738_v5  ;;  %v8740_v10 = vld [vmem:[#allocation5 + $0x1e8] sm:$0xf0]  ;;  %v11116_v13 = vld [vmem:[#allocation5 + $0x19c] sm:$0xf0]  ;;  %v11112_v14 = vld [vmem:[#allocation5 + $0x184] sm:$0xf] }
  0x24   :  { %556 = vmatpush.bf16.msra.mxu0 %v8731_v3  ;;  %v8743_v12 = vor.u32 %v11121_v9, %v8740_v10  ;;  %v8700_v15 = vld [vmem:[#allocation5 + $0x1a0] sm:$0xf0]  ;;  %605 = vmatpush.bf16.msra.mxu1 %v8735_v7  ;;  %v8699_v16 = vor.u32 %v11116_v13, %v8698_v11  ;;  %v8706_v18 = vld [vmem:[#allocation5 + $0x188] sm:$0xf]  ;;  %v11113_v20 = vld [vmem:[#allocation5 + $0x18c] sm:$0xf] }
  0x25   :  { %654 = vmatpush.bf16.msra.mxu2 %v8739_v8  ;;  %v8703_v17 = vor.u32 %v11112_v14, %v8700_v15  ;;  %v11117_v19 = vld [vmem:[#allocation5 + $0x1a4] sm:$0xf0]  ;;  %v8708_v22 = vld [vmem:[#allocation5 + $0x1a8] sm:$0xf0]  ;;  %v8666_v23 = vld [vmem:[#allocation5 + $0x140] sm:$0xf] }
  0x26   :  { %703 = vmatpush.bf16.msra.mxu3 %v8743_v12  ;;  %v8707_v21 = vor.u32 %v11117_v19, %v8706_v18  ;;  %v11108_v24 = vld [vmem:[#allocation5 + $0x15c] sm:$0xf0]  ;;  %v8711_v25 = vor.u32 %v11113_v20, %v8708_v22  ;;  %v11104_v26 = vld [vmem:[#allocation5 + $0x144] sm:$0xf]  ;;  %v8674_v28 = vld [vmem:[#allocation5 + $0x148] sm:$0xf] }
  0x27   :  { %v8668_v27 = vld [vmem:[#allocation5 + $0x160] sm:$0xf0]  ;;  %v8667_v29 = vor.u32 %v11108_v24, %v8666_v23  ;;  %v11109_v30 = vld [vmem:[#allocation5 + $0x164] sm:$0xf0]  ;;  %v11105_v31 = vld [vmem:[#allocation5 + $0x14c] sm:$0xf] }
  0x28   :  { %557 = vmatpush.bf16.msra.mxu0 %v8699_v16  ;;  %v8676_v32 = vld [vmem:[#allocation5 + $0x168] sm:$0xf0]  ;;  %606 = vmatpush.bf16.msra.mxu1 %v8703_v17  ;;  %v8671_v33 = vor.u32 %v11104_v26, %v8668_v27  ;;  %v8675_v34 = vor.u32 %v11109_v30, %v8674_v28  ;;  %v8634_v35 = vld [vmem:[#allocation5 + $0x100] sm:$0xf]  ;;  %v11096_v37 = vld [vmem:[#allocation5 + $0x104] sm:$0xf] }
  0x29   :  { %655 = vmatpush.bf16.msra.mxu2 %v8707_v21  ;;  %v11100_v36 = vld [vmem:[#allocation5 + $0x11c] sm:$0xf0]  ;;  %v8679_v38 = vor.u32 %v11105_v31, %v8676_v32  ;;  %v8636_v39 = vld [vmem:[#allocation5 + $0x120] sm:$0xf0]  ;;  %v8642_v40 = vld [vmem:[#allocation5 + $0x108] sm:$0xf] }
  0x2a   :  { %704 = vmatpush.bf16.msra.mxu3 %v8711_v25  ;;  %v11101_v41 = vld [vmem:[#allocation5 + $0x124] sm:$0xf0]  ;;  %v11097_v42 = vld [vmem:[#allocation5 + $0x10c] sm:$0xf]  ;;  %v8635_v44 = vor.u32 %v11100_v36, %v8634_v35  ;;  %v8639_v45 = vor.u32 %v11096_v37, %v8636_v39  ;;  %v8602_v47 = vld [vmem:[#allocation5 + $0xc0] sm:$0xf] }
  0x2b   :  { %v8644_v43 = vld [vmem:[#allocation5 + $0x128] sm:$0xf0]  ;;  %v8643_v46 = vor.u32 %v11101_v41, %v8642_v40  ;;  %v11092_v48 = vld [vmem:[#allocation5 + $0xdc] sm:$0xf0]  ;;  %v11088_v49 = vld [vmem:[#allocation5 + $0xc4] sm:$0xf] }
  0x2c   :  { %558 = vmatpush.bf16.msra.mxu0 %v8667_v29  ;;  %607 = vmatpush.bf16.msra.mxu1 %v8671_v33  ;;  %v8647_v50 = vor.u32 %v11097_v42, %v8644_v43  ;;  %v8604_v51 = vld [vmem:[#allocation5 + $0xe0] sm:$0xf0]  ;;  %v8610_v52 = vld [vmem:[#allocation5 + $0xc8] sm:$0xf]  ;;  %v11089_v54 = vld [vmem:[#allocation5 + $0xcc] sm:$0xf]  ;;  %v8603_v56 = vor.u32 %v11092_v48, %v8602_v47 }
  0x2d   :  { %656 = vmatpush.bf16.msra.mxu2 %v8675_v34  ;;  %v11093_v53 = vld [vmem:[#allocation5 + $0xe4] sm:$0xf0]  ;;  %v8612_v55 = vld [vmem:[#allocation5 + $0xe8] sm:$0xf0]  ;;  %v8607_v57 = vor.u32 %v11088_v49, %v8604_v51  ;;  %v8570_v59 = vld [vmem:[#allocation5 + $0x80] sm:$0xf] }
  0x2e   :  { %705 = vmatpush.bf16.msra.mxu3 %v8679_v38  ;;  %v8611_v58 = vor.u32 %v11093_v53, %v8610_v52  ;;  %v11084_v60 = vld [vmem:[#allocation5 + $0x9c] sm:$0xf0]  ;;  %v11080_v61 = vld [vmem:[#allocation5 + $0x84] sm:$0xf]  ;;  %v8615_v62 = vor.u32 %v11089_v54, %v8612_v55  ;;  %v8578_v0 = vld [vmem:[#allocation5 + $0x88] sm:$0xf] }
  0x2f   :  { %v8572_v63 = vld [vmem:[#allocation5 + $0xa0] sm:$0xf0]  ;;  %v11085_v1 = vld [vmem:[#allocation5 + $0xa4] sm:$0xf0]  ;;  %v11081_v2 = vld [vmem:[#allocation5 + $0x8c] sm:$0xf]  ;;  %v8571_v4 = vor.u32 %v11084_v60, %v8570_v59 }
  0x30   :  { %559 = vmatpush.bf16.msra.mxu0 %v8635_v44  ;;  %608 = vmatpush.bf16.msra.mxu1 %v8639_v45  ;;  %v8580_v3 = vld [vmem:[#allocation5 + $0xa8] sm:$0xf0]  ;;  %v8575_v5 = vor.u32 %v11080_v61, %v8572_v63  ;;  %v8579_v6 = vor.u32 %v11085_v1, %v8578_v0  ;;  %v8538_v7 = vld [vmem:[#allocation5 + $0x40] sm:$0xf]  ;;  %v11072_v9 = vld [vmem:[#allocation5 + $0x44] sm:$0xf] }
  0x31   :  { %657 = vmatpush.bf16.msra.mxu2 %v8643_v46  ;;  %v11076_v8 = vld [vmem:[#allocation5 + $0x5c] sm:$0xf0]  ;;  %v8583_v10 = vor.u32 %v11081_v2, %v8580_v3  ;;  %v8540_v11 = vld [vmem:[#allocation5 + $0x60] sm:$0xf0]  ;;  %v8546_v12 = vld [vmem:[#allocation5 + $0x48] sm:$0xf] }
  0x32   :  { %706 = vmatpush.bf16.msra.mxu3 %v8647_v50  ;;  %v11077_v13 = vld [vmem:[#allocation5 + $0x64] sm:$0xf0]  ;;  %v11073_v14 = vld [vmem:[#allocation5 + $0x4c] sm:$0xf]  ;;  %v8539_v16 = vor.u32 %v11076_v8, %v8538_v7  ;;  %v8506_v17 = vld [vmem:[#allocation5] sm:$0xf]  ;;  %v8543_v19 = vor.u32 %v11072_v9, %v8540_v11 }
  0x33   :  { %v8548_v15 = vld [vmem:[#allocation5 + $0x68] sm:$0xf0]  ;;  %v11068_v18 = vld [vmem:[#allocation5 + $0x1c] sm:$0xf0]  ;;  %v8547_v20 = vor.u32 %v11077_v13, %v8546_v12  ;;  %v11064_v21 = vld [vmem:[#allocation5 + $0x4] sm:$0xf] }
  0x34   :  { %560 = vmatpush.bf16.msra.mxu0 %v8603_v56  ;;  %609 = vmatpush.bf16.msra.mxu1 %v8607_v57  ;;  %v8508_v22 = vld [vmem:[#allocation5 + $0x20] sm:$0xf0]  ;;  %v8514_v23 = vld [vmem:[#allocation5 + $0x8] sm:$0xf]  ;;  %v8551_v24 = vor.u32 %v11073_v14, %v8548_v15  ;;  %v11065_v26 = vld [vmem:[#allocation5 + $0xc] sm:$0xf]  ;;  %v8507_v31 = vor.u32 %v11068_v18, %v8506_v17 }
  0x35   :  { %658 = vmatpush.bf16.msra.mxu2 %v8611_v58  ;;  %v11069_v25 = vld [vmem:[#allocation5 + $0x24] sm:$0xf0]  ;;  %v8516_v27 = vld [vmem:[#allocation5 + $0x28] sm:$0xf0]  ;;  %v130_v28 = vld [vmem:[#allocation2] sm:$0xff]  ;;  %v8511_v35 = vor.u32 %v11064_v21, %v8508_v22  ;;  %s12453_s4 = smov [#allocation14]  }
  0x36   :  { %707 = vmatpush.bf16.msra.mxu3 %v8615_v62  ;;  %v8754_v29 = vld [vmem:[#allocation5 + $0x1d8] sm:$0xf]  ;;  %v131_v32 = vld [vmem:[#allocation2 + $0x8] sm:$0xff]  ;;  %v11123_v33 = vld [vmem:[#allocation5 + $0x1dc] sm:$0xf]  ;;  %v8515_v36 = vor.u32 %v11069_v25, %v8514_v23  ;;  %v8519_v37 = vor.u32 %v11065_v26, %v8516_v27  ;;  %s8486_s6 = sshll.u32 %s12453_s4, 4  ;;  %s8487_s6 = int_to_ptr.vmem [resolvable:$true] %s8486_s6 }
  0x37   :  { %v11127_v30 = vld [vmem:[#allocation5 + $0x1f4] sm:$0xf0]  ;;  %v8756_v34 = vld [vmem:[#allocation5 + $0x1f8] sm:$0xf0]  ;;  %v8746_v39 = vld [vmem:[#allocation5 + $0x1d0] sm:$0xf]  ;;  %v12518_v42 = vpack.c.bf16 %v131_v32, %v130_v28 }
  0x38   :  { %561 = vmatpush.bf16.msra.mxu0 %v8571_v4  ;;  %610 = vmatpush.bf16.msra.mxu1 %v8575_v5  ;;  %v8755_v38 = vor.u32 %v11127_v30, %v8754_v29  ;;  %v11126_v40 = vld [vmem:[#allocation5 + $0x1ec] sm:$0xf0]  ;;  %v11122_v41 = vld [vmem:[#allocation5 + $0x1d4] sm:$0xf]  ;;  %v8759_v43 = vor.u32 %v11123_v33, %v8756_v34  ;;  %v8722_v45 = vld [vmem:[#allocation5 + $0x198] sm:$0xf] }
  0x39   :  { %659 = vmatpush.bf16.msra.mxu2 %v8579_v6  ;;  %v8748_v44 = vld [vmem:[#allocation5 + $0x1f0] sm:$0xf0]  ;;  %v11119_v46 = vld [vmem:[#allocation5 + $0x1b4] sm:$0xf0]  ;;  %v11115_v47 = vld [vmem:[#allocation5 + $0x19c] sm:$0xf]  ;;  %v8747_v49 = vor.u32 %v11126_v40, %v8746_v39 }
  0x3a   :  { %708 = vmatpush.bf16.msra.mxu3 %v8583_v10  ;;  %v8724_v48 = vld [vmem:[#allocation5 + $0x1b8] sm:$0xf0]  ;;  %v8751_v50 = vor.u32 %v11122_v41, %v8748_v44  ;;  %v8723_v51 = vor.u32 %v11119_v46, %v8722_v45  ;;  %v8714_v52 = vld [vmem:[#allocation5 + $0x190] sm:$0xf]  ;;  %v11114_v55 = vld [vmem:[#allocation5 + $0x194] sm:$0xf] }
  0x3b   :  { %v11118_v53 = vld [vmem:[#allocation5 + $0x1ac] sm:$0xf0]  ;;  %v8727_v54 = vor.u32 %v11115_v47, %v8724_v48  ;;  %v8716_v56 = vld [vmem:[#allocation5 + $0x1b0] sm:$0xf0]  ;;  %v8690_v58 = vld [vmem:[#allocation5 + $0x158] sm:$0xf] }
  0x3c   :  { %562 = vmatpush.bf16.msra.mxu0 %v8539_v16  ;;  %611 = vmatpush.bf16.msra.mxu1 %v8543_v19  ;;  %v8715_v57 = vor.u32 %v11118_v53, %v8714_v52  ;;  %v11111_v59 = vld [vmem:[#allocation5 + $0x174] sm:$0xf0]  ;;  %v8682_v60 = vld [vmem:[#allocation5 + $0x150] sm:$0xf]  ;;  %v8719_v61 = vor.u32 %v11114_v55, %v8716_v56  ;;  %v11107_v0 = vld [vmem:[#allocation5 + $0x15c] sm:$0xf] }
  0x3d   :  { %660 = vmatpush.bf16.msra.mxu2 %v8547_v20  ;;  %v8691_v62 = vor.u32 %v11111_v59, %v8690_v58  ;;  %v11110_v63 = vld [vmem:[#allocation5 + $0x16c] sm:$0xf0]  ;;  %v8692_v1 = vld [vmem:[#allocation5 + $0x178] sm:$0xf0]  ;;  %v11106_v3 = vld [vmem:[#allocation5 + $0x154] sm:$0xf] }
  0x3e   :  { %709 = vmatpush.bf16.msra.mxu3 %v8551_v24  ;;  %v8695_v2 = vor.u32 %v11107_v0, %v8692_v1  ;;  %v8684_v4 = vld [vmem:[#allocation5 + $0x170] sm:$0xf0]  ;;  %v8683_v5 = vor.u32 %v11110_v63, %v8682_v60  ;;  %v133_v8 = vld [vmem:[#allocation2 + $0x18] sm:$0xff]  ;;  %v8650_v12 = vld [vmem:[#allocation5 + $0x110] sm:$0xf]  ;;  %s8488_s1 = sshll.u32 %s14575_s7, 4  ;;  %s8489_s1 = int_to_ptr.hbm [resolvable:$true] %s8488_s1 }
  0x3f   :  { %v8687_v6 = vor.u32 %v11106_v3, %v8684_v4  ;;  %v132_v7 = vld [vmem:[#allocation2 + $0x10] sm:$0xff]  ;;  %v8658_v10 = vld [vmem:[#allocation5 + $0x118] sm:$0xf]  ;;  %v11099_v15 = vld [vmem:[#allocation5 + $0x11c] sm:$0xf] }
  0x40   :  { %563 = vmatpush.bf16.msra.mxu0 %v8507_v31  ;;  %612 = vmatpush.bf16.msra.mxu1 %v8511_v35  ;;  %v12524_v9 = vpack.c.bf16 %v133_v8, %v132_v7  ;;  %v11103_v11 = vld [vmem:[#allocation5 + $0x134] sm:$0xf0]  ;;  %v11102_v14 = vld [vmem:[#allocation5 + $0x12c] sm:$0xf0]  ;;  %v8660_v16 = vld [vmem:[#allocation5 + $0x138] sm:$0xf0] }
  0x41   :  { %661 = vmatpush.bf16.msra.mxu2 %v8515_v36  ;;  %v8659_v13 = vor.u32 %v11103_v11, %v8658_v10  ;;  %v8651_v17 = vor.u32 %v11102_v14, %v8650_v12  ;;  %v8663_v18 = vor.u32 %v11099_v15, %v8660_v16  ;;  %v11098_v19 = vld [vmem:[#allocation5 + $0x114] sm:$0xf]  ;;  %v134_v22 = vld [vmem:[#allocation2 + $0x20] sm:$0xff]  ;;  %v135_v23 = vld [vmem:[#allocation2 + $0x28] sm:$0xff] }
  0x42   :  { %710 = vmatpush.bf16.msra.mxu3 %v8519_v37  ;;  %v8652_v20 = vld [vmem:[#allocation5 + $0x130] sm:$0xf0]  ;;  %v12530_v24 = vpack.c.bf16 %v135_v23, %v134_v22  ;;  %v8626_v25 = vld [vmem:[#allocation5 + $0xd8] sm:$0xf]  ;;  %v8618_v27 = vld [vmem:[#allocation5 + $0xd0] sm:$0xf] }
  0x43   :  { %564 = vmatmul.bf16.vlgmr.msra.gmra.mxu0 %v12518_v42  ;;  %613 = vmatmul.bf16.vlgmr.msra.gmra.mxu1 %v12518_v42  ;;  %v8655_v21 = vor.u32 %v11098_v19, %v8652_v20  ;;  %v11095_v26 = vld [vmem:[#allocation5 + $0xf4] sm:$0xf0]  ;;  %v11094_v29 = vld [vmem:[#allocation5 + $0xec] sm:$0xf0]  ;;  %v11091_v30 = vld [vmem:[#allocation5 + $0xdc] sm:$0xf] }
  0x44   :  { %662 = vmatmul.bf16.vlgmr.msra.gmra.mxu2 %v12518_v42  ;;  %752 = vmatpush.bf16.msrb.mxu0 %v8747_v49  ;;  %v8627_v28 = vor.u32 %v11095_v26, %v8626_v25  ;;  %v8628_v31 = vld [vmem:[#allocation5 + $0xf8] sm:$0xf0]  ;;  %v8619_v32 = vor.u32 %v11094_v29, %v8618_v27  ;;  %v11090_v34 = vld [vmem:[#allocation5 + $0xd4] sm:$0xf]  ;;  %v8594_v40 = vld [vmem:[#allocation5 + $0x98] sm:$0xf] }
  0x45   :  { %850 = vmatpush.bf16.msrb.mxu2 %v8755_v38  ;;  %711 = vmatmul.bf16.vlgmr.msra.gmra.mxu3 %v12518_v42  ;;  %v8631_v33 = vor.u32 %v11091_v30, %v8628_v31  ;;  %v8620_v35 = vld [vmem:[#allocation5 + $0xf0] sm:$0xf0]  ;;  %v137_v38 = vld [vmem:[#allocation2 + $0x38] sm:$0xff]  ;;  %v11086_v45 = vld [vmem:[#allocation5 + $0xac] sm:$0xf0] }
  0x46   :  { %899 = vmatpush.bf16.msrb.mxu3 %v8759_v43  ;;  %801 = vmatpush.bf16.msrb.mxu1 %v8751_v50  ;;  %v8623_v36 = vor.u32 %v11090_v34, %v8620_v35  ;;  %v136_v37 = vld [vmem:[#allocation2 + $0x30] sm:$0xff]  ;;  %v11087_v41 = vld [vmem:[#allocation5 + $0xb4] sm:$0xf0]  ;;  %v11083_v46 = vld [vmem:[#allocation5 + $0x9c] sm:$0xf] }
  0x47   :  { %v12536_v39 = vpack.c.bf16 %v137_v38, %v136_v37  ;;  %v8586_v43 = vld [vmem:[#allocation5 + $0x90] sm:$0xf]  ;;  %v8595_v44 = vor.u32 %v11087_v41, %v8594_v40  ;;  %v8596_v47 = vld [vmem:[#allocation5 + $0xb8] sm:$0xf0]  ;;  %v11082_v50 = vld [vmem:[#allocation5 + $0x94] sm:$0xf] }
  0x48   :  { %753 = vmatpush.bf16.msrb.mxu0 %v8715_v57  ;;  %v8587_v48 = vor.u32 %v11086_v45, %v8586_v43  ;;  %v8599_v49 = vor.u32 %v11083_v46, %v8596_v47  ;;  %v138_v53 = vld [vmem:[#allocation2 + $0x40] sm:$0xff]  ;;  %v8562_v56 = vld [vmem:[#allocation5 + $0x58] sm:$0xf]  ;;  %v8554_v58 = vld [vmem:[#allocation5 + $0x50] sm:$0xf] }
  0x49   :  { %851 = vmatpush.bf16.msrb.mxu2 %v8723_v51  ;;  %v8588_v51 = vld [vmem:[#allocation5 + $0xb0] sm:$0xf0]  ;;  %v11079_v57 = vld [vmem:[#allocation5 + $0x74] sm:$0xf0]  ;;  %v11078_v60 = vld [vmem:[#allocation5 + $0x6c] sm:$0xf0] }
  0x4a   :  { %900 = vmatpush.bf16.msrb.mxu3 %v8727_v54  ;;  %802 = vmatpush.bf16.msrb.mxu1 %v8719_v61  ;;  %v8591_v52 = vor.u32 %v11082_v50, %v8588_v51  ;;  %v139_v54 = vld [vmem:[#allocation2 + $0x48] sm:$0xff]  ;;  %v8563_v59 = vor.u32 %v11079_v57, %v8562_v56  ;;  %v11075_v61 = vld [vmem:[#allocation5 + $0x5c] sm:$0xf]  ;;  %v8555_v63 = vor.u32 %v11078_v60, %v8554_v58  ;;  %v11074_v1 = vld [vmem:[#allocation5 + $0x54] sm:$0xf] }
  0x4b   :  { %v12542_v55 = vpack.c.bf16 %v139_v54, %v138_v53  ;;  %v140_v4 = vld [vmem:[#allocation2 + $0x50] sm:$0xff]  ;;  %v8530_v7 = vld [vmem:[#allocation5 + $0x18] sm:$0xf]  ;;  %v8532_v14 = vld [vmem:[#allocation5 + $0x38] sm:$0xf0] }
  0x4c   :  { %754 = vmatpush.bf16.msrb.mxu0 %v8683_v5  ;;  %v141_v5 = vld [vmem:[#allocation2 + $0x58] sm:$0xff]  ;;  %v8522_v10 = vld [vmem:[#allocation5 + $0x10] sm:$0xf]  ;;  %v142_v20 = vld [vmem:[#allocation2 + $0x60] sm:$0xff] }
  0x4d   :  { %852 = vmatpush.bf16.msrb.mxu2 %v8691_v62  ;;  %v8564_v62 = vld [vmem:[#allocation5 + $0x78] sm:$0xf0]  ;;  %v11071_v8 = vld [vmem:[#allocation5 + $0x34] sm:$0xf0]  ;;  %v11070_v12 = vld [vmem:[#allocation5 + $0x2c] sm:$0xf0] }
  0x4e   :  { %901 = vmatpush.bf16.msrb.mxu3 %v8695_v2  ;;  %803 = vmatpush.bf16.msrb.mxu1 %v8687_v6  ;;  %v8567_v0 = vor.u32 %v11075_v61, %v8564_v62  ;;  %v8556_v2 = vld [vmem:[#allocation5 + $0x70] sm:$0xf0]  ;;  %v12548_v6 = vpack.c.bf16 %v141_v5, %v140_v4  ;;  %v8531_v11 = vor.u32 %v11071_v8, %v8530_v7  ;;  %v9498_v23 = vld [vmem:[#allocation8 + $0x5c0] sm:$0xf]  ;;  %v12566_v53 = vld [vmem:[#allocation7] sm:$0xff] }
  0x4f   :  { %v8559_v3 = vor.u32 %v11074_v1, %v8556_v2  ;;  %v8523_v15 = vor.u32 %v11070_v12, %v8522_v10  ;;  %v11316_v25 = vld [vmem:[#allocation8 + $0x5dc] sm:$0xf0]  ;;  %v144_v35 = vld [vmem:[#allocation2 + $0x70] sm:$0xff]  ;;  %v12569_v57 = vperm.slane %v12566_v53, 0  ;;  %v12572_v58 = vperm.slane %v12566_v53, 1 }
  0x50   :  { %755 = vmatpush.bf16.msrb.mxu0 %v8651_v17  ;;  %v11066_v17 = vld [vmem:[#allocation5 + $0x14] sm:$0xf]  ;;  %v8986_v26 = vld [vmem:[#allocation8 + $0x1c0] sm:$0xf]  ;;  %v9499_v27 = vor.u32 %v11316_v25, %v9498_v23  ;;  %v12581_v62 = vperm.slane %v12566_v53, 2  ;;  %v12584_v1 = vperm.slane %v12566_v53, 3 }
  0x51   :  { %853 = vmatpush.bf16.msrb.mxu2 %v8659_v13  ;;  %v11067_v13 = vld [vmem:[#allocation5 + $0x1c] sm:$0xf]  ;;  %v9754_v29 = vld [vmem:[#allocation8 + $0x7c0] sm:$0xf] }
  0x52   :  { %902 = vmatpush.bf16.msrb.mxu3 %v8663_v18  ;;  %804 = vmatpush.bf16.msrb.mxu1 %v8655_v21  ;;  %v8535_v16 = vor.u32 %v11067_v13, %v8532_v14  ;;  %v8524_v18 = vld [vmem:[#allocation5 + $0x30] sm:$0xf0]  ;;  %v143_v21 = vld [vmem:[#allocation2 + $0x68] sm:$0xff] }
  0x53   :  { %569 = vmatmul.bf16.gmra.mxu0 %v12524_v9  ;;  %618 = vmatmul.bf16.gmra.mxu1 %v12524_v9  ;;  %v8527_v19 = vor.u32 %v11066_v17, %v8524_v18  ;;  %v12554_v22 = vpack.c.bf16 %v143_v21, %v142_v20  ;;  %v11380_v30 = vld [vmem:[#allocation8 + $0x7dc] sm:$0xf0] }
  0x54   :  { %667 = vmatmul.bf16.gmra.mxu2 %v12524_v9  ;;  %756 = vmatpush.bf16.msrb.mxu0 %v8619_v32  ;;  %v9755_v32 = vor.u32 %v11380_v30, %v9754_v29  ;;  %v11252_v34 = vld [vmem:[#allocation8 + $0x3dc] sm:$0xf0] }
  0x55   :  { %716 = vmatmul.bf16.gmra.mxu3 %v12524_v9  ;;  %854 = vmatpush.bf16.msrb.mxu2 %v8627_v28  ;;  %v11188_v28 = vld [vmem:[#allocation8 + $0x1dc] sm:$0xf0] }
  0x56   :  { %903 = vmatpush.bf16.msrb.mxu3 %v8631_v33  ;;  %805 = vmatpush.bf16.msrb.mxu1 %v8623_v36  ;;  %v8987_v31 = vor.u32 %v11188_v28, %v8986_v26  ;;  %v9242_v33 = vld [vmem:[#allocation8 + $0x3c0] sm:$0xf]  ;;  %v145_v36 = vld [vmem:[#allocation2 + $0x78] sm:$0xff] }
  0x57   :  { %v9243_v37 = vor.u32 %v11252_v34, %v9242_v33  ;;  %v12560_v38 = vpack.c.bf16 %v145_v36, %v144_v35  ;;  %v9466_v40 = vld [vmem:[#allocation8 + $0x580] sm:$0xf] }
  0x58   :  { %757 = vmatpush.bf16.msrb.mxu0 %v8587_v48  ;;  %v11308_v41 = vld [vmem:[#allocation8 + $0x59c] sm:$0xf0] }
  0x59   :  { %855 = vmatpush.bf16.msrb.mxu2 %v8595_v44  ;;  %v8954_v43 = vld [vmem:[#allocation8 + $0x180] sm:$0xf]  ;;  %v9467_v44 = vor.u32 %v11308_v41, %v9466_v40 }
  0x5a   :  { %904 = vmatpush.bf16.msrb.mxu3 %v8599_v49  ;;  %806 = vmatpush.bf16.msrb.mxu1 %v8591_v52  ;;  %v11180_v45 = vld [vmem:[#allocation8 + $0x19c] sm:$0xf0] }
  0x5b   :  { %v9722_v46 = vld [vmem:[#allocation8 + $0x780] sm:$0xf]  ;;  %v8955_v48 = vor.u32 %v11180_v45, %v8954_v43 }
  0x5c   :  { %758 = vmatpush.bf16.msrb.mxu0 %v8555_v63  ;;  %v11372_v47 = vld [vmem:[#allocation8 + $0x79c] sm:$0xf0] }
  0x5d   :  { %856 = vmatpush.bf16.msrb.mxu2 %v8563_v59  ;;  %v9723_v49 = vor.u32 %v11372_v47, %v9722_v46  ;;  %v9210_v50 = vld [vmem:[#allocation8 + $0x380] sm:$0xf] }
  0x5e   :  { %905 = vmatpush.bf16.msrb.mxu3 %v8567_v0  ;;  %807 = vmatpush.bf16.msrb.mxu1 %v8559_v3  ;;  %v11244_v51 = vld [vmem:[#allocation8 + $0x39c] sm:$0xf0] }
  0x5f   :  { %v9211_v52 = vor.u32 %v11244_v51, %v9210_v50  ;;  %v11300_v5 = vld [vmem:[#allocation8 + $0x55c] sm:$0xf0] }
  0x60   :  { %759 = vmatpush.bf16.msrb.mxu0 %v8523_v15  ;;  %v8922_v7 = vld [vmem:[#allocation8 + $0x140] sm:$0xf] }
  0x61   :  { %857 = vmatpush.bf16.msrb.mxu2 %v8531_v11  ;;  %v11172_v10 = vld [vmem:[#allocation8 + $0x15c] sm:$0xf0] }
  0x62   :  { %906 = vmatpush.bf16.msrb.mxu3 %v8535_v16  ;;  %808 = vmatpush.bf16.msrb.mxu1 %v8527_v19  ;;  %v9690_v11 = vld [vmem:[#allocation8 + $0x740] sm:$0xf]  ;;  %v8923_v14 = vor.u32 %v11172_v10, %v8922_v7 }
  0x63   :  { %574 = vmatmul.bf16.gmra.mxu0 %v12530_v24  ;;  %623 = vmatmul.bf16.gmra.mxu1 %v12530_v24  ;;  %v11364_v12 = vld [vmem:[#allocation8 + $0x75c] sm:$0xf0] }
  0x64   :  { %672 = vmatmul.bf16.gmra.mxu2 %v12530_v24  ;;  %4230 = vmatpush.bf16.msra.mxu0 %v8987_v31  ;;  %v9691_v15 = vor.u32 %v11364_v12, %v9690_v11  ;;  %v9178_v16 = vld [vmem:[#allocation8 + $0x340] sm:$0xf] }
  0x65   :  { %721 = vmatmul.bf16.gmra.mxu3 %v12530_v24  ;;  %4328 = vmatpush.bf16.msra.mxu2 %v9499_v27  ;;  %v11236_v17 = vld [vmem:[#allocation8 + $0x35c] sm:$0xf0] }
  0x66   :  { %4377 = vmatpush.bf16.msra.mxu3 %v9755_v32  ;;  %4279 = vmatpush.bf16.msra.mxu1 %v9243_v37  ;;  %v9179_v19 = vor.u32 %v11236_v17, %v9178_v16  ;;  %v9402_v50 = vld [vmem:[#allocation8 + $0x500] sm:$0xf] }
  0x67   :  { %v11292_v51 = vld [vmem:[#allocation8 + $0x51c] sm:$0xf0] }
  0x68   :  { %4231 = vmatpush.bf16.msra.mxu0 %v8955_v48 }
  0x69   :  { %4329 = vmatpush.bf16.msra.mxu2 %v9467_v44 }
  0x6a   :  { %4378 = vmatpush.bf16.msra.mxu3 %v9723_v49  ;;  %4280 = vmatpush.bf16.msra.mxu1 %v9211_v52  ;;  %v8890_v52 = vld [vmem:[#allocation8 + $0x100] sm:$0xf] }
  0x6c   :  { %4232 = vmatpush.bf16.msra.mxu0 %v8923_v14 }
  0x6e   :  { %4379 = vmatpush.bf16.msra.mxu3 %v9691_v15  ;;  %4281 = vmatpush.bf16.msra.mxu1 %v9179_v19 }
  0x73   :  { %579 = vmatmul.bf16.gmra.mxu0 %v12536_v39  ;;  %628 = vmatmul.bf16.gmra.mxu1 %v12536_v39 }
  0x74   :  { %677 = vmatmul.bf16.gmra.mxu2 %v12536_v39 }
  0x75   :  { %726 = vmatmul.bf16.gmra.mxu3 %v12536_v39 }
  0x83   :  { %584 = vmatmul.bf16.gmra.mxu0 %v12542_v55  ;;  %633 = vmatmul.bf16.gmra.mxu1 %v12542_v55 }
  0x84   :  { %682 = vmatmul.bf16.gmra.mxu2 %v12542_v55 }
  0x85   :  { %731 = vmatmul.bf16.gmra.mxu3 %v12542_v55 }
  0x93   :  { %589 = vmatmul.bf16.gmra.mxu0 %v12548_v6  ;;  %638 = vmatmul.bf16.gmra.mxu1 %v12548_v6 }
  0x94   :  { %687 = vmatmul.bf16.gmra.mxu2 %v12548_v6 }
  0x95   :  { %736 = vmatmul.bf16.gmra.mxu3 %v12548_v6 }
  0xa3   :  { %594 = vmatmul.bf16.gmra.mxu0 %v12554_v22  ;;  %643 = vmatmul.bf16.gmra.mxu1 %v12554_v22 }
  0xa4   :  { %692 = vmatmul.bf16.gmra.mxu2 %v12554_v22 }
  0xa5   :  { %741 = vmatmul.bf16.gmra.mxu3 %v12554_v22 }
  0xb3   :  { %599 = vmatmul.bf16.gmra.mxu0 %v12560_v38  ;;  %648 = vmatmul.bf16.gmra.mxu1 %v12560_v38 }
  0xb4   :  { %697 = vmatmul.bf16.gmra.mxu2 %v12560_v38 }
  0xb5   :  { %746 = vmatmul.bf16.gmra.mxu3 %v12560_v38 }
  0xc0   :  { %v565_v54 = vpop.f32.mrf.mxu0  ;;  %v614_v56 = vpop.f32.mrf.mxu1 }
  0xc1   :  { %v566_v59 = vadd.f32 %v565_v54, %v12569_v57  ;;  %v615_v60 = vadd.f32 %v614_v56, %v12572_v58  ;;  %v9403_v54 = vor.u32 %v11292_v51, %v9402_v50  ;;  %v11164_v56 = vld [vmem:[#allocation8 + $0x11c] sm:$0xf0] }
  0xc2   :  { %v9114_v50 = vld [vmem:[#allocation8 + $0x2c0] sm:$0xf] }
  0xc3   :  { %760 = vmatmul.bf16.vlgmr.msrb.gmra.mxu0 %v12518_v42  ;;  %809 = vmatmul.bf16.vlgmr.msrb.gmra.mxu1 %v12518_v42  ;;  %11719 = vtanh.f32 %v566_v59  ;;  %v9658_v59 = vld [vmem:[#allocation8 + $0x700] sm:$0xf] }
  0xc4   :  { %858 = vmatmul.bf16.vlgmr.msrb.gmra.mxu2 %v12518_v42  ;;  %11721 = vtanh.f32 %v615_v60  ;;  %v11356_v60 = vld [vmem:[#allocation8 + $0x71c] sm:$0xf0] }
  0xc5   :  { %907 = vmatmul.bf16.vlgmr.msrb.gmra.mxu3 %v12518_v42  ;;  %v9434_v42 = vld [vmem:[#allocation8 + $0x540] sm:$0xf] }
  0xc6   :  { %v9435_v8 = vor.u32 %v11300_v5, %v9434_v42  ;;  %v11220_v51 = vld [vmem:[#allocation8 + $0x2dc] sm:$0xf0] }
  0xc7   :  { %v663_v61 = vpop.f32.mrf.mxu2 }
  0xc8   :  { %v712_v63 = vpop.f32.mrf.mxu3  ;;  %v567_v0 = vpop.f32.mrf.mxu0  ;;  %v664_v13 = vadd.f32 %v663_v61, %v12581_v62  ;;  %4330 = vmatpush.bf16.msra.mxu2 %v9435_v8 }
  0xc9   :  { %v568_v2 = vadd.f32 %v567_v0, %v12569_v57  ;;  %v616_v3 = vpop.f32.mrf.mxu1  ;;  %v713_v18 = vadd.f32 %v712_v63, %v12584_v1  ;;  %v11720_v21 = vpop.eup %11719  ;;  %v8891_v63 = vor.u32 %v11164_v56, %v8890_v52  ;;  %v9659_v0 = vor.u32 %v11356_v60, %v9658_v59 }
  0xca   :  { %v617_v4 = vadd.f32 %v616_v3, %v12572_v58  ;;  %v11722_v27 = vpop.eup %11721  ;;  %v11228_v3 = vld [vmem:[#allocation8 + $0x31c] sm:$0xf0] }
  0xcb   :  { %11723 = vtanh.f32 %v568_v2  ;;  %v9146_v2 = vld [vmem:[#allocation8 + $0x300] sm:$0xf]  ;;  %4233 = vmatpush.bf16.msra.mxu0 %v8891_v63  ;;  %4380 = vmatpush.bf16.msra.mxu3 %v9659_v0 }
  0xcc   :  { %11725 = vtanh.f32 %v617_v4  ;;  %4331 = vmatpush.bf16.msra.mxu2 %v9403_v54  ;;  %v9147_v42 = vor.u32 %v11228_v3, %v9146_v2  ;;  %v9115_v54 = vor.u32 %v11220_v51, %v9114_v50 }
  0xcd   :  { %11727 = vtanh.f32 %v664_v13 }
  0xce   :  { %11729 = vtanh.f32 %v713_v18  ;;  %4282 = vmatpush.bf16.msra.mxu1 %v9147_v42 }
  0xcf   :  { %v665_v20 = vpop.f32.mrf.mxu2 }
  0xd0   :  { %v666_v23 = vadd.f32 %v665_v20, %v12581_v62  ;;  %v714_v25 = vpop.f32.mrf.mxu3  ;;  %v570_v26 = vpop.f32.mrf.mxu0 }
  0xd1   :  { %v715_v28 = vadd.f32 %v714_v25, %v12584_v1  ;;  %v619_v29 = vpop.f32.mrf.mxu1  ;;  %v11724_v30 = vpop.eup %11723  ;;  %v571_v35 = vadd.f32 %v570_v26, %v12569_v57 }
  0xd2   :  { %11731 = vtanh.f32 %v666_v23  ;;  %v11726_v31 = vpop.eup %11725  ;;  %v12592_v32 = vpack.c.bf16 %v11724_v30, %v11720_v21  ;;  %v620_v37 = vadd.f32 %v619_v29, %v12572_v58  ;;  %4283 = vmatpush.bf16.msra.mxu1 %v9115_v54 }
  0xd3   :  { %11733 = vtanh.f32 %v715_v28  ;;  %765 = vmatmul.bf16.gmra.mxu0 %v12524_v9  ;;  %v12595_v33 = vpack.c.bf16 %v11726_v31, %v11722_v27  ;;  %814 = vmatmul.bf16.gmra.mxu1 %v12524_v9  ;;  %v11728_v34 = vpop.eup %11727 }
  0xd4   :  { %14784 = vst [vmem:[#allocation20_spill] sm:$0xff] %v12592_v32  ;;  %863 = vmatmul.bf16.gmra.mxu2 %v12524_v9  ;;  %v11730_v36 = vpop.eup %11729  ;;  %11735 = vtanh.f32 %v571_v35 }
  0xd5   :  { %14785 = vst [vmem:[#allocation21_spill] sm:$0xff] %v12595_v33  ;;  %912 = vmatmul.bf16.gmra.mxu3 %v12524_v9  ;;  %11737 = vtanh.f32 %v620_v37  ;;  %v11284_v37 = vld [vmem:[#allocation8 + $0x4dc] sm:$0xf0] }
  0xd7   :  { %v668_v40 = vpop.f32.mrf.mxu2 }
  0xd8   :  { %v11732_v41 = vpop.eup %11731  ;;  %v717_v43 = vpop.f32.mrf.mxu3  ;;  %v669_v61 = vadd.f32 %v668_v40, %v12581_v62  ;;  %v8858_v40 = vld [vmem:[#allocation8 + $0xc0] sm:$0xf] }
  0xd9   :  { %v572_v44 = vpop.f32.mrf.mxu0  ;;  %v11734_v45 = vpop.eup %11733  ;;  %v12602_v46 = vpack.c.bf16 %v11732_v41, %v11728_v34  ;;  %v718_v4 = vadd.f32 %v717_v43, %v12584_v1  ;;  %v11156_v43 = vld [vmem:[#allocation8 + $0xdc] sm:$0xf0] }
  0xda   :  { %v573_v47 = vadd.f32 %v572_v44, %v12569_v57  ;;  %v621_v48 = vpop.f32.mrf.mxu1  ;;  %v12605_v49 = vpack.c.bf16 %v11734_v45, %v11730_v36  ;;  %v11736_v7 = vpop.eup %11735  ;;  %v9370_v36 = vld [vmem:[#allocation8 + $0x4c0] sm:$0xf] }
  0xdb   :  { %14786 = vst [vmem:[#allocation22_spill] sm:$0xff] %v12602_v46  ;;  %v622_v9 = vadd.f32 %v621_v48, %v12572_v58  ;;  %v11738_v12 = vpop.eup %11737  ;;  %v9371_v41 = vor.u32 %v11284_v37, %v9370_v36  ;;  %v9626_v44 = vld [vmem:[#allocation8 + $0x6c0] sm:$0xf]  ;;  %v8859_v48 = vor.u32 %v11156_v43, %v8858_v40 }
  0xdc   :  { %14787 = vst [vmem:[#allocation23_spill] sm:$0xff] %v12605_v49  ;;  %11739 = vtanh.f32 %v573_v47  ;;  %v11348_v45 = vld [vmem:[#allocation8 + $0x6dc] sm:$0xf0] }
  0xdd   :  { %11741 = vtanh.f32 %v622_v9  ;;  %v9627_v9 = vor.u32 %v11348_v45, %v9626_v44  ;;  %4332 = vmatpush.bf16.msra.mxu2 %v9371_v41  ;;  %4234 = vmatpush.bf16.msra.mxu0 %v8859_v48  ;;  %v9082_v41 = vld [vmem:[#allocation8 + $0x280] sm:$0xf] }
  0xde   :  { %11743 = vtanh.f32 %v669_v61  ;;  %v11212_v43 = vld [vmem:[#allocation8 + $0x29c] sm:$0xf0] }
  0xdf   :  { %v670_v5 = vpop.f32.mrf.mxu2  ;;  %11745 = vtanh.f32 %v718_v4  ;;  %4381 = vmatpush.bf16.msra.mxu3 %v9627_v9  ;;  %v9083_v45 = vor.u32 %v11212_v43, %v9082_v41 }
  0xe0   :  { %v671_v8 = vadd.f32 %v670_v5, %v12581_v62  ;;  %v719_v10 = vpop.f32.mrf.mxu3 }
  0xe1   :  { %v575_v11 = vpop.f32.mrf.mxu0  ;;  %v720_v13 = vadd.f32 %v719_v10, %v12584_v1  ;;  %4284 = vmatpush.bf16.msra.mxu1 %v9083_v45 }
  0xe2   :  { %v624_v14 = vpop.f32.mrf.mxu1  ;;  %v11740_v15 = vpop.eup %11739  ;;  %11747 = vtanh.f32 %v671_v8  ;;  %v576_v20 = vadd.f32 %v575_v11, %v12569_v57 }
  0xe3   :  { %v11742_v16 = vpop.eup %11741  ;;  %v12612_v17 = vpack.c.bf16 %v11740_v15, %v11736_v7  ;;  %11749 = vtanh.f32 %v720_v13  ;;  %770 = vmatmul.bf16.gmra.mxu0 %v12530_v24  ;;  %819 = vmatmul.bf16.gmra.mxu1 %v12530_v24  ;;  %v625_v23 = vadd.f32 %v624_v14, %v12572_v58 }
  0xe4   :  { %v12615_v18 = vpack.c.bf16 %v11742_v16, %v11738_v12  ;;  %868 = vmatmul.bf16.gmra.mxu2 %v12530_v24  ;;  %v11744_v19 = vpop.eup %11743  ;;  %11751 = vtanh.f32 %v576_v20 }
  0xe5   :  { %917 = vmatmul.bf16.gmra.mxu3 %v12530_v24  ;;  %v11746_v21 = vpop.eup %11745  ;;  %11753 = vtanh.f32 %v625_v23 }
  0xe7   :  { %v673_v25 = vpop.f32.mrf.mxu2 }
  0xe8   :  { %v11748_v26 = vpop.eup %11747  ;;  %v722_v27 = vpop.f32.mrf.mxu3  ;;  %v674_v47 = vadd.f32 %v673_v25, %v12581_v62 }
  0xe9   :  { %v577_v28 = vpop.f32.mrf.mxu0  ;;  %v11750_v29 = vpop.eup %11749  ;;  %v12622_v30 = vpack.c.bf16 %v11748_v26, %v11744_v19  ;;  %v723_v52 = vadd.f32 %v722_v27, %v12584_v1  ;;  %v9338_v26 = vld [vmem:[#allocation8 + $0x480] sm:$0xf] }
  0xea   :  { %v578_v31 = vadd.f32 %v577_v28, %v12569_v57  ;;  %v626_v34 = vpop.f32.mrf.mxu1  ;;  %v12625_v35 = vpack.c.bf16 %v11750_v29, %v11746_v21  ;;  %v11752_v59 = vpop.eup %11751  ;;  %v11276_v27 = vld [vmem:[#allocation8 + $0x49c] sm:$0xf0] }
  0xeb   :  { %v627_v24 = vadd.f32 %v626_v34, %v12572_v58  ;;  %v11754_v0 = vpop.eup %11753  ;;  %v8826_v28 = vld [vmem:[#allocation8 + $0x80] sm:$0xf]  ;;  %v9339_v29 = vor.u32 %v11276_v27, %v9338_v26 }
  0xec   :  { %11755 = vtanh.f32 %v578_v31  ;;  %v11148_v31 = vld [vmem:[#allocation8 + $0x9c] sm:$0xf0] }
  0xed   :  { %11757 = vtanh.f32 %v627_v24  ;;  %v9594_v34 = vld [vmem:[#allocation8 + $0x680] sm:$0xf]  ;;  %v8827_v37 = vor.u32 %v11148_v31, %v8826_v28  ;;  %4333 = vmatpush.bf16.msra.mxu2 %v9339_v29 }
  0xee   :  { %11759 = vtanh.f32 %v674_v47  ;;  %v11340_v24 = vld [vmem:[#allocation8 + $0x69c] sm:$0xf0] }
  0xef   :  { %v675_v56 = vpop.f32.mrf.mxu2  ;;  %11761 = vtanh.f32 %v723_v52  ;;  %v9595_v40 = vor.u32 %v11340_v24, %v9594_v34  ;;  %4235 = vmatpush.bf16.msra.mxu0 %v8827_v37  ;;  %v11140_v26 = vld [vmem:[#allocation8 + $0x5c] sm:$0xf0] }
  0xf0   :  { %v676_v60 = vadd.f32 %v675_v56, %v12581_v62  ;;  %v724_v61 = vpop.f32.mrf.mxu3  ;;  %v9562_v27 = vld [vmem:[#allocation8 + $0x640] sm:$0xf] }
  0xf1   :  { %v580_v63 = vpop.f32.mrf.mxu0  ;;  %v725_v2 = vadd.f32 %v724_v61, %v12584_v1  ;;  %4382 = vmatpush.bf16.msra.mxu3 %v9595_v40  ;;  %v11332_v28 = vld [vmem:[#allocation8 + $0x65c] sm:$0xf0] }
  0xf2   :  { %v629_v3 = vpop.f32.mrf.mxu1  ;;  %v11756_v4 = vpop.eup %11755  ;;  %11763 = vtanh.f32 %v676_v60  ;;  %v581_v10 = vadd.f32 %v580_v63, %v12569_v57  ;;  %v9563_v34 = vor.u32 %v11332_v28, %v9562_v27  ;;  %v9050_v24 = vld [vmem:[#allocation8 + $0x240] sm:$0xf] }
  0xf3   :  { %v11758_v42 = vpop.eup %11757  ;;  %v12632_v5 = vpack.c.bf16 %v11756_v4, %v11752_v59  ;;  %11765 = vtanh.f32 %v725_v2  ;;  %775 = vmatmul.bf16.gmra.mxu0 %v12536_v39  ;;  %824 = vmatmul.bf16.gmra.mxu1 %v12536_v39  ;;  %v630_v12 = vadd.f32 %v629_v3, %v12572_v58  ;;  %v11324_v27 = vld [vmem:[#allocation8 + $0x61c] sm:$0xf0] }
  0xf4   :  { %v12635_v7 = vpack.c.bf16 %v11758_v42, %v11754_v0  ;;  %873 = vmatmul.bf16.gmra.mxu2 %v12536_v39  ;;  %v11760_v8 = vpop.eup %11759  ;;  %11767 = vtanh.f32 %v581_v10 }
  0xf5   :  { %922 = vmatmul.bf16.gmra.mxu3 %v12536_v39  ;;  %v11762_v11 = vpop.eup %11761  ;;  %11769 = vtanh.f32 %v630_v12 }
  0xf6   :  { %4383 = vmatpush.bf16.msra.mxu3 %v9563_v34  ;;  %v9018_v34 = vld [vmem:[#allocation8 + $0x200] sm:$0xf] }
  0xf7   :  { %v678_v13 = vpop.f32.mrf.mxu2 }
  0xf8   :  { %v11764_v14 = vpop.eup %11763  ;;  %v727_v15 = vpop.f32.mrf.mxu3  ;;  %v679_v36 = vadd.f32 %v678_v13, %v12581_v62 }
  0xf9   :  { %v582_v16 = vpop.f32.mrf.mxu0  ;;  %v11766_v19 = vpop.eup %11765  ;;  %v12642_v20 = vpack.c.bf16 %v11764_v14, %v11760_v8  ;;  %v728_v44 = vadd.f32 %v727_v15, %v12584_v1 }
  0xfa   :  { %v583_v21 = vadd.f32 %v582_v16, %v12569_v57  ;;  %v631_v23 = vpop.f32.mrf.mxu1  ;;  %v12645_v25 = vpack.c.bf16 %v11766_v19, %v11762_v11  ;;  %v11768_v48 = vpop.eup %11767  ;;  %v9306_v19 = vld [vmem:[#allocation8 + $0x440] sm:$0xf] }
  0xfb   :  { %v632_v39 = vadd.f32 %v631_v23, %v12572_v58  ;;  %v11770_v52 = vpop.eup %11769  ;;  %v8794_v23 = vld [vmem:[#allocation8 + $0x40] sm:$0xf] }
  0xfc   :  { %14788 = vst [vmem:[#allocation24_spill] sm:$0xff] %v12645_v25  ;;  %11771 = vtanh.f32 %v583_v21  ;;  %v11268_v21 = vld [vmem:[#allocation8 + $0x45c] sm:$0xf0]  ;;  %v8795_v31 = vor.u32 %v11140_v26, %v8794_v23 }
  0xfd   :  { %11773 = vtanh.f32 %v632_v39  ;;  %v9307_v39 = vor.u32 %v11268_v21, %v9306_v19  ;;  %v11260_v19 = vld [vmem:[#allocation8 + $0x41c] sm:$0xf0] }
  0xfe   :  { %11775 = vtanh.f32 %v679_v36  ;;  %v11204_v36 = vld [vmem:[#allocation8 + $0x25c] sm:$0xf0]  ;;  %4236 = vmatpush.bf16.msra.mxu0 %v8795_v31 }
  0xff   :  { %v680_v47 = vpop.f32.mrf.mxu2  ;;  %11777 = vtanh.f32 %v728_v44  ;;  %4334 = vmatpush.bf16.msra.mxu2 %v9307_v39  ;;  %v9051_v40 = vor.u32 %v11204_v36, %v9050_v24  ;;  %v8762_v21 = vld [vmem:[#allocation8] sm:$0xf] }
 0x100   :  { %v681_v9 = vadd.f32 %v680_v47, %v12581_v62  ;;  %v729_v50 = vpop.f32.mrf.mxu3  ;;  %v11132_v39 = vld [vmem:[#allocation8 + $0x1c] sm:$0xf0] }
 0x101   :  { %v585_v51 = vpop.f32.mrf.mxu0  ;;  %v730_v54 = vadd.f32 %v729_v50, %v12584_v1  ;;  %4285 = vmatpush.bf16.msra.mxu1 %v9051_v40  ;;  %v9530_v26 = vld [vmem:[#allocation8 + $0x600] sm:$0xf] }
 0x102   :  { %v634_v56 = vpop.f32.mrf.mxu1  ;;  %v11772_v59 = vpop.eup %11771  ;;  %11779 = vtanh.f32 %v681_v9  ;;  %v586_v2 = vadd.f32 %v585_v51, %v12569_v57  ;;  %v9531_v31 = vor.u32 %v11324_v27, %v9530_v26  ;;  %v11196_v24 = vld [vmem:[#allocation8 + $0x21c] sm:$0xf0] }
 0x103   :  { %v11774_v60 = vpop.eup %11773  ;;  %v12652_v61 = vpack.c.bf16 %v11772_v59, %v11768_v48  ;;  %11781 = vtanh.f32 %v730_v54  ;;  %780 = vmatmul.bf16.gmra.mxu0 %v12542_v55  ;;  %829 = vmatmul.bf16.gmra.mxu1 %v12542_v55  ;;  %v635_v4 = vadd.f32 %v634_v56, %v12572_v58  ;;  %v11444_v27 = vld [vmem:[#allocation8 + $0x9dc] sm:$0xf0] }
 0x104   :  { %v12655_v63 = vpack.c.bf16 %v11774_v60, %v11770_v52  ;;  %878 = vmatmul.bf16.gmra.mxu2 %v12542_v55  ;;  %v11776_v0 = vpop.eup %11775  ;;  %11783 = vtanh.f32 %v586_v2  ;;  %4384 = vmatpush.bf16.msra.mxu3 %v9531_v31 }
 0x105   :  { %14789 = vst [vmem:[#allocation25_spill] sm:$0xff] %v12652_v61  ;;  %927 = vmatmul.bf16.gmra.mxu3 %v12542_v55  ;;  %v11778_v3 = vpop.eup %11777  ;;  %11785 = vtanh.f32 %v635_v4 }
 0x106   :  { %14790 = vst [vmem:[#allocation26_spill] sm:$0xff] %v12655_v63 }
 0x107   :  { %v683_v42 = vpop.f32.mrf.mxu2 }
 0x108   :  { %v11780_v8 = vpop.eup %11779  ;;  %v732_v10 = vpop.f32.mrf.mxu3  ;;  %v684_v29 = vadd.f32 %v683_v42, %v12581_v62 }
 0x109   :  { %v587_v11 = vpop.f32.mrf.mxu0  ;;  %v11782_v12 = vpop.eup %11781  ;;  %v12662_v13 = vpack.c.bf16 %v11780_v8, %v11776_v0  ;;  %v733_v37 = vadd.f32 %v732_v10, %v12584_v1 }
 0x10a   :  { %v588_v14 = vadd.f32 %v587_v11, %v12569_v57  ;;  %v636_v15 = vpop.f32.mrf.mxu1  ;;  %v12665_v16 = vpack.c.bf16 %v11782_v12, %v11778_v3  ;;  %v11784_v43 = vpop.eup %11783 }
 0x10b   :  { %14791 = vst [vmem:[#allocation27_spill] sm:$0xff] %v12662_v13  ;;  %v637_v55 = vadd.f32 %v636_v15, %v12572_v58  ;;  %v11786_v48 = vpop.eup %11785 }
 0x10c   :  { %14792 = vst [vmem:[#allocation28_spill] sm:$0xff] %v12665_v16  ;;  %11787 = vtanh.f32 %v588_v14 }
 0x10d   :  { %11789 = vtanh.f32 %v637_v55  ;;  %v9274_v55 = vld [vmem:[#allocation8 + $0x400] sm:$0xf] }
 0x10e   :  { %11791 = vtanh.f32 %v684_v29  ;;  %v9275_v23 = vor.u32 %v11260_v19, %v9274_v55  ;;  %v8763_v29 = vor.u32 %v11132_v39, %v8762_v21  ;;  %v10522_v21 = vld [vmem:[#allocation8 + $0xdc0] sm:$0xf] }
 0x10f   :  { %v685_v41 = vpop.f32.mrf.mxu2  ;;  %11793 = vtanh.f32 %v733_v37  ;;  %v9019_v37 = vor.u32 %v11196_v24, %v9018_v34  ;;  %v10010_v39 = vld [vmem:[#allocation8 + $0x9c0] sm:$0xf] }
 0x110   :  { %v686_v44 = vadd.f32 %v685_v41, %v12581_v62  ;;  %v734_v45 = vpop.f32.mrf.mxu3  ;;  %4335 = vmatpush.bf16.msra.mxu2 %v9275_v23  ;;  %4237 = vmatpush.bf16.msra.mxu0 %v8763_v29  ;;  %v11572_v23 = vld [vmem:[#allocation8 + $0xddc] sm:$0xf0]  ;;  %v10011_v34 = vor.u32 %v11444_v27, %v10010_v39 }
 0x111   :  { %v590_v47 = vpop.f32.mrf.mxu0  ;;  %v735_v9 = vadd.f32 %v734_v45, %v12584_v1  ;;  %4286 = vmatpush.bf16.msra.mxu1 %v9019_v37  ;;  %v10523_v26 = vor.u32 %v11572_v23, %v10522_v21  ;;  %v11636_v29 = vld [vmem:[#allocation8 + $0xfdc] sm:$0xf0] }
 0x112   :  { %v639_v50 = vpop.f32.mrf.mxu1  ;;  %v11788_v51 = vpop.eup %11787  ;;  %11795 = vtanh.f32 %v686_v44  ;;  %v591_v60 = vadd.f32 %v590_v47, %v12569_v57  ;;  %v11508_v37 = vld [vmem:[#allocation8 + $0xbdc] sm:$0xf0] }
 0x113   :  { %v11790_v52 = vpop.eup %11789  ;;  %v12672_v54 = vpack.c.bf16 %v11788_v51, %v11784_v43  ;;  %11797 = vtanh.f32 %v735_v9  ;;  %785 = vmatmul.bf16.gmra.mxu0 %v12548_v6  ;;  %834 = vmatmul.bf16.gmra.mxu1 %v12548_v6  ;;  %v640_v2 = vadd.f32 %v639_v50, %v12572_v58 }
 0x114   :  { %v12675_v56 = vpack.c.bf16 %v11790_v52, %v11786_v48  ;;  %883 = vmatmul.bf16.gmra.mxu2 %v12548_v6  ;;  %v11792_v59 = vpop.eup %11791  ;;  %11799 = vtanh.f32 %v591_v60  ;;  %4426 = vmatpush.bf16.msrb.mxu0 %v10011_v34 }
 0x115   :  { %14793 = vst [vmem:[#allocation29_spill] sm:$0xff] %v12672_v54  ;;  %932 = vmatmul.bf16.gmra.mxu3 %v12548_v6  ;;  %v11794_v0 = vpop.eup %11793  ;;  %11801 = vtanh.f32 %v640_v2  ;;  %4524 = vmatpush.bf16.msrb.mxu2 %v10523_v26 }
 0x116   :  { %14794 = vst [vmem:[#allocation30_spill] sm:$0xff] %v12675_v56 }
 0x117   :  { %v688_v3 = vpop.f32.mrf.mxu2 }
 0x118   :  { %v11796_v4 = vpop.eup %11795  ;;  %v737_v42 = vpop.f32.mrf.mxu3  ;;  %v689_v28 = vadd.f32 %v688_v3, %v12581_v62 }
 0x119   :  { %v592_v8 = vpop.f32.mrf.mxu0  ;;  %v11798_v10 = vpop.eup %11797  ;;  %v12682_v11 = vpack.c.bf16 %v11796_v4, %v11792_v59  ;;  %v738_v36 = vadd.f32 %v737_v42, %v12584_v1 }
 0x11a   :  { %v593_v12 = vadd.f32 %v592_v8, %v12569_v57  ;;  %v641_v14 = vpop.f32.mrf.mxu1  ;;  %v12685_v15 = vpack.c.bf16 %v11798_v10, %v11794_v0  ;;  %v11800_v41 = vpop.eup %11799 }
 0x11b   :  { %14795 = vst [vmem:[#allocation31_spill] sm:$0xff] %v12682_v11  ;;  %v642_v6 = vadd.f32 %v641_v14, %v12572_v58  ;;  %v11802_v47 = vpop.eup %11801 }
 0x11c   :  { %14796 = vst [vmem:[#allocation32_spill] sm:$0xff] %v12685_v15  ;;  %11803 = vtanh.f32 %v593_v12 }
 0x11d   :  { %11805 = vtanh.f32 %v642_v6 }
 0x11e   :  { %11807 = vtanh.f32 %v689_v28  ;;  %v10778_v28 = vld [vmem:[#allocation8 + $0xfc0] sm:$0xf] }
 0x11f   :  { %v690_v40 = vpop.f32.mrf.mxu2  ;;  %11809 = vtanh.f32 %v738_v36  ;;  %v10779_v24 = vor.u32 %v11636_v29, %v10778_v28  ;;  %v10266_v36 = vld [vmem:[#allocation8 + $0xbc0] sm:$0xf] }
 0x120   :  { %v691_v43 = vadd.f32 %v690_v40, %v12581_v62  ;;  %v739_v44 = vpop.f32.mrf.mxu3  ;;  %v10490_v28 = vld [vmem:[#allocation8 + $0xd80] sm:$0xf] }
 0x121   :  { %v595_v45 = vpop.f32.mrf.mxu0  ;;  %v740_v48 = vadd.f32 %v739_v44, %v12584_v1  ;;  %4573 = vmatpush.bf16.msrb.mxu3 %v10779_v24  ;;  %v11564_v29 = vld [vmem:[#allocation8 + $0xd9c] sm:$0xf0] }
 0x122   :  { %v644_v9 = vpop.f32.mrf.mxu1  ;;  %v11804_v50 = vpop.eup %11803  ;;  %11811 = vtanh.f32 %v691_v43  ;;  %v596_v0 = vadd.f32 %v595_v45, %v12569_v57  ;;  %v10491_v34 = vor.u32 %v11564_v29, %v10490_v28  ;;  %v11436_v24 = vld [vmem:[#allocation8 + $0x99c] sm:$0xf0] }
 0x123   :  { %v11806_v51 = vpop.eup %11805  ;;  %v12692_v52 = vpack.c.bf16 %v11804_v50, %v11800_v41  ;;  %11813 = vtanh.f32 %v740_v48  ;;  %790 = vmatmul.bf16.gmra.mxu0 %v12554_v22  ;;  %839 = vmatmul.bf16.gmra.mxu1 %v12554_v22  ;;  %v645_v3 = vadd.f32 %v644_v9, %v12572_v58  ;;  %v10267_v41 = vor.u32 %v11508_v37, %v10266_v36  ;;  %v10746_v36 = vld [vmem:[#allocation8 + $0xf80] sm:$0xf] }
 0x124   :  { %v12695_v59 = vpack.c.bf16 %v11806_v51, %v11802_v47  ;;  %888 = vmatmul.bf16.gmra.mxu2 %v12554_v22  ;;  %v11808_v60 = vpop.eup %11807  ;;  %11815 = vtanh.f32 %v596_v0  ;;  %v11628_v37 = vld [vmem:[#allocation8 + $0xf9c] sm:$0xf0] }
 0x125   :  { %14797 = vst [vmem:[#allocation33_spill] sm:$0xff] %v12692_v52  ;;  %937 = vmatmul.bf16.gmra.mxu3 %v12554_v22  ;;  %v11810_v2 = vpop.eup %11809  ;;  %11817 = vtanh.f32 %v645_v3  ;;  %4475 = vmatpush.bf16.msrb.mxu1 %v10267_v41 }
 0x126   :  { %14798 = vst [vmem:[#allocation34_spill] sm:$0xff] %v12695_v59  ;;  %4525 = vmatpush.bf16.msrb.mxu2 %v10491_v34 }
 0x127   :  { %v693_v4 = vpop.f32.mrf.mxu2 }
 0x128   :  { %v11812_v42 = vpop.eup %11811  ;;  %v742_v8 = vpop.f32.mrf.mxu3  ;;  %v694_v31 = vadd.f32 %v693_v4, %v12581_v62 }
 0x129   :  { %v597_v10 = vpop.f32.mrf.mxu0  ;;  %v11814_v12 = vpop.eup %11813  ;;  %v12702_v14 = vpack.c.bf16 %v11812_v42, %v11808_v60  ;;  %v743_v40 = vadd.f32 %v742_v8, %v12584_v1 }
 0x12a   :  { %v598_v6 = vadd.f32 %v597_v10, %v12569_v57  ;;  %v646_v55 = vpop.f32.mrf.mxu1  ;;  %v12705_v19 = vpack.c.bf16 %v11814_v12, %v11810_v2  ;;  %v11816_v44 = vpop.eup %11815 }
 0x12b   :  { %14799 = vst [vmem:[#allocation35_spill] sm:$0xff] %v12702_v14  ;;  %v647_v22 = vadd.f32 %v646_v55, %v12572_v58  ;;  %v11818_v9 = vpop.eup %11817 }
 0x12c   :  { %14800 = vst [vmem:[#allocation36_spill] sm:$0xff] %v12705_v19  ;;  %11819 = vtanh.f32 %v598_v6 }
 0x12d   :  { %11821 = vtanh.f32 %v647_v22 }
 0x12e   :  { %11823 = vtanh.f32 %v694_v31  ;;  %v9978_v31 = vld [vmem:[#allocation8 + $0x980] sm:$0xf] }
 0x12f   :  { %v695_v43 = vpop.f32.mrf.mxu2  ;;  %11825 = vtanh.f32 %v743_v40  ;;  %v9979_v41 = vor.u32 %v11436_v24, %v9978_v31  ;;  %v12754_v24 = vperm.slane %v12566_v53, 7 }
 0x130   :  { %v696_v45 = vadd.f32 %v695_v43, %v12581_v62  ;;  %v744_v47 = vpop.f32.mrf.mxu3  ;;  %v10747_v43 = vor.u32 %v11628_v37, %v10746_v36 }
 0x131   :  { %v600_v48 = vpop.f32.mrf.mxu0  ;;  %v745_v50 = vadd.f32 %v744_v47, %v12584_v1  ;;  %4427 = vmatpush.bf16.msrb.mxu0 %v9979_v41 }
 0x132   :  { %v649_v51 = vpop.f32.mrf.mxu1  ;;  %v11820_v60 = vpop.eup %11819  ;;  %11827 = vtanh.f32 %v696_v45  ;;  %v601_v42 = vadd.f32 %v600_v48, %v12569_v57  ;;  %4574 = vmatpush.bf16.msrb.mxu3 %v10747_v43  ;;  %v10458_v43 = vld [vmem:[#allocation8 + $0xd40] sm:$0xf] }
 0x133   :  { %v11822_v0 = vpop.eup %11821  ;;  %v12712_v2 = vpack.c.bf16 %v11820_v60, %v11816_v44  ;;  %11829 = vtanh.f32 %v745_v50  ;;  %795 = vmatmul.bf16.gmra.mxu0 %v12560_v38  ;;  %844 = vmatmul.bf16.gmra.mxu1 %v12560_v38  ;;  %v650_v10 = vadd.f32 %v649_v51, %v12572_v58  ;;  %v11500_v44 = vld [vmem:[#allocation8 + $0xb9c] sm:$0xf0] }
 0x134   :  { %v12715_v3 = vpack.c.bf16 %v11822_v0, %v11818_v9  ;;  %893 = vmatmul.bf16.gmra.mxu2 %v12560_v38  ;;  %v11824_v4 = vpop.eup %11823  ;;  %11831 = vtanh.f32 %v601_v42 }
 0x135   :  { %14801 = vst [vmem:[#allocation37_spill] sm:$0xff] %v12712_v2  ;;  %942 = vmatmul.bf16.gmra.mxu3 %v12560_v38  ;;  %v11826_v8 = vpop.eup %11825  ;;  %11833 = vtanh.f32 %v650_v10 }
 0x136   :  { %14802 = vst [vmem:[#allocation38_spill] sm:$0xff] %v12715_v3 }
 0x137   :  { %v698_v12 = vpop.f32.mrf.mxu2 }
 0x138   :  { %v11828_v6 = vpop.eup %11827  ;;  %v747_v55 = vpop.f32.mrf.mxu3  ;;  %v699_v40 = vadd.f32 %v698_v12, %v12581_v62 }
 0x139   :  { %v602_v22 = vpop.f32.mrf.mxu0  ;;  %v11830_v21 = vpop.eup %11829  ;;  %v12722_v23 = vpack.c.bf16 %v11828_v6, %v11824_v4  ;;  %v748_v45 = vadd.f32 %v747_v55, %v12584_v1  ;;  %v12738_v6 = vperm.slane %v12566_v53, 5 }
 0x13a   :  { %v603_v39 = vadd.f32 %v602_v22, %v12569_v57  ;;  %v651_v26 = vpop.f32.mrf.mxu1  ;;  %v12725_v27 = vpack.c.bf16 %v11830_v21, %v11826_v8  ;;  %v10234_v57 = vld [vmem:[#allocation8 + $0xb80] sm:$0xf]  ;;  %v11832_v48 = vpop.eup %11831  ;;  %v12733_v8 = vperm.slane %v12566_v53, 4 }
 0x13b   :  { %14803 = vst [vmem:[#allocation39_spill] sm:$0xff] %v12722_v23  ;;  %v652_v38 = vadd.f32 %v651_v26, %v12572_v58  ;;  %v10235_v58 = vor.u32 %v11500_v44, %v10234_v57  ;;  %v11834_v60 = vpop.eup %11833  ;;  %v11556_v57 = vld [vmem:[#allocation8 + $0xd5c] sm:$0xf0] }
 0x13c   :  { %14804 = vst [vmem:[#allocation40_spill] sm:$0xff] %v12725_v27  ;;  %11835 = vtanh.f32 %v603_v39  ;;  %v9946_v44 = vld [vmem:[#allocation8 + $0x940] sm:$0xf] }
 0x13d   :  { %11837 = vtanh.f32 %v652_v38  ;;  %4476 = vmatpush.bf16.msrb.mxu1 %v10235_v58  ;;  %v12749_v38 = vperm.slane %v12566_v53, 6  ;;  %v11428_v58 = vld [vmem:[#allocation8 + $0x95c] sm:$0xf0] }
 0x13e   :  { %11839 = vtanh.f32 %v699_v40  ;;  %v9947_v53 = vor.u32 %v11428_v58, %v9946_v44 }
 0x13f   :  { %v700_v47 = vpop.f32.mrf.mxu2  ;;  %11841 = vtanh.f32 %v748_v45  ;;  %v10459_v45 = vor.u32 %v11556_v57, %v10458_v43 }
 0x140   :  { %v701_v9 = vadd.f32 %v700_v47, %v12581_v62  ;;  %v749_v50 = vpop.f32.mrf.mxu3  ;;  %v10714_v47 = vld [vmem:[#allocation8 + $0xf40] sm:$0xf]  ;;  %4428 = vmatpush.bf16.msrb.mxu0 %v9947_v53 }
 0x141   :  { %v761_v51 = vpop.f32.mrf.mxu0  ;;  %v750_v0 = vadd.f32 %v749_v50, %v12584_v1  ;;  %4526 = vmatpush.bf16.msrb.mxu2 %v10459_v45 }
 0x142   :  { %v810_v4 = vpop.f32.mrf.mxu1  ;;  %v11836_v42 = vpop.eup %11835  ;;  %11843 = vtanh.f32 %v701_v9  ;;  %v762_v55 = vadd.f32 %v761_v51, %v12733_v8  ;;  %v10202_v51 = vld [vmem:[#allocation8 + $0xb40] sm:$0xf] }
 0x143   :  { %v11838_v10 = vpop.eup %11837  ;;  %v12735_v12 = vpack.c.bf16 %v11836_v42, %v11832_v48  ;;  %11845 = vtanh.f32 %v750_v0  ;;  %4238 = vmatmul.bf16.vlgmr.msra.gmra.mxu0 %v12592_v32  ;;  %4287 = vmatmul.bf16.vlgmr.msra.gmra.mxu1 %v12595_v33  ;;  %v811_v21 = vadd.f32 %v810_v4, %v12738_v6  ;;  %v11620_v48 = vld [vmem:[#allocation8 + $0xf5c] sm:$0xf0] }
 0x144   :  { %v12741_v62 = vpack.c.bf16 %v11838_v10, %v11834_v60  ;;  %4336 = vmatmul.bf16.vlgmr.msra.gmra.mxu2 %v12602_v46  ;;  %v11840_v1 = vpop.eup %11839  ;;  %11847 = vtanh.f32 %v762_v55  ;;  %v10715_v50 = vor.u32 %v11620_v48, %v10714_v47  ;;  %v11492_v60 = vld [vmem:[#allocation8 + $0xb5c] sm:$0xf0] }
 0x145   :  { %4385 = vmatmul.bf16.vlgmr.msra.gmra.mxu3 %v12605_v49  ;;  %v11842_v22 = vpop.eup %11841  ;;  %11849 = vtanh.f32 %v811_v21  ;;  %v10203_v4 = vor.u32 %v11492_v60, %v10202_v51 }
 0x146   :  { %14805 = vst [vmem:[#allocation41_spill] sm:$0xff] %v12741_v62  ;;  %4575 = vmatpush.bf16.msrb.mxu3 %v10715_v50 }
 0x147   :  { %v859_v39 = vpop.f32.mrf.mxu2  ;;  %4477 = vmatpush.bf16.msrb.mxu1 %v10203_v4  ;;  %v11548_v4 = vld [vmem:[#allocation8 + $0xd1c] sm:$0xf0] }
 0x148   :  { %v11844_v26 = vpop.eup %11843  ;;  %v908_v28 = vpop.f32.mrf.mxu3  ;;  %v860_v9 = vadd.f32 %v859_v39, %v12749_v38 }
 0x149   :  { %v763_v29 = vpop.f32.mrf.mxu0  ;;  %v11846_v31 = vpop.eup %11845  ;;  %v12751_v34 = vpack.c.bf16 %v11844_v26, %v11840_v1  ;;  %v909_v0 = vadd.f32 %v908_v28, %v12754_v24 }
 0x14a   :  { %v764_v36 = vadd.f32 %v763_v29, %v12733_v8  ;;  %v812_v37 = vpop.f32.mrf.mxu1  ;;  %v12757_v40 = vpack.c.bf16 %v11846_v31, %v11842_v22  ;;  %v11848_v10 = vpop.eup %11847 }
 0x14b   :  { %14806 = vst [vmem:[#allocation42_spill] sm:$0xff] %v12751_v34  ;;  %v813_v41 = vadd.f32 %v812_v37, %v12738_v6  ;;  %v11850_v21 = vpop.eup %11849 }
 0x14c   :  { %14807 = vst [vmem:[#allocation43_spill] sm:$0xff] %v12757_v40  ;;  %11851 = vtanh.f32 %v764_v36 }
 0x14d   :  { %11853 = vtanh.f32 %v813_v41 }
 0x14e   :  { %11855 = vtanh.f32 %v860_v9 }
 0x14f   :  { %v861_v42 = vpop.f32.mrf.mxu2  ;;  %11857 = vtanh.f32 %v909_v0  ;;  %v10426_v0 = vld [vmem:[#allocation8 + $0xd00] sm:$0xf] }
 0x150   :  { %v862_v1 = vadd.f32 %v861_v42, %v12749_v38  ;;  %v910_v55 = vpop.f32.mrf.mxu3  ;;  %v9914_v42 = vld [vmem:[#allocation8 + $0x900] sm:$0xf] }
 0x151   :  { %v766_v22 = vpop.f32.mrf.mxu0  ;;  %v911_v39 = vadd.f32 %v910_v55, %v12754_v24  ;;  %v10682_v55 = vld [vmem:[#allocation8 + $0xf00] sm:$0xf] }
 0x152   :  { %v815_v26 = vpop.f32.mrf.mxu1  ;;  %v11852_v29 = vpop.eup %11851  ;;  %11859 = vtanh.f32 %v862_v1  ;;  %v767_v41 = vadd.f32 %v766_v22, %v12733_v8  ;;  %v11420_v1 = vld [vmem:[#allocation8 + $0x91c] sm:$0xf0] }
 0x153   :  { %v11854_v28 = vpop.eup %11853  ;;  %v12764_v31 = vpack.c.bf16 %v11852_v29, %v11848_v10  ;;  %11861 = vtanh.f32 %v911_v39  ;;  %4243 = vmatmul.bf16.gmra.mxu0 %v12612_v17  ;;  %4292 = vmatmul.bf16.gmra.mxu1 %v12615_v18  ;;  %v816_v57 = vadd.f32 %v815_v26, %v12738_v6  ;;  %v10427_v10 = vor.u32 %v11548_v4, %v10426_v0  ;;  %v11612_v22 = vld [vmem:[#allocation8 + $0xf1c] sm:$0xf0] }
 0x154   :  { %v12767_v36 = vpack.c.bf16 %v11854_v28, %v11850_v21  ;;  %4341 = vmatmul.bf16.gmra.mxu2 %v12622_v30  ;;  %v11856_v37 = vpop.eup %11855  ;;  %11863 = vtanh.f32 %v767_v41  ;;  %v9915_v39 = vor.u32 %v11420_v1, %v9914_v42  ;;  %v10683_v26 = vor.u32 %v11612_v22, %v10682_v55  ;;  %v10170_v29 = vld [vmem:[#allocation8 + $0xb00] sm:$0xf] }
 0x155   :  { %14808 = vst [vmem:[#allocation44_spill] sm:$0xff] %v12764_v31  ;;  %4390 = vmatmul.bf16.gmra.mxu3 %v12625_v35  ;;  %v11858_v43 = vpop.eup %11857  ;;  %11865 = vtanh.f32 %v816_v57  ;;  %v11484_v28 = vld [vmem:[#allocation8 + $0xb1c] sm:$0xf0]  ;;  %4527 = vmatpush.bf16.msrb.mxu2 %v10427_v10 }
 0x156   :  { %14809 = vst [vmem:[#allocation45_spill] sm:$0xff] %v12767_v36  ;;  %v10171_v41 = vor.u32 %v11484_v28, %v10170_v29  ;;  %4429 = vmatpush.bf16.msrb.mxu0 %v9915_v39  ;;  %4576 = vmatpush.bf16.msrb.mxu3 %v10683_v26 }
 0x157   :  { %v864_v44 = vpop.f32.mrf.mxu2 }
 0x158   :  { %v11860_v45 = vpop.eup %11859  ;;  %v913_v58 = vpop.f32.mrf.mxu3  ;;  %v865_v21 = vadd.f32 %v864_v44, %v12749_v38  ;;  %4478 = vmatpush.bf16.msrb.mxu1 %v10171_v41 }
 0x159   :  { %v768_v47 = vpop.f32.mrf.mxu0  ;;  %v11862_v48 = vpop.eup %11861  ;;  %v12774_v9 = vpack.c.bf16 %v11860_v45, %v11856_v37  ;;  %v914_v37 = vadd.f32 %v913_v58, %v12754_v24 }
 0x15a   :  { %v769_v53 = vadd.f32 %v768_v47, %v12733_v8  ;;  %v817_v50 = vpop.f32.mrf.mxu1  ;;  %v12777_v51 = vpack.c.bf16 %v11862_v48, %v11858_v43  ;;  %v11864_v57 = vpop.eup %11863 }
 0x15b   :  { %14810 = vst [vmem:[#allocation46_spill] sm:$0xff] %v12774_v9  ;;  %v818_v60 = vadd.f32 %v817_v50, %v12738_v6  ;;  %v11866_v48 = vpop.eup %11865 }
 0x15c   :  { %14811 = vst [vmem:[#allocation47_spill] sm:$0xff] %v12777_v51  ;;  %11867 = vtanh.f32 %v769_v53 }
 0x15d   :  { %11869 = vtanh.f32 %v818_v60 }
 0x15e   :  { %11871 = vtanh.f32 %v865_v21 }
 0x15f   :  { %v866_v43 = vpop.f32.mrf.mxu2  ;;  %11873 = vtanh.f32 %v914_v37 }
 0x160   :  { %v867_v45 = vadd.f32 %v866_v43, %v12749_v38  ;;  %v915_v47 = vpop.f32.mrf.mxu3 }
 0x161   :  { %v771_v44 = vpop.f32.mrf.mxu0  ;;  %v916_v53 = vadd.f32 %v915_v47, %v12754_v24  ;;  %v11540_v47 = vld [vmem:[#allocation8 + $0xcdc] sm:$0xf0] }
 0x162   :  { %v820_v50 = vpop.f32.mrf.mxu1  ;;  %v11868_v0 = vpop.eup %11867  ;;  %11875 = vtanh.f32 %v867_v45  ;;  %v772_v10 = vadd.f32 %v771_v44, %v12733_v8  ;;  %v10394_v45 = vld [vmem:[#allocation8 + $0xcc0] sm:$0xf] }
 0x163   :  { %v11870_v58 = vpop.eup %11869  ;;  %v12784_v60 = vpack.c.bf16 %v11868_v0, %v11864_v57  ;;  %11877 = vtanh.f32 %v916_v53  ;;  %4248 = vmatmul.bf16.gmra.mxu0 %v12632_v5  ;;  %4297 = vmatmul.bf16.gmra.mxu1 %v12635_v7  ;;  %v821_v55 = vadd.f32 %v820_v50, %v12738_v6  ;;  %v9882_v44 = vld [vmem:[#allocation8 + $0x8c0] sm:$0xf] }
 0x164   :  { %v12787_v4 = vpack.c.bf16 %v11870_v58, %v11866_v48  ;;  %4346 = vmatmul.bf16.gmra.mxu2 %v12642_v20  ;;  %v11872_v42 = vpop.eup %11871  ;;  %11879 = vtanh.f32 %v772_v10  ;;  %v10395_v48 = vor.u32 %v11540_v47, %v10394_v45  ;;  %v11412_v53 = vld [vmem:[#allocation8 + $0x8dc] sm:$0xf0] }
 0x165   :  { %14812 = vst [vmem:[#allocation48_spill] sm:$0xff] %v12784_v60  ;;  %4395 = vmatmul.bf16.gmra.mxu3 %v12645_v25  ;;  %v11874_v1 = vpop.eup %11873  ;;  %11881 = vtanh.f32 %v821_v55  ;;  %v10650_v50 = vld [vmem:[#allocation8 + $0xec0] sm:$0xf] }
 0x166   :  { %14813 = vst [vmem:[#allocation49_spill] sm:$0xff] %v12787_v4  ;;  %v11604_v0 = vld [vmem:[#allocation8 + $0xedc] sm:$0xf0]  ;;  %4528 = vmatpush.bf16.msrb.mxu2 %v10395_v48 }
 0x167   :  { %v869_v22 = vpop.f32.mrf.mxu2  ;;  %v11476_v25 = vld [vmem:[#allocation8 + $0xadc] sm:$0xf0] }
 0x168   :  { %v11876_v21 = vpop.eup %11875  ;;  %v918_v39 = vpop.f32.mrf.mxu3  ;;  %v870_v58 = vadd.f32 %v869_v22, %v12749_v38 }
 0x169   :  { %v773_v26 = vpop.f32.mrf.mxu0  ;;  %v11878_v29 = vpop.eup %11877  ;;  %v12794_v28 = vpack.c.bf16 %v11876_v21, %v11872_v42  ;;  %v9883_v42 = vor.u32 %v11412_v53, %v9882_v44  ;;  %v10651_v21 = vor.u32 %v11604_v0, %v10650_v50 }
 0x16a   :  { %v774_v37 = vadd.f32 %v773_v26, %v12733_v8  ;;  %v822_v41 = vpop.f32.mrf.mxu1  ;;  %v12797_v43 = vpack.c.bf16 %v11878_v29, %v11874_v1  ;;  %v10138_v26 = vld [vmem:[#allocation8 + $0xac0] sm:$0xf]  ;;  %v919_v1 = vadd.f32 %v918_v39, %v12754_v24  ;;  %v11880_v55 = vpop.eup %11879 }
 0x16b   :  { %14814 = vst [vmem:[#allocation50_spill] sm:$0xff] %v12794_v28  ;;  %v823_v57 = vadd.f32 %v822_v41, %v12738_v6  ;;  %v10139_v10 = vor.u32 %v11476_v25, %v10138_v26  ;;  %4430 = vmatpush.bf16.msrb.mxu0 %v9883_v42  ;;  %4577 = vmatpush.bf16.msrb.mxu3 %v10651_v21 }
 0x16c   :  { %14815 = vst [vmem:[#allocation51_spill] sm:$0xff] %v12797_v43  ;;  %11883 = vtanh.f32 %v774_v37  ;;  %v11882_v37 = vpop.eup %11881 }
 0x16d   :  { %11885 = vtanh.f32 %v823_v57  ;;  %4479 = vmatpush.bf16.msrb.mxu1 %v10139_v10 }
 0x16e   :  { %11887 = vtanh.f32 %v870_v58 }
 0x16f   :  { %v871_v29 = vpop.f32.mrf.mxu2  ;;  %11889 = vtanh.f32 %v919_v1 }
 0x170   :  { %v872_v41 = vadd.f32 %v871_v29, %v12749_v38  ;;  %v920_v45 = vpop.f32.mrf.mxu3 }
 0x171   :  { %v776_v22 = vpop.f32.mrf.mxu0  ;;  %v921_v47 = vadd.f32 %v920_v45, %v12754_v24 }
 0x172   :  { %v825_v44 = vpop.f32.mrf.mxu1  ;;  %v11884_v53 = vpop.eup %11883  ;;  %11891 = vtanh.f32 %v872_v41  ;;  %v777_v50 = vadd.f32 %v776_v22, %v12733_v8  ;;  %v11532_v22 = vld [vmem:[#allocation8 + $0xc9c] sm:$0xf0] }
 0x173   :  { %v11886_v39 = vpop.eup %11885  ;;  %v12804_v57 = vpack.c.bf16 %v11884_v53, %v11880_v55  ;;  %11893 = vtanh.f32 %v921_v47  ;;  %4253 = vmatmul.bf16.gmra.mxu0 %v12652_v61  ;;  %4302 = vmatmul.bf16.gmra.mxu1 %v12655_v63  ;;  %v826_v58 = vadd.f32 %v825_v44, %v12738_v6  ;;  %v10362_v47 = vld [vmem:[#allocation8 + $0xc80] sm:$0xf] }
 0x174   :  { %v12807_v25 = vpack.c.bf16 %v11886_v39, %v11882_v37  ;;  %4351 = vmatmul.bf16.gmra.mxu2 %v12662_v13  ;;  %v11888_v48 = vpop.eup %11887  ;;  %11895 = vtanh.f32 %v777_v50  ;;  %v9850_v53 = vld [vmem:[#allocation8 + $0x880] sm:$0xf]  ;;  %v10363_v44 = vor.u32 %v11532_v22, %v10362_v47 }
 0x175   :  { %14816 = vst [vmem:[#allocation52_spill] sm:$0xff] %v12804_v57  ;;  %4400 = vmatmul.bf16.gmra.mxu3 %v12665_v16  ;;  %v11890_v0 = vpop.eup %11889  ;;  %11897 = vtanh.f32 %v826_v58  ;;  %v11404_v39 = vld [vmem:[#allocation8 + $0x89c] sm:$0xf0] }
 0x176   :  { %14817 = vst [vmem:[#allocation53_spill] sm:$0xff] %v12807_v25  ;;  %v10618_v16 = vld [vmem:[#allocation8 + $0xe80] sm:$0xf]  ;;  %4529 = vmatpush.bf16.msrb.mxu2 %v10363_v44 }
 0x177   :  { %v874_v42 = vpop.f32.mrf.mxu2  ;;  %v11596_v13 = vld [vmem:[#allocation8 + $0xe9c] sm:$0xf0] }
 0x178   :  { %v11892_v21 = vpop.eup %11891  ;;  %v923_v26 = vpop.f32.mrf.mxu3  ;;  %v875_v63 = vadd.f32 %v874_v42, %v12749_v38  ;;  %v11468_v61 = vld [vmem:[#allocation8 + $0xa9c] sm:$0xf0] }
 0x179   :  { %v778_v1 = vpop.f32.mrf.mxu0  ;;  %v11894_v10 = vpop.eup %11893  ;;  %v12814_v29 = vpack.c.bf16 %v11892_v21, %v11888_v48  ;;  %v9851_v48 = vor.u32 %v11404_v39, %v9850_v53  ;;  %v10619_v21 = vor.u32 %v11596_v13, %v10618_v16 }
 0x17a   :  { %v779_v55 = vadd.f32 %v778_v1, %v12733_v8  ;;  %v827_v41 = vpop.f32.mrf.mxu1  ;;  %v12817_v45 = vpack.c.bf16 %v11894_v10, %v11890_v0  ;;  %v10106_v1 = vld [vmem:[#allocation8 + $0xa80] sm:$0xf]  ;;  %v924_v0 = vadd.f32 %v923_v26, %v12754_v24  ;;  %v11896_v58 = vpop.eup %11895 }
 0x17b   :  { %14818 = vst [vmem:[#allocation54_spill] sm:$0xff] %v12814_v29  ;;  %v828_v37 = vadd.f32 %v827_v41, %v12738_v6  ;;  %v10107_v50 = vor.u32 %v11468_v61, %v10106_v1  ;;  %4431 = vmatpush.bf16.msrb.mxu0 %v9851_v48  ;;  %4578 = vmatpush.bf16.msrb.mxu3 %v10619_v21 }
 0x17c   :  { %14819 = vst [vmem:[#allocation55_spill] sm:$0xff] %v12817_v45  ;;  %11899 = vtanh.f32 %v779_v55  ;;  %v11898_v55 = vpop.eup %11897 }
 0x17d   :  { %11901 = vtanh.f32 %v828_v37  ;;  %4480 = vmatpush.bf16.msrb.mxu1 %v10107_v50 }
 0x17e   :  { %11903 = vtanh.f32 %v875_v63 }
 0x17f   :  { %v876_v10 = vpop.f32.mrf.mxu2  ;;  %11905 = vtanh.f32 %v924_v0 }
 0x180   :  { %v877_v41 = vadd.f32 %v876_v10, %v12749_v38  ;;  %v925_v47 = vpop.f32.mrf.mxu3 }
 0x181   :  { %v781_v42 = vpop.f32.mrf.mxu0  ;;  %v926_v13 = vadd.f32 %v925_v47, %v12754_v24 }
 0x182   :  { %v830_v16 = vpop.f32.mrf.mxu1  ;;  %v11900_v22 = vpop.eup %11899  ;;  %11907 = vtanh.f32 %v877_v41  ;;  %v782_v53 = vadd.f32 %v781_v42, %v12733_v8  ;;  %v11524_v42 = vld [vmem:[#allocation8 + $0xc5c] sm:$0xf0] }
 0x183   :  { %v11902_v26 = vpop.eup %11901  ;;  %v12824_v37 = vpack.c.bf16 %v11900_v22, %v11896_v58  ;;  %11909 = vtanh.f32 %v926_v13  ;;  %4258 = vmatmul.bf16.gmra.mxu0 %v12672_v54  ;;  %4307 = vmatmul.bf16.gmra.mxu1 %v12675_v56  ;;  %v831_v39 = vadd.f32 %v830_v16, %v12738_v6  ;;  %v10330_v13 = vld [vmem:[#allocation8 + $0xc40] sm:$0xf] }
 0x184   :  { %v12827_v61 = vpack.c.bf16 %v11902_v26, %v11898_v55  ;;  %4356 = vmatmul.bf16.gmra.mxu2 %v12682_v11  ;;  %v11904_v63 = vpop.eup %11903  ;;  %11911 = vtanh.f32 %v782_v53  ;;  %v9818_v22 = vld [vmem:[#allocation8 + $0x840] sm:$0xf]  ;;  %v10331_v16 = vor.u32 %v11524_v42, %v10330_v13 }
 0x185   :  { %14820 = vst [vmem:[#allocation56_spill] sm:$0xff] %v12824_v37  ;;  %4405 = vmatmul.bf16.gmra.mxu3 %v12685_v15  ;;  %v11906_v44 = vpop.eup %11905  ;;  %11913 = vtanh.f32 %v831_v39  ;;  %v11396_v26 = vld [vmem:[#allocation8 + $0x85c] sm:$0xf0] }
 0x186   :  { %14821 = vst [vmem:[#allocation57_spill] sm:$0xff] %v12827_v61  ;;  %v10586_v15 = vld [vmem:[#allocation8 + $0xe40] sm:$0xf]  ;;  %4530 = vmatpush.bf16.msrb.mxu2 %v10331_v16 }
 0x187   :  { %v879_v48 = vpop.f32.mrf.mxu2  ;;  %v11588_v11 = vld [vmem:[#allocation8 + $0xe5c] sm:$0xf0] }
 0x188   :  { %v11908_v21 = vpop.eup %11907  ;;  %v928_v1 = vpop.f32.mrf.mxu3  ;;  %v880_v56 = vadd.f32 %v879_v48, %v12749_v38  ;;  %v11460_v54 = vld [vmem:[#allocation8 + $0xa5c] sm:$0xf0] }
 0x189   :  { %v783_v0 = vpop.f32.mrf.mxu0  ;;  %v11910_v50 = vpop.eup %11909  ;;  %v12834_v10 = vpack.c.bf16 %v11908_v21, %v11904_v63  ;;  %v9819_v63 = vor.u32 %v11396_v26, %v9818_v22  ;;  %v10587_v21 = vor.u32 %v11588_v11, %v10586_v15 }
 0x18a   :  { %v784_v58 = vadd.f32 %v783_v0, %v12733_v8  ;;  %v832_v41 = vpop.f32.mrf.mxu1  ;;  %v12837_v47 = vpack.c.bf16 %v11910_v50, %v11906_v44  ;;  %v10074_v0 = vld [vmem:[#allocation8 + $0xa40] sm:$0xf]  ;;  %v929_v44 = vadd.f32 %v928_v1, %v12754_v24  ;;  %v11912_v39 = vpop.eup %11911 }
 0x18b   :  { %14822 = vst [vmem:[#allocation58_spill] sm:$0xff] %v12834_v10  ;;  %v833_v55 = vadd.f32 %v832_v41, %v12738_v6  ;;  %v10075_v53 = vor.u32 %v11460_v54, %v10074_v0  ;;  %4432 = vmatpush.bf16.msrb.mxu0 %v9819_v63  ;;  %4579 = vmatpush.bf16.msrb.mxu3 %v10587_v21 }
 0x18c   :  { %14823 = vst [vmem:[#allocation59_spill] sm:$0xff] %v12837_v47  ;;  %11915 = vtanh.f32 %v784_v58  ;;  %v11914_v58 = vpop.eup %11913 }
 0x18d   :  { %11917 = vtanh.f32 %v833_v55  ;;  %4481 = vmatpush.bf16.msrb.mxu1 %v10075_v53 }
 0x18e   :  { %11919 = vtanh.f32 %v880_v56 }
 0x18f   :  { %v881_v50 = vpop.f32.mrf.mxu2  ;;  %11921 = vtanh.f32 %v929_v44 }
 0x190   :  { %v882_v41 = vadd.f32 %v881_v50, %v12749_v38  ;;  %v930_v13 = vpop.f32.mrf.mxu3 }
 0x191   :  { %v786_v48 = vpop.f32.mrf.mxu0  ;;  %v931_v11 = vadd.f32 %v930_v13, %v12754_v24 }
 0x192   :  { %v835_v15 = vpop.f32.mrf.mxu1  ;;  %v11916_v42 = vpop.eup %11915  ;;  %11923 = vtanh.f32 %v882_v41  ;;  %v787_v22 = vadd.f32 %v786_v48, %v12733_v8  ;;  %v11516_v48 = vld [vmem:[#allocation8 + $0xc1c] sm:$0xf0] }
 0x193   :  { %v11918_v1 = vpop.eup %11917  ;;  %v12844_v55 = vpack.c.bf16 %v11916_v42, %v11912_v39  ;;  %11925 = vtanh.f32 %v931_v11  ;;  %4263 = vmatmul.bf16.gmra.mxu0 %v12692_v52  ;;  %4312 = vmatmul.bf16.gmra.mxu1 %v12695_v59  ;;  %v836_v26 = vadd.f32 %v835_v15, %v12738_v6  ;;  %v10298_v11 = vld [vmem:[#allocation8 + $0xc00] sm:$0xf] }
 0x194   :  { %v12847_v54 = vpack.c.bf16 %v11918_v1, %v11914_v58  ;;  %4361 = vmatmul.bf16.gmra.mxu2 %v12702_v14  ;;  %v11920_v56 = vpop.eup %11919  ;;  %11927 = vtanh.f32 %v787_v22  ;;  %v9786_v42 = vld [vmem:[#allocation8 + $0x800] sm:$0xf]  ;;  %v10299_v15 = vor.u32 %v11516_v48, %v10298_v11 }
 0x195   :  { %14824 = vst [vmem:[#allocation60_spill] sm:$0xff] %v12844_v55  ;;  %4410 = vmatmul.bf16.gmra.mxu3 %v12705_v19  ;;  %v11922_v16 = vpop.eup %11921  ;;  %11929 = vtanh.f32 %v836_v26  ;;  %v11388_v1 = vld [vmem:[#allocation8 + $0x81c] sm:$0xf0] }
 0x196   :  { %14825 = vst [vmem:[#allocation61_spill] sm:$0xff] %v12847_v54  ;;  %v10554_v19 = vld [vmem:[#allocation8 + $0xe00] sm:$0xf]  ;;  %4531 = vmatpush.bf16.msrb.mxu2 %v10299_v15 }
 0x197   :  { %v884_v63 = vpop.f32.mrf.mxu2  ;;  %v11580_v14 = vld [vmem:[#allocation8 + $0xe1c] sm:$0xf0] }
 0x198   :  { %v11924_v21 = vpop.eup %11923  ;;  %v933_v0 = vpop.f32.mrf.mxu3  ;;  %v885_v59 = vadd.f32 %v884_v63, %v12749_v38  ;;  %v11452_v52 = vld [vmem:[#allocation8 + $0xa1c] sm:$0xf0] }
 0x199   :  { %v788_v44 = vpop.f32.mrf.mxu0  ;;  %v11926_v53 = vpop.eup %11925  ;;  %v12854_v50 = vpack.c.bf16 %v11924_v21, %v11920_v56  ;;  %v9787_v56 = vor.u32 %v11388_v1, %v9786_v42  ;;  %v10555_v21 = vor.u32 %v11580_v14, %v10554_v19 }
 0x19a   :  { %v789_v39 = vadd.f32 %v788_v44, %v12733_v8  ;;  %v837_v41 = vpop.f32.mrf.mxu1  ;;  %v12857_v13 = vpack.c.bf16 %v11926_v53, %v11922_v16  ;;  %v10042_v44 = vld [vmem:[#allocation8 + $0xa00] sm:$0xf]  ;;  %v934_v16 = vadd.f32 %v933_v0, %v12754_v24  ;;  %v11928_v26 = vpop.eup %11927 }
 0x19b   :  { %14826 = vst [vmem:[#allocation62_spill] sm:$0xff] %v12854_v50  ;;  %v838_v58 = vadd.f32 %v837_v41, %v12738_v6  ;;  %v10043_v22 = vor.u32 %v11452_v52, %v10042_v44  ;;  %4433 = vmatpush.bf16.msrb.mxu0 %v9787_v56  ;;  %4580 = vmatpush.bf16.msrb.mxu3 %v10555_v21 }
 0x19c   :  { %14827 = vst [vmem:[#allocation63_spill] sm:$0xff] %v12857_v13  ;;  %11931 = vtanh.f32 %v789_v39  ;;  %v11930_v39 = vpop.eup %11929 }
 0x19d   :  { %11933 = vtanh.f32 %v838_v58  ;;  %4482 = vmatpush.bf16.msrb.mxu1 %v10043_v22 }
 0x19e   :  { %11935 = vtanh.f32 %v885_v59 }
 0x19f   :  { %v886_v53 = vpop.f32.mrf.mxu2  ;;  %11937 = vtanh.f32 %v934_v16 }
 0x1a0   :  { %v887_v41 = vadd.f32 %v886_v53, %v12749_v38  ;;  %v935_v11 = vpop.f32.mrf.mxu3 }
 0x1a1   :  { %v791_v63 = vpop.f32.mrf.mxu0  ;;  %v936_v14 = vadd.f32 %v935_v11, %v12754_v24 }
 0x1a2   :  { %v840_v19 = vpop.f32.mrf.mxu1  ;;  %v11932_v48 = vpop.eup %11931  ;;  %11939 = vtanh.f32 %v887_v41  ;;  %v792_v42 = vadd.f32 %v791_v63, %v12733_v8  ;;  %v9500_v63 = vld [vmem:[#allocation8 + $0x5e0] sm:$0xf0] }
 0x1a3   :  { %v11934_v0 = vpop.eup %11933  ;;  %v12864_v58 = vpack.c.bf16 %v11932_v48, %v11928_v26  ;;  %11941 = vtanh.f32 %v936_v14  ;;  %4268 = vmatmul.bf16.gmra.mxu0 %v12712_v2  ;;  %4317 = vmatmul.bf16.gmra.mxu1 %v12715_v3  ;;  %v841_v1 = vadd.f32 %v840_v19, %v12738_v6  ;;  %v11312_v14 = vld [vmem:[#allocation8 + $0x5c4] sm:$0xf] }
 0x1a4   :  { %v12867_v52 = vpack.c.bf16 %v11934_v0, %v11930_v39  ;;  %4366 = vmatmul.bf16.gmra.mxu2 %v12722_v23  ;;  %v11936_v59 = vpop.eup %11935  ;;  %11943 = vtanh.f32 %v792_v42  ;;  %v11184_v48 = vld [vmem:[#allocation8 + $0x1c4] sm:$0xf]  ;;  %v9503_v19 = vor.u32 %v11312_v14, %v9500_v63 }
 0x1a5   :  { %14828 = vst [vmem:[#allocation64_spill] sm:$0xff] %v12864_v58  ;;  %4415 = vmatmul.bf16.gmra.mxu3 %v12725_v27  ;;  %v11938_v15 = vpop.eup %11937  ;;  %11945 = vtanh.f32 %v841_v1  ;;  %v8988_v0 = vld [vmem:[#allocation8 + $0x1e0] sm:$0xf0] }
 0x1a6   :  { %14829 = vst [vmem:[#allocation65_spill] sm:$0xff] %v12867_v52  ;;  %v11376_v27 = vld [vmem:[#allocation8 + $0x7c4] sm:$0xf]  ;;  %4720 = vmatpush.bf16.msra.mxu2 %v9503_v19 }
 0x1a7   :  { %v889_v56 = vpop.f32.mrf.mxu2  ;;  %v9756_v23 = vld [vmem:[#allocation8 + $0x7e0] sm:$0xf0] }
 0x1a8   :  { %v11940_v21 = vpop.eup %11939  ;;  %v938_v44 = vpop.f32.mrf.mxu3  ;;  %v890_v3 = vadd.f32 %v889_v56, %v12749_v38  ;;  %v9244_v2 = vld [vmem:[#allocation8 + $0x3e0] sm:$0xf0] }
 0x1a9   :  { %v793_v16 = vpop.f32.mrf.mxu0  ;;  %v11942_v22 = vpop.eup %11941  ;;  %v12874_v53 = vpack.c.bf16 %v11940_v21, %v11936_v59  ;;  %v8991_v59 = vor.u32 %v11184_v48, %v8988_v0  ;;  %v9759_v21 = vor.u32 %v11376_v27, %v9756_v23  ;;  %v9468_v48 = vld [vmem:[#allocation8 + $0x5a0] sm:$0xf0] }
 0x1aa   :  { %v794_v26 = vadd.f32 %v793_v16, %v12733_v8  ;;  %v842_v41 = vpop.f32.mrf.mxu1  ;;  %v12877_v11 = vpack.c.bf16 %v11942_v22, %v11938_v15  ;;  %v11248_v16 = vld [vmem:[#allocation8 + $0x3c4] sm:$0xf]  ;;  %v939_v15 = vadd.f32 %v938_v44, %v12754_v24  ;;  %v11944_v1 = vpop.eup %11943 }
 0x1ab   :  { %14830 = vst [vmem:[#allocation66_spill] sm:$0xff] %v12874_v53  ;;  %v843_v39 = vadd.f32 %v842_v41, %v12738_v6  ;;  %v9247_v42 = vor.u32 %v11248_v16, %v9244_v2  ;;  %4622 = vmatpush.bf16.msra.mxu0 %v8991_v59  ;;  %4769 = vmatpush.bf16.msra.mxu3 %v9759_v21  ;;  %v11176_v19 = vld [vmem:[#allocation8 + $0x184] sm:$0xf] }
 0x1ac   :  { %14831 = vst [vmem:[#allocation67_spill] sm:$0xff] %v12877_v11  ;;  %11947 = vtanh.f32 %v794_v26  ;;  %v11946_v26 = vpop.eup %11945  ;;  %v8956_v16 = vld [vmem:[#allocation8 + $0x1a0] sm:$0xf0] }
 0x1ad   :  { %11949 = vtanh.f32 %v843_v39  ;;  %4671 = vmatpush.bf16.msra.mxu1 %v9247_v42  ;;  %v9724_v42 = vld [vmem:[#allocation8 + $0x7a0] sm:$0xf0] }
 0x1ae   :  { %11951 = vtanh.f32 %v890_v3  ;;  %v11304_v3 = vld [vmem:[#allocation8 + $0x584] sm:$0xf] }
 0x1af   :  { %v891_v22 = vpop.f32.mrf.mxu2  ;;  %11953 = vtanh.f32 %v939_v15  ;;  %v9471_v21 = vor.u32 %v11304_v3, %v9468_v48  ;;  %v11368_v15 = vld [vmem:[#allocation8 + $0x784] sm:$0xf] }
 0x1b0   :  { %v892_v41 = vadd.f32 %v891_v22, %v12749_v38  ;;  %v940_v14 = vpop.f32.mrf.mxu3  ;;  %v1652_v48 = vld [vmem:[#allocation10] sm:$0xff] }
 0x1b1   :  { %v796_v56 = vpop.f32.mrf.mxu0  ;;  %v941_v23 = vadd.f32 %v940_v14, %v12754_v24  ;;  %v8959_v14 = vor.u32 %v11176_v19, %v8956_v16  ;;  %4721 = vmatpush.bf16.msra.mxu2 %v9471_v21  ;;  %v11240_v19 = vld [vmem:[#allocation8 + $0x384] sm:$0xf] }
 0x1b2   :  { %v845_v27 = vpop.f32.mrf.mxu1  ;;  %v11948_v63 = vpop.eup %11947  ;;  %11955 = vtanh.f32 %v892_v41  ;;  %v797_v59 = vadd.f32 %v796_v56, %v12733_v8  ;;  %v9212_v16 = vld [vmem:[#allocation8 + $0x3a0] sm:$0xf0] }
 0x1b3   :  { %v11950_v44 = vpop.eup %11949  ;;  %v12884_v39 = vpack.c.bf16 %v11948_v63, %v11944_v1  ;;  %11957 = vtanh.f32 %v941_v23  ;;  %4273 = vmatmul.bf16.gmra.mxu0 %v12735_v12  ;;  %4322 = vmatmul.bf16.gmra.mxu1 %v12741_v62  ;;  %v846_v1 = vadd.f32 %v845_v27, %v12738_v6 }
 0x1b4   :  { %v12887_v2 = vpack.c.bf16 %v11950_v44, %v11946_v26  ;;  %4371 = vmatmul.bf16.gmra.mxu2 %v12751_v34  ;;  %v11952_v0 = vpop.eup %11951  ;;  %v9727_v26 = vor.u32 %v11368_v15, %v9724_v42  ;;  %4623 = vmatpush.bf16.msra.mxu0 %v8959_v14  ;;  %11959 = vtanh.f32 %v797_v59  ;;  %v9215_v15 = vor.u32 %v11240_v19, %v9212_v16  ;;  %v8924_v16 = vld [vmem:[#allocation8 + $0x160] sm:$0xf0] }
 0x1b5   :  { %14832 = vst [vmem:[#allocation68_spill] sm:$0xff] %v12884_v39  ;;  %4420 = vmatmul.bf16.gmra.mxu3 %v12757_v40  ;;  %v11954_v22 = vpop.eup %11953  ;;  %11961 = vtanh.f32 %v846_v1 }
 0x1b6   :  { %14833 = vst [vmem:[#allocation69_spill] sm:$0xff] %v12887_v2  ;;  %4770 = vmatpush.bf16.msra.mxu3 %v9727_v26  ;;  %4672 = vmatpush.bf16.msra.mxu1 %v9215_v15  ;;  %v11360_v15 = vld [vmem:[#allocation8 + $0x744] sm:$0xf] }
 0x1b7   :  { %v894_v41 = vpop.f32.mrf.mxu2 }
 0x1b8   :  { %v11956_v23 = vpop.eup %11955  ;;  %v943_v63 = vpop.f32.mrf.mxu3  ;;  %v895_v21 = vadd.f32 %v894_v41, %v12749_v38 }
 0x1b9   :  { %v798_v44 = vpop.f32.mrf.mxu0  ;;  %v11958_v40 = vpop.eup %11957  ;;  %v12894_v34 = vpack.c.bf16 %v11956_v23, %v11952_v0  ;;  %v944_v0 = vadd.f32 %v943_v63, %v12754_v24 }
 0x1ba   :  { %v799_v62 = vadd.f32 %v798_v44, %v12733_v8  ;;  %v847_v56 = vpop.f32.mrf.mxu1  ;;  %v12897_v3 = vpack.c.bf16 %v11958_v40, %v11954_v22  ;;  %v12902_v8 = vperm.slane %v1652_v48, 0  ;;  %v11960_v40 = vpop.eup %11959 }
 0x1bb   :  { %14834 = vst [vmem:[#allocation70_spill] sm:$0xff] %v12894_v34  ;;  %v848_v27 = vadd.f32 %v847_v56, %v12738_v6  ;;  %v11962_v14 = vpop.eup %11961 }
 0x1bc   :  { %14835 = vst [vmem:[#allocation71_spill] sm:$0xff] %v12897_v3  ;;  %11963 = vtanh.f32 %v799_v62 }
 0x1bd   :  { %11965 = vtanh.f32 %v848_v27  ;;  %v11168_v27 = vld [vmem:[#allocation8 + $0x144] sm:$0xf] }
 0x1be   :  { %11967 = vtanh.f32 %v895_v21  ;;  %v9692_v21 = vld [vmem:[#allocation8 + $0x760] sm:$0xf0] }
 0x1bf   :  { %v896_v42 = vpop.f32.mrf.mxu2  ;;  %11969 = vtanh.f32 %v944_v0 }
 0x1c0   :  { %v897_v59 = vadd.f32 %v896_v42, %v12749_v38  ;;  %v945_v6 = vpop.f32.mrf.mxu3  ;;  %v11296_v38 = vld [vmem:[#allocation8 + $0x544] sm:$0xf] }
 0x1c1   :  { %v4239_v22 = vpop.f32.mrf.mxu0  ;;  %v946_v1 = vadd.f32 %v945_v6, %v12754_v24  ;;  %v9436_v24 = vld [vmem:[#allocation8 + $0x560] sm:$0xf0] }
 0x1c2   :  { %v4240_v41 = vadd.f32 %v4239_v22, %v12902_v8  ;;  %v4288_v62 = vpop.f32.mrf.mxu1  ;;  %v11964_v26 = vpop.eup %11963  ;;  %11971 = vtanh.f32 %v897_v59  ;;  %v9439_v19 = vor.u32 %v11296_v38, %v9436_v24  ;;  %v9695_v59 = vor.u32 %v11360_v15, %v9692_v21 }
 0x1c3   :  { %v11966_v23 = vpop.eup %11965  ;;  %v12907_v63 = vpack.c.bf16 %v11964_v26, %v11960_v40  ;;  %11973 = vtanh.f32 %v946_v1  ;;  %4434 = vmatmul.bf16.vlgmr.msrb.gmra.mxu0 %v12764_v31  ;;  %4483 = vmatmul.bf16.vlgmr.msrb.gmra.mxu1 %v12767_v36  ;;  %v8927_v40 = vor.u32 %v11168_v27, %v8924_v16  ;;  %v9180_v27 = vld [vmem:[#allocation8 + $0x360] sm:$0xf0] }
 0x1c4   :  { %v4289_v44 = vadd.f32 %v4288_v62, %v4240_v41  ;;  %v12910_v56 = vpack.c.bf16 %v11966_v23, %v11962_v14  ;;  %4532 = vmatmul.bf16.vlgmr.msrb.gmra.mxu2 %v12774_v9  ;;  %v11968_v48 = vpop.eup %11967  ;;  %4771 = vmatpush.bf16.msra.mxu3 %v9695_v59  ;;  %v11160_v59 = vld [vmem:[#allocation8 + $0x104] sm:$0xf] }
 0x1c5   :  { %14836 = vst [vmem:[#allocation72_spill] sm:$0xff] %v12907_v63  ;;  %4581 = vmatmul.bf16.vlgmr.msrb.gmra.mxu3 %v12777_v51  ;;  %v11970_v0 = vpop.eup %11969  ;;  %4722 = vmatpush.bf16.msra.mxu2 %v9439_v19  ;;  %v11232_v51 = vld [vmem:[#allocation8 + $0x344] sm:$0xf] }
 0x1c6   :  { %14837 = vst [vmem:[#allocation73_spill] sm:$0xff] %v12910_v56  ;;  %4624 = vmatpush.bf16.msra.mxu0 %v8927_v40  ;;  %v9183_v15 = vor.u32 %v11232_v51, %v9180_v27  ;;  %v11288_v51 = vld [vmem:[#allocation8 + $0x504] sm:$0xf] }
 0x1c7   :  { %v4337_v42 = vpop.f32.mrf.mxu2 }
 0x1c8   :  { %v11972_v6 = vpop.eup %11971  ;;  %v4338_v22 = vadd.f32 %v4337_v42, %v4289_v44  ;;  %v4386_v14 = vpop.f32.mrf.mxu3  ;;  %4673 = vmatpush.bf16.msra.mxu1 %v9183_v15 }
 0x1c9   :  { %v4241_v1 = vpop.f32.mrf.mxu0  ;;  %v11974_v41 = vpop.eup %11973  ;;  %v12915_v62 = vpack.c.bf16 %v11972_v6, %v11968_v48 }
 0x1ca   :  { %v4242_v26 = vadd.f32 %v4241_v1, %v12902_v8  ;;  %v4290_v23 = vpop.f32.mrf.mxu1  ;;  %v12918_v38 = vpack.c.bf16 %v11974_v41, %v11970_v0  ;;  %v12920_v24 = vadd.f32 %v4386_v14, %v4338_v22  ;;  %v9404_v0 = vld [vmem:[#allocation8 + $0x520] sm:$0xf0] }
 0x1cb   :  { %14838 = vst [vmem:[#allocation74_spill] sm:$0xff] %v12915_v62  ;;  %v9407_v22 = vor.u32 %v11288_v51, %v9404_v0  ;;  %v8892_v14 = vld [vmem:[#allocation8 + $0x120] sm:$0xf0] }
 0x1cc   :  { %14839 = vst [vmem:[#allocation75_spill] sm:$0xff] %v12918_v38  ;;  %v4291_v16 = vadd.f32 %v4290_v23, %v4242_v26  ;;  %v11352_v41 = vld [vmem:[#allocation8 + $0x704] sm:$0xf]  ;;  %v8895_v27 = vor.u32 %v11160_v59, %v8892_v14 }
 0x1cd   :  { %v9660_v26 = vld [vmem:[#allocation8 + $0x720] sm:$0xf0]  ;;  %4723 = vmatpush.bf16.msra.mxu2 %v9407_v22 }
 0x1ce   :  { %4625 = vmatpush.bf16.msra.mxu0 %v8895_v27  ;;  %v11152_v27 = vld [vmem:[#allocation8 + $0xc4] sm:$0xf] }
 0x1cf   :  { %v4339_v44 = vpop.f32.mrf.mxu2 }
 0x1d0   :  { %v4340_v21 = vadd.f32 %v4339_v44, %v4291_v16  ;;  %v4388_v19 = vpop.f32.mrf.mxu3  ;;  %v9663_v16 = vor.u32 %v11352_v41, %v9660_v26 }
 0x1d1   :  { %v4244_v42 = vpop.f32.mrf.mxu0 }
 0x1d2   :  { %v4245_v48 = vadd.f32 %v4244_v42, %v12902_v8  ;;  %v4293_v6 = vpop.f32.mrf.mxu1  ;;  %v12923_v1 = vadd.f32 %v4388_v19, %v4340_v21  ;;  %4772 = vmatpush.bf16.msra.mxu3 %v9663_v16  ;;  %v8860_v16 = vld [vmem:[#allocation8 + $0xe0] sm:$0xf0] }
 0x1d3   :  { %4439 = vmatmul.bf16.gmra.mxu0 %v12784_v60  ;;  %4488 = vmatmul.bf16.gmra.mxu1 %v12787_v4 }
 0x1d4   :  { %v4294_v40 = vadd.f32 %v4293_v6, %v4245_v48  ;;  %4537 = vmatmul.bf16.gmra.mxu2 %v12794_v28  ;;  %v11224_v6 = vld [vmem:[#allocation8 + $0x304] sm:$0xf] }
 0x1d5   :  { %4586 = vmatmul.bf16.gmra.mxu3 %v12797_v43  ;;  %v9148_v43 = vld [vmem:[#allocation8 + $0x320] sm:$0xf0] }
 0x1d6   :  { %v9151_v0 = vor.u32 %v11224_v6, %v9148_v43  ;;  %v11280_v43 = vld [vmem:[#allocation8 + $0x4c4] sm:$0xf] }
 0x1d7   :  { %v4342_v23 = vpop.f32.mrf.mxu2 }
 0x1d8   :  { %v4343_v15 = vadd.f32 %v4342_v23, %v4294_v40  ;;  %v4391_v44 = vpop.f32.mrf.mxu3  ;;  %4674 = vmatpush.bf16.msra.mxu1 %v9151_v0  ;;  %v9372_v23 = vld [vmem:[#allocation8 + $0x4e0] sm:$0xf0] }
 0x1d9   :  { %v4246_v21 = vpop.f32.mrf.mxu0 }
 0x1da   :  { %v4247_v19 = vadd.f32 %v4246_v21, %v12902_v8  ;;  %v4295_v42 = vpop.f32.mrf.mxu1  ;;  %v12930_v48 = vadd.f32 %v4391_v44, %v4343_v15  ;;  %v11344_v15 = vld [vmem:[#allocation8 + $0x6c4] sm:$0xf] }
 0x1db   :  { %v9628_v44 = vld [vmem:[#allocation8 + $0x6e0] sm:$0xf0] }
 0x1dc   :  { %v4296_v51 = vadd.f32 %v4295_v42, %v4247_v19  ;;  %v8863_v19 = vor.u32 %v11152_v27, %v8860_v16 }
 0x1de   :  { %4626 = vmatpush.bf16.msra.mxu0 %v8863_v19  ;;  %v9340_v19 = vld [vmem:[#allocation8 + $0x4a0] sm:$0xf0] }
 0x1df   :  { %v4344_v28 = vpop.f32.mrf.mxu2 }
 0x1e0   :  { %v4345_v4 = vadd.f32 %v4344_v28, %v4296_v51  ;;  %v4393_v59 = vpop.f32.mrf.mxu3  ;;  %v9375_v28 = vor.u32 %v11280_v43, %v9372_v23 }
 0x1e1   :  { %v4249_v14 = vpop.f32.mrf.mxu0 }
 0x1e2   :  { %v4250_v40 = vadd.f32 %v4249_v14, %v12902_v8  ;;  %v4298_v41 = vpop.f32.mrf.mxu1  ;;  %v12933_v22 = vadd.f32 %v4393_v59, %v4345_v4  ;;  %v9631_v4 = vor.u32 %v11344_v15, %v9628_v44  ;;  %4724 = vmatpush.bf16.msra.mxu2 %v9375_v28 }
 0x1e3   :  { %4444 = vmatmul.bf16.gmra.mxu0 %v12804_v57  ;;  %4493 = vmatmul.bf16.gmra.mxu1 %v12807_v25 }
 0x1e4   :  { %v4299_v26 = vadd.f32 %v4298_v41, %v4250_v40  ;;  %4542 = vmatmul.bf16.gmra.mxu2 %v12814_v29  ;;  %4773 = vmatpush.bf16.msra.mxu3 %v9631_v4  ;;  %v11216_v40 = vld [vmem:[#allocation8 + $0x2c4] sm:$0xf] }
 0x1e5   :  { %4591 = vmatmul.bf16.gmra.mxu3 %v12817_v45  ;;  %v9116_v41 = vld [vmem:[#allocation8 + $0x2e0] sm:$0xf0] }
 0x1e6   :  { %v9119_v23 = vor.u32 %v11216_v40, %v9116_v41  ;;  %v11144_v4 = vld [vmem:[#allocation8 + $0x84] sm:$0xf] }
 0x1e7   :  { %v4347_v21 = vpop.f32.mrf.mxu2 }
 0x1e8   :  { %v4348_v42 = vadd.f32 %v4347_v21, %v4299_v26  ;;  %v4396_v6 = vpop.f32.mrf.mxu3  ;;  %4675 = vmatpush.bf16.msra.mxu1 %v9119_v23  ;;  %v11272_v21 = vld [vmem:[#allocation8 + $0x484] sm:$0xf] }
 0x1e9   :  { %v4251_v51 = vpop.f32.mrf.mxu0 }
 0x1ea   :  { %v4252_v0 = vadd.f32 %v4251_v51, %v12902_v8  ;;  %v4300_v59 = vpop.f32.mrf.mxu1  ;;  %v12940_v14 = vadd.f32 %v4396_v6, %v4348_v42  ;;  %v8828_v42 = vld [vmem:[#allocation8 + $0xa0] sm:$0xf0] }
 0x1eb   :  { %v11336_v6 = vld [vmem:[#allocation8 + $0x684] sm:$0xf] }
 0x1ec   :  { %v4301_v43 = vadd.f32 %v4300_v59, %v4252_v0  ;;  %v9596_v51 = vld [vmem:[#allocation8 + $0x6a0] sm:$0xf0]  ;;  %v8831_v59 = vor.u32 %v11144_v4, %v8828_v42 }
 0x1ee   :  { %4627 = vmatpush.bf16.msra.mxu0 %v8831_v59  ;;  %v9308_v59 = vld [vmem:[#allocation8 + $0x460] sm:$0xf0] }
 0x1ef   :  { %v4349_v45 = vpop.f32.mrf.mxu2 }
 0x1f0   :  { %v4350_v29 = vadd.f32 %v4349_v45, %v4301_v43  ;;  %v4398_v27 = vpop.f32.mrf.mxu3  ;;  %v9343_v45 = vor.u32 %v11272_v21, %v9340_v19 }
 0x1f1   :  { %v4254_v16 = vpop.f32.mrf.mxu0 }
 0x1f2   :  { %v4255_v26 = vadd.f32 %v4254_v16, %v12902_v8  ;;  %v4303_v15 = vpop.f32.mrf.mxu1  ;;  %v12943_v28 = vadd.f32 %v4398_v27, %v4350_v29  ;;  %v9599_v29 = vor.u32 %v11336_v6, %v9596_v51  ;;  %4725 = vmatpush.bf16.msra.mxu2 %v9343_v45 }
 0x1f3   :  { %4449 = vmatmul.bf16.gmra.mxu0 %v12824_v37  ;;  %4498 = vmatmul.bf16.gmra.mxu1 %v12827_v61 }
 0x1f4   :  { %v4304_v44 = vadd.f32 %v4303_v15, %v4255_v26  ;;  %4547 = vmatmul.bf16.gmra.mxu2 %v12834_v10  ;;  %4774 = vmatpush.bf16.msra.mxu3 %v9599_v29  ;;  %v11208_v26 = vld [vmem:[#allocation8 + $0x284] sm:$0xf] }
 0x1f5   :  { %4596 = vmatmul.bf16.gmra.mxu3 %v12837_v47  ;;  %v9084_v15 = vld [vmem:[#allocation8 + $0x2a0] sm:$0xf0] }
 0x1f6   :  { %v9087_v19 = vor.u32 %v11208_v26, %v9084_v15  ;;  %v11136_v29 = vld [vmem:[#allocation8 + $0x44] sm:$0xf] }
 0x1f7   :  { %v4352_v0 = vpop.f32.mrf.mxu2 }
 0x1f8   :  { %v4353_v40 = vadd.f32 %v4352_v0, %v4304_v44  ;;  %v4401_v41 = vpop.f32.mrf.mxu3  ;;  %4676 = vmatpush.bf16.msra.mxu1 %v9087_v19  ;;  %v11264_v0 = vld [vmem:[#allocation8 + $0x444] sm:$0xf] }
 0x1f9   :  { %v4256_v43 = vpop.f32.mrf.mxu0 }
 0x1fa   :  { %v4257_v23 = vadd.f32 %v4256_v43, %v12902_v8  ;;  %v4305_v27 = vpop.f32.mrf.mxu1  ;;  %v12950_v16 = vadd.f32 %v4401_v41, %v4353_v40  ;;  %v8796_v40 = vld [vmem:[#allocation8 + $0x60] sm:$0xf0] }
 0x1fb   :  { %v11328_v41 = vld [vmem:[#allocation8 + $0x644] sm:$0xf] }
 0x1fc   :  { %v4306_v21 = vadd.f32 %v4305_v27, %v4257_v23  ;;  %v9564_v43 = vld [vmem:[#allocation8 + $0x660] sm:$0xf0]  ;;  %v8799_v27 = vor.u32 %v11136_v29, %v8796_v40 }
 0x1fe   :  { %4628 = vmatpush.bf16.msra.mxu0 %v8799_v27  ;;  %v9276_v27 = vld [vmem:[#allocation8 + $0x420] sm:$0xf0] }
 0x1ff   :  { %v4354_v47 = vpop.f32.mrf.mxu2 }
 0x200   :  { %v4355_v10 = vadd.f32 %v4354_v47, %v4306_v21  ;;  %v4403_v4 = vpop.f32.mrf.mxu3  ;;  %v9311_v47 = vor.u32 %v11264_v0, %v9308_v59 }
 0x201   :  { %v4259_v42 = vpop.f32.mrf.mxu0 }
 0x202   :  { %v4260_v44 = vadd.f32 %v4259_v42, %v12902_v8  ;;  %v4308_v6 = vpop.f32.mrf.mxu1  ;;  %v12953_v45 = vadd.f32 %v4403_v4, %v4355_v10  ;;  %v9567_v10 = vor.u32 %v11328_v41, %v9564_v43  ;;  %4726 = vmatpush.bf16.msra.mxu2 %v9311_v47 }
 0x203   :  { %4454 = vmatmul.bf16.gmra.mxu0 %v12844_v55  ;;  %4503 = vmatmul.bf16.gmra.mxu1 %v12847_v54 }
 0x204   :  { %v4309_v51 = vadd.f32 %v4308_v6, %v4260_v44  ;;  %4552 = vmatmul.bf16.gmra.mxu2 %v12854_v50  ;;  %4775 = vmatpush.bf16.msra.mxu3 %v9567_v10  ;;  %v11200_v44 = vld [vmem:[#allocation8 + $0x244] sm:$0xf] }
 0x205   :  { %4601 = vmatmul.bf16.gmra.mxu3 %v12857_v13  ;;  %v9052_v6 = vld [vmem:[#allocation8 + $0x260] sm:$0xf0] }
 0x206   :  { %v9055_v59 = vor.u32 %v11200_v44, %v9052_v6  ;;  %v11128_v10 = vld [vmem:[#allocation8 + $0x4] sm:$0xf] }
 0x207   :  { %v4357_v23 = vpop.f32.mrf.mxu2 }
 0x208   :  { %v4358_v26 = vadd.f32 %v4357_v23, %v4309_v51  ;;  %v4406_v15 = vpop.f32.mrf.mxu3  ;;  %4677 = vmatpush.bf16.msra.mxu1 %v9055_v59  ;;  %v11256_v23 = vld [vmem:[#allocation8 + $0x404] sm:$0xf] }
 0x209   :  { %v4261_v21 = vpop.f32.mrf.mxu0 }
 0x20a   :  { %v4262_v19 = vadd.f32 %v4261_v21, %v12902_v8  ;;  %v4310_v4 = vpop.f32.mrf.mxu1  ;;  %v12960_v42 = vadd.f32 %v4406_v15, %v4358_v26  ;;  %v8764_v26 = vld [vmem:[#allocation8 + $0x20] sm:$0xf0] }
 0x20b   :  { %v11320_v15 = vld [vmem:[#allocation8 + $0x604] sm:$0xf] }
 0x20c   :  { %v4311_v0 = vadd.f32 %v4310_v4, %v4262_v19  ;;  %v9532_v21 = vld [vmem:[#allocation8 + $0x620] sm:$0xf0]  ;;  %v8767_v4 = vor.u32 %v11128_v10, %v8764_v26 }
 0x20e   :  { %4629 = vmatpush.bf16.msra.mxu0 %v8767_v4  ;;  %v10524_v4 = vld [vmem:[#allocation8 + $0xde0] sm:$0xf0] }
 0x20f   :  { %v4359_v13 = vpop.f32.mrf.mxu2 }
 0x210   :  { %v4360_v50 = vadd.f32 %v4359_v13, %v4311_v0  ;;  %v4408_v29 = vpop.f32.mrf.mxu3  ;;  %v9279_v13 = vor.u32 %v11256_v23, %v9276_v27 }
 0x211   :  { %v4264_v40 = vpop.f32.mrf.mxu0 }
 0x212   :  { %v4265_v51 = vadd.f32 %v4264_v40, %v12902_v8  ;;  %v4313_v41 = vpop.f32.mrf.mxu1  ;;  %v12963_v47 = vadd.f32 %v4408_v29, %v4360_v50  ;;  %v9535_v50 = vor.u32 %v11320_v15, %v9532_v21  ;;  %4727 = vmatpush.bf16.msra.mxu2 %v9279_v13 }
 0x213   :  { %4459 = vmatmul.bf16.gmra.mxu0 %v12864_v58  ;;  %4508 = vmatmul.bf16.gmra.mxu1 %v12867_v52 }
 0x214   :  { %v4314_v43 = vadd.f32 %v4313_v41, %v4265_v51  ;;  %4557 = vmatmul.bf16.gmra.mxu2 %v12874_v53  ;;  %4776 = vmatpush.bf16.msra.mxu3 %v9535_v50  ;;  %v11192_v51 = vld [vmem:[#allocation8 + $0x204] sm:$0xf] }
 0x215   :  { %4606 = vmatmul.bf16.gmra.mxu3 %v12877_v11  ;;  %v9020_v41 = vld [vmem:[#allocation8 + $0x220] sm:$0xf0] }
 0x216   :  { %v9023_v27 = vor.u32 %v11192_v51, %v9020_v41  ;;  %v11440_v50 = vld [vmem:[#allocation8 + $0x9c4] sm:$0xf] }
 0x217   :  { %v4362_v19 = vpop.f32.mrf.mxu2 }
 0x218   :  { %v4363_v44 = vadd.f32 %v4362_v19, %v4314_v43  ;;  %v4411_v6 = vpop.f32.mrf.mxu3  ;;  %4678 = vmatpush.bf16.msra.mxu1 %v9023_v27  ;;  %v11568_v19 = vld [vmem:[#allocation8 + $0xdc4] sm:$0xf] }
 0x219   :  { %v4266_v0 = vpop.f32.mrf.mxu0 }
 0x21a   :  { %v4267_v59 = vadd.f32 %v4266_v0, %v12902_v8  ;;  %v4315_v29 = vpop.f32.mrf.mxu1  ;;  %v12970_v40 = vadd.f32 %v4411_v6, %v4363_v44  ;;  %v10012_v44 = vld [vmem:[#allocation8 + $0x9e0] sm:$0xf0] }
 0x21b   :  { %v11632_v6 = vld [vmem:[#allocation8 + $0xfc4] sm:$0xf] }
 0x21c   :  { %v4316_v23 = vadd.f32 %v4315_v29, %v4267_v59  ;;  %v10780_v0 = vld [vmem:[#allocation8 + $0xfe0] sm:$0xf0]  ;;  %v10015_v29 = vor.u32 %v11440_v50, %v10012_v44 }
 0x21e   :  { %4818 = vmatpush.bf16.msrb.mxu0 %v10015_v29 }
 0x21f   :  { %v4364_v11 = vpop.f32.mrf.mxu2 }
 0x220   :  { %v4365_v53 = vadd.f32 %v4364_v11, %v4316_v23  ;;  %v4413_v10 = vpop.f32.mrf.mxu3  ;;  %v10527_v11 = vor.u32 %v11568_v19, %v10524_v4  ;;  %v10268_v19 = vld [vmem:[#allocation8 + $0xbe0] sm:$0xf0] }
 0x221   :  { %v4269_v26 = vpop.f32.mrf.mxu0 }
 0x222   :  { %v4270_v43 = vadd.f32 %v4269_v26, %v12902_v8  ;;  %v4318_v15 = vpop.f32.mrf.mxu1  ;;  %v12973_v13 = vadd.f32 %v4413_v10, %v4365_v53  ;;  %v10783_v53 = vor.u32 %v11632_v6, %v10780_v0  ;;  %4916 = vmatpush.bf16.msrb.mxu2 %v10527_v11 }
 0x223   :  { %4464 = vmatmul.bf16.gmra.mxu0 %v12884_v39  ;;  %4513 = vmatmul.bf16.gmra.mxu1 %v12887_v2 }
 0x224   :  { %v4319_v21 = vadd.f32 %v4318_v15, %v4270_v43  ;;  %4562 = vmatmul.bf16.gmra.mxu2 %v12894_v34  ;;  %4965 = vmatpush.bf16.msrb.mxu3 %v10783_v53  ;;  %v11504_v15 = vld [vmem:[#allocation8 + $0xbc4] sm:$0xf] }
 0x225   :  { %4611 = vmatmul.bf16.gmra.mxu3 %v12897_v3  ;;  %v10271_v4 = vor.u32 %v11504_v15, %v10268_v19  ;;  %v9980_v19 = vld [vmem:[#allocation8 + $0x9a0] sm:$0xf0] }
 0x227   :  { %v4367_v59 = vpop.f32.mrf.mxu2  ;;  %4867 = vmatpush.bf16.msrb.mxu1 %v10271_v4  ;;  %v11624_v4 = vld [vmem:[#allocation8 + $0xf84] sm:$0xf] }
 0x228   :  { %v4368_v51 = vadd.f32 %v4367_v59, %v4319_v21  ;;  %v4416_v41 = vpop.f32.mrf.mxu3 }
 0x229   :  { %v4271_v23 = vpop.f32.mrf.mxu0 }
 0x22a   :  { %v4272_v27 = vadd.f32 %v4271_v23, %v12902_v8  ;;  %v4320_v10 = vpop.f32.mrf.mxu1  ;;  %v12980_v26 = vadd.f32 %v4416_v41, %v4368_v51 }
 0x22c   :  { %v4321_v43 = vadd.f32 %v4320_v10, %v4272_v27  ;;  %v11560_v27 = vld [vmem:[#allocation8 + $0xd84] sm:$0xf] }
 0x22d   :  { %v10492_v10 = vld [vmem:[#allocation8 + $0xda0] sm:$0xf0] }
 0x22e   :  { %v10495_v15 = vor.u32 %v11560_v27, %v10492_v10  ;;  %v10460_v10 = vld [vmem:[#allocation8 + $0xd60] sm:$0xf0] }
 0x22f   :  { %v4369_v3 = vpop.f32.mrf.mxu2 }
 0x230   :  { %v4370_v34 = vadd.f32 %v4369_v3, %v4321_v43  ;;  %v4418_v50 = vpop.f32.mrf.mxu3  ;;  %v11432_v43 = vld [vmem:[#allocation8 + $0x984] sm:$0xf]  ;;  %4917 = vmatpush.bf16.msrb.mxu2 %v10495_v15 }
 0x231   :  { %v4274_v44 = vpop.f32.mrf.mxu0  ;;  %v9948_v15 = vld [vmem:[#allocation8 + $0x960] sm:$0xf0] }
 0x232   :  { %v4275_v21 = vadd.f32 %v4274_v44, %v12902_v8  ;;  %v4323_v6 = vpop.f32.mrf.mxu1  ;;  %v12983_v11 = vadd.f32 %v4418_v50, %v4370_v34  ;;  %v10748_v50 = vld [vmem:[#allocation8 + $0xfa0] sm:$0xf0]  ;;  %v9983_v44 = vor.u32 %v11432_v43, %v9980_v19 }
 0x233   :  { %4469 = vmatmul.bf16.gmra.mxu0 %v12907_v63  ;;  %4518 = vmatmul.bf16.gmra.mxu1 %v12910_v56  ;;  %v11616_v19 = vld [vmem:[#allocation8 + $0xf44] sm:$0xf] }
 0x234   :  { %v4324_v0 = vadd.f32 %v4323_v6, %v4275_v21  ;;  %4567 = vmatmul.bf16.gmra.mxu2 %v12915_v62  ;;  %v10751_v21 = vor.u32 %v11624_v4, %v10748_v50  ;;  %v11496_v6 = vld [vmem:[#allocation8 + $0xb84] sm:$0xf]  ;;  %4819 = vmatpush.bf16.msrb.mxu0 %v9983_v44 }
 0x235   :  { %4616 = vmatmul.bf16.gmra.mxu3 %v12918_v38  ;;  %v10236_v38 = vld [vmem:[#allocation8 + $0xba0] sm:$0xf0] }
 0x236   :  { %4966 = vmatpush.bf16.msrb.mxu3 %v10751_v21  ;;  %v10716_v4 = vld [vmem:[#allocation8 + $0xf60] sm:$0xf0] }
 0x237   :  { %v4372_v59 = vpop.f32.mrf.mxu2  ;;  %v10719_v44 = vor.u32 %v11616_v19, %v10716_v4  ;;  %v10428_v4 = vld [vmem:[#allocation8 + $0xd20] sm:$0xf0] }
 0x238   :  { %v4373_v29 = vadd.f32 %v4372_v59, %v4324_v0  ;;  %v4421_v53 = vpop.f32.mrf.mxu3  ;;  %v10239_v0 = vor.u32 %v11496_v6, %v10236_v38  ;;  %v11552_v38 = vld [vmem:[#allocation8 + $0xd44] sm:$0xf] }
 0x239   :  { %v4276_v3 = vpop.f32.mrf.mxu0  ;;  %v10463_v43 = vor.u32 %v11552_v38, %v10460_v10 }
 0x23a   :  { %v4277_v51 = vadd.f32 %v4276_v3, %v12902_v8  ;;  %v4325_v41 = vpop.f32.mrf.mxu1  ;;  %v12990_v23 = vadd.f32 %v4421_v53, %v4373_v29  ;;  %4868 = vmatpush.bf16.msrb.mxu1 %v10239_v0  ;;  %4967 = vmatpush.bf16.msrb.mxu3 %v10719_v44  ;;  %v9916_v44 = vld [vmem:[#allocation8 + $0x920] sm:$0xf0] }
 0x23b   :  { %4918 = vmatpush.bf16.msrb.mxu2 %v10463_v43 }
 0x23c   :  { %v4326_v34 = vadd.f32 %v4325_v41, %v4277_v51 }
 0x23f   :  { %v4374_v59 = vpop.f32.mrf.mxu2 }
 0x240   :  { %v4375_v8 = vadd.f32 %v4374_v59, %v4326_v34  ;;  %v4423_v29 = vpop.f32.mrf.mxu3  ;;  %v11424_v34 = vld [vmem:[#allocation8 + $0x944] sm:$0xf] }
 0x241   :  { %v4435_v53 = vpop.f32.mrf.mxu0  ;;  %v9951_v50 = vor.u32 %v11424_v34, %v9948_v15 }
 0x242   :  { %v4436_v3 = vadd.f32 %v4435_v53, %v12920_v24  ;;  %v4484_v51 = vpop.f32.mrf.mxu1  ;;  %v12993_v41 = vadd.f32 %v4423_v29, %v4375_v8 }
 0x243   :  { %4630 = vmatmul.bf16.vlgmr.msra.gmra.mxu0 %v12592_v32  ;;  %4679 = vmatmul.bf16.vlgmr.msra.gmra.mxu1 %v12595_v33 }
 0x244   :  { %v4485_v27 = vadd.f32 %v4484_v51, %v4436_v3  ;;  %4728 = vmatmul.bf16.vlgmr.msra.gmra.mxu2 %v12602_v46  ;;  %4820 = vmatpush.bf16.msrb.mxu0 %v9951_v50  ;;  %v11488_v3 = vld [vmem:[#allocation8 + $0xb44] sm:$0xf] }
 0x245   :  { %4777 = vmatmul.bf16.vlgmr.msra.gmra.mxu3 %v12605_v49  ;;  %v10204_v51 = vld [vmem:[#allocation8 + $0xb60] sm:$0xf0] }
 0x246   :  { %v10207_v38 = vor.u32 %v11488_v3, %v10204_v51 }
 0x247   :  { %v4533_v24 = vpop.f32.mrf.mxu2 }
 0x248   :  { %v4534_v21 = vadd.f32 %v4533_v24, %v4485_v27  ;;  %v4582_v6 = vpop.f32.mrf.mxu3  ;;  %4869 = vmatpush.bf16.msrb.mxu1 %v10207_v38  ;;  %v11416_v24 = vld [vmem:[#allocation8 + $0x904] sm:$0xf] }
 0x249   :  { %v4437_v0 = vpop.f32.mrf.mxu0 }
 0x24a   :  { %v4438_v59 = vadd.f32 %v4437_v0, %v12923_v1  ;;  %v4486_v8 = vpop.f32.mrf.mxu1  ;;  %v4583_v29 = vadd.f32 %v4582_v6, %v4534_v21  ;;  %v11544_v1 = vld [vmem:[#allocation8 + $0xd04] sm:$0xf] }
 0x24b   :  { %v10431_v50 = vor.u32 %v11544_v1, %v10428_v4  ;;  %v11608_v21 = vld [vmem:[#allocation8 + $0xf04] sm:$0xf] }
 0x24c   :  { %v4487_v53 = vadd.f32 %v4486_v8, %v4438_v59  ;;  %11975 = vtanh.f32 %v4583_v29 }
 0x24d   :  { %4919 = vmatpush.bf16.msrb.mxu2 %v10431_v50 }
 0x24f   :  { %v4535_v10 = vpop.f32.mrf.mxu2 }
 0x250   :  { %v4536_v49 = vadd.f32 %v4535_v10, %v4487_v53  ;;  %v4584_v46 = vpop.f32.mrf.mxu3 }
 0x251   :  { %v4440_v34 = vpop.f32.mrf.mxu0 }
 0x252   :  { %v4441_v27 = vadd.f32 %v4440_v34, %v12930_v48  ;;  %v4489_v15 = vpop.f32.mrf.mxu1  ;;  %v4585_v19 = vadd.f32 %v4584_v46, %v4536_v49  ;;  %v10684_v48 = vld [vmem:[#allocation8 + $0xf20] sm:$0xf0]  ;;  %v9919_v46 = vor.u32 %v11416_v24, %v9916_v44  ;;  %v13005_v29 = vpop.eup %11975 }
 0x253   :  { %4635 = vmatmul.bf16.gmra.mxu0 %v12612_v17  ;;  %4684 = vmatmul.bf16.gmra.mxu1 %v12615_v18  ;;  %v10687_v49 = vor.u32 %v11608_v21, %v10684_v48  ;;  %14840 = vst [vmem:[#allocation76_spill] sm:$0xff] %v13005_v29  ;;  %v14842_v48 = vld [vmem:[#allocation24_spill] sm:$0xff]  ;;  %v14857_v29 = vld [vmem:[#allocation33_spill] sm:$0xff] }
 0x254   :  { %v4490_v43 = vadd.f32 %v4489_v15, %v4441_v27  ;;  %11977 = vtanh.f32 %v4585_v19  ;;  %4733 = vmatmul.bf16.gmra.mxu2 %v12622_v30  ;;  %4821 = vmatpush.bf16.msrb.mxu0 %v9919_v46  ;;  %v11480_v27 = vld [vmem:[#allocation8 + $0xb04] sm:$0xf] }
 0x255   :  { %4782 = vmatmul.bf16.gmra.mxu3 %v12625_v35  ;;  %v10172_v15 = vld [vmem:[#allocation8 + $0xb20] sm:$0xf0] }
 0x256   :  { %4968 = vmatpush.bf16.msrb.mxu3 %v10687_v49  ;;  %v10175_v19 = vor.u32 %v11480_v27, %v10172_v15  ;;  %v10396_v46 = vld [vmem:[#allocation8 + $0xce0] sm:$0xf0] }
 0x257   :  { %v4538_v6 = vpop.f32.mrf.mxu2  ;;  %v11408_v49 = vld [vmem:[#allocation8 + $0x8c4] sm:$0xf] }
 0x258   :  { %v4539_v0 = vadd.f32 %v4538_v6, %v4490_v43  ;;  %v4587_v59 = vpop.f32.mrf.mxu3  ;;  %4870 = vmatpush.bf16.msrb.mxu1 %v10175_v19  ;;  %v11536_v6 = vld [vmem:[#allocation8 + $0xcc4] sm:$0xf] }
 0x259   :  { %v4442_v8 = vpop.f32.mrf.mxu0 }
 0x25a   :  { %v4443_v53 = vadd.f32 %v4442_v8, %v12933_v22  ;;  %v4491_v3 = vpop.f32.mrf.mxu1  ;;  %v13008_v51 = vpop.eup %11977  ;;  %v4588_v38 = vadd.f32 %v4587_v59, %v4539_v0  ;;  %v10399_v0 = vor.u32 %v11536_v6, %v10396_v46  ;;  %v9884_v59 = vld [vmem:[#allocation8 + $0x8e0] sm:$0xf0] }
 0x25b   :  { %14841 = vst [vmem:[#allocation77_spill] sm:$0xff] %v13008_v51  ;;  %v11600_v8 = vld [vmem:[#allocation8 + $0xec4] sm:$0xf] }
 0x25c   :  { %v4492_v34 = vadd.f32 %v4491_v3, %v4443_v53  ;;  %11979 = vtanh.f32 %v4588_v38  ;;  %v9887_v3 = vor.u32 %v11408_v49, %v9884_v59  ;;  %4920 = vmatpush.bf16.msrb.mxu2 %v10399_v0  ;;  %v10140_v6 = vld [vmem:[#allocation8 + $0xae0] sm:$0xf0] }
 0x25e   :  { %4822 = vmatpush.bf16.msrb.mxu0 %v9887_v3  ;;  %v14845_v3 = vld [vmem:[#allocation25_spill] sm:$0xff] }
 0x25f   :  { %v4540_v43 = vpop.f32.mrf.mxu2 }
 0x260   :  { %v4541_v1 = vadd.f32 %v4540_v43, %v4492_v34  ;;  %v4589_v4 = vpop.f32.mrf.mxu3 }
 0x261   :  { %v4445_v24 = vpop.f32.mrf.mxu0 }
 0x262   :  { %v4446_v22 = vadd.f32 %v4445_v24, %v12940_v14  ;;  %v4494_v50 = vpop.f32.mrf.mxu1  ;;  %v4590_v44 = vadd.f32 %v4589_v4, %v4541_v1  ;;  %v10652_v14 = vld [vmem:[#allocation8 + $0xee0] sm:$0xf0]  ;;  %v13017_v19 = vpop.eup %11979 }
 0x263   :  { %4640 = vmatmul.bf16.gmra.mxu0 %v12632_v5  ;;  %4689 = vmatmul.bf16.gmra.mxu1 %v12635_v7  ;;  %v10655_v38 = vor.u32 %v11600_v8, %v10652_v14  ;;  %14843 = vst [vmem:[#allocation24_spill] sm:$0xff] %v13017_v19  ;;  %v14851_v19 = vld [vmem:[#allocation29_spill] sm:$0xff] }
 0x264   :  { %v4495_v21 = vadd.f32 %v4494_v50, %v4446_v22  ;;  %11981 = vtanh.f32 %v4590_v44  ;;  %4738 = vmatmul.bf16.gmra.mxu2 %v12642_v20  ;;  %v11472_v44 = vld [vmem:[#allocation8 + $0xac4] sm:$0xf] }
 0x265   :  { %4787 = vmatmul.bf16.gmra.mxu3 %v14842_v48 }
 0x266   :  { %4969 = vmatpush.bf16.msrb.mxu3 %v10655_v38  ;;  %v14846_v38 = vld [vmem:[#allocation26_spill] sm:$0xff] }
 0x267   :  { %v4543_v53 = vpop.f32.mrf.mxu2 }
 0x268   :  { %v4544_v34 = vadd.f32 %v4543_v53, %v4495_v21  ;;  %v4592_v27 = vpop.f32.mrf.mxu3  ;;  %v10143_v21 = vor.u32 %v11472_v44, %v10140_v6  ;;  %v9852_v44 = vld [vmem:[#allocation8 + $0x8a0] sm:$0xf0] }
 0x269   :  { %v4447_v15 = vpop.f32.mrf.mxu0  ;;  %v11592_v6 = vld [vmem:[#allocation8 + $0xe84] sm:$0xf] }
 0x26a   :  { %v4448_v43 = vadd.f32 %v4447_v15, %v12943_v28  ;;  %v4496_v1 = vpop.f32.mrf.mxu1  ;;  %v13020_v4 = vpop.eup %11981  ;;  %v4593_v24 = vadd.f32 %v4592_v27, %v4544_v34  ;;  %4871 = vmatpush.bf16.msrb.mxu1 %v10143_v21  ;;  %v14847_v34 = vld [vmem:[#allocation27_spill] sm:$0xff]  ;;  %v14848_v27 = vld [vmem:[#allocation28_spill] sm:$0xff] }
 0x26b   :  { %14844 = vst [vmem:[#allocation78_spill] sm:$0xff] %v13020_v4  ;;  %v11528_v15 = vld [vmem:[#allocation8 + $0xc84] sm:$0xf] }
 0x26c   :  { %v4497_v22 = vadd.f32 %v4496_v1, %v4448_v43  ;;  %11983 = vtanh.f32 %v4593_v24  ;;  %v10364_v43 = vld [vmem:[#allocation8 + $0xca0] sm:$0xf0] }
 0x26d   :  { %v11400_v1 = vld [vmem:[#allocation8 + $0x884] sm:$0xf] }
 0x26f   :  { %v4545_v46 = vpop.f32.mrf.mxu2 }
 0x270   :  { %v4546_v49 = vadd.f32 %v4545_v46, %v4497_v22  ;;  %v4594_v0 = vpop.f32.mrf.mxu3  ;;  %v10367_v22 = vor.u32 %v11528_v15, %v10364_v43  ;;  %v9855_v46 = vor.u32 %v11400_v1, %v9852_v44  ;;  %v11464_v1 = vld [vmem:[#allocation8 + $0xa84] sm:$0xf] }
 0x271   :  { %v4450_v59 = vpop.f32.mrf.mxu0  ;;  %v10108_v44 = vld [vmem:[#allocation8 + $0xaa0] sm:$0xf0] }
 0x272   :  { %v4451_v28 = vadd.f32 %v4450_v59, %v12950_v16  ;;  %v4499_v8 = vpop.f32.mrf.mxu1  ;;  %v4595_v14 = vadd.f32 %v4594_v0, %v4546_v49  ;;  %v10620_v16 = vld [vmem:[#allocation8 + $0xea0] sm:$0xf0]  ;;  %4921 = vmatpush.bf16.msrb.mxu2 %v10367_v22  ;;  %4823 = vmatpush.bf16.msrb.mxu0 %v9855_v46 }
 0x273   :  { %4645 = vmatmul.bf16.gmra.mxu0 %v14845_v3  ;;  %4694 = vmatmul.bf16.gmra.mxu1 %v14846_v38  ;;  %v10623_v24 = vor.u32 %v11592_v6, %v10620_v16 }
 0x274   :  { %v4500_v53 = vadd.f32 %v4499_v8, %v4451_v28  ;;  %11985 = vtanh.f32 %v4595_v14  ;;  %4743 = vmatmul.bf16.gmra.mxu2 %v14847_v34  ;;  %v13029_v28 = vpop.eup %11983 }
 0x275   :  { %4792 = vmatmul.bf16.gmra.mxu3 %v14848_v27  ;;  %14849 = vst [vmem:[#allocation25_spill] sm:$0xff] %v13029_v28 }
 0x276   :  { %4970 = vmatpush.bf16.msrb.mxu3 %v10623_v24 }
 0x277   :  { %v4548_v21 = vpop.f32.mrf.mxu2 }
 0x278   :  { %v4549_v49 = vadd.f32 %v4548_v21, %v4500_v53  ;;  %v4597_v0 = vpop.f32.mrf.mxu3  ;;  %v10111_v53 = vor.u32 %v11464_v1, %v10108_v44  ;;  %v10332_v1 = vld [vmem:[#allocation8 + $0xc60] sm:$0xf0] }
 0x279   :  { %v4452_v59 = vpop.f32.mrf.mxu0 }
 0x27a   :  { %v4453_v8 = vadd.f32 %v4452_v59, %v12953_v45  ;;  %v4501_v14 = vpop.f32.mrf.mxu1  ;;  %v13032_v50 = vpop.eup %11985  ;;  %v4598_v15 = vadd.f32 %v4597_v0, %v4549_v49  ;;  %4872 = vmatpush.bf16.msrb.mxu1 %v10111_v53  ;;  %v14852_v49 = vld [vmem:[#allocation30_spill] sm:$0xff]  ;;  %v14853_v0 = vld [vmem:[#allocation31_spill] sm:$0xff] }
 0x27b   :  { %14850 = vst [vmem:[#allocation26_spill] sm:$0xff] %v13032_v50  ;;  %v9820_v53 = vld [vmem:[#allocation8 + $0x860] sm:$0xf0] }
 0x27c   :  { %v4502_v43 = vadd.f32 %v4501_v14, %v4453_v8  ;;  %11987 = vtanh.f32 %v4598_v15  ;;  %v14854_v8 = vld [vmem:[#allocation32_spill] sm:$0xff]  ;;  %v11520_v14 = vld [vmem:[#allocation8 + $0xc44] sm:$0xf] }
 0x27d   :  { %v10335_v44 = vor.u32 %v11520_v14, %v10332_v1 }
 0x27f   :  { %v4550_v6 = vpop.f32.mrf.mxu2  ;;  %4922 = vmatpush.bf16.msrb.mxu2 %v10335_v44 }
 0x280   :  { %v4551_v22 = vadd.f32 %v4550_v6, %v4502_v43  ;;  %v4599_v16 = vpop.f32.mrf.mxu3  ;;  %v11392_v43 = vld [vmem:[#allocation8 + $0x844] sm:$0xf] }
 0x281   :  { %v4455_v21 = vpop.f32.mrf.mxu0  ;;  %v11584_v6 = vld [vmem:[#allocation8 + $0xe44] sm:$0xf] }
 0x282   :  { %v4456_v45 = vadd.f32 %v4455_v21, %v12960_v42  ;;  %v4504_v59 = vpop.f32.mrf.mxu1  ;;  %v4600_v46 = vadd.f32 %v4599_v16, %v4551_v22  ;;  %v10588_v42 = vld [vmem:[#allocation8 + $0xe60] sm:$0xf0]  ;;  %v9823_v22 = vor.u32 %v11392_v43, %v9820_v53 }
 0x283   :  { %4650 = vmatmul.bf16.gmra.mxu0 %v14851_v19  ;;  %4699 = vmatmul.bf16.gmra.mxu1 %v14852_v49  ;;  %v10591_v15 = vor.u32 %v11584_v6, %v10588_v42  ;;  %v11456_v43 = vld [vmem:[#allocation8 + $0xa44] sm:$0xf] }
 0x284   :  { %v4505_v24 = vadd.f32 %v4504_v59, %v4456_v45  ;;  %11989 = vtanh.f32 %v4600_v46  ;;  %4748 = vmatmul.bf16.gmra.mxu2 %v14853_v0  ;;  %v13041_v46 = vpop.eup %11987  ;;  %4824 = vmatpush.bf16.msrb.mxu0 %v9823_v22  ;;  %v10076_v53 = vld [vmem:[#allocation8 + $0xa60] sm:$0xf0] }
 0x285   :  { %4797 = vmatmul.bf16.gmra.mxu3 %v14854_v8  ;;  %14855 = vst [vmem:[#allocation27_spill] sm:$0xff] %v13041_v46 }
 0x286   :  { %4971 = vmatpush.bf16.msrb.mxu3 %v10591_v15 }
 0x287   :  { %v4553_v21 = vpop.f32.mrf.mxu2 }
 0x288   :  { %v4554_v16 = vadd.f32 %v4553_v21, %v4505_v24  ;;  %v4602_v45 = vpop.f32.mrf.mxu3  ;;  %v10079_v24 = vor.u32 %v11456_v43, %v10076_v53  ;;  %v10300_v43 = vld [vmem:[#allocation8 + $0xc20] sm:$0xf0] }
 0x289   :  { %v4457_v59 = vpop.f32.mrf.mxu0 }
 0x28a   :  { %v4458_v10 = vadd.f32 %v4457_v59, %v12963_v47  ;;  %v4506_v28 = vpop.f32.mrf.mxu1  ;;  %v13044_v50 = vpop.eup %11989  ;;  %v4603_v14 = vadd.f32 %v4602_v45, %v4554_v16  ;;  %4873 = vmatpush.bf16.msrb.mxu1 %v10079_v24  ;;  %v14860_v16 = vld [vmem:[#allocation36_spill] sm:$0xff]  ;;  %v11512_v45 = vld [vmem:[#allocation8 + $0xc04] sm:$0xf] }
 0x28b   :  { %14856 = vst [vmem:[#allocation28_spill] sm:$0xff] %v13044_v50  ;;  %v10303_v53 = vor.u32 %v11512_v45, %v10300_v43  ;;  %v9788_v24 = vld [vmem:[#allocation8 + $0x820] sm:$0xf0] }
 0x28c   :  { %v4507_v1 = vadd.f32 %v4506_v28, %v4458_v10  ;;  %11991 = vtanh.f32 %v4603_v14  ;;  %v14858_v10 = vld [vmem:[#allocation34_spill] sm:$0xff]  ;;  %v14859_v28 = vld [vmem:[#allocation35_spill] sm:$0xff] }
 0x28d   :  { %4923 = vmatpush.bf16.msrb.mxu2 %v10303_v53 }
 0x28f   :  { %v4555_v6 = vpop.f32.mrf.mxu2 }
 0x290   :  { %v4556_v44 = vadd.f32 %v4555_v6, %v4507_v1  ;;  %v4604_v42 = vpop.f32.mrf.mxu3  ;;  %v11384_v1 = vld [vmem:[#allocation8 + $0x804] sm:$0xf] }
 0x291   :  { %v4460_v21 = vpop.f32.mrf.mxu0  ;;  %v11576_v6 = vld [vmem:[#allocation8 + $0xe04] sm:$0xf] }
 0x292   :  { %v4461_v47 = vadd.f32 %v4460_v21, %v12970_v40  ;;  %v4509_v59 = vpop.f32.mrf.mxu1  ;;  %v4605_v22 = vadd.f32 %v4604_v42, %v4556_v44  ;;  %v10556_v40 = vld [vmem:[#allocation8 + $0xe20] sm:$0xf0]  ;;  %v9791_v44 = vor.u32 %v11384_v1, %v9788_v24 }
 0x293   :  { %4655 = vmatmul.bf16.gmra.mxu0 %v14857_v29  ;;  %4704 = vmatmul.bf16.gmra.mxu1 %v14858_v10  ;;  %v10559_v14 = vor.u32 %v11576_v6, %v10556_v40  ;;  %v11448_v1 = vld [vmem:[#allocation8 + $0xa04] sm:$0xf] }
 0x294   :  { %v4510_v15 = vadd.f32 %v4509_v59, %v4461_v47  ;;  %11993 = vtanh.f32 %v4605_v22  ;;  %4753 = vmatmul.bf16.gmra.mxu2 %v14859_v28  ;;  %v13053_v22 = vpop.eup %11991  ;;  %4825 = vmatpush.bf16.msrb.mxu0 %v9791_v44  ;;  %v10044_v24 = vld [vmem:[#allocation8 + $0xa20] sm:$0xf0] }
 0x295   :  { %4802 = vmatmul.bf16.gmra.mxu3 %v14860_v16  ;;  %14861 = vst [vmem:[#allocation29_spill] sm:$0xff] %v13053_v22  ;;  %v14863_v16 = vld [vmem:[#allocation37_spill] sm:$0xff] }
 0x296   :  { %4972 = vmatpush.bf16.msrb.mxu3 %v10559_v14 }
 0x297   :  { %v4558_v21 = vpop.f32.mrf.mxu2 }
 0x298   :  { %v4559_v42 = vadd.f32 %v4558_v21, %v4510_v15  ;;  %v4607_v47 = vpop.f32.mrf.mxu3  ;;  %v10047_v15 = vor.u32 %v11448_v1, %v10044_v24  ;;  %v11317_v1 = vld [vmem:[#allocation8 + $0x5e4] sm:$0xf0] }
 0x299   :  { %v4462_v59 = vpop.f32.mrf.mxu0 }
 0x29a   :  { %v4463_v4 = vadd.f32 %v4462_v59, %v12973_v13  ;;  %v4511_v46 = vpop.f32.mrf.mxu1  ;;  %v13056_v50 = vpop.eup %11993  ;;  %v4608_v45 = vadd.f32 %v4607_v47, %v4559_v42  ;;  %4874 = vmatpush.bf16.msrb.mxu1 %v10047_v15  ;;  %v14866_v42 = vld [vmem:[#allocation40_spill] sm:$0xff] }
 0x29b   :  { %14862 = vst [vmem:[#allocation30_spill] sm:$0xff] %v13056_v50  ;;  %v9506_v47 = vld [vmem:[#allocation8 + $0x5c8] sm:$0xf] }
 0x29c   :  { %v4512_v43 = vadd.f32 %v4511_v46, %v4463_v4  ;;  %11995 = vtanh.f32 %v4608_v45  ;;  %v14864_v4 = vld [vmem:[#allocation38_spill] sm:$0xff]  ;;  %v14865_v46 = vld [vmem:[#allocation39_spill] sm:$0xff]  ;;  %v9507_v24 = vor.u32 %v11317_v1, %v9506_v47 }
 0x29d   :  { %v11189_v15 = vld [vmem:[#allocation8 + $0x1e4] sm:$0xf0] }
 0x29e   :  { %5112 = vmatpush.bf16.msra.mxu2 %v9507_v24  ;;  %v9250_v1 = vld [vmem:[#allocation8 + $0x3c8] sm:$0xf] }
 0x29f   :  { %v4560_v6 = vpop.f32.mrf.mxu2 }
 0x2a0   :  { %v4561_v53 = vadd.f32 %v4560_v6, %v4512_v43  ;;  %v4609_v40 = vpop.f32.mrf.mxu3  ;;  %v8994_v43 = vld [vmem:[#allocation8 + $0x1c8] sm:$0xf] }
 0x2a1   :  { %v4465_v21 = vpop.f32.mrf.mxu0  ;;  %v9762_v6 = vld [vmem:[#allocation8 + $0x7c8] sm:$0xf] }
 0x2a2   :  { %v4466_v13 = vadd.f32 %v4465_v21, %v12980_v26  ;;  %v4514_v59 = vpop.f32.mrf.mxu1  ;;  %v4610_v44 = vadd.f32 %v4609_v40, %v4561_v53  ;;  %v11381_v26 = vld [vmem:[#allocation8 + $0x7e4] sm:$0xf0]  ;;  %v8995_v53 = vor.u32 %v11189_v15, %v8994_v43 }
 0x2a3   :  { %4660 = vmatmul.bf16.gmra.mxu0 %v14863_v16  ;;  %4709 = vmatmul.bf16.gmra.mxu1 %v14864_v4  ;;  %v9763_v45 = vor.u32 %v11381_v26, %v9762_v6 }
 0x2a4   :  { %v4515_v14 = vadd.f32 %v4514_v59, %v4466_v13  ;;  %11997 = vtanh.f32 %v4610_v44  ;;  %4758 = vmatmul.bf16.gmra.mxu2 %v14865_v46  ;;  %v13065_v44 = vpop.eup %11995  ;;  %5014 = vmatpush.bf16.msra.mxu0 %v8995_v53 }
 0x2a5   :  { %4807 = vmatmul.bf16.gmra.mxu3 %v14866_v42  ;;  %14867 = vst [vmem:[#allocation31_spill] sm:$0xff] %v13065_v44  ;;  %v11253_v42 = vld [vmem:[#allocation8 + $0x3e4] sm:$0xf0] }
 0x2a6   :  { %5161 = vmatpush.bf16.msra.mxu3 %v9763_v45  ;;  %v9251_v4 = vor.u32 %v11253_v42, %v9250_v1  ;;  %v14869_v45 = vld [vmem:[#allocation41_spill] sm:$0xff]  ;;  %v11309_v42 = vld [vmem:[#allocation8 + $0x5a4] sm:$0xf0] }
 0x2a7   :  { %v4563_v21 = vpop.f32.mrf.mxu2  ;;  %v11245_v44 = vld [vmem:[#allocation8 + $0x3a4] sm:$0xf0] }
 0x2a8   :  { %v4564_v40 = vadd.f32 %v4563_v21, %v4515_v14  ;;  %v4612_v13 = vpop.f32.mrf.mxu3  ;;  %5063 = vmatpush.bf16.msra.mxu1 %v9251_v4  ;;  %v9474_v4 = vld [vmem:[#allocation8 + $0x588] sm:$0xf] }
 0x2a9   :  { %v4467_v59 = vpop.f32.mrf.mxu0 }
 0x2aa   :  { %v4468_v51 = vadd.f32 %v4467_v59, %v12983_v11  ;;  %v4516_v22 = vpop.f32.mrf.mxu1  ;;  %v13068_v50 = vpop.eup %11997  ;;  %v4613_v47 = vadd.f32 %v4612_v13, %v4564_v40  ;;  %v9475_v40 = vor.u32 %v11309_v42, %v9474_v4  ;;  %v11181_v13 = vld [vmem:[#allocation8 + $0x1a4] sm:$0xf0] }
 0x2ab   :  { %14868 = vst [vmem:[#allocation32_spill] sm:$0xff] %v13068_v50  ;;  %v9730_v59 = vld [vmem:[#allocation8 + $0x788] sm:$0xf] }
 0x2ac   :  { %v4517_v46 = vadd.f32 %v4516_v22, %v4468_v51  ;;  %11999 = vtanh.f32 %v4613_v47  ;;  %v14870_v51 = vld [vmem:[#allocation42_spill] sm:$0xff]  ;;  %v14871_v22 = vld [vmem:[#allocation43_spill] sm:$0xff]  ;;  %5113 = vmatpush.bf16.msra.mxu2 %v9475_v40 }
 0x2ad   :  { %v9218_v42 = vld [vmem:[#allocation8 + $0x388] sm:$0xf] }
 0x2af   :  { %v4565_v43 = vpop.f32.mrf.mxu2 }
 0x2b0   :  { %v4566_v24 = vadd.f32 %v4565_v43, %v4517_v46  ;;  %v4614_v15 = vpop.f32.mrf.mxu3  ;;  %v8962_v46 = vld [vmem:[#allocation8 + $0x188] sm:$0xf] }
 0x2b1   :  { %v4470_v6 = vpop.f32.mrf.mxu0  ;;  %v8963_v43 = vor.u32 %v11181_v13, %v8962_v46  ;;  %v12231_v46 = vld [vmem:[#allocation10] sm:$0xff] }
 0x2b2   :  { %v4471_v11 = vadd.f32 %v4470_v6, %v12990_v23  ;;  %v4519_v26 = vpop.f32.mrf.mxu1  ;;  %v4615_v21 = vadd.f32 %v4614_v15, %v4566_v24  ;;  %v11373_v23 = vld [vmem:[#allocation8 + $0x7a4] sm:$0xf0]  ;;  %v13084_v13 = vperm.slane %v12231_v46, 1 }
 0x2b3   :  { %4665 = vmatmul.bf16.gmra.mxu0 %v12735_v12  ;;  %4714 = vmatmul.bf16.gmra.mxu1 %v14869_v45  ;;  %v9731_v47 = vor.u32 %v11373_v23, %v9730_v59 }
 0x2b4   :  { %v4520_v53 = vadd.f32 %v4519_v26, %v4471_v11  ;;  %12001 = vtanh.f32 %v4615_v21  ;;  %4763 = vmatmul.bf16.gmra.mxu2 %v14870_v51  ;;  %v13077_v11 = vpop.eup %11999  ;;  %5015 = vmatpush.bf16.msra.mxu0 %v8963_v43 }
 0x2b5   :  { %4812 = vmatmul.bf16.gmra.mxu3 %v14871_v22  ;;  %14872 = vst [vmem:[#allocation33_spill] sm:$0xff] %v13077_v11  ;;  %v9219_v22 = vor.u32 %v11245_v44, %v9218_v42  ;;  %v14874_v44 = vld [vmem:[#allocation47_spill] sm:$0xff] }
 0x2b6   :  { %5162 = vmatpush.bf16.msra.mxu3 %v9731_v47  ;;  %v11365_v42 = vld [vmem:[#allocation8 + $0x764] sm:$0xf0] }
 0x2b7   :  { %v4568_v1 = vpop.f32.mrf.mxu2  ;;  %5064 = vmatpush.bf16.msra.mxu1 %v9219_v22  ;;  %v9442_v22 = vld [vmem:[#allocation8 + $0x548] sm:$0xf] }
 0x2b8   :  { %v4569_v24 = vadd.f32 %v4568_v1, %v4520_v53  ;;  %v4617_v15 = vpop.f32.mrf.mxu3  ;;  %v11237_v11 = vld [vmem:[#allocation8 + $0x364] sm:$0xf0] }
 0x2b9   :  { %v4472_v6 = vpop.f32.mrf.mxu0 }
 0x2ba   :  { %v4473_v26 = vadd.f32 %v4472_v6, %v12993_v41  ;;  %v4521_v21 = vpop.f32.mrf.mxu1  ;;  %v13080_v14 = vpop.eup %12001  ;;  %v4618_v4 = vadd.f32 %v4617_v15, %v4569_v24  ;;  %v11301_v15 = vld [vmem:[#allocation8 + $0x564] sm:$0xf0] }
 0x2bb   :  { %14873 = vst [vmem:[#allocation34_spill] sm:$0xff] %v13080_v14  ;;  %v9443_v6 = vor.u32 %v11301_v15, %v9442_v22  ;;  %v9186_v15 = vld [vmem:[#allocation8 + $0x348] sm:$0xf] }
 0x2bc   :  { %v4522_v50 = vadd.f32 %v4521_v21, %v4473_v26  ;;  %12003 = vtanh.f32 %v4618_v4  ;;  %v11173_v26 = vld [vmem:[#allocation8 + $0x164] sm:$0xf0] }
 0x2bd   :  { %v9698_v21 = vld [vmem:[#allocation8 + $0x748] sm:$0xf]  ;;  %5114 = vmatpush.bf16.msra.mxu2 %v9443_v6 }
 0x2be   :  { %v9699_v4 = vor.u32 %v11365_v42, %v9698_v21 }
 0x2bf   :  { %v4570_v40 = vpop.f32.mrf.mxu2 }
 0x2c0   :  { %v4571_v59 = vadd.f32 %v4570_v40, %v4522_v50  ;;  %v4619_v41 = vpop.f32.mrf.mxu3  ;;  %v8930_v50 = vld [vmem:[#allocation8 + $0x148] sm:$0xf]  ;;  %5163 = vmatpush.bf16.msra.mxu3 %v9699_v4 }
 0x2c1   :  { %v4631_v23 = vpop.f32.mrf.mxu0  ;;  %v8931_v40 = vor.u32 %v11173_v26, %v8930_v50  ;;  %v9187_v50 = vor.u32 %v11237_v11, %v9186_v15  ;;  %v14879_v11 = vld [vmem:[#allocation51_spill] sm:$0xff] }
 0x2c2   :  { %v4632_v1 = vadd.f32 %v4631_v23, %v13084_v13  ;;  %v4680_v43 = vpop.f32.mrf.mxu1  ;;  %v4620_v47 = vadd.f32 %v4619_v41, %v4571_v59  ;;  %v8898_v15 = vld [vmem:[#allocation8 + $0x108] sm:$0xf] }
 0x2c3   :  { %4826 = vmatmul.bf16.vlgmr.msrb.gmra.mxu0 %v12764_v31  ;;  %4875 = vmatmul.bf16.vlgmr.msrb.gmra.mxu1 %v12767_v36 }
 0x2c4   :  { %v4681_v24 = vadd.f32 %v4680_v43, %v4632_v1  ;;  %12005 = vtanh.f32 %v4620_v47  ;;  %4924 = vmatmul.bf16.vlgmr.msrb.gmra.mxu2 %v12774_v9  ;;  %v13091_v1 = vpop.eup %12003  ;;  %5016 = vmatpush.bf16.msra.mxu0 %v8931_v40 }
 0x2c5   :  { %4973 = vmatmul.bf16.vlgmr.msrb.gmra.mxu3 %v14874_v44  ;;  %14875 = vst [vmem:[#allocation35_spill] sm:$0xff] %v13091_v1  ;;  %5065 = vmatpush.bf16.msra.mxu1 %v9187_v50  ;;  %v11165_v50 = vld [vmem:[#allocation8 + $0x124] sm:$0xf0] }
 0x2c6   :  { %v8899_v1 = vor.u32 %v11165_v50, %v8898_v15 }
 0x2c7   :  { %v4729_v46 = vpop.f32.mrf.mxu2 }
 0x2c8   :  { %v4730_v59 = vadd.f32 %v4729_v46, %v4681_v24  ;;  %v4778_v41 = vpop.f32.mrf.mxu3  ;;  %v11357_v24 = vld [vmem:[#allocation8 + $0x724] sm:$0xf0]  ;;  %5017 = vmatpush.bf16.msra.mxu0 %v8899_v1  ;;  %v14880_v1 = vld [vmem:[#allocation54_spill] sm:$0xff] }
 0x2c9   :  { %v4633_v23 = vpop.f32.mrf.mxu0 }
 0x2ca   :  { %v4634_v43 = vadd.f32 %v4633_v23, %v13084_v13  ;;  %v4682_v47 = vpop.f32.mrf.mxu1  ;;  %v13094_v53 = vpop.eup %12005  ;;  %v13096_v22 = vadd.f32 %v4778_v41, %v4730_v59  ;;  %v14877_v59 = vld [vmem:[#allocation49_spill] sm:$0xff]  ;;  %v14878_v41 = vld [vmem:[#allocation50_spill] sm:$0xff] }
 0x2cb   :  { %14876 = vst [vmem:[#allocation37_spill] sm:$0xff] %v13094_v53 }
 0x2cc   :  { %v4683_v14 = vadd.f32 %v4682_v47, %v4634_v43  ;;  %v9410_v43 = vld [vmem:[#allocation8 + $0x508] sm:$0xf] }
 0x2cd   :  { %v11293_v47 = vld [vmem:[#allocation8 + $0x524] sm:$0xf0] }
 0x2cf   :  { %v4731_v6 = vpop.f32.mrf.mxu2 }
 0x2d0   :  { %v4732_v26 = vadd.f32 %v4731_v6, %v4683_v14  ;;  %v4780_v21 = vpop.f32.mrf.mxu3  ;;  %v9411_v14 = vor.u32 %v11293_v47, %v9410_v43  ;;  %v9666_v6 = vld [vmem:[#allocation8 + $0x708] sm:$0xf] }
 0x2d1   :  { %v4636_v42 = vpop.f32.mrf.mxu0 }
 0x2d2   :  { %v4637_v46 = vadd.f32 %v4636_v42, %v13084_v13  ;;  %v4685_v40 = vpop.f32.mrf.mxu1  ;;  %v13101_v4 = vadd.f32 %v4780_v21, %v4732_v26  ;;  %v9667_v26 = vor.u32 %v11357_v24, %v9666_v6  ;;  %5115 = vmatpush.bf16.msra.mxu2 %v9411_v14 }
 0x2d3   :  { %4831 = vmatmul.bf16.gmra.mxu0 %v12784_v60  ;;  %4880 = vmatmul.bf16.gmra.mxu1 %v14877_v59  ;;  %v11229_v60 = vld [vmem:[#allocation8 + $0x324] sm:$0xf0] }
 0x2d4   :  { %v4686_v23 = vadd.f32 %v4685_v40, %v4637_v46  ;;  %4929 = vmatmul.bf16.gmra.mxu2 %v14878_v41  ;;  %5164 = vmatpush.bf16.msra.mxu3 %v9667_v26  ;;  %v9154_v41 = vld [vmem:[#allocation8 + $0x308] sm:$0xf] }
 0x2d5   :  { %4978 = vmatmul.bf16.gmra.mxu3 %v14879_v11  ;;  %v9155_v47 = vor.u32 %v11229_v60, %v9154_v41  ;;  %v9378_v60 = vld [vmem:[#allocation8 + $0x4c8] sm:$0xf] }
 0x2d6   :  { %v11157_v41 = vld [vmem:[#allocation8 + $0xe4] sm:$0xf0] }
 0x2d7   :  { %v4734_v42 = vpop.f32.mrf.mxu2  ;;  %5066 = vmatpush.bf16.msra.mxu1 %v9155_v47  ;;  %v9634_v26 = vld [vmem:[#allocation8 + $0x6c8] sm:$0xf] }
 0x2d8   :  { %v4735_v21 = vadd.f32 %v4734_v42, %v4686_v23  ;;  %v4783_v46 = vpop.f32.mrf.mxu3  ;;  %v14881_v42 = vld [vmem:[#allocation55_spill] sm:$0xff] }
 0x2d9   :  { %v4638_v40 = vpop.f32.mrf.mxu0 }
 0x2da   :  { %v4639_v53 = vadd.f32 %v4638_v40, %v13084_v13  ;;  %v4687_v59 = vpop.f32.mrf.mxu1  ;;  %v13108_v11 = vadd.f32 %v4783_v46, %v4735_v21  ;;  %v11349_v21 = vld [vmem:[#allocation8 + $0x6e4] sm:$0xf0] }
 0x2dc   :  { %v4688_v43 = vadd.f32 %v4687_v59, %v4639_v53  ;;  %v11285_v53 = vld [vmem:[#allocation8 + $0x4e4] sm:$0xf0] }
 0x2dd   :  { %v8866_v59 = vld [vmem:[#allocation8 + $0xc8] sm:$0xf] }
 0x2de   :  { %v8867_v40 = vor.u32 %v11157_v41, %v8866_v59 }
 0x2df   :  { %v4736_v44 = vpop.f32.mrf.mxu2 }
 0x2e0   :  { %v4737_v9 = vadd.f32 %v4736_v44, %v4688_v43  ;;  %v4785_v15 = vpop.f32.mrf.mxu3  ;;  %v9379_v44 = vor.u32 %v11285_v53, %v9378_v60  ;;  %5018 = vmatpush.bf16.msra.mxu0 %v8867_v40  ;;  %v14883_v40 = vld [vmem:[#allocation59_spill] sm:$0xff] }
 0x2e1   :  { %v4641_v24 = vpop.f32.mrf.mxu0 }
 0x2e2   :  { %v4642_v23 = vadd.f32 %v4641_v24, %v13084_v13  ;;  %v4690_v50 = vpop.f32.mrf.mxu1  ;;  %v13111_v14 = vadd.f32 %v4785_v15, %v4737_v9  ;;  %v9635_v9 = vor.u32 %v11349_v21, %v9634_v26  ;;  %5116 = vmatpush.bf16.msra.mxu2 %v9379_v44 }
 0x2e3   :  { %4836 = vmatmul.bf16.gmra.mxu0 %v12804_v57  ;;  %4885 = vmatmul.bf16.gmra.mxu1 %v12807_v25 }
 0x2e4   :  { %v4691_v6 = vadd.f32 %v4690_v50, %v4642_v23  ;;  %4934 = vmatmul.bf16.gmra.mxu2 %v14880_v1  ;;  %5165 = vmatpush.bf16.msra.mxu3 %v9635_v9  ;;  %v11221_v1 = vld [vmem:[#allocation8 + $0x2e4] sm:$0xf0] }
 0x2e5   :  { %4983 = vmatmul.bf16.gmra.mxu3 %v14881_v42  ;;  %v9122_v42 = vld [vmem:[#allocation8 + $0x2c8] sm:$0xf] }
 0x2e6   :  { %v9123_v53 = vor.u32 %v11221_v1, %v9122_v42  ;;  %v9346_v1 = vld [vmem:[#allocation8 + $0x488] sm:$0xf] }
 0x2e7   :  { %v4739_v46 = vpop.f32.mrf.mxu2  ;;  %v11277_v42 = vld [vmem:[#allocation8 + $0x4a4] sm:$0xf0] }
 0x2e8   :  { %v4740_v43 = vadd.f32 %v4739_v46, %v4691_v6  ;;  %v4788_v47 = vpop.f32.mrf.mxu3  ;;  %5067 = vmatpush.bf16.msra.mxu1 %v9123_v53  ;;  %v14882_v46 = vld [vmem:[#allocation58_spill] sm:$0xff]  ;;  %v8834_v9 = vld [vmem:[#allocation8 + $0x88] sm:$0xf] }
 0x2e9   :  { %v4643_v15 = vpop.f32.mrf.mxu0 }
 0x2ea   :  { %v4644_v24 = vadd.f32 %v4643_v15, %v13084_v13  ;;  %v4692_v23 = vpop.f32.mrf.mxu1  ;;  %v13118_v50 = vadd.f32 %v4788_v47, %v4740_v43  ;;  %v11149_v43 = vld [vmem:[#allocation8 + $0xa4] sm:$0xf0] }
 0x2eb   :  { %v9602_v47 = vld [vmem:[#allocation8 + $0x688] sm:$0xf] }
 0x2ec   :  { %v4693_v60 = vadd.f32 %v4692_v23, %v4644_v24  ;;  %v11341_v15 = vld [vmem:[#allocation8 + $0x6a4] sm:$0xf0]  ;;  %v8835_v23 = vor.u32 %v11149_v43, %v8834_v9 }
 0x2ee   :  { %5019 = vmatpush.bf16.msra.mxu0 %v8835_v23  ;;  %v14885_v23 = vld [vmem:[#allocation63_spill] sm:$0xff] }
 0x2ef   :  { %v4741_v25 = vpop.f32.mrf.mxu2 }
 0x2f0   :  { %v4742_v57 = vadd.f32 %v4741_v25, %v4693_v60  ;;  %v4790_v59 = vpop.f32.mrf.mxu3  ;;  %v9347_v25 = vor.u32 %v11277_v42, %v9346_v1 }
 0x2f1   :  { %v4646_v41 = vpop.f32.mrf.mxu0 }
 0x2f2   :  { %v4647_v6 = vadd.f32 %v4646_v41, %v13084_v13  ;;  %v4695_v26 = vpop.f32.mrf.mxu1  ;;  %v13121_v44 = vadd.f32 %v4790_v59, %v4742_v57  ;;  %v9603_v57 = vor.u32 %v11341_v15, %v9602_v47  ;;  %5117 = vmatpush.bf16.msra.mxu2 %v9347_v25 }
 0x2f3   :  { %4841 = vmatmul.bf16.gmra.mxu0 %v12824_v37  ;;  %4890 = vmatmul.bf16.gmra.mxu1 %v12827_v61 }
 0x2f4   :  { %v4696_v21 = vadd.f32 %v4695_v26, %v4647_v6  ;;  %4939 = vmatmul.bf16.gmra.mxu2 %v14882_v46  ;;  %5166 = vmatpush.bf16.msra.mxu3 %v9603_v57  ;;  %v11213_v46 = vld [vmem:[#allocation8 + $0x2a4] sm:$0xf0] }
 0x2f5   :  { %4988 = vmatmul.bf16.gmra.mxu3 %v14883_v40  ;;  %v9090_v40 = vld [vmem:[#allocation8 + $0x288] sm:$0xf] }
 0x2f6   :  { %v9091_v42 = vor.u32 %v11213_v46, %v9090_v40  ;;  %v9314_v46 = vld [vmem:[#allocation8 + $0x448] sm:$0xf] }
 0x2f7   :  { %v4744_v24 = vpop.f32.mrf.mxu2  ;;  %v11269_v40 = vld [vmem:[#allocation8 + $0x464] sm:$0xf0] }
 0x2f8   :  { %v4745_v60 = vadd.f32 %v4744_v24, %v4696_v21  ;;  %v4793_v53 = vpop.f32.mrf.mxu3  ;;  %5068 = vmatpush.bf16.msra.mxu1 %v9091_v42  ;;  %v14884_v24 = vld [vmem:[#allocation62_spill] sm:$0xff]  ;;  %v8802_v57 = vld [vmem:[#allocation8 + $0x48] sm:$0xf] }
 0x2f9   :  { %v4648_v59 = vpop.f32.mrf.mxu0 }
 0x2fa   :  { %v4649_v41 = vadd.f32 %v4648_v59, %v13084_v13  ;;  %v4697_v6 = vpop.f32.mrf.mxu1  ;;  %v13128_v26 = vadd.f32 %v4793_v53, %v4745_v60  ;;  %v11141_v60 = vld [vmem:[#allocation8 + $0x64] sm:$0xf0] }
 0x2fb   :  { %v9570_v53 = vld [vmem:[#allocation8 + $0x648] sm:$0xf] }
 0x2fc   :  { %v4698_v1 = vadd.f32 %v4697_v6, %v4649_v41  ;;  %v11333_v59 = vld [vmem:[#allocation8 + $0x664] sm:$0xf0]  ;;  %v8803_v6 = vor.u32 %v11141_v60, %v8802_v57 }
 0x2fe   :  { %5020 = vmatpush.bf16.msra.mxu0 %v8803_v6  ;;  %v14887_v6 = vld [vmem:[#allocation67_spill] sm:$0xff] }
 0x2ff   :  { %v4746_v61 = vpop.f32.mrf.mxu2 }
 0x300   :  { %v4747_v37 = vadd.f32 %v4746_v61, %v4698_v1  ;;  %v4795_v9 = vpop.f32.mrf.mxu3  ;;  %v9315_v61 = vor.u32 %v11269_v40, %v9314_v46 }
 0x301   :  { %v4651_v43 = vpop.f32.mrf.mxu0 }
 0x302   :  { %v4652_v21 = vadd.f32 %v4651_v43, %v13084_v13  ;;  %v4700_v47 = vpop.f32.mrf.mxu1  ;;  %v13131_v25 = vadd.f32 %v4795_v9, %v4747_v37  ;;  %v9571_v37 = vor.u32 %v11333_v59, %v9570_v53  ;;  %5118 = vmatpush.bf16.msra.mxu2 %v9315_v61 }
 0x303   :  { %4846 = vmatmul.bf16.gmra.mxu0 %v12844_v55  ;;  %4895 = vmatmul.bf16.gmra.mxu1 %v12847_v54 }
 0x304   :  { %v4701_v15 = vadd.f32 %v4700_v47, %v4652_v21  ;;  %4944 = vmatmul.bf16.gmra.mxu2 %v14884_v24  ;;  %5167 = vmatpush.bf16.msra.mxu3 %v9571_v37  ;;  %v11205_v24 = vld [vmem:[#allocation8 + $0x264] sm:$0xf0] }
 0x305   :  { %4993 = vmatmul.bf16.gmra.mxu3 %v14885_v23  ;;  %v9058_v23 = vld [vmem:[#allocation8 + $0x248] sm:$0xf] }
 0x306   :  { %v9059_v40 = vor.u32 %v11205_v24, %v9058_v23  ;;  %v9282_v24 = vld [vmem:[#allocation8 + $0x408] sm:$0xf] }
 0x307   :  { %v4749_v41 = vpop.f32.mrf.mxu2  ;;  %v11261_v23 = vld [vmem:[#allocation8 + $0x424] sm:$0xf0] }
 0x308   :  { %v4750_v1 = vadd.f32 %v4749_v41, %v4701_v15  ;;  %v4798_v42 = vpop.f32.mrf.mxu3  ;;  %5069 = vmatpush.bf16.msra.mxu1 %v9059_v40  ;;  %v14886_v41 = vld [vmem:[#allocation66_spill] sm:$0xff]  ;;  %v8770_v37 = vld [vmem:[#allocation8 + $0x8] sm:$0xf] }
 0x309   :  { %v4653_v9 = vpop.f32.mrf.mxu0 }
 0x30a   :  { %v4654_v43 = vadd.f32 %v4653_v9, %v13084_v13  ;;  %v4702_v21 = vpop.f32.mrf.mxu1  ;;  %v13138_v47 = vadd.f32 %v4798_v42, %v4750_v1  ;;  %v11133_v1 = vld [vmem:[#allocation8 + $0x24] sm:$0xf0] }
 0x30b   :  { %v9538_v42 = vld [vmem:[#allocation8 + $0x608] sm:$0xf] }
 0x30c   :  { %v4703_v46 = vadd.f32 %v4702_v21, %v4654_v43  ;;  %v11325_v9 = vld [vmem:[#allocation8 + $0x624] sm:$0xf0]  ;;  %v8771_v21 = vor.u32 %v11133_v1, %v8770_v37 }
 0x30e   :  { %5021 = vmatpush.bf16.msra.mxu0 %v8771_v21  ;;  %v14889_v21 = vld [vmem:[#allocation71_spill] sm:$0xff] }
 0x30f   :  { %v4751_v54 = vpop.f32.mrf.mxu2 }
 0x310   :  { %v4752_v55 = vadd.f32 %v4751_v54, %v4703_v46  ;;  %v4800_v57 = vpop.f32.mrf.mxu3  ;;  %v9283_v54 = vor.u32 %v11261_v23, %v9282_v24 }
 0x311   :  { %v4656_v60 = vpop.f32.mrf.mxu0 }
 0x312   :  { %v4657_v15 = vadd.f32 %v4656_v60, %v13084_v13  ;;  %v4705_v53 = vpop.f32.mrf.mxu1  ;;  %v13141_v61 = vadd.f32 %v4800_v57, %v4752_v55  ;;  %v9539_v55 = vor.u32 %v11325_v9, %v9538_v42  ;;  %5119 = vmatpush.bf16.msra.mxu2 %v9283_v54 }
 0x313   :  { %4851 = vmatmul.bf16.gmra.mxu0 %v12864_v58  ;;  %4900 = vmatmul.bf16.gmra.mxu1 %v12867_v52 }
 0x314   :  { %v4706_v59 = vadd.f32 %v4705_v53, %v4657_v15  ;;  %4949 = vmatmul.bf16.gmra.mxu2 %v14886_v41  ;;  %5168 = vmatpush.bf16.msra.mxu3 %v9539_v55  ;;  %v11197_v41 = vld [vmem:[#allocation8 + $0x224] sm:$0xf0] }
 0x315   :  { %4998 = vmatmul.bf16.gmra.mxu3 %v14887_v6  ;;  %v9026_v6 = vld [vmem:[#allocation8 + $0x208] sm:$0xf] }
 0x316   :  { %v9027_v23 = vor.u32 %v11197_v41, %v9026_v6  ;;  %v10530_v41 = vld [vmem:[#allocation8 + $0xdc8] sm:$0xf] }
 0x317   :  { %v4754_v43 = vpop.f32.mrf.mxu2  ;;  %v11573_v6 = vld [vmem:[#allocation8 + $0xde4] sm:$0xf0] }
 0x318   :  { %v4755_v46 = vadd.f32 %v4754_v43, %v4706_v59  ;;  %v4803_v40 = vpop.f32.mrf.mxu3  ;;  %5070 = vmatpush.bf16.msra.mxu1 %v9027_v23  ;;  %v14888_v43 = vld [vmem:[#allocation70_spill] sm:$0xff]  ;;  %v10018_v55 = vld [vmem:[#allocation8 + $0x9c8] sm:$0xf] }
 0x319   :  { %v4658_v57 = vpop.f32.mrf.mxu0 }
 0x31a   :  { %v4659_v60 = vadd.f32 %v4658_v57, %v13084_v13  ;;  %v4707_v15 = vpop.f32.mrf.mxu1  ;;  %v13148_v53 = vadd.f32 %v4803_v40, %v4755_v46  ;;  %v11445_v46 = vld [vmem:[#allocation8 + $0x9e4] sm:$0xf0] }
 0x31b   :  { %v10786_v40 = vld [vmem:[#allocation8 + $0xfc8] sm:$0xf] }
 0x31c   :  { %v4708_v24 = vadd.f32 %v4707_v15, %v4659_v60  ;;  %v11637_v57 = vld [vmem:[#allocation8 + $0xfe4] sm:$0xf0]  ;;  %v10019_v15 = vor.u32 %v11445_v46, %v10018_v55 }
 0x31e   :  { %5210 = vmatpush.bf16.msrb.mxu0 %v10019_v15 }
 0x31f   :  { %v4756_v52 = vpop.f32.mrf.mxu2 }
 0x320   :  { %v4757_v58 = vadd.f32 %v4756_v52, %v4708_v24  ;;  %v4805_v37 = vpop.f32.mrf.mxu3  ;;  %v10531_v52 = vor.u32 %v11573_v6, %v10530_v41  ;;  %v11509_v41 = vld [vmem:[#allocation8 + $0xbe4] sm:$0xf0] }
 0x321   :  { %v4661_v1 = vpop.f32.mrf.mxu0 }
 0x322   :  { %v4662_v59 = vadd.f32 %v4661_v1, %v13084_v13  ;;  %v4710_v42 = vpop.f32.mrf.mxu1  ;;  %v13151_v54 = vadd.f32 %v4805_v37, %v4757_v58  ;;  %v10787_v58 = vor.u32 %v11637_v57, %v10786_v40  ;;  %5308 = vmatpush.bf16.msrb.mxu2 %v10531_v52 }
 0x323   :  { %4856 = vmatmul.bf16.gmra.mxu0 %v12884_v39  ;;  %4905 = vmatmul.bf16.gmra.mxu1 %v12887_v2 }
 0x324   :  { %v4711_v9 = vadd.f32 %v4710_v42, %v4662_v59  ;;  %4954 = vmatmul.bf16.gmra.mxu2 %v14888_v43  ;;  %5357 = vmatpush.bf16.msrb.mxu3 %v10787_v58  ;;  %v10274_v43 = vld [vmem:[#allocation8 + $0xbc8] sm:$0xf] }
 0x325   :  { %5003 = vmatmul.bf16.gmra.mxu3 %v14889_v21  ;;  %v10275_v6 = vor.u32 %v11509_v41, %v10274_v43 }
 0x327   :  { %v4759_v60 = vpop.f32.mrf.mxu2  ;;  %5259 = vmatpush.bf16.msrb.mxu1 %v10275_v6  ;;  %v11437_v6 = vld [vmem:[#allocation8 + $0x9a4] sm:$0xf0] }
 0x328   :  { %v4760_v24 = vadd.f32 %v4759_v60, %v4711_v9  ;;  %v4808_v23 = vpop.f32.mrf.mxu3  ;;  %v14890_v60 = vld [vmem:[#allocation75_spill] sm:$0xff] }
 0x329   :  { %v4663_v37 = vpop.f32.mrf.mxu0 }
 0x32a   :  { %v4664_v1 = vadd.f32 %v4663_v37, %v13084_v13  ;;  %v4712_v59 = vpop.f32.mrf.mxu1  ;;  %v13158_v42 = vadd.f32 %v4808_v23, %v4760_v24  ;;  %v10498_v37 = vld [vmem:[#allocation8 + $0xd88] sm:$0xf] }
 0x32c   :  { %v4713_v21 = vadd.f32 %v4712_v59, %v4664_v1  ;;  %v11565_v1 = vld [vmem:[#allocation8 + $0xda4] sm:$0xf0] }
 0x32d   :  { %v9986_v59 = vld [vmem:[#allocation8 + $0x988] sm:$0xf]  ;;  %v10499_v41 = vor.u32 %v11565_v1, %v10498_v37  ;;  %v14891_v1 = vld [vmem:[#allocation22_spill] sm:$0xff] }
 0x32f   :  { %v4761_v2 = vpop.f32.mrf.mxu2  ;;  %5309 = vmatpush.bf16.msrb.mxu2 %v10499_v41 }
 0x330   :  { %v4762_v39 = vadd.f32 %v4761_v2, %v4713_v21  ;;  %v4810_v55 = vpop.f32.mrf.mxu3 }
 0x331   :  { %v4666_v46 = vpop.f32.mrf.mxu0 }
 0x332   :  { %v4667_v9 = vadd.f32 %v4666_v46, %v13084_v13  ;;  %v4715_v40 = vpop.f32.mrf.mxu1  ;;  %v13161_v52 = vadd.f32 %v4810_v55, %v4762_v39  ;;  %v10754_v55 = vld [vmem:[#allocation8 + $0xf88] sm:$0xf] }
 0x333   :  { %4861 = vmatmul.bf16.gmra.mxu0 %v12907_v63  ;;  %4910 = vmatmul.bf16.gmra.mxu1 %v12910_v56  ;;  %v11629_v46 = vld [vmem:[#allocation8 + $0xfa4] sm:$0xf0] }
 0x334   :  { %v4716_v57 = vadd.f32 %v4715_v40, %v4667_v9  ;;  %4959 = vmatmul.bf16.gmra.mxu2 %v12915_v62  ;;  %v9987_v9 = vor.u32 %v11437_v6, %v9986_v59  ;;  %v10755_v40 = vor.u32 %v11629_v46, %v10754_v55  ;;  %v11501_v62 = vld [vmem:[#allocation8 + $0xba4] sm:$0xf0] }
 0x335   :  { %5008 = vmatmul.bf16.gmra.mxu3 %v14890_v60  ;;  %v10242_v60 = vld [vmem:[#allocation8 + $0xb88] sm:$0xf] }
 0x336   :  { %5211 = vmatpush.bf16.msrb.mxu0 %v9987_v9  ;;  %5358 = vmatpush.bf16.msrb.mxu3 %v10755_v40  ;;  %v11557_v59 = vld [vmem:[#allocation8 + $0xd64] sm:$0xf0] }
 0x337   :  { %v4764_v43 = vpop.f32.mrf.mxu2  ;;  %v11429_v6 = vld [vmem:[#allocation8 + $0x964] sm:$0xf0] }
 0x338   :  { %v4765_v15 = vadd.f32 %v4764_v43, %v4716_v57  ;;  %v4813_v58 = vpop.f32.mrf.mxu3  ;;  %v10243_v57 = vor.u32 %v11501_v62, %v10242_v60  ;;  %v14892_v62 = vld [vmem:[#allocation23_spill] sm:$0xff] }
 0x339   :  { %v4668_v2 = vpop.f32.mrf.mxu0  ;;  %v10466_v60 = vld [vmem:[#allocation8 + $0xd48] sm:$0xf] }
 0x33a   :  { %v4669_v21 = vadd.f32 %v4668_v2, %v13084_v13  ;;  %v4717_v24 = vpop.f32.mrf.mxu1  ;;  %v13168_v23 = vadd.f32 %v4813_v58, %v4765_v15  ;;  %5260 = vmatpush.bf16.msrb.mxu1 %v10243_v57  ;;  %v10467_v41 = vor.u32 %v11557_v59, %v10466_v60  ;;  %v10722_v55 = vld [vmem:[#allocation8 + $0xf48] sm:$0xf] }
 0x33b   :  { %v11621_v46 = vld [vmem:[#allocation8 + $0xf64] sm:$0xf0] }
 0x33c   :  { %v4718_v39 = vadd.f32 %v4717_v24, %v4669_v21  ;;  %v10723_v40 = vor.u32 %v11621_v46, %v10722_v55  ;;  %5310 = vmatpush.bf16.msrb.mxu2 %v10467_v41 }
 0x33e   :  { %5359 = vmatpush.bf16.msrb.mxu3 %v10723_v40 }
 0x33f   :  { %v4766_v43 = vpop.f32.mrf.mxu2 }
 0x340   :  { %v4767_v13 = vadd.f32 %v4766_v43, %v4718_v39  ;;  %v4815_v15 = vpop.f32.mrf.mxu3  ;;  %v9954_v39 = vld [vmem:[#allocation8 + $0x948] sm:$0xf] }
 0x341   :  { %v4827_v58 = vpop.f32.mrf.mxu0  ;;  %v9955_v9 = vor.u32 %v11429_v6, %v9954_v39 }
 0x342   :  { %v4828_v2 = vadd.f32 %v4827_v58, %v13096_v22  ;;  %v4876_v21 = vpop.f32.mrf.mxu1  ;;  %v13171_v24 = vadd.f32 %v4815_v15, %v4767_v13 }
 0x343   :  { %5022 = vmatmul.bf16.vlgmr.msra.gmra.mxu0 %v12592_v32  ;;  %5071 = vmatmul.bf16.vlgmr.msra.gmra.mxu1 %v12595_v33 }
 0x344   :  { %v4877_v37 = vadd.f32 %v4876_v21, %v4828_v2  ;;  %5120 = vmatmul.bf16.vlgmr.msra.gmra.mxu2 %v14891_v1  ;;  %5212 = vmatpush.bf16.msrb.mxu0 %v9955_v9  ;;  %v11493_v1 = vld [vmem:[#allocation8 + $0xb64] sm:$0xf0] }
 0x345   :  { %5169 = vmatmul.bf16.vlgmr.msra.gmra.mxu3 %v14892_v62  ;;  %v10210_v62 = vld [vmem:[#allocation8 + $0xb48] sm:$0xf] }
 0x346   :  { %v10211_v60 = vor.u32 %v11493_v1, %v10210_v62  ;;  %v11549_v1 = vld [vmem:[#allocation8 + $0xd24] sm:$0xf0] }
 0x347   :  { %v4925_v22 = vpop.f32.mrf.mxu2  ;;  %v9922_v62 = vld [vmem:[#allocation8 + $0x908] sm:$0xf] }
 0x348   :  { %v4926_v57 = vadd.f32 %v4925_v22, %v4877_v37  ;;  %v4974_v43 = vpop.f32.mrf.mxu3  ;;  %5261 = vmatpush.bf16.msrb.mxu1 %v10211_v60  ;;  %v11421_v22 = vld [vmem:[#allocation8 + $0x924] sm:$0xf0] }
 0x349   :  { %v4829_v13 = vpop.f32.mrf.mxu0  ;;  %v10690_v9 = vld [vmem:[#allocation8 + $0xf08] sm:$0xf] }
 0x34a   :  { %v4830_v15 = vadd.f32 %v4829_v13, %v13101_v4  ;;  %v4878_v58 = vpop.f32.mrf.mxu1  ;;  %v4975_v2 = vadd.f32 %v4974_v43, %v4926_v57  ;;  %v10434_v4 = vld [vmem:[#allocation8 + $0xd08] sm:$0xf] }
 0x34b   :  { %v10435_v46 = vor.u32 %v11549_v1, %v10434_v4 }
 0x34c   :  { %v4879_v21 = vadd.f32 %v4878_v58, %v4830_v15  ;;  %12007 = vtanh.f32 %v4975_v2 }
 0x34d   :  { %5311 = vmatpush.bf16.msrb.mxu2 %v10435_v46 }
 0x34f   :  { %v4927_v59 = vpop.f32.mrf.mxu2 }
 0x350   :  { %v4928_v33 = vadd.f32 %v4927_v59, %v4879_v21  ;;  %v4976_v32 = vpop.f32.mrf.mxu3 }
 0x351   :  { %v4832_v39 = vpop.f32.mrf.mxu0 }
 0x352   :  { %v4833_v37 = vadd.f32 %v4832_v39, %v13108_v11  ;;  %v4881_v6 = vpop.f32.mrf.mxu1  ;;  %v4977_v55 = vadd.f32 %v4976_v32, %v4928_v33  ;;  %v11613_v11 = vld [vmem:[#allocation8 + $0xf24] sm:$0xf0]  ;;  %v9923_v32 = vor.u32 %v11421_v22, %v9922_v62  ;;  %v13183_v15 = vpop.eup %12007 }
 0x353   :  { %5027 = vmatmul.bf16.gmra.mxu0 %v12612_v17  ;;  %5076 = vmatmul.bf16.gmra.mxu1 %v12615_v18  ;;  %v10691_v33 = vor.u32 %v11613_v11, %v10690_v9  ;;  %14893 = vst [vmem:[#allocation41_spill] sm:$0xff] %v13183_v15  ;;  %v10402_v11 = vld [vmem:[#allocation8 + $0xcc8] sm:$0xf] }
 0x354   :  { %v4882_v41 = vadd.f32 %v4881_v6, %v4833_v37  ;;  %12009 = vtanh.f32 %v4977_v55  ;;  %5125 = vmatmul.bf16.gmra.mxu2 %v12622_v30  ;;  %5213 = vmatpush.bf16.msrb.mxu0 %v9923_v32  ;;  %v10178_v37 = vld [vmem:[#allocation8 + $0xb08] sm:$0xf] }
 0x355   :  { %5174 = vmatmul.bf16.gmra.mxu3 %v12625_v35  ;;  %v11485_v6 = vld [vmem:[#allocation8 + $0xb24] sm:$0xf0] }
 0x356   :  { %5360 = vmatpush.bf16.msrb.mxu3 %v10691_v33  ;;  %v10179_v55 = vor.u32 %v11485_v6, %v10178_v37  ;;  %v9890_v32 = vld [vmem:[#allocation8 + $0x8c8] sm:$0xf] }
 0x357   :  { %v4930_v40 = vpop.f32.mrf.mxu2 }
 0x358   :  { %v4931_v57 = vadd.f32 %v4930_v40, %v4882_v41  ;;  %v4979_v43 = vpop.f32.mrf.mxu3  ;;  %5262 = vmatpush.bf16.msrb.mxu1 %v10179_v55  ;;  %v11541_v40 = vld [vmem:[#allocation8 + $0xce4] sm:$0xf0] }
 0x359   :  { %v4834_v13 = vpop.f32.mrf.mxu0  ;;  %v10403_v33 = vor.u32 %v11541_v40, %v10402_v11 }
 0x35a   :  { %v4835_v58 = vadd.f32 %v4834_v13, %v13111_v14  ;;  %v4883_v2 = vpop.f32.mrf.mxu1  ;;  %v13186_v21 = vpop.eup %12009  ;;  %v4980_v60 = vadd.f32 %v4979_v43, %v4931_v57  ;;  %v11413_v57 = vld [vmem:[#allocation8 + $0x8e4] sm:$0xf0] }
 0x35b   :  { %14894 = vst [vmem:[#allocation42_spill] sm:$0xff] %v13186_v21  ;;  %v10658_v43 = vld [vmem:[#allocation8 + $0xec8] sm:$0xf]  ;;  %5312 = vmatpush.bf16.msrb.mxu2 %v10403_v33 }
 0x35c   :  { %v4884_v39 = vadd.f32 %v4883_v2, %v4835_v58  ;;  %12011 = vtanh.f32 %v4980_v60  ;;  %v9891_v58 = vor.u32 %v11413_v57, %v9890_v32 }
 0x35e   :  { %5214 = vmatpush.bf16.msrb.mxu0 %v9891_v58  ;;  %v11533_v58 = vld [vmem:[#allocation8 + $0xca4] sm:$0xf0] }
 0x35f   :  { %v4932_v41 = vpop.f32.mrf.mxu2 }
 0x360   :  { %v4933_v4 = vadd.f32 %v4932_v41, %v4884_v39  ;;  %v4981_v1 = vpop.f32.mrf.mxu3 }
 0x361   :  { %v4837_v62 = vpop.f32.mrf.mxu0 }
 0x362   :  { %v4838_v14 = vadd.f32 %v4837_v62, %v13118_v50  ;;  %v4886_v46 = vpop.f32.mrf.mxu1  ;;  %v4982_v22 = vadd.f32 %v4981_v1, %v4933_v4  ;;  %v11605_v50 = vld [vmem:[#allocation8 + $0xee4] sm:$0xf0]  ;;  %v13195_v6 = vpop.eup %12011 }
 0x363   :  { %5032 = vmatmul.bf16.gmra.mxu0 %v12632_v5  ;;  %5081 = vmatmul.bf16.gmra.mxu1 %v12635_v7  ;;  %v10659_v2 = vor.u32 %v11605_v50, %v10658_v43  ;;  %14895 = vst [vmem:[#allocation79_spill] sm:$0xff] %v13195_v6 }
 0x364   :  { %v4887_v9 = vadd.f32 %v4886_v46, %v4838_v14  ;;  %12013 = vtanh.f32 %v4982_v22  ;;  %5130 = vmatmul.bf16.gmra.mxu2 %v12642_v20  ;;  %v10146_v46 = vld [vmem:[#allocation8 + $0xac8] sm:$0xf]  ;;  %v9252_v14 = vld [vmem:[#allocation8 + $0x3e8] sm:$0xf0] }
 0x365   :  { %5179 = vmatmul.bf16.gmra.mxu3 %v14842_v48  ;;  %v11477_v22 = vld [vmem:[#allocation8 + $0xae4] sm:$0xf0] }
 0x366   :  { %5361 = vmatpush.bf16.msrb.mxu3 %v10659_v2  ;;  %v9858_v2 = vld [vmem:[#allocation8 + $0x888] sm:$0xf] }
 0x367   :  { %v4935_v13 = vpop.f32.mrf.mxu2 }
 0x368   :  { %v4936_v60 = vadd.f32 %v4935_v13, %v4887_v9  ;;  %v4984_v39 = vpop.f32.mrf.mxu3  ;;  %v10147_v9 = vor.u32 %v11477_v22, %v10146_v46  ;;  %v10370_v13 = vld [vmem:[#allocation8 + $0xc88] sm:$0xf] }
 0x369   :  { %v4839_v37 = vpop.f32.mrf.mxu0 }
 0x36a   :  { %v4840_v55 = vadd.f32 %v4839_v37, %v13121_v44  ;;  %v4888_v41 = vpop.f32.mrf.mxu1  ;;  %v13198_v4 = vpop.eup %12013  ;;  %v4985_v1 = vadd.f32 %v4984_v39, %v4936_v60  ;;  %5263 = vmatpush.bf16.msrb.mxu1 %v10147_v9  ;;  %v10371_v60 = vor.u32 %v11533_v58, %v10370_v13  ;;  %v11405_v39 = vld [vmem:[#allocation8 + $0x8a4] sm:$0xf0] }
 0x36b   :  { %14896 = vst [vmem:[#allocation80_spill] sm:$0xff] %v13198_v4  ;;  %v10626_v37 = vld [vmem:[#allocation8 + $0xe88] sm:$0xf] }
 0x36c   :  { %v4889_v62 = vadd.f32 %v4888_v41, %v4840_v55  ;;  %12015 = vtanh.f32 %v4985_v1  ;;  %v9859_v41 = vor.u32 %v11405_v39, %v9858_v2  ;;  %5313 = vmatpush.bf16.msrb.mxu2 %v10371_v60  ;;  %v11469_v13 = vld [vmem:[#allocation8 + $0xaa4] sm:$0xf0] }
 0x36e   :  { %5215 = vmatpush.bf16.msrb.mxu0 %v9859_v41  ;;  %v10338_v41 = vld [vmem:[#allocation8 + $0xc48] sm:$0xf] }
 0x36f   :  { %v4937_v11 = vpop.f32.mrf.mxu2 }
 0x370   :  { %v4938_v40 = vadd.f32 %v4937_v11, %v4889_v62  ;;  %v4986_v32 = vpop.f32.mrf.mxu3 }
 0x371   :  { %v4842_v33 = vpop.f32.mrf.mxu0 }
 0x372   :  { %v4843_v44 = vadd.f32 %v4842_v33, %v13128_v26  ;;  %v4891_v57 = vpop.f32.mrf.mxu1  ;;  %v4987_v43 = vadd.f32 %v4986_v32, %v4938_v40  ;;  %v11597_v26 = vld [vmem:[#allocation8 + $0xea4] sm:$0xf0]  ;;  %v13207_v9 = vpop.eup %12015 }
 0x373   :  { %5037 = vmatmul.bf16.gmra.mxu0 %v14845_v3  ;;  %5086 = vmatmul.bf16.gmra.mxu1 %v14846_v38  ;;  %v10627_v1 = vor.u32 %v11597_v26, %v10626_v37  ;;  %14897 = vst [vmem:[#allocation81_spill] sm:$0xff] %v13207_v9  ;;  %v11225_v9 = vld [vmem:[#allocation8 + $0x30c] sm:$0xf] }
 0x374   :  { %v4892_v50 = vadd.f32 %v4891_v57, %v4843_v44  ;;  %12017 = vtanh.f32 %v4987_v43  ;;  %5135 = vmatmul.bf16.gmra.mxu2 %v14847_v34  ;;  %v10114_v43 = vld [vmem:[#allocation8 + $0xa88] sm:$0xf] }
 0x375   :  { %5184 = vmatmul.bf16.gmra.mxu3 %v14848_v27 }
 0x376   :  { %5362 = vmatpush.bf16.msrb.mxu3 %v10627_v1  ;;  %v11525_v1 = vld [vmem:[#allocation8 + $0xc64] sm:$0xf0] }
 0x377   :  { %v4940_v55 = vpop.f32.mrf.mxu2 }
 0x378   :  { %v4941_v62 = vadd.f32 %v4940_v55, %v4892_v50  ;;  %v4989_v46 = vpop.f32.mrf.mxu3  ;;  %v10115_v50 = vor.u32 %v11469_v13, %v10114_v43 }
 0x379   :  { %v4844_v22 = vpop.f32.mrf.mxu0 }
 0x37a   :  { %v4845_v11 = vadd.f32 %v4844_v22, %v13131_v25  ;;  %v4893_v40 = vpop.f32.mrf.mxu1  ;;  %v13210_v32 = vpop.eup %12017  ;;  %v4990_v33 = vadd.f32 %v4989_v46, %v4941_v62  ;;  %5264 = vmatpush.bf16.msrb.mxu1 %v10115_v50  ;;  %v9826_v62 = vld [vmem:[#allocation8 + $0x848] sm:$0xf]  ;;  %v10339_v46 = vor.u32 %v11525_v1, %v10338_v41 }
 0x37b   :  { %14898 = vst [vmem:[#allocation82_spill] sm:$0xff] %v13210_v32  ;;  %v11397_v22 = vld [vmem:[#allocation8 + $0x864] sm:$0xf0]  ;;  %v9156_v32 = vld [vmem:[#allocation8 + $0x328] sm:$0xf0] }
 0x37c   :  { %v4894_v44 = vadd.f32 %v4893_v40, %v4845_v11  ;;  %12019 = vtanh.f32 %v4990_v33  ;;  %v10594_v11 = vld [vmem:[#allocation8 + $0xe48] sm:$0xf]  ;;  %5314 = vmatpush.bf16.msrb.mxu2 %v10339_v46 }
 0x37d   :  { %v10082_v41 = vld [vmem:[#allocation8 + $0xa48] sm:$0xf] }
 0x37e   :  { %v11461_v1 = vld [vmem:[#allocation8 + $0xa64] sm:$0xf0] }
 0x37f   :  { %v4942_v58 = vpop.f32.mrf.mxu2 }
 0x380   :  { %v4943_v2 = vadd.f32 %v4942_v58, %v4894_v44  ;;  %v4991_v60 = vpop.f32.mrf.mxu3  ;;  %v9827_v44 = vor.u32 %v11397_v22, %v9826_v62 }
 0x381   :  { %v4847_v39 = vpop.f32.mrf.mxu0 }
 0x382   :  { %v4848_v25 = vadd.f32 %v4847_v39, %v13138_v47  ;;  %v4896_v37 = vpop.f32.mrf.mxu1  ;;  %v4992_v26 = vadd.f32 %v4991_v60, %v4943_v2  ;;  %v11589_v47 = vld [vmem:[#allocation8 + $0xe64] sm:$0xf0]  ;;  %v13219_v58 = vpop.eup %12019  ;;  %5216 = vmatpush.bf16.msrb.mxu0 %v9827_v44 }
 0x383   :  { %5042 = vmatmul.bf16.gmra.mxu0 %v14851_v19  ;;  %5091 = vmatmul.bf16.gmra.mxu1 %v14852_v49  ;;  %v10595_v33 = vor.u32 %v11589_v47, %v10594_v11  ;;  %14899 = vst [vmem:[#allocation83_spill] sm:$0xff] %v13219_v58 }
 0x384   :  { %v4897_v55 = vadd.f32 %v4896_v37, %v4848_v25  ;;  %12021 = vtanh.f32 %v4992_v26  ;;  %5140 = vmatmul.bf16.gmra.mxu2 %v14853_v0 }
 0x385   :  { %5189 = vmatmul.bf16.gmra.mxu3 %v14854_v8 }
 0x386   :  { %5363 = vmatpush.bf16.msrb.mxu3 %v10595_v33  ;;  %v14901_v33 = vld [vmem:[#allocation36_spill] sm:$0xff] }
 0x387   :  { %v4945_v40 = vpop.f32.mrf.mxu2 }
 0x388   :  { %v4946_v43 = vadd.f32 %v4945_v40, %v4897_v55  ;;  %v4994_v13 = vpop.f32.mrf.mxu3  ;;  %v10083_v55 = vor.u32 %v11461_v1, %v10082_v41 }
 0x389   :  { %v4849_v50 = vpop.f32.mrf.mxu0 }
 0x38a   :  { %v4850_v2 = vadd.f32 %v4849_v50, %v13141_v61  ;;  %v4898_v60 = vpop.f32.mrf.mxu1  ;;  %v13222_v39 = vpop.eup %12021  ;;  %v4995_v25 = vadd.f32 %v4994_v13, %v4946_v43  ;;  %5265 = vmatpush.bf16.msrb.mxu1 %v10083_v55  ;;  %v10306_v43 = vld [vmem:[#allocation8 + $0xc08] sm:$0xf] }
 0x38b   :  { %14900 = vst [vmem:[#allocation84_spill] sm:$0xff] %v13222_v39  ;;  %v11517_v13 = vld [vmem:[#allocation8 + $0xc24] sm:$0xf0] }
 0x38c   :  { %v4899_v37 = vadd.f32 %v4898_v60, %v4850_v2  ;;  %12023 = vtanh.f32 %v4995_v25  ;;  %v9794_v50 = vld [vmem:[#allocation8 + $0x808] sm:$0xf]  ;;  %v10307_v2 = vor.u32 %v11517_v13, %v10306_v43 }
 0x38d   :  { %v11389_v60 = vld [vmem:[#allocation8 + $0x824] sm:$0xf0] }
 0x38e   :  { %v9795_v1 = vor.u32 %v11389_v60, %v9794_v50  ;;  %5315 = vmatpush.bf16.msrb.mxu2 %v10307_v2  ;;  %v10050_v50 = vld [vmem:[#allocation8 + $0xa08] sm:$0xf] }
 0x38f   :  { %v4947_v62 = vpop.f32.mrf.mxu2  ;;  %v11453_v60 = vld [vmem:[#allocation8 + $0xa24] sm:$0xf0] }
 0x390   :  { %v4948_v46 = vadd.f32 %v4947_v62, %v4899_v37  ;;  %v4996_v22 = vpop.f32.mrf.mxu3  ;;  %v10562_v37 = vld [vmem:[#allocation8 + $0xe08] sm:$0xf]  ;;  %5217 = vmatpush.bf16.msrb.mxu0 %v9795_v1 }
 0x391   :  { %v4852_v11 = vpop.f32.mrf.mxu0 }
 0x392   :  { %v4853_v61 = vadd.f32 %v4852_v11, %v13148_v53  ;;  %v4901_v47 = vpop.f32.mrf.mxu1  ;;  %v4997_v40 = vadd.f32 %v4996_v22, %v4948_v46  ;;  %v11581_v53 = vld [vmem:[#allocation8 + $0xe24] sm:$0xf0]  ;;  %v13231_v22 = vpop.eup %12023 }
 0x393   :  { %5047 = vmatmul.bf16.gmra.mxu0 %v14857_v29  ;;  %5096 = vmatmul.bf16.gmra.mxu1 %v14858_v10  ;;  %v10563_v25 = vor.u32 %v11581_v53, %v10562_v37  ;;  %14902 = vst [vmem:[#allocation36_spill] sm:$0xff] %v13231_v22 }
 0x394   :  { %v4902_v44 = vadd.f32 %v4901_v47, %v4853_v61  ;;  %12025 = vtanh.f32 %v4997_v40  ;;  %5145 = vmatmul.bf16.gmra.mxu2 %v14859_v28 }
 0x395   :  { %5194 = vmatmul.bf16.gmra.mxu3 %v14901_v33 }
 0x396   :  { %5364 = vmatpush.bf16.msrb.mxu3 %v10563_v25 }
 0x397   :  { %v4950_v41 = vpop.f32.mrf.mxu2 }
 0x398   :  { %v4951_v55 = vadd.f32 %v4950_v41, %v4902_v44  ;;  %v4999_v62 = vpop.f32.mrf.mxu3  ;;  %v10051_v44 = vor.u32 %v11453_v60, %v10050_v50  ;;  %v9508_v50 = vld [vmem:[#allocation8 + $0x5e8] sm:$0xf0] }
 0x399   :  { %v4854_v46 = vpop.f32.mrf.mxu0 }
 0x39a   :  { %v4855_v11 = vadd.f32 %v4854_v46, %v13151_v54  ;;  %v4903_v61 = vpop.f32.mrf.mxu1  ;;  %v13234_v47 = vpop.eup %12025  ;;  %v5000_v40 = vadd.f32 %v4999_v62, %v4951_v55  ;;  %5266 = vmatpush.bf16.msrb.mxu1 %v10051_v44  ;;  %v14904_v55 = vld [vmem:[#allocation38_spill] sm:$0xff]  ;;  %v14905_v62 = vld [vmem:[#allocation39_spill] sm:$0xff]  ;;  %v8996_v44 = vld [vmem:[#allocation8 + $0x1e8] sm:$0xf0] }
 0x39b   :  { %14903 = vst [vmem:[#allocation85_spill] sm:$0xff] %v13234_v47 }
 0x39c   :  { %v4904_v43 = vadd.f32 %v4903_v61, %v4855_v11  ;;  %12027 = vtanh.f32 %v5000_v40  ;;  %v14906_v11 = vld [vmem:[#allocation40_spill] sm:$0xff] }
 0x39d   :  { %v11313_v61 = vld [vmem:[#allocation8 + $0x5cc] sm:$0xf] }
 0x39e   :  { %v9511_v60 = vor.u32 %v11313_v61, %v9508_v50  ;;  %v11249_v50 = vld [vmem:[#allocation8 + $0x3cc] sm:$0xf] }
 0x39f   :  { %v4952_v37 = vpop.f32.mrf.mxu2  ;;  %v9255_v22 = vor.u32 %v11249_v50, %v9252_v14  ;;  %v14909_v14 = vld [vmem:[#allocation43_spill] sm:$0xff] }
 0x3a0   :  { %v4953_v2 = vadd.f32 %v4952_v37, %v4904_v43  ;;  %v5001_v53 = vpop.f32.mrf.mxu3  ;;  %v11185_v43 = vld [vmem:[#allocation8 + $0x1cc] sm:$0xf]  ;;  %5504 = vmatpush.bf16.msra.mxu2 %v9511_v60 }
 0x3a1   :  { %v4857_v41 = vpop.f32.mrf.mxu0  ;;  %v11377_v37 = vld [vmem:[#allocation8 + $0x7cc] sm:$0xf]  ;;  %5455 = vmatpush.bf16.msra.mxu1 %v9255_v22 }
 0x3a2   :  { %v4858_v54 = vadd.f32 %v4857_v41, %v13158_v42  ;;  %v4906_v46 = vpop.f32.mrf.mxu1  ;;  %v5002_v1 = vadd.f32 %v5001_v53, %v4953_v2  ;;  %v9764_v42 = vld [vmem:[#allocation8 + $0x7e8] sm:$0xf0]  ;;  %v8999_v2 = vor.u32 %v11185_v43, %v8996_v44 }
 0x3a3   :  { %5052 = vmatmul.bf16.gmra.mxu0 %v14863_v16  ;;  %5101 = vmatmul.bf16.gmra.mxu1 %v14904_v55  ;;  %v9767_v40 = vor.u32 %v11377_v37, %v9764_v42  ;;  %v9476_v22 = vld [vmem:[#allocation8 + $0x5a8] sm:$0xf0] }
 0x3a4   :  { %v4907_v25 = vadd.f32 %v4906_v46, %v4858_v54  ;;  %12029 = vtanh.f32 %v5002_v1  ;;  %5150 = vmatmul.bf16.gmra.mxu2 %v14905_v62  ;;  %v13243_v1 = vpop.eup %12027  ;;  %5406 = vmatpush.bf16.msra.mxu0 %v8999_v2 }
 0x3a5   :  { %5199 = vmatmul.bf16.gmra.mxu3 %v14906_v11  ;;  %14907 = vst [vmem:[#allocation38_spill] sm:$0xff] %v13243_v1 }
 0x3a6   :  { %5553 = vmatpush.bf16.msra.mxu3 %v9767_v40  ;;  %v8964_v40 = vld [vmem:[#allocation8 + $0x1a8] sm:$0xf0] }
 0x3a7   :  { %v4955_v41 = vpop.f32.mrf.mxu2 }
 0x3a8   :  { %v4956_v53 = vadd.f32 %v4955_v41, %v4907_v25  ;;  %v5004_v54 = vpop.f32.mrf.mxu3 }
 0x3a9   :  { %v4859_v46 = vpop.f32.mrf.mxu0 }
 0x3aa   :  { %v4860_v13 = vadd.f32 %v4859_v46, %v13161_v52  ;;  %v4908_v26 = vpop.f32.mrf.mxu1  ;;  %v13246_v57 = vpop.eup %12029  ;;  %v5005_v61 = vadd.f32 %v5004_v54, %v4956_v53  ;;  %v11369_v53 = vld [vmem:[#allocation8 + $0x78c] sm:$0xf] }
 0x3ab   :  { %14908 = vst [vmem:[#allocation39_spill] sm:$0xff] %v13246_v57 }
 0x3ac   :  { %v4909_v59 = vadd.f32 %v4908_v26, %v4860_v13  ;;  %12031 = vtanh.f32 %v5005_v61  ;;  %v11305_v26 = vld [vmem:[#allocation8 + $0x58c] sm:$0xf] }
 0x3ad   :  { %v9479_v13 = vor.u32 %v11305_v26, %v9476_v22  ;;  %v11241_v26 = vld [vmem:[#allocation8 + $0x38c] sm:$0xf] }
 0x3ae   :  { %v9220_v22 = vld [vmem:[#allocation8 + $0x3a8] sm:$0xf0] }
 0x3af   :  { %v4957_v43 = vpop.f32.mrf.mxu2  ;;  %5505 = vmatpush.bf16.msra.mxu2 %v9479_v13  ;;  %v9223_v1 = vor.u32 %v11241_v26, %v9220_v22  ;;  %v8932_v26 = vld [vmem:[#allocation8 + $0x168] sm:$0xf0] }
 0x3b0   :  { %v4958_v60 = vadd.f32 %v4957_v43, %v4909_v59  ;;  %v5006_v44 = vpop.f32.mrf.mxu3  ;;  %v11177_v59 = vld [vmem:[#allocation8 + $0x18c] sm:$0xf] }
 0x3b1   :  { %v4862_v37 = vpop.f32.mrf.mxu0  ;;  %v8967_v46 = vor.u32 %v11177_v59, %v8964_v40  ;;  %v12232_v59 = vld [vmem:[#allocation10] sm:$0xff]  ;;  %5456 = vmatpush.bf16.msra.mxu1 %v9223_v1  ;;  %v11297_v1 = vld [vmem:[#allocation8 + $0x54c] sm:$0xf] }
 0x3b2   :  { %v4863_v52 = vadd.f32 %v4862_v37, %v13168_v23  ;;  %v4911_v42 = vpop.f32.mrf.mxu1  ;;  %v5007_v41 = vadd.f32 %v5006_v44, %v4958_v60  ;;  %v9732_v23 = vld [vmem:[#allocation8 + $0x7a8] sm:$0xf0]  ;;  %v13255_v44 = vpop.eup %12031  ;;  %v13262_v40 = vperm.slane %v12232_v59, 2 }
 0x3b3   :  { %5057 = vmatmul.bf16.gmra.mxu0 %v12735_v12  ;;  %5106 = vmatmul.bf16.gmra.mxu1 %v14869_v45  ;;  %v9735_v61 = vor.u32 %v11369_v53, %v9732_v23  ;;  %14910 = vst [vmem:[#allocation40_spill] sm:$0xff] %v13255_v44  ;;  %v11361_v22 = vld [vmem:[#allocation8 + $0x74c] sm:$0xf] }
 0x3b4   :  { %v4912_v2 = vadd.f32 %v4911_v42, %v4863_v52  ;;  %12033 = vtanh.f32 %v5007_v41  ;;  %5155 = vmatmul.bf16.gmra.mxu2 %v14870_v51  ;;  %5407 = vmatpush.bf16.msra.mxu0 %v8967_v46  ;;  %v9700_v59 = vld [vmem:[#allocation8 + $0x768] sm:$0xf0] }
 0x3b5   :  { %5204 = vmatmul.bf16.gmra.mxu3 %v14909_v14 }
 0x3b6   :  { %5554 = vmatpush.bf16.msra.mxu3 %v9735_v61 }
 0x3b7   :  { %v4960_v54 = vpop.f32.mrf.mxu2 }
 0x3b8   :  { %v4961_v50 = vadd.f32 %v4960_v54, %v4912_v2  ;;  %v5009_v43 = vpop.f32.mrf.mxu3 }
 0x3b9   :  { %v4864_v60 = vpop.f32.mrf.mxu0 }
 0x3ba   :  { %v4865_v37 = vadd.f32 %v4864_v60, %v13171_v24  ;;  %v4913_v52 = vpop.f32.mrf.mxu1  ;;  %v13258_v42 = vpop.eup %12033  ;;  %v5010_v41 = vadd.f32 %v5009_v43, %v4961_v50  ;;  %v14912_v43 = vld [vmem:[#allocation46_spill] sm:$0xff]  ;;  %v14913_v60 = vld [vmem:[#allocation47_spill] sm:$0xff] }
 0x3bb   :  { %14911 = vst [vmem:[#allocation43_spill] sm:$0xff] %v13258_v42  ;;  %v9188_v42 = vld [vmem:[#allocation8 + $0x368] sm:$0xf0] }
 0x3bc   :  { %v4914_v25 = vadd.f32 %v4913_v52, %v4865_v37  ;;  %12035 = vtanh.f32 %v5010_v41  ;;  %v9444_v37 = vld [vmem:[#allocation8 + $0x568] sm:$0xf0]  ;;  %v9703_v41 = vor.u32 %v11361_v22, %v9700_v59 }
 0x3bd   :  { %v9447_v52 = vor.u32 %v11297_v1, %v9444_v37  ;;  %v11233_v37 = vld [vmem:[#allocation8 + $0x34c] sm:$0xf] }
 0x3be   :  { %5555 = vmatpush.bf16.msra.mxu3 %v9703_v41 }
 0x3bf   :  { %v4962_v13 = vpop.f32.mrf.mxu2  ;;  %5506 = vmatpush.bf16.msra.mxu2 %v9447_v52 }
 0x3c0   :  { %v4963_v53 = vadd.f32 %v4962_v13, %v4914_v25  ;;  %v5011_v24 = vpop.f32.mrf.mxu3  ;;  %v11169_v25 = vld [vmem:[#allocation8 + $0x14c] sm:$0xf] }
 0x3c1   :  { %v5023_v23 = vpop.f32.mrf.mxu0 }
 0x3c2   :  { %v5024_v54 = vadd.f32 %v5023_v23, %v13262_v40  ;;  %v5072_v46 = vpop.f32.mrf.mxu1  ;;  %v5012_v61 = vadd.f32 %v5011_v24, %v4963_v53  ;;  %v8935_v53 = vor.u32 %v11169_v25, %v8932_v26  ;;  %v9191_v25 = vor.u32 %v11233_v37, %v9188_v42  ;;  %v14919_v42 = vld [vmem:[#allocation51_spill] sm:$0xff]  ;;  %v9412_v37 = vld [vmem:[#allocation8 + $0x528] sm:$0xf0] }
 0x3c3   :  { %5218 = vmatmul.bf16.vlgmr.msrb.gmra.mxu0 %v12764_v31  ;;  %5267 = vmatmul.bf16.vlgmr.msrb.gmra.mxu1 %v12767_v36 }
 0x3c4   :  { %v5073_v50 = vadd.f32 %v5072_v46, %v5024_v54  ;;  %12037 = vtanh.f32 %v5012_v61  ;;  %5316 = vmatmul.bf16.vlgmr.msrb.gmra.mxu2 %v14912_v43  ;;  %v13269_v46 = vpop.eup %12035  ;;  %5408 = vmatpush.bf16.msra.mxu0 %v8935_v53 }
 0x3c5   :  { %5365 = vmatmul.bf16.vlgmr.msrb.gmra.mxu3 %v14913_v60  ;;  %14914 = vst [vmem:[#allocation86_spill] sm:$0xff] %v13269_v46  ;;  %5457 = vmatpush.bf16.msra.mxu1 %v9191_v25  ;;  %v11161_v25 = vld [vmem:[#allocation8 + $0x10c] sm:$0xf] }
 0x3c6   :  { %v9668_v46 = vld [vmem:[#allocation8 + $0x728] sm:$0xf0] }
 0x3c7   :  { %v5121_v13 = vpop.f32.mrf.mxu2 }
 0x3c8   :  { %v5122_v24 = vadd.f32 %v5121_v13, %v5073_v50  ;;  %v5170_v23 = vpop.f32.mrf.mxu3  ;;  %v11353_v50 = vld [vmem:[#allocation8 + $0x70c] sm:$0xf] }
 0x3c9   :  { %v5025_v54 = vpop.f32.mrf.mxu0 }
 0x3ca   :  { %v5026_v61 = vadd.f32 %v5025_v54, %v13262_v40  ;;  %v5074_v2 = vpop.f32.mrf.mxu1  ;;  %v13272_v44 = vpop.eup %12037  ;;  %v13274_v1 = vadd.f32 %v5170_v23, %v5122_v24  ;;  %v14916_v24 = vld [vmem:[#allocation48_spill] sm:$0xff]  ;;  %v14917_v23 = vld [vmem:[#allocation49_spill] sm:$0xff] }
 0x3cb   :  { %14915 = vst [vmem:[#allocation87_spill] sm:$0xff] %v13272_v44 }
 0x3cc   :  { %v5075_v57 = vadd.f32 %v5074_v2, %v5026_v61  ;;  %v14918_v2 = vld [vmem:[#allocation50_spill] sm:$0xff]  ;;  %v11289_v61 = vld [vmem:[#allocation8 + $0x50c] sm:$0xf] }
 0x3cf   :  { %v5123_v52 = vpop.f32.mrf.mxu2 }
 0x3d0   :  { %v5124_v26 = vadd.f32 %v5123_v52, %v5075_v57  ;;  %v5172_v22 = vpop.f32.mrf.mxu3  ;;  %v9415_v57 = vor.u32 %v11289_v61, %v9412_v37  ;;  %v8900_v52 = vld [vmem:[#allocation8 + $0x128] sm:$0xf0]  ;;  %v9159_v37 = vor.u32 %v11225_v9, %v9156_v32 }
 0x3d1   :  { %v5028_v59 = vpop.f32.mrf.mxu0  ;;  %v8903_v44 = vor.u32 %v11161_v25, %v8900_v52  ;;  %v11281_v9 = vld [vmem:[#allocation8 + $0x4cc] sm:$0xf] }
 0x3d2   :  { %v5029_v13 = vadd.f32 %v5028_v59, %v13262_v40  ;;  %v5077_v53 = vpop.f32.mrf.mxu1  ;;  %v13279_v41 = vadd.f32 %v5172_v22, %v5124_v26  ;;  %v9671_v26 = vor.u32 %v11353_v50, %v9668_v46  ;;  %5507 = vmatpush.bf16.msra.mxu2 %v9415_v57  ;;  %5458 = vmatpush.bf16.msra.mxu1 %v9159_v37  ;;  %v9380_v32 = vld [vmem:[#allocation8 + $0x4e8] sm:$0xf0] }
 0x3d3   :  { %5223 = vmatmul.bf16.gmra.mxu0 %v14916_v24  ;;  %5272 = vmatmul.bf16.gmra.mxu1 %v14917_v23 }
 0x3d4   :  { %v5078_v54 = vadd.f32 %v5077_v53, %v5029_v13  ;;  %5321 = vmatmul.bf16.gmra.mxu2 %v14918_v2  ;;  %5409 = vmatpush.bf16.msra.mxu0 %v8903_v44  ;;  %v14921_v44 = vld [vmem:[#allocation53_spill] sm:$0xff] }
 0x3d5   :  { %5370 = vmatmul.bf16.gmra.mxu3 %v14919_v42 }
 0x3d6   :  { %5556 = vmatpush.bf16.msra.mxu3 %v9671_v26  ;;  %v14922_v26 = vld [vmem:[#allocation54_spill] sm:$0xff] }
 0x3d7   :  { %v5126_v59 = vpop.f32.mrf.mxu2 }
 0x3d8   :  { %v5127_v22 = vadd.f32 %v5126_v59, %v5078_v54  ;;  %v5175_v13 = vpop.f32.mrf.mxu3  ;;  %v14920_v59 = vld [vmem:[#allocation52_spill] sm:$0xff] }
 0x3d9   :  { %v5030_v53 = vpop.f32.mrf.mxu0 }
 0x3da   :  { %v5031_v47 = vadd.f32 %v5030_v53, %v13262_v40  ;;  %v5079_v58 = vpop.f32.mrf.mxu1  ;;  %v13286_v39 = vadd.f32 %v5175_v13, %v5127_v22  ;;  %v14923_v22 = vld [vmem:[#allocation55_spill] sm:$0xff]  ;;  %v11345_v13 = vld [vmem:[#allocation8 + $0x6cc] sm:$0xf] }
 0x3db   :  { %v9636_v53 = vld [vmem:[#allocation8 + $0x6e8] sm:$0xf0] }
 0x3dc   :  { %v5080_v61 = vadd.f32 %v5079_v58, %v5031_v47  ;;  %v11153_v58 = vld [vmem:[#allocation8 + $0xcc] sm:$0xf] }
 0x3dd   :  { %v8868_v47 = vld [vmem:[#allocation8 + $0xe8] sm:$0xf0] }
 0x3de   :  { %v8871_v37 = vor.u32 %v11153_v58, %v8868_v47 }
 0x3df   :  { %v5128_v6 = vpop.f32.mrf.mxu2 }
 0x3e0   :  { %v5129_v4 = vadd.f32 %v5128_v6, %v5080_v61  ;;  %v5177_v25 = vpop.f32.mrf.mxu3  ;;  %v9383_v6 = vor.u32 %v11281_v9, %v9380_v32  ;;  %5410 = vmatpush.bf16.msra.mxu0 %v8871_v37  ;;  %v14925_v37 = vld [vmem:[#allocation57_spill] sm:$0xff] }
 0x3e1   :  { %v5033_v46 = vpop.f32.mrf.mxu0 }
 0x3e2   :  { %v5034_v50 = vadd.f32 %v5033_v46, %v13262_v40  ;;  %v5082_v54 = vpop.f32.mrf.mxu1  ;;  %v13289_v57 = vadd.f32 %v5177_v25, %v5129_v4  ;;  %v9639_v4 = vor.u32 %v11345_v13, %v9636_v53  ;;  %5508 = vmatpush.bf16.msra.mxu2 %v9383_v6 }
 0x3e3   :  { %5228 = vmatmul.bf16.gmra.mxu0 %v14920_v59  ;;  %5277 = vmatmul.bf16.gmra.mxu1 %v14921_v44 }
 0x3e4   :  { %v5083_v52 = vadd.f32 %v5082_v54, %v5034_v50  ;;  %5326 = vmatmul.bf16.gmra.mxu2 %v14922_v26  ;;  %5557 = vmatpush.bf16.msra.mxu3 %v9639_v4  ;;  %v9124_v26 = vld [vmem:[#allocation8 + $0x2e8] sm:$0xf0]  ;;  %v14926_v4 = vld [vmem:[#allocation58_spill] sm:$0xff] }
 0x3e5   :  { %5375 = vmatmul.bf16.gmra.mxu3 %v14923_v22  ;;  %v11217_v22 = vld [vmem:[#allocation8 + $0x2cc] sm:$0xf] }
 0x3e6   :  { %v9127_v32 = vor.u32 %v11217_v22, %v9124_v26  ;;  %v9348_v26 = vld [vmem:[#allocation8 + $0x4a8] sm:$0xf0] }
 0x3e7   :  { %v5131_v61 = vpop.f32.mrf.mxu2  ;;  %v11145_v22 = vld [vmem:[#allocation8 + $0x8c] sm:$0xf] }
 0x3e8   :  { %v5132_v25 = vadd.f32 %v5131_v61, %v5083_v52  ;;  %v5180_v46 = vpop.f32.mrf.mxu3  ;;  %5459 = vmatpush.bf16.msra.mxu1 %v9127_v32  ;;  %v14924_v61 = vld [vmem:[#allocation56_spill] sm:$0xff] }
 0x3e9   :  { %v5035_v50 = vpop.f32.mrf.mxu0 }
 0x3ea   :  { %v5036_v54 = vadd.f32 %v5035_v50, %v13262_v40  ;;  %v5084_v15 = vpop.f32.mrf.mxu1  ;;  %v13296_v21 = vadd.f32 %v5180_v46, %v5132_v25  ;;  %v14927_v25 = vld [vmem:[#allocation59_spill] sm:$0xff]  ;;  %v8836_v46 = vld [vmem:[#allocation8 + $0xa8] sm:$0xf0] }
 0x3eb   :  { %v11337_v50 = vld [vmem:[#allocation8 + $0x68c] sm:$0xf]  ;;  %v8839_v32 = vor.u32 %v11145_v22, %v8836_v46 }
 0x3ec   :  { %v5085_v9 = vadd.f32 %v5084_v15, %v5036_v54  ;;  %v11273_v15 = vld [vmem:[#allocation8 + $0x48c] sm:$0xf] }
 0x3ed   :  { %v9604_v54 = vld [vmem:[#allocation8 + $0x6a8] sm:$0xf0]  ;;  %5411 = vmatpush.bf16.msra.mxu0 %v8839_v32  ;;  %v14929_v32 = vld [vmem:[#allocation61_spill] sm:$0xff] }
 0x3ef   :  { %v5133_v44 = vpop.f32.mrf.mxu2 }
 0x3f0   :  { %v5134_v59 = vadd.f32 %v5133_v44, %v5085_v9  ;;  %v5182_v58 = vpop.f32.mrf.mxu3  ;;  %v9351_v44 = vor.u32 %v11273_v15, %v9348_v26 }
 0x3f1   :  { %v5038_v47 = vpop.f32.mrf.mxu0 }
 0x3f2   :  { %v5039_v52 = vadd.f32 %v5038_v47, %v13262_v40  ;;  %v5087_v13 = vpop.f32.mrf.mxu1  ;;  %v13299_v6 = vadd.f32 %v5182_v58, %v5134_v59  ;;  %v9607_v59 = vor.u32 %v11337_v50, %v9604_v54  ;;  %5509 = vmatpush.bf16.msra.mxu2 %v9351_v44 }
 0x3f3   :  { %5233 = vmatmul.bf16.gmra.mxu0 %v14924_v61  ;;  %5282 = vmatmul.bf16.gmra.mxu1 %v14925_v37  ;;  %v9092_v61 = vld [vmem:[#allocation8 + $0x2a8] sm:$0xf0] }
 0x3f4   :  { %v5088_v53 = vadd.f32 %v5087_v13, %v5039_v52  ;;  %5331 = vmatmul.bf16.gmra.mxu2 %v14926_v4  ;;  %5558 = vmatpush.bf16.msra.mxu3 %v9607_v59  ;;  %v11209_v4 = vld [vmem:[#allocation8 + $0x28c] sm:$0xf]  ;;  %v14930_v59 = vld [vmem:[#allocation62_spill] sm:$0xff] }
 0x3f5   :  { %5380 = vmatmul.bf16.gmra.mxu3 %v14927_v25  ;;  %v9095_v26 = vor.u32 %v11209_v4, %v9092_v61  ;;  %v11265_v61 = vld [vmem:[#allocation8 + $0x44c] sm:$0xf] }
 0x3f6   :  { %v11137_v4 = vld [vmem:[#allocation8 + $0x4c] sm:$0xf] }
 0x3f7   :  { %v5136_v9 = vpop.f32.mrf.mxu2  ;;  %5460 = vmatpush.bf16.msra.mxu1 %v9095_v26 }
 0x3f8   :  { %v5137_v58 = vadd.f32 %v5136_v9, %v5088_v53  ;;  %v5185_v47 = vpop.f32.mrf.mxu3  ;;  %v14928_v9 = vld [vmem:[#allocation60_spill] sm:$0xff] }
 0x3f9   :  { %v5040_v52 = vpop.f32.mrf.mxu0 }
 0x3fa   :  { %v5041_v13 = vadd.f32 %v5040_v52, %v13262_v40  ;;  %v5089_v37 = vpop.f32.mrf.mxu1  ;;  %v13306_v25 = vadd.f32 %v5185_v47, %v5137_v58  ;;  %v14931_v58 = vld [vmem:[#allocation63_spill] sm:$0xff]  ;;  %v8804_v47 = vld [vmem:[#allocation8 + $0x68] sm:$0xf0] }
 0x3fb   :  { %v11329_v52 = vld [vmem:[#allocation8 + $0x64c] sm:$0xf]  ;;  %v8807_v26 = vor.u32 %v11137_v4, %v8804_v47 }
 0x3fc   :  { %v5090_v15 = vadd.f32 %v5089_v37, %v5041_v13  ;;  %v9316_v37 = vld [vmem:[#allocation8 + $0x468] sm:$0xf0] }
 0x3fd   :  { %v9572_v13 = vld [vmem:[#allocation8 + $0x668] sm:$0xf0]  ;;  %5412 = vmatpush.bf16.msra.mxu0 %v8807_v26  ;;  %v14933_v26 = vld [vmem:[#allocation65_spill] sm:$0xff] }
 0x3ff   :  { %v5138_v42 = vpop.f32.mrf.mxu2 }
 0x400   :  { %v5139_v2 = vadd.f32 %v5138_v42, %v5090_v15  ;;  %v5187_v22 = vpop.f32.mrf.mxu3  ;;  %v9319_v42 = vor.u32 %v11265_v61, %v9316_v37 }
 0x401   :  { %v5043_v46 = vpop.f32.mrf.mxu0 }
 0x402   :  { %v5044_v53 = vadd.f32 %v5043_v46, %v13262_v40  ;;  %v5092_v50 = vpop.f32.mrf.mxu1  ;;  %v13309_v44 = vadd.f32 %v5187_v22, %v5139_v2  ;;  %v9575_v2 = vor.u32 %v11329_v52, %v9572_v13  ;;  %5510 = vmatpush.bf16.msra.mxu2 %v9319_v42 }
 0x403   :  { %5238 = vmatmul.bf16.gmra.mxu0 %v14928_v9  ;;  %5287 = vmatmul.bf16.gmra.mxu1 %v14929_v32  ;;  %v9060_v9 = vld [vmem:[#allocation8 + $0x268] sm:$0xf0] }
 0x404   :  { %v5093_v54 = vadd.f32 %v5092_v50, %v5044_v53  ;;  %5336 = vmatmul.bf16.gmra.mxu2 %v14930_v59  ;;  %5559 = vmatpush.bf16.msra.mxu3 %v9575_v2  ;;  %v11201_v59 = vld [vmem:[#allocation8 + $0x24c] sm:$0xf]  ;;  %v14934_v2 = vld [vmem:[#allocation66_spill] sm:$0xff] }
 0x405   :  { %5385 = vmatmul.bf16.gmra.mxu3 %v14931_v58  ;;  %v9063_v37 = vor.u32 %v11201_v59, %v9060_v9  ;;  %v11257_v9 = vld [vmem:[#allocation8 + $0x40c] sm:$0xf] }
 0x406   :  { %v11129_v59 = vld [vmem:[#allocation8 + $0xc] sm:$0xf] }
 0x407   :  { %v5141_v15 = vpop.f32.mrf.mxu2  ;;  %5461 = vmatpush.bf16.msra.mxu1 %v9063_v37 }
 0x408   :  { %v5142_v22 = vadd.f32 %v5141_v15, %v5093_v54  ;;  %v5190_v46 = vpop.f32.mrf.mxu3  ;;  %v14932_v15 = vld [vmem:[#allocation64_spill] sm:$0xff] }
 0x409   :  { %v5045_v53 = vpop.f32.mrf.mxu0 }
 0x40a   :  { %v5046_v50 = vadd.f32 %v5045_v53, %v13262_v40  ;;  %v5094_v32 = vpop.f32.mrf.mxu1  ;;  %v13316_v58 = vadd.f32 %v5190_v46, %v5142_v22  ;;  %v14935_v22 = vld [vmem:[#allocation67_spill] sm:$0xff]  ;;  %v8772_v46 = vld [vmem:[#allocation8 + $0x28] sm:$0xf0] }
 0x40b   :  { %v11321_v53 = vld [vmem:[#allocation8 + $0x60c] sm:$0xf]  ;;  %v8775_v37 = vor.u32 %v11129_v59, %v8772_v46 }
 0x40c   :  { %v5095_v61 = vadd.f32 %v5094_v32, %v5046_v50  ;;  %v9284_v32 = vld [vmem:[#allocation8 + $0x428] sm:$0xf0] }
 0x40d   :  { %v9540_v50 = vld [vmem:[#allocation8 + $0x628] sm:$0xf0]  ;;  %5413 = vmatpush.bf16.msra.mxu0 %v8775_v37  ;;  %v14937_v37 = vld [vmem:[#allocation69_spill] sm:$0xff] }
 0x40f   :  { %v5143_v23 = vpop.f32.mrf.mxu2 }
 0x410   :  { %v5144_v24 = vadd.f32 %v5143_v23, %v5095_v61  ;;  %v5192_v4 = vpop.f32.mrf.mxu3  ;;  %v9287_v23 = vor.u32 %v11257_v9, %v9284_v32 }
 0x411   :  { %v5048_v47 = vpop.f32.mrf.mxu0 }
 0x412   :  { %v5049_v54 = vadd.f32 %v5048_v47, %v13262_v40  ;;  %v5097_v52 = vpop.f32.mrf.mxu1  ;;  %v13319_v42 = vadd.f32 %v5192_v4, %v5144_v24  ;;  %v9543_v24 = vor.u32 %v11321_v53, %v9540_v50  ;;  %5511 = vmatpush.bf16.msra.mxu2 %v9287_v23 }
 0x413   :  { %5243 = vmatmul.bf16.gmra.mxu0 %v14932_v15  ;;  %5292 = vmatmul.bf16.gmra.mxu1 %v14933_v26  ;;  %v9028_v15 = vld [vmem:[#allocation8 + $0x228] sm:$0xf0] }
 0x414   :  { %v5098_v13 = vadd.f32 %v5097_v52, %v5049_v54  ;;  %5341 = vmatmul.bf16.gmra.mxu2 %v14934_v2  ;;  %5560 = vmatpush.bf16.msra.mxu3 %v9543_v24  ;;  %v11193_v2 = vld [vmem:[#allocation8 + $0x20c] sm:$0xf]  ;;  %v14938_v24 = vld [vmem:[#allocation70_spill] sm:$0xff] }
 0x415   :  { %5390 = vmatmul.bf16.gmra.mxu3 %v14935_v22  ;;  %v9031_v32 = vor.u32 %v11193_v2, %v9028_v15  ;;  %v11569_v15 = vld [vmem:[#allocation8 + $0xdcc] sm:$0xf] }
 0x416   :  { %v11441_v2 = vld [vmem:[#allocation8 + $0x9cc] sm:$0xf] }
 0x417   :  { %v5146_v61 = vpop.f32.mrf.mxu2  ;;  %5462 = vmatpush.bf16.msra.mxu1 %v9031_v32 }
 0x418   :  { %v5147_v4 = vadd.f32 %v5146_v61, %v5098_v13  ;;  %v5195_v47 = vpop.f32.mrf.mxu3  ;;  %v14936_v61 = vld [vmem:[#allocation68_spill] sm:$0xff] }
 0x419   :  { %v5050_v54 = vpop.f32.mrf.mxu0 }
 0x41a   :  { %v5051_v52 = vadd.f32 %v5050_v54, %v13262_v40  ;;  %v5099_v26 = vpop.f32.mrf.mxu1  ;;  %v13326_v22 = vadd.f32 %v5195_v47, %v5147_v4  ;;  %v14939_v4 = vld [vmem:[#allocation71_spill] sm:$0xff]  ;;  %v10020_v47 = vld [vmem:[#allocation8 + $0x9e8] sm:$0xf0] }
 0x41b   :  { %v11633_v54 = vld [vmem:[#allocation8 + $0xfcc] sm:$0xf]  ;;  %v10023_v32 = vor.u32 %v11441_v2, %v10020_v47 }
 0x41c   :  { %v5100_v9 = vadd.f32 %v5099_v26, %v5051_v52  ;;  %v10532_v26 = vld [vmem:[#allocation8 + $0xde8] sm:$0xf0] }
 0x41d   :  { %v10788_v52 = vld [vmem:[#allocation8 + $0xfe8] sm:$0xf0]  ;;  %5602 = vmatpush.bf16.msrb.mxu0 %v10023_v32 }
 0x41f   :  { %v5148_v60 = vpop.f32.mrf.mxu2 }
 0x420   :  { %v5149_v43 = vadd.f32 %v5148_v60, %v5100_v9  ;;  %v5197_v59 = vpop.f32.mrf.mxu3  ;;  %v10535_v60 = vor.u32 %v11569_v15, %v10532_v26  ;;  %v10276_v15 = vld [vmem:[#allocation8 + $0xbe8] sm:$0xf0] }
 0x421   :  { %v5053_v46 = vpop.f32.mrf.mxu0 }
 0x422   :  { %v5054_v13 = vadd.f32 %v5053_v46, %v13262_v40  ;;  %v5102_v53 = vpop.f32.mrf.mxu1  ;;  %v13329_v23 = vadd.f32 %v5197_v59, %v5149_v43  ;;  %v10791_v43 = vor.u32 %v11633_v54, %v10788_v52  ;;  %5700 = vmatpush.bf16.msrb.mxu2 %v10535_v60 }
 0x423   :  { %5248 = vmatmul.bf16.gmra.mxu0 %v14936_v61  ;;  %5297 = vmatmul.bf16.gmra.mxu1 %v14937_v37  ;;  %v11505_v61 = vld [vmem:[#allocation8 + $0xbcc] sm:$0xf] }
 0x424   :  { %v5103_v50 = vadd.f32 %v5102_v53, %v5054_v13  ;;  %5346 = vmatmul.bf16.gmra.mxu2 %v14938_v24  ;;  %5749 = vmatpush.bf16.msrb.mxu3 %v10791_v43  ;;  %v10279_v26 = vor.u32 %v11505_v61, %v10276_v15  ;;  %v11433_v15 = vld [vmem:[#allocation8 + $0x98c] sm:$0xf] }
 0x425   :  { %5395 = vmatmul.bf16.gmra.mxu3 %v14939_v4 }
 0x426   :  { %5651 = vmatpush.bf16.msrb.mxu1 %v10279_v26 }
 0x427   :  { %v5151_v9 = vpop.f32.mrf.mxu2 }
 0x428   :  { %v5152_v59 = vadd.f32 %v5151_v9, %v5103_v50  ;;  %v5200_v46 = vpop.f32.mrf.mxu3  ;;  %v14940_v9 = vld [vmem:[#allocation74_spill] sm:$0xff] }
 0x429   :  { %v5055_v13 = vpop.f32.mrf.mxu0 }
 0x42a   :  { %v5056_v53 = vadd.f32 %v5055_v13, %v13262_v40  ;;  %v5104_v37 = vpop.f32.mrf.mxu1  ;;  %v13336_v4 = vadd.f32 %v5200_v46, %v5152_v59  ;;  %v11561_v13 = vld [vmem:[#allocation8 + $0xd8c] sm:$0xf] }
 0x42c   :  { %v5105_v24 = vadd.f32 %v5104_v37, %v5056_v53  ;;  %v14941_v37 = vld [vmem:[#allocation75_spill] sm:$0xff]  ;;  %v10500_v53 = vld [vmem:[#allocation8 + $0xda8] sm:$0xf0] }
 0x42d   :  { %v10503_v26 = vor.u32 %v11561_v13, %v10500_v53  ;;  %v14943_v53 = vld [vmem:[#allocation20_spill] sm:$0xff] }
 0x42f   :  { %v5153_v36 = vpop.f32.mrf.mxu2  ;;  %5701 = vmatpush.bf16.msrb.mxu2 %v10503_v26 }
 0x430   :  { %v5154_v31 = vadd.f32 %v5153_v36, %v5105_v24  ;;  %v5202_v2 = vpop.f32.mrf.mxu3 }
 0x431   :  { %v5058_v47 = vpop.f32.mrf.mxu0 }
 0x432   :  { %v5059_v50 = vadd.f32 %v5058_v47, %v13262_v40  ;;  %v5107_v54 = vpop.f32.mrf.mxu1  ;;  %v13339_v60 = vadd.f32 %v5202_v2, %v5154_v31  ;;  %v9988_v2 = vld [vmem:[#allocation8 + $0x9a8] sm:$0xf0] }
 0x433   :  { %5253 = vmatmul.bf16.gmra.mxu0 %v12907_v63  ;;  %5302 = vmatmul.bf16.gmra.mxu1 %v12910_v56  ;;  %v11625_v47 = vld [vmem:[#allocation8 + $0xf8c] sm:$0xf] }
 0x434   :  { %v5108_v52 = vadd.f32 %v5107_v54, %v5059_v50  ;;  %5351 = vmatmul.bf16.gmra.mxu2 %v14940_v9  ;;  %v10756_v50 = vld [vmem:[#allocation8 + $0xfa8] sm:$0xf0]  ;;  %v9991_v54 = vor.u32 %v11433_v15, %v9988_v2  ;;  %v14944_v15 = vld [vmem:[#allocation21_spill] sm:$0xff]  ;;  %v14945_v2 = vld [vmem:[#allocation22_spill] sm:$0xff] }
 0x435   :  { %5400 = vmatmul.bf16.gmra.mxu3 %v14941_v37  ;;  %v10759_v9 = vor.u32 %v11625_v47, %v10756_v50  ;;  %v11497_v37 = vld [vmem:[#allocation8 + $0xb8c] sm:$0xf] }
 0x436   :  { %v10244_v56 = vld [vmem:[#allocation8 + $0xba8] sm:$0xf0]  ;;  %5603 = vmatpush.bf16.msrb.mxu0 %v9991_v54 }
 0x437   :  { %v5156_v61 = vpop.f32.mrf.mxu2  ;;  %5750 = vmatpush.bf16.msrb.mxu3 %v10759_v9  ;;  %v10468_v9 = vld [vmem:[#allocation8 + $0xd68] sm:$0xf0] }
 0x438   :  { %v5157_v32 = vadd.f32 %v5156_v61, %v5108_v52  ;;  %v5205_v43 = vpop.f32.mrf.mxu3  ;;  %v10247_v52 = vor.u32 %v11497_v37, %v10244_v56  ;;  %v14946_v56 = vld [vmem:[#allocation23_spill] sm:$0xff]  ;;  %v11553_v37 = vld [vmem:[#allocation8 + $0xd4c] sm:$0xf] }
 0x439   :  { %v5060_v36 = vpop.f32.mrf.mxu0  ;;  %v10471_v26 = vor.u32 %v11553_v37, %v10468_v9  ;;  %v9956_v47 = vld [vmem:[#allocation8 + $0x968] sm:$0xf0] }
 0x43a   :  { %v5061_v24 = vadd.f32 %v5060_v36, %v13262_v40  ;;  %v5109_v59 = vpop.f32.mrf.mxu1  ;;  %v13346_v46 = vadd.f32 %v5205_v43, %v5157_v32  ;;  %5652 = vmatpush.bf16.msrb.mxu1 %v10247_v52  ;;  %v11617_v50 = vld [vmem:[#allocation8 + $0xf4c] sm:$0xf] }
 0x43b   :  { %v10724_v54 = vld [vmem:[#allocation8 + $0xf68] sm:$0xf0]  ;;  %5702 = vmatpush.bf16.msrb.mxu2 %v10471_v26 }
 0x43c   :  { %v5110_v31 = vadd.f32 %v5109_v59, %v5061_v24 }
 0x43f   :  { %v5158_v61 = vpop.f32.mrf.mxu2 }
 0x440   :  { %v5159_v40 = vadd.f32 %v5158_v61, %v5110_v31  ;;  %v5207_v32 = vpop.f32.mrf.mxu3  ;;  %v11425_v31 = vld [vmem:[#allocation8 + $0x94c] sm:$0xf]  ;;  %v10727_v61 = vor.u32 %v11617_v50, %v10724_v54 }
 0x441   :  { %v5219_v43 = vpop.f32.mrf.mxu0  ;;  %v9959_v52 = vor.u32 %v11425_v31, %v9956_v47  ;;  %v9924_v54 = vld [vmem:[#allocation8 + $0x928] sm:$0xf0] }
 0x442   :  { %v5220_v36 = vadd.f32 %v5219_v43, %v13274_v1  ;;  %v5268_v24 = vpop.f32.mrf.mxu1  ;;  %v13349_v59 = vadd.f32 %v5207_v32, %v5159_v40  ;;  %5751 = vmatpush.bf16.msrb.mxu3 %v10727_v61 }
 0x443   :  { %5414 = vmatmul.bf16.vlgmr.msra.gmra.mxu0 %v14943_v53  ;;  %5463 = vmatmul.bf16.vlgmr.msra.gmra.mxu1 %v14944_v15  ;;  %v11489_v15 = vld [vmem:[#allocation8 + $0xb4c] sm:$0xf] }
 0x444   :  { %14942 = vst [vmem:[#allocation88_spill] sm:$0xff] %v13349_v59  ;;  %v5269_v13 = vadd.f32 %v5268_v24, %v5220_v36  ;;  %5512 = vmatmul.bf16.vlgmr.msra.gmra.mxu2 %v14945_v2  ;;  %5604 = vmatpush.bf16.msrb.mxu0 %v9959_v52  ;;  %v10212_v53 = vld [vmem:[#allocation8 + $0xb68] sm:$0xf0] }
 0x445   :  { %5561 = vmatmul.bf16.vlgmr.msra.gmra.mxu3 %v14946_v56  ;;  %v10215_v37 = vor.u32 %v11489_v15, %v10212_v53  ;;  %v10436_v53 = vld [vmem:[#allocation8 + $0xd28] sm:$0xf0] }
 0x446   :  { %v11417_v15 = vld [vmem:[#allocation8 + $0x90c] sm:$0xf] }
 0x447   :  { %v5317_v1 = vpop.f32.mrf.mxu2  ;;  %5653 = vmatpush.bf16.msrb.mxu1 %v10215_v37 }
 0x448   :  { %v5318_v40 = vadd.f32 %v5317_v1, %v5269_v13  ;;  %v5366_v32 = vpop.f32.mrf.mxu3  ;;  %v11609_v1 = vld [vmem:[#allocation8 + $0xf0c] sm:$0xf] }
 0x449   :  { %v5221_v43 = vpop.f32.mrf.mxu0 }
 0x44a   :  { %v5222_v36 = vadd.f32 %v5221_v43, %v13279_v41  ;;  %v5270_v24 = vpop.f32.mrf.mxu1  ;;  %v5367_v56 = vadd.f32 %v5366_v32, %v5318_v40  ;;  %v11545_v41 = vld [vmem:[#allocation8 + $0xd0c] sm:$0xf] }
 0x44c   :  { %v5271_v2 = vadd.f32 %v5270_v24, %v5222_v36  ;;  %12039 = vtanh.f32 %v5367_v56 }
 0x44f   :  { %v5319_v9 = vpop.f32.mrf.mxu2 }
 0x450   :  { %v5320_v63 = vadd.f32 %v5319_v9, %v5271_v2  ;;  %v5368_v59 = vpop.f32.mrf.mxu3  ;;  %v10439_v2 = vor.u32 %v11545_v41, %v10436_v53 }
 0x451   :  { %v5224_v31 = vpop.f32.mrf.mxu0 }
 0x452   :  { %v5225_v13 = vadd.f32 %v5224_v31, %v13286_v39  ;;  %v5273_v47 = vpop.f32.mrf.mxu1  ;;  %v5369_v50 = vadd.f32 %v5368_v59, %v5320_v63  ;;  %v10692_v39 = vld [vmem:[#allocation8 + $0xf28] sm:$0xf0]  ;;  %v9927_v63 = vor.u32 %v11417_v15, %v9924_v54  ;;  %5703 = vmatpush.bf16.msrb.mxu2 %v10439_v2  ;;  %v13361_v32 = vpop.eup %12039 }
 0x453   :  { %5419 = vmatmul.bf16.gmra.mxu0 %v12612_v17  ;;  %5468 = vmatmul.bf16.gmra.mxu1 %v12615_v18  ;;  %v10695_v59 = vor.u32 %v11609_v1, %v10692_v39  ;;  %14947 = vst [vmem:[#allocation89_spill] sm:$0xff] %v13361_v32  ;;  %v11537_v39 = vld [vmem:[#allocation8 + $0xccc] sm:$0xf]  ;;  %v9130_v32 = vld [vmem:[#allocation8 + $0x2d0] sm:$0xf] }
 0x454   :  { %v5274_v26 = vadd.f32 %v5273_v47, %v5225_v13  ;;  %12041 = vtanh.f32 %v5369_v50  ;;  %5517 = vmatmul.bf16.gmra.mxu2 %v12622_v30  ;;  %5605 = vmatpush.bf16.msrb.mxu0 %v9927_v63  ;;  %v11481_v13 = vld [vmem:[#allocation8 + $0xb0c] sm:$0xf] }
 0x455   :  { %5566 = vmatmul.bf16.gmra.mxu3 %v12625_v35  ;;  %v10180_v47 = vld [vmem:[#allocation8 + $0xb28] sm:$0xf0] }
 0x456   :  { %5752 = vmatpush.bf16.msrb.mxu3 %v10695_v59  ;;  %v10183_v50 = vor.u32 %v11481_v13, %v10180_v47  ;;  %v11409_v63 = vld [vmem:[#allocation8 + $0x8cc] sm:$0xf] }
 0x457   :  { %v5322_v52 = vpop.f32.mrf.mxu2 }
 0x458   :  { %v5323_v56 = vadd.f32 %v5322_v52, %v5274_v26  ;;  %v5371_v61 = vpop.f32.mrf.mxu3  ;;  %5654 = vmatpush.bf16.msrb.mxu1 %v10183_v50  ;;  %v10404_v52 = vld [vmem:[#allocation8 + $0xce8] sm:$0xf0] }
 0x459   :  { %v5226_v40 = vpop.f32.mrf.mxu0  ;;  %v10407_v59 = vor.u32 %v11537_v39, %v10404_v52 }
 0x45a   :  { %v5227_v43 = vadd.f32 %v5226_v40, %v13289_v57  ;;  %v5275_v36 = vpop.f32.mrf.mxu1  ;;  %v13364_v24 = vpop.eup %12041  ;;  %v5372_v37 = vadd.f32 %v5371_v61, %v5323_v56  ;;  %v9892_v56 = vld [vmem:[#allocation8 + $0x8e8] sm:$0xf0] }
 0x45b   :  { %14948 = vst [vmem:[#allocation90_spill] sm:$0xff] %v13364_v24  ;;  %v11601_v61 = vld [vmem:[#allocation8 + $0xecc] sm:$0xf]  ;;  %5704 = vmatpush.bf16.msrb.mxu2 %v10407_v59  ;;  %v11222_v24 = vld [vmem:[#allocation8 + $0x2ec] sm:$0xf0] }
 0x45c   :  { %v5276_v31 = vadd.f32 %v5275_v36, %v5227_v43  ;;  %12043 = vtanh.f32 %v5372_v37  ;;  %v9895_v43 = vor.u32 %v11409_v63, %v9892_v56 }
 0x45e   :  { %5606 = vmatpush.bf16.msrb.mxu0 %v9895_v43  ;;  %v10372_v43 = vld [vmem:[#allocation8 + $0xca8] sm:$0xf0] }
 0x45f   :  { %v5324_v26 = vpop.f32.mrf.mxu2 }
 0x460   :  { %v5325_v41 = vadd.f32 %v5324_v26, %v5276_v31  ;;  %v5373_v53 = vpop.f32.mrf.mxu3 }
 0x461   :  { %v5229_v15 = vpop.f32.mrf.mxu0 }
 0x462   :  { %v5230_v57 = vadd.f32 %v5229_v15, %v13296_v21  ;;  %v5278_v2 = vpop.f32.mrf.mxu1  ;;  %v5374_v54 = vadd.f32 %v5373_v53, %v5325_v41  ;;  %v10660_v21 = vld [vmem:[#allocation8 + $0xee8] sm:$0xf0]  ;;  %v13373_v47 = vpop.eup %12043 }
 0x463   :  { %5424 = vmatmul.bf16.gmra.mxu0 %v12632_v5  ;;  %5473 = vmatmul.bf16.gmra.mxu1 %v12635_v7  ;;  %v10663_v36 = vor.u32 %v11601_v61, %v10660_v21  ;;  %14949 = vst [vmem:[#allocation91_spill] sm:$0xff] %v13373_v47 }
 0x464   :  { %v5279_v1 = vadd.f32 %v5278_v2, %v5230_v57  ;;  %12045 = vtanh.f32 %v5374_v54  ;;  %5522 = vmatmul.bf16.gmra.mxu2 %v12642_v20  ;;  %v11473_v2 = vld [vmem:[#allocation8 + $0xacc] sm:$0xf] }
 0x465   :  { %5571 = vmatmul.bf16.gmra.mxu3 %v14842_v48  ;;  %v10148_v54 = vld [vmem:[#allocation8 + $0xae8] sm:$0xf0] }
 0x466   :  { %5753 = vmatpush.bf16.msrb.mxu3 %v10663_v36  ;;  %v11401_v36 = vld [vmem:[#allocation8 + $0x88c] sm:$0xf] }
 0x467   :  { %v5327_v40 = vpop.f32.mrf.mxu2 }
 0x468   :  { %v5328_v37 = vadd.f32 %v5327_v40, %v5279_v1  ;;  %v5376_v31 = vpop.f32.mrf.mxu3  ;;  %v10151_v1 = vor.u32 %v11473_v2, %v10148_v54  ;;  %v11529_v40 = vld [vmem:[#allocation8 + $0xc8c] sm:$0xf] }
 0x469   :  { %v5231_v13 = vpop.f32.mrf.mxu0 }
 0x46a   :  { %v5232_v50 = vadd.f32 %v5231_v13, %v13299_v6  ;;  %v5280_v26 = vpop.f32.mrf.mxu1  ;;  %v13376_v41 = vpop.eup %12045  ;;  %v5377_v53 = vadd.f32 %v5376_v31, %v5328_v37  ;;  %5655 = vmatpush.bf16.msrb.mxu1 %v10151_v1  ;;  %v10375_v37 = vor.u32 %v11529_v40, %v10372_v43  ;;  %v9860_v31 = vld [vmem:[#allocation8 + $0x8a8] sm:$0xf0] }
 0x46b   :  { %14950 = vst [vmem:[#allocation92_spill] sm:$0xff] %v13376_v41  ;;  %v11593_v13 = vld [vmem:[#allocation8 + $0xe8c] sm:$0xf] }
 0x46c   :  { %v5281_v15 = vadd.f32 %v5280_v26, %v5232_v50  ;;  %12047 = vtanh.f32 %v5377_v53  ;;  %v9863_v26 = vor.u32 %v11401_v36, %v9860_v31  ;;  %5705 = vmatpush.bf16.msrb.mxu2 %v10375_v37  ;;  %v10116_v40 = vld [vmem:[#allocation8 + $0xaa8] sm:$0xf0] }
 0x46e   :  { %5607 = vmatpush.bf16.msrb.mxu0 %v9863_v26  ;;  %v11521_v26 = vld [vmem:[#allocation8 + $0xc4c] sm:$0xf] }
 0x46f   :  { %v5329_v39 = vpop.f32.mrf.mxu2 }
 0x470   :  { %v5330_v52 = vadd.f32 %v5329_v39, %v5281_v15  ;;  %v5378_v63 = vpop.f32.mrf.mxu3 }
 0x471   :  { %v5234_v59 = vpop.f32.mrf.mxu0 }
 0x472   :  { %v5235_v6 = vadd.f32 %v5234_v59, %v13306_v25  ;;  %v5283_v56 = vpop.f32.mrf.mxu1  ;;  %v5379_v61 = vadd.f32 %v5378_v63, %v5330_v52  ;;  %v10628_v25 = vld [vmem:[#allocation8 + $0xea8] sm:$0xf0]  ;;  %v13385_v1 = vpop.eup %12047 }
 0x473   :  { %5429 = vmatmul.bf16.gmra.mxu0 %v14845_v3  ;;  %5478 = vmatmul.bf16.gmra.mxu1 %v14846_v38  ;;  %v10631_v53 = vor.u32 %v11593_v13, %v10628_v25  ;;  %14951 = vst [vmem:[#allocation93_spill] sm:$0xff] %v13385_v1 }
 0x474   :  { %v5284_v21 = vadd.f32 %v5283_v56, %v5235_v6  ;;  %12049 = vtanh.f32 %v5379_v61  ;;  %5527 = vmatmul.bf16.gmra.mxu2 %v14847_v34  ;;  %v11465_v61 = vld [vmem:[#allocation8 + $0xa8c] sm:$0xf] }
 0x475   :  { %5576 = vmatmul.bf16.gmra.mxu3 %v14848_v27 }
 0x476   :  { %5754 = vmatpush.bf16.msrb.mxu3 %v10631_v53  ;;  %v10340_v53 = vld [vmem:[#allocation8 + $0xc68] sm:$0xf0] }
 0x477   :  { %v5332_v50 = vpop.f32.mrf.mxu2 }
 0x478   :  { %v5333_v15 = vadd.f32 %v5332_v50, %v5284_v21  ;;  %v5381_v2 = vpop.f32.mrf.mxu3  ;;  %v10119_v21 = vor.u32 %v11465_v61, %v10116_v40 }
 0x479   :  { %v5236_v54 = vpop.f32.mrf.mxu0 }
 0x47a   :  { %v5237_v39 = vadd.f32 %v5236_v54, %v13309_v44  ;;  %v5285_v52 = vpop.f32.mrf.mxu1  ;;  %v13388_v63 = vpop.eup %12049  ;;  %v5382_v59 = vadd.f32 %v5381_v2, %v5333_v15  ;;  %5656 = vmatpush.bf16.msrb.mxu1 %v10119_v21  ;;  %v11393_v15 = vld [vmem:[#allocation8 + $0x84c] sm:$0xf]  ;;  %v10343_v2 = vor.u32 %v11521_v26, %v10340_v53 }
 0x47b   :  { %14952 = vst [vmem:[#allocation94_spill] sm:$0xff] %v13388_v63  ;;  %v9828_v54 = vld [vmem:[#allocation8 + $0x868] sm:$0xf0] }
 0x47c   :  { %v5286_v6 = vadd.f32 %v5285_v52, %v5237_v39  ;;  %12051 = vtanh.f32 %v5382_v59  ;;  %v11585_v39 = vld [vmem:[#allocation8 + $0xe4c] sm:$0xf]  ;;  %5706 = vmatpush.bf16.msrb.mxu2 %v10343_v2 }
 0x47d   :  { %v11457_v26 = vld [vmem:[#allocation8 + $0xa4c] sm:$0xf] }
 0x47e   :  { %v10084_v53 = vld [vmem:[#allocation8 + $0xa68] sm:$0xf0] }
 0x47f   :  { %v5334_v43 = vpop.f32.mrf.mxu2 }
 0x480   :  { %v5335_v36 = vadd.f32 %v5334_v43, %v5286_v6  ;;  %v5383_v37 = vpop.f32.mrf.mxu3  ;;  %v9831_v6 = vor.u32 %v11393_v15, %v9828_v54 }
 0x481   :  { %v5239_v31 = vpop.f32.mrf.mxu0 }
 0x482   :  { %v5240_v44 = vadd.f32 %v5239_v31, %v13316_v58  ;;  %v5288_v13 = vpop.f32.mrf.mxu1  ;;  %v5384_v25 = vadd.f32 %v5383_v37, %v5335_v36  ;;  %v10596_v58 = vld [vmem:[#allocation8 + $0xe68] sm:$0xf0]  ;;  %v13397_v43 = vpop.eup %12051  ;;  %5608 = vmatpush.bf16.msrb.mxu0 %v9831_v6 }
 0x483   :  { %5434 = vmatmul.bf16.gmra.mxu0 %v14851_v19  ;;  %5483 = vmatmul.bf16.gmra.mxu1 %v14852_v49  ;;  %v10599_v59 = vor.u32 %v11585_v39, %v10596_v58  ;;  %14953 = vst [vmem:[#allocation95_spill] sm:$0xff] %v13397_v43  ;;  %v9162_v43 = vld [vmem:[#allocation8 + $0x310] sm:$0xf] }
 0x484   :  { %v5289_v50 = vadd.f32 %v5288_v13, %v5240_v44  ;;  %12053 = vtanh.f32 %v5384_v25  ;;  %5532 = vmatmul.bf16.gmra.mxu2 %v14853_v0 }
 0x485   :  { %5581 = vmatmul.bf16.gmra.mxu3 %v14854_v8 }
 0x486   :  { %5755 = vmatpush.bf16.msrb.mxu3 %v10599_v59  ;;  %v11513_v59 = vld [vmem:[#allocation8 + $0xc0c] sm:$0xf] }
 0x487   :  { %v5337_v52 = vpop.f32.mrf.mxu2 }
 0x488   :  { %v5338_v61 = vadd.f32 %v5337_v52, %v5289_v50  ;;  %v5386_v40 = vpop.f32.mrf.mxu3  ;;  %v10087_v50 = vor.u32 %v11457_v26, %v10084_v53 }
 0x489   :  { %v5241_v21 = vpop.f32.mrf.mxu0 }
 0x48a   :  { %v5242_v36 = vadd.f32 %v5241_v21, %v13319_v42  ;;  %v5290_v37 = vpop.f32.mrf.mxu1  ;;  %v13400_v31 = vpop.eup %12053  ;;  %v5387_v44 = vadd.f32 %v5386_v40, %v5338_v61  ;;  %5657 = vmatpush.bf16.msrb.mxu1 %v10087_v50  ;;  %v10308_v61 = vld [vmem:[#allocation8 + $0xc28] sm:$0xf0] }
 0x48b   :  { %14954 = vst [vmem:[#allocation96_spill] sm:$0xff] %v13400_v31  ;;  %v11385_v40 = vld [vmem:[#allocation8 + $0x80c] sm:$0xf]  ;;  %v10311_v21 = vor.u32 %v11513_v59, %v10308_v61  ;;  %v11230_v31 = vld [vmem:[#allocation8 + $0x32c] sm:$0xf0] }
 0x48c   :  { %v5291_v13 = vadd.f32 %v5290_v37, %v5242_v36  ;;  %12055 = vtanh.f32 %v5387_v44  ;;  %v9796_v36 = vld [vmem:[#allocation8 + $0x828] sm:$0xf0] }
 0x48d   :  { %v11577_v37 = vld [vmem:[#allocation8 + $0xe0c] sm:$0xf]  ;;  %v9799_v26 = vor.u32 %v11385_v40, %v9796_v36  ;;  %5707 = vmatpush.bf16.msrb.mxu2 %v10311_v21 }
 0x48e   :  { %v11449_v61 = vld [vmem:[#allocation8 + $0xa0c] sm:$0xf] }
 0x48f   :  { %v5339_v15 = vpop.f32.mrf.mxu2  ;;  %5609 = vmatpush.bf16.msrb.mxu0 %v9799_v26  ;;  %v10052_v40 = vld [vmem:[#allocation8 + $0xa28] sm:$0xf0] }
 0x490   :  { %v5340_v2 = vadd.f32 %v5339_v15, %v5291_v13  ;;  %v5388_v54 = vpop.f32.mrf.mxu3 }
 0x491   :  { %v5244_v39 = vpop.f32.mrf.mxu0 }
 0x492   :  { %v5245_v42 = vadd.f32 %v5244_v39, %v13326_v22  ;;  %v5293_v58 = vpop.f32.mrf.mxu1  ;;  %v5389_v52 = vadd.f32 %v5388_v54, %v5340_v2  ;;  %v10564_v22 = vld [vmem:[#allocation8 + $0xe28] sm:$0xf0]  ;;  %v13409_v2 = vpop.eup %12055 }
 0x493   :  { %5439 = vmatmul.bf16.gmra.mxu0 %v14857_v29  ;;  %5488 = vmatmul.bf16.gmra.mxu1 %v14858_v10  ;;  %v10567_v44 = vor.u32 %v11577_v37, %v10564_v22  ;;  %14955 = vst [vmem:[#allocation97_spill] sm:$0xff] %v13409_v2 }
 0x494   :  { %v5294_v6 = vadd.f32 %v5293_v58, %v5245_v42  ;;  %12057 = vtanh.f32 %v5389_v52  ;;  %5537 = vmatmul.bf16.gmra.mxu2 %v14859_v28 }
 0x495   :  { %5586 = vmatmul.bf16.gmra.mxu3 %v14901_v33 }
 0x496   :  { %5756 = vmatpush.bf16.msrb.mxu3 %v10567_v44 }
 0x497   :  { %v5342_v13 = vpop.f32.mrf.mxu2 }
 0x498   :  { %v5343_v53 = vadd.f32 %v5342_v13, %v5294_v6  ;;  %v5391_v50 = vpop.f32.mrf.mxu3  ;;  %v10055_v6 = vor.u32 %v11449_v61, %v10052_v40 }
 0x499   :  { %v5246_v15 = vpop.f32.mrf.mxu0 }
 0x49a   :  { %v5247_v54 = vadd.f32 %v5246_v15, %v13329_v23  ;;  %v5295_v39 = vpop.f32.mrf.mxu1  ;;  %v13412_v42 = vpop.eup %12057  ;;  %v5392_v58 = vadd.f32 %v5391_v50, %v5343_v53  ;;  %5658 = vmatpush.bf16.msrb.mxu1 %v10055_v6  ;;  %v9514_v53 = vld [vmem:[#allocation8 + $0x5d0] sm:$0xf] }
 0x49b   :  { %14956 = vst [vmem:[#allocation98_spill] sm:$0xff] %v13412_v42  ;;  %v11318_v50 = vld [vmem:[#allocation8 + $0x5ec] sm:$0xf0] }
 0x49c   :  { %v5296_v52 = vadd.f32 %v5295_v39, %v5247_v54  ;;  %12059 = vtanh.f32 %v5392_v58  ;;  %v9002_v15 = vld [vmem:[#allocation8 + $0x1d0] sm:$0xf]  ;;  %v9515_v54 = vor.u32 %v11318_v50, %v9514_v53 }
 0x49d   :  { %v11190_v39 = vld [vmem:[#allocation8 + $0x1ec] sm:$0xf0] }
 0x49e   :  { %v9003_v40 = vor.u32 %v11190_v39, %v9002_v15  ;;  %5896 = vmatpush.bf16.msra.mxu2 %v9515_v54  ;;  %v9258_v53 = vld [vmem:[#allocation8 + $0x3d0] sm:$0xf] }
 0x49f   :  { %v5344_v36 = vpop.f32.mrf.mxu2  ;;  %v11254_v50 = vld [vmem:[#allocation8 + $0x3ec] sm:$0xf0] }
 0x4a0   :  { %v5345_v21 = vadd.f32 %v5344_v36, %v5296_v52  ;;  %v5393_v37 = vpop.f32.mrf.mxu3  ;;  %v9770_v52 = vld [vmem:[#allocation8 + $0x7d0] sm:$0xf]  ;;  %5798 = vmatpush.bf16.msra.mxu0 %v9003_v40  ;;  %v9259_v25 = vor.u32 %v11254_v50, %v9258_v53 }
 0x4a1   :  { %v5249_v22 = vpop.f32.mrf.mxu0 }
 0x4a2   :  { %v5250_v23 = vadd.f32 %v5249_v22, %v13336_v4  ;;  %v5298_v13 = vpop.f32.mrf.mxu1  ;;  %v5394_v26 = vadd.f32 %v5393_v37, %v5345_v21  ;;  %v11382_v4 = vld [vmem:[#allocation8 + $0x7ec] sm:$0xf0]  ;;  %v13421_v37 = vpop.eup %12059  ;;  %5847 = vmatpush.bf16.msra.mxu1 %v9259_v25 }
 0x4a3   :  { %5444 = vmatmul.bf16.gmra.mxu0 %v14863_v16  ;;  %5493 = vmatmul.bf16.gmra.mxu1 %v14904_v55  ;;  %v9771_v58 = vor.u32 %v11382_v4, %v9770_v52  ;;  %14957 = vst [vmem:[#allocation99_spill] sm:$0xff] %v13421_v37  ;;  %v9482_v25 = vld [vmem:[#allocation8 + $0x590] sm:$0xf] }
 0x4a4   :  { %v5299_v44 = vadd.f32 %v5298_v13, %v5250_v23  ;;  %12061 = vtanh.f32 %v5394_v26  ;;  %5542 = vmatmul.bf16.gmra.mxu2 %v14905_v62 }
 0x4a5   :  { %5591 = vmatmul.bf16.gmra.mxu3 %v14906_v11 }
 0x4a6   :  { %5945 = vmatpush.bf16.msra.mxu3 %v9771_v58  ;;  %v11310_v58 = vld [vmem:[#allocation8 + $0x5ac] sm:$0xf0] }
 0x4a7   :  { %v5347_v61 = vpop.f32.mrf.mxu2 }
 0x4a8   :  { %v5348_v6 = vadd.f32 %v5347_v61, %v5299_v44  ;;  %v5396_v36 = vpop.f32.mrf.mxu3 }
 0x4a9   :  { %v5251_v21 = vpop.f32.mrf.mxu0 }
 0x4aa   :  { %v5252_v22 = vadd.f32 %v5251_v21, %v13339_v60  ;;  %v5300_v23 = vpop.f32.mrf.mxu1  ;;  %v13424_v13 = vpop.eup %12061  ;;  %v5397_v26 = vadd.f32 %v5396_v36, %v5348_v6  ;;  %v9483_v6 = vor.u32 %v11310_v58, %v9482_v25  ;;  %v11182_v36 = vld [vmem:[#allocation8 + $0x1ac] sm:$0xf0] }
 0x4ab   :  { %14958 = vst [vmem:[#allocation100_spill] sm:$0xff] %v13424_v13  ;;  %v9738_v21 = vld [vmem:[#allocation8 + $0x790] sm:$0xf] }
 0x4ac   :  { %v5301_v59 = vadd.f32 %v5300_v23, %v5252_v22  ;;  %12063 = vtanh.f32 %v5397_v26  ;;  %5897 = vmatpush.bf16.msra.mxu2 %v9483_v6  ;;  %v9226_v25 = vld [vmem:[#allocation8 + $0x390] sm:$0xf] }
 0x4ad   :  { %v11246_v58 = vld [vmem:[#allocation8 + $0x3ac] sm:$0xf0] }
 0x4ae   :  { %v9227_v56 = vor.u32 %v11246_v58, %v9226_v25  ;;  %v11302_v25 = vld [vmem:[#allocation8 + $0x56c] sm:$0xf0] }
 0x4af   :  { %v5349_v15 = vpop.f32.mrf.mxu2 }
 0x4b0   :  { %v5350_v54 = vadd.f32 %v5349_v15, %v5301_v59  ;;  %v5398_v39 = vpop.f32.mrf.mxu3  ;;  %v8970_v59 = vld [vmem:[#allocation8 + $0x190] sm:$0xf]  ;;  %5848 = vmatpush.bf16.msra.mxu1 %v9227_v56 }
 0x4b1   :  { %v5254_v52 = vpop.f32.mrf.mxu0  ;;  %v8971_v23 = vor.u32 %v11182_v36, %v8970_v59  ;;  %v12233_v59 = vld [vmem:[#allocation10] sm:$0xff]  ;;  %v9450_v56 = vld [vmem:[#allocation8 + $0x550] sm:$0xf] }
 0x4b2   :  { %v5255_v60 = vadd.f32 %v5254_v52, %v13346_v46  ;;  %v5303_v4 = vpop.f32.mrf.mxu1  ;;  %v5399_v61 = vadd.f32 %v5398_v39, %v5350_v54  ;;  %v11374_v46 = vld [vmem:[#allocation8 + $0x7ac] sm:$0xf0]  ;;  %v13433_v54 = vpop.eup %12063  ;;  %v13440_v36 = vperm.slane %v12233_v59, 3  ;;  %v9451_v58 = vor.u32 %v11302_v25, %v9450_v56 }
 0x4b3   :  { %5449 = vmatmul.bf16.gmra.mxu0 %v12735_v12  ;;  %5498 = vmatmul.bf16.gmra.mxu1 %v14869_v45  ;;  %v9739_v26 = vor.u32 %v11374_v46, %v9738_v21  ;;  %14959 = vst [vmem:[#allocation101_spill] sm:$0xff] %v13433_v54  ;;  %v14960_v39 = vld [vmem:[#allocation88_spill] sm:$0xff] }
 0x4b4   :  { %v5304_v40 = vadd.f32 %v5303_v4, %v5255_v60  ;;  %12065 = vtanh.f32 %v5399_v61  ;;  %5547 = vmatmul.bf16.gmra.mxu2 %v14870_v51  ;;  %5799 = vmatpush.bf16.msra.mxu0 %v8971_v23  ;;  %v11174_v59 = vld [vmem:[#allocation8 + $0x16c] sm:$0xf0] }
 0x4b5   :  { %5596 = vmatmul.bf16.gmra.mxu3 %v14909_v14  ;;  %5898 = vmatpush.bf16.msra.mxu2 %v9451_v58  ;;  %v9194_v25 = vld [vmem:[#allocation8 + $0x350] sm:$0xf] }
 0x4b6   :  { %5946 = vmatpush.bf16.msra.mxu3 %v9739_v26 }
 0x4b7   :  { %v5352_v22 = vpop.f32.mrf.mxu2 }
 0x4b8   :  { %v5353_v53 = vadd.f32 %v5352_v22, %v5304_v40  ;;  %v5401_v50 = vpop.f32.mrf.mxu3 }
 0x4b9   :  { %v5256_v15 = vpop.f32.mrf.mxu0 }
 0x4ba   :  { %v5257_v52 = vadd.f32 %v5256_v15, %v14960_v39  ;;  %v5305_v60 = vpop.f32.mrf.mxu1  ;;  %v13436_v4 = vpop.eup %12065  ;;  %v5402_v61 = vadd.f32 %v5401_v50, %v5353_v53  ;;  %v14962_v50 = vld [vmem:[#allocation44_spill] sm:$0xff]  ;;  %v14963_v39 = vld [vmem:[#allocation45_spill] sm:$0xff] }
 0x4bb   :  { %14961 = vst [vmem:[#allocation88_spill] sm:$0xff] %v13436_v4  ;;  %v11238_v4 = vld [vmem:[#allocation8 + $0x36c] sm:$0xf0] }
 0x4bc   :  { %v5306_v44 = vadd.f32 %v5305_v60, %v5257_v52  ;;  %12067 = vtanh.f32 %v5402_v61  ;;  %v14964_v52 = vld [vmem:[#allocation46_spill] sm:$0xff]  ;;  %v14965_v60 = vld [vmem:[#allocation47_spill] sm:$0xff] }
 0x4bf   :  { %v5354_v6 = vpop.f32.mrf.mxu2 }
 0x4c0   :  { %v5355_v21 = vadd.f32 %v5354_v6, %v5306_v44  ;;  %v5403_v46 = vpop.f32.mrf.mxu3  ;;  %v8938_v44 = vld [vmem:[#allocation8 + $0x150] sm:$0xf] }
 0x4c1   :  { %v5415_v22 = vpop.f32.mrf.mxu0  ;;  %v9706_v6 = vld [vmem:[#allocation8 + $0x750] sm:$0xf] }
 0x4c2   :  { %v5416_v23 = vadd.f32 %v5415_v22, %v13440_v36  ;;  %v5464_v26 = vpop.f32.mrf.mxu1  ;;  %v5404_v15 = vadd.f32 %v5403_v46, %v5355_v21  ;;  %v11366_v22 = vld [vmem:[#allocation8 + $0x76c] sm:$0xf0]  ;;  %v8939_v21 = vor.u32 %v11174_v59, %v8938_v44  ;;  %v9195_v44 = vor.u32 %v11238_v4, %v9194_v25 }
 0x4c3   :  { %5610 = vmatmul.bf16.vlgmr.msrb.gmra.mxu0 %v14962_v50  ;;  %5659 = vmatmul.bf16.vlgmr.msrb.gmra.mxu1 %v14963_v39  ;;  %v9707_v61 = vor.u32 %v11366_v22, %v9706_v6  ;;  %v9418_v4 = vld [vmem:[#allocation8 + $0x510] sm:$0xf] }
 0x4c4   :  { %v5465_v53 = vadd.f32 %v5464_v26, %v5416_v23  ;;  %12069 = vtanh.f32 %v5404_v15  ;;  %5708 = vmatmul.bf16.vlgmr.msrb.gmra.mxu2 %v14964_v52  ;;  %v13447_v15 = vpop.eup %12067  ;;  %5800 = vmatpush.bf16.msra.mxu0 %v8939_v21  ;;  %v11294_v25 = vld [vmem:[#allocation8 + $0x52c] sm:$0xf0] }
 0x4c5   :  { %5757 = vmatmul.bf16.vlgmr.msrb.gmra.mxu3 %v14965_v60  ;;  %14966 = vst [vmem:[#allocation102_spill] sm:$0xff] %v13447_v15  ;;  %5849 = vmatpush.bf16.msra.mxu1 %v9195_v44  ;;  %v8906_v44 = vld [vmem:[#allocation8 + $0x110] sm:$0xf] }
 0x4c6   :  { %5947 = vmatpush.bf16.msra.mxu3 %v9707_v61  ;;  %v11358_v15 = vld [vmem:[#allocation8 + $0x72c] sm:$0xf0] }
 0x4c7   :  { %v5513_v40 = vpop.f32.mrf.mxu2  ;;  %v11502_v39 = vld [vmem:[#allocation8 + $0xbac] sm:$0xf0] }
 0x4c8   :  { %v5514_v46 = vadd.f32 %v5513_v40, %v5465_v53  ;;  %v5562_v23 = vpop.f32.mrf.mxu3  ;;  %v9674_v40 = vld [vmem:[#allocation8 + $0x710] sm:$0xf] }
 0x4c9   :  { %v5417_v26 = vpop.f32.mrf.mxu0 }
 0x4ca   :  { %v5418_v57 = vadd.f32 %v5417_v26, %v13440_v36  ;;  %v5466_v9 = vpop.f32.mrf.mxu1  ;;  %v13450_v54 = vpop.eup %12069  ;;  %v13452_v56 = vadd.f32 %v5562_v23, %v5514_v46  ;;  %v14968_v46 = vld [vmem:[#allocation48_spill] sm:$0xff]  ;;  %v14969_v23 = vld [vmem:[#allocation49_spill] sm:$0xff] }
 0x4cb   :  { %14967 = vst [vmem:[#allocation103_spill] sm:$0xff] %v13450_v54 }
 0x4cc   :  { %v5467_v37 = vadd.f32 %v5466_v9, %v5418_v57  ;;  %v14970_v9 = vld [vmem:[#allocation50_spill] sm:$0xff]  ;;  %v14971_v57 = vld [vmem:[#allocation51_spill] sm:$0xff] }
 0x4cf   :  { %v5515_v53 = vpop.f32.mrf.mxu2 }
 0x4d0   :  { %v5516_v58 = vadd.f32 %v5515_v53, %v5467_v37  ;;  %v5564_v59 = vpop.f32.mrf.mxu3  ;;  %v9419_v37 = vor.u32 %v11294_v25, %v9418_v4  ;;  %v11166_v53 = vld [vmem:[#allocation8 + $0x12c] sm:$0xf0]  ;;  %v9163_v25 = vor.u32 %v11230_v31, %v9162_v43 }
 0x4d1   :  { %v5420_v6 = vpop.f32.mrf.mxu0  ;;  %v8907_v54 = vor.u32 %v11166_v53, %v8906_v44  ;;  %v9386_v43 = vld [vmem:[#allocation8 + $0x4d0] sm:$0xf] }
 0x4d2   :  { %v5421_v22 = vadd.f32 %v5420_v6, %v13440_v36  ;;  %v5469_v21 = vpop.f32.mrf.mxu1  ;;  %v13457_v61 = vadd.f32 %v5564_v59, %v5516_v58  ;;  %v9675_v58 = vor.u32 %v11358_v15, %v9674_v40  ;;  %5899 = vmatpush.bf16.msra.mxu2 %v9419_v37  ;;  %5850 = vmatpush.bf16.msra.mxu1 %v9163_v25  ;;  %v11286_v31 = vld [vmem:[#allocation8 + $0x4ec] sm:$0xf0] }
 0x4d3   :  { %5615 = vmatmul.bf16.gmra.mxu0 %v14968_v46  ;;  %5664 = vmatmul.bf16.gmra.mxu1 %v14969_v23 }
 0x4d4   :  { %v5470_v26 = vadd.f32 %v5469_v21, %v5421_v22  ;;  %5713 = vmatmul.bf16.gmra.mxu2 %v14970_v9  ;;  %5801 = vmatpush.bf16.msra.mxu0 %v8907_v54  ;;  %v14973_v54 = vld [vmem:[#allocation53_spill] sm:$0xff] }
 0x4d5   :  { %5762 = vmatmul.bf16.gmra.mxu3 %v14971_v57 }
 0x4d6   :  { %5948 = vmatpush.bf16.msra.mxu3 %v9675_v58  ;;  %v14974_v58 = vld [vmem:[#allocation54_spill] sm:$0xff] }
 0x4d7   :  { %v5518_v6 = vpop.f32.mrf.mxu2 }
 0x4d8   :  { %v5519_v59 = vadd.f32 %v5518_v6, %v5470_v26  ;;  %v5567_v22 = vpop.f32.mrf.mxu3  ;;  %v14972_v6 = vld [vmem:[#allocation52_spill] sm:$0xff] }
 0x4d9   :  { %v5422_v21 = vpop.f32.mrf.mxu0 }
 0x4da   :  { %v5423_v13 = vadd.f32 %v5422_v21, %v13440_v36  ;;  %v5471_v2 = vpop.f32.mrf.mxu1  ;;  %v13464_v42 = vadd.f32 %v5567_v22, %v5519_v59  ;;  %v14975_v59 = vld [vmem:[#allocation55_spill] sm:$0xff]  ;;  %v9642_v22 = vld [vmem:[#allocation8 + $0x6d0] sm:$0xf] }
 0x4db   :  { %v11350_v21 = vld [vmem:[#allocation8 + $0x6ec] sm:$0xf0] }
 0x4dc   :  { %v5472_v4 = vadd.f32 %v5471_v2, %v5423_v13  ;;  %v8874_v2 = vld [vmem:[#allocation8 + $0xd0] sm:$0xf] }
 0x4dd   :  { %v11158_v13 = vld [vmem:[#allocation8 + $0xec] sm:$0xf0] }
 0x4de   :  { %v8875_v25 = vor.u32 %v11158_v13, %v8874_v2 }
 0x4df   :  { %v5520_v1 = vpop.f32.mrf.mxu2 }
 0x4e0   :  { %v5521_v63 = vadd.f32 %v5520_v1, %v5472_v4  ;;  %v5569_v44 = vpop.f32.mrf.mxu3  ;;  %v9387_v1 = vor.u32 %v11286_v31, %v9386_v43  ;;  %5802 = vmatpush.bf16.msra.mxu0 %v8875_v25  ;;  %v9131_v31 = vor.u32 %v11222_v24, %v9130_v32  ;;  %v14977_v25 = vld [vmem:[#allocation57_spill] sm:$0xff] }
 0x4e1   :  { %v5425_v15 = vpop.f32.mrf.mxu0  ;;  %v9354_v32 = vld [vmem:[#allocation8 + $0x490] sm:$0xf] }
 0x4e2   :  { %v5426_v40 = vadd.f32 %v5425_v15, %v13440_v36  ;;  %v5474_v26 = vpop.f32.mrf.mxu1  ;;  %v13467_v37 = vadd.f32 %v5569_v44, %v5521_v63  ;;  %v9643_v63 = vor.u32 %v11350_v21, %v9642_v22  ;;  %5900 = vmatpush.bf16.msra.mxu2 %v9387_v1  ;;  %5851 = vmatpush.bf16.msra.mxu1 %v9131_v31  ;;  %v11278_v24 = vld [vmem:[#allocation8 + $0x4ac] sm:$0xf0] }
 0x4e3   :  { %5620 = vmatmul.bf16.gmra.mxu0 %v14972_v6  ;;  %5669 = vmatmul.bf16.gmra.mxu1 %v14973_v54 }
 0x4e4   :  { %v5475_v53 = vadd.f32 %v5474_v26, %v5426_v40  ;;  %5718 = vmatmul.bf16.gmra.mxu2 %v14974_v58  ;;  %5949 = vmatpush.bf16.msra.mxu3 %v9643_v63  ;;  %v14978_v63 = vld [vmem:[#allocation58_spill] sm:$0xff] }
 0x4e5   :  { %5767 = vmatmul.bf16.gmra.mxu3 %v14975_v59 }
 0x4e7   :  { %v5523_v4 = vpop.f32.mrf.mxu2 }
 0x4e8   :  { %v5524_v44 = vadd.f32 %v5523_v4, %v5475_v53  ;;  %v5572_v15 = vpop.f32.mrf.mxu3  ;;  %v14976_v4 = vld [vmem:[#allocation56_spill] sm:$0xff] }
 0x4e9   :  { %v5427_v40 = vpop.f32.mrf.mxu0 }
 0x4ea   :  { %v5428_v26 = vadd.f32 %v5427_v40, %v13440_v36  ;;  %v5476_v47 = vpop.f32.mrf.mxu1  ;;  %v13474_v41 = vadd.f32 %v5572_v15, %v5524_v44  ;;  %v14979_v44 = vld [vmem:[#allocation59_spill] sm:$0xff]  ;;  %v11150_v15 = vld [vmem:[#allocation8 + $0xac] sm:$0xf0] }
 0x4eb   :  { %v9610_v40 = vld [vmem:[#allocation8 + $0x690] sm:$0xf] }
 0x4ec   :  { %v5477_v43 = vadd.f32 %v5476_v47, %v5428_v26  ;;  %v8842_v47 = vld [vmem:[#allocation8 + $0x90] sm:$0xf] }
 0x4ed   :  { %v11342_v26 = vld [vmem:[#allocation8 + $0x6ac] sm:$0xf0]  ;;  %v8843_v31 = vor.u32 %v11150_v15, %v8842_v47 }
 0x4ef   :  { %v5525_v59 = vpop.f32.mrf.mxu2  ;;  %5803 = vmatpush.bf16.msra.mxu0 %v8843_v31  ;;  %v14981_v31 = vld [vmem:[#allocation61_spill] sm:$0xff] }
 0x4f0   :  { %v5526_v58 = vadd.f32 %v5525_v59, %v5477_v43  ;;  %v5574_v2 = vpop.f32.mrf.mxu3  ;;  %v9355_v59 = vor.u32 %v11278_v24, %v9354_v32 }
 0x4f1   :  { %v5430_v13 = vpop.f32.mrf.mxu0 }
 0x4f2   :  { %v5431_v53 = vadd.f32 %v5430_v13, %v13440_v36  ;;  %v5479_v22 = vpop.f32.mrf.mxu1  ;;  %v13477_v1 = vadd.f32 %v5574_v2, %v5526_v58  ;;  %v9611_v58 = vor.u32 %v11342_v26, %v9610_v40  ;;  %5901 = vmatpush.bf16.msra.mxu2 %v9355_v59 }
 0x4f3   :  { %5625 = vmatmul.bf16.gmra.mxu0 %v14976_v4  ;;  %5674 = vmatmul.bf16.gmra.mxu1 %v14977_v25  ;;  %v11214_v4 = vld [vmem:[#allocation8 + $0x2ac] sm:$0xf0] }
 0x4f4   :  { %v5480_v21 = vadd.f32 %v5479_v22, %v5431_v53  ;;  %5723 = vmatmul.bf16.gmra.mxu2 %v14978_v63  ;;  %5950 = vmatpush.bf16.msra.mxu3 %v9611_v58  ;;  %v9098_v63 = vld [vmem:[#allocation8 + $0x290] sm:$0xf]  ;;  %v14982_v58 = vld [vmem:[#allocation62_spill] sm:$0xff] }
 0x4f5   :  { %5772 = vmatmul.bf16.gmra.mxu3 %v14979_v44  ;;  %v9099_v24 = vor.u32 %v11214_v4, %v9098_v63  ;;  %v9322_v4 = vld [vmem:[#allocation8 + $0x450] sm:$0xf] }
 0x4f6   :  { %v8810_v63 = vld [vmem:[#allocation8 + $0x50] sm:$0xf] }
 0x4f7   :  { %v5528_v43 = vpop.f32.mrf.mxu2  ;;  %5852 = vmatpush.bf16.msra.mxu1 %v9099_v24 }
 0x4f8   :  { %v5529_v2 = vadd.f32 %v5528_v43, %v5480_v21  ;;  %v5577_v13 = vpop.f32.mrf.mxu3  ;;  %v14980_v43 = vld [vmem:[#allocation60_spill] sm:$0xff] }
 0x4f9   :  { %v5432_v53 = vpop.f32.mrf.mxu0 }
 0x4fa   :  { %v5433_v22 = vadd.f32 %v5432_v53, %v13440_v36  ;;  %v5481_v25 = vpop.f32.mrf.mxu1  ;;  %v13484_v44 = vadd.f32 %v5577_v13, %v5529_v2  ;;  %v14983_v2 = vld [vmem:[#allocation63_spill] sm:$0xff]  ;;  %v11142_v13 = vld [vmem:[#allocation8 + $0x6c] sm:$0xf0] }
 0x4fb   :  { %v9578_v53 = vld [vmem:[#allocation8 + $0x650] sm:$0xf]  ;;  %v8811_v24 = vor.u32 %v11142_v13, %v8810_v63 }
 0x4fc   :  { %v5482_v32 = vadd.f32 %v5481_v25, %v5433_v22  ;;  %v11270_v25 = vld [vmem:[#allocation8 + $0x46c] sm:$0xf0] }
 0x4fd   :  { %v11334_v22 = vld [vmem:[#allocation8 + $0x66c] sm:$0xf0]  ;;  %5804 = vmatpush.bf16.msra.mxu0 %v8811_v24 }
 0x4fe   :  { %v14985_v24 = vld [vmem:[#allocation65_spill] sm:$0xff] }
 0x4ff   :  { %v5530_v54 = vpop.f32.mrf.mxu2 }
 0x500   :  { %v5531_v6 = vadd.f32 %v5530_v54, %v5482_v32  ;;  %v5579_v47 = vpop.f32.mrf.mxu3  ;;  %v9323_v54 = vor.u32 %v11270_v25, %v9322_v4 }
 0x501   :  { %v5435_v15 = vpop.f32.mrf.mxu0 }
 0x502   :  { %v5436_v21 = vadd.f32 %v5435_v15, %v13440_v36  ;;  %v5484_v40 = vpop.f32.mrf.mxu1  ;;  %v13487_v59 = vadd.f32 %v5579_v47, %v5531_v6  ;;  %v9579_v6 = vor.u32 %v11334_v22, %v9578_v53  ;;  %5902 = vmatpush.bf16.msra.mxu2 %v9323_v54 }
 0x503   :  { %5630 = vmatmul.bf16.gmra.mxu0 %v14980_v43  ;;  %5679 = vmatmul.bf16.gmra.mxu1 %v14981_v31  ;;  %v11206_v43 = vld [vmem:[#allocation8 + $0x26c] sm:$0xf0] }
 0x504   :  { %v5485_v26 = vadd.f32 %v5484_v40, %v5436_v21  ;;  %5728 = vmatmul.bf16.gmra.mxu2 %v14982_v58  ;;  %5951 = vmatpush.bf16.msra.mxu3 %v9579_v6  ;;  %v9066_v58 = vld [vmem:[#allocation8 + $0x250] sm:$0xf]  ;;  %v14986_v6 = vld [vmem:[#allocation66_spill] sm:$0xff] }
 0x505   :  { %5777 = vmatmul.bf16.gmra.mxu3 %v14983_v2  ;;  %v9067_v25 = vor.u32 %v11206_v43, %v9066_v58  ;;  %v9290_v43 = vld [vmem:[#allocation8 + $0x410] sm:$0xf] }
 0x506   :  { %v8778_v58 = vld [vmem:[#allocation8 + $0x10] sm:$0xf] }
 0x507   :  { %v5533_v32 = vpop.f32.mrf.mxu2  ;;  %5853 = vmatpush.bf16.msra.mxu1 %v9067_v25 }
 0x508   :  { %v5534_v47 = vadd.f32 %v5533_v32, %v5485_v26  ;;  %v5582_v15 = vpop.f32.mrf.mxu3  ;;  %v14984_v32 = vld [vmem:[#allocation64_spill] sm:$0xff] }
 0x509   :  { %v5437_v21 = vpop.f32.mrf.mxu0 }
 0x50a   :  { %v5438_v40 = vadd.f32 %v5437_v21, %v13440_v36  ;;  %v5486_v31 = vpop.f32.mrf.mxu1  ;;  %v13494_v2 = vadd.f32 %v5582_v15, %v5534_v47  ;;  %v14987_v47 = vld [vmem:[#allocation67_spill] sm:$0xff]  ;;  %v11134_v15 = vld [vmem:[#allocation8 + $0x2c] sm:$0xf0] }
 0x50b   :  { %v9546_v21 = vld [vmem:[#allocation8 + $0x610] sm:$0xf]  ;;  %v8779_v25 = vor.u32 %v11134_v15, %v8778_v58 }
 0x50c   :  { %v5487_v4 = vadd.f32 %v5486_v31, %v5438_v40  ;;  %v11262_v31 = vld [vmem:[#allocation8 + $0x42c] sm:$0xf0] }
 0x50d   :  { %v11326_v40 = vld [vmem:[#allocation8 + $0x62c] sm:$0xf0]  ;;  %5805 = vmatpush.bf16.msra.mxu0 %v8779_v25 }
 0x50e   :  { %v14989_v25 = vld [vmem:[#allocation69_spill] sm:$0xff] }
 0x50f   :  { %v5535_v57 = vpop.f32.mrf.mxu2 }
 0x510   :  { %v5536_v9 = vadd.f32 %v5535_v57, %v5487_v4  ;;  %v5584_v63 = vpop.f32.mrf.mxu3  ;;  %v9291_v57 = vor.u32 %v11262_v31, %v9290_v43 }
 0x511   :  { %v5440_v13 = vpop.f32.mrf.mxu0 }
 0x512   :  { %v5441_v26 = vadd.f32 %v5440_v13, %v13440_v36  ;;  %v5489_v53 = vpop.f32.mrf.mxu1  ;;  %v13497_v54 = vadd.f32 %v5584_v63, %v5536_v9  ;;  %v9547_v9 = vor.u32 %v11326_v40, %v9546_v21  ;;  %5903 = vmatpush.bf16.msra.mxu2 %v9291_v57 }
 0x513   :  { %5635 = vmatmul.bf16.gmra.mxu0 %v14984_v32  ;;  %5684 = vmatmul.bf16.gmra.mxu1 %v14985_v24  ;;  %v11198_v32 = vld [vmem:[#allocation8 + $0x22c] sm:$0xf0] }
 0x514   :  { %v5490_v22 = vadd.f32 %v5489_v53, %v5441_v26  ;;  %5733 = vmatmul.bf16.gmra.mxu2 %v14986_v6  ;;  %5952 = vmatpush.bf16.msra.mxu3 %v9547_v9  ;;  %v9034_v6 = vld [vmem:[#allocation8 + $0x210] sm:$0xf]  ;;  %v14990_v9 = vld [vmem:[#allocation70_spill] sm:$0xff] }
 0x515   :  { %5782 = vmatmul.bf16.gmra.mxu3 %v14987_v47  ;;  %v9035_v31 = vor.u32 %v11198_v32, %v9034_v6  ;;  %v10538_v32 = vld [vmem:[#allocation8 + $0xdd0] sm:$0xf] }
 0x516   :  { %v10026_v6 = vld [vmem:[#allocation8 + $0x9d0] sm:$0xf] }
 0x517   :  { %v5538_v4 = vpop.f32.mrf.mxu2  ;;  %5854 = vmatpush.bf16.msra.mxu1 %v9035_v31 }
 0x518   :  { %v5539_v63 = vadd.f32 %v5538_v4, %v5490_v22  ;;  %v5587_v13 = vpop.f32.mrf.mxu3  ;;  %v14988_v4 = vld [vmem:[#allocation68_spill] sm:$0xff] }
 0x519   :  { %v5442_v26 = vpop.f32.mrf.mxu0 }
 0x51a   :  { %v5443_v53 = vadd.f32 %v5442_v26, %v13440_v36  ;;  %v5491_v24 = vpop.f32.mrf.mxu1  ;;  %v13504_v47 = vadd.f32 %v5587_v13, %v5539_v63  ;;  %v14991_v63 = vld [vmem:[#allocation71_spill] sm:$0xff]  ;;  %v11446_v13 = vld [vmem:[#allocation8 + $0x9ec] sm:$0xf0] }
 0x51b   :  { %v10794_v26 = vld [vmem:[#allocation8 + $0xfd0] sm:$0xf]  ;;  %v10027_v31 = vor.u32 %v11446_v13, %v10026_v6 }
 0x51c   :  { %v5492_v43 = vadd.f32 %v5491_v24, %v5443_v53  ;;  %v11574_v24 = vld [vmem:[#allocation8 + $0xdec] sm:$0xf0] }
 0x51d   :  { %v11638_v53 = vld [vmem:[#allocation8 + $0xfec] sm:$0xf0]  ;;  %5994 = vmatpush.bf16.msrb.mxu0 %v10027_v31 }
 0x51e   :  { %v14993_v31 = vld [vmem:[#allocation73_spill] sm:$0xff] }
 0x51f   :  { %v5540_v23 = vpop.f32.mrf.mxu2 }
 0x520   :  { %v5541_v46 = vadd.f32 %v5540_v23, %v5492_v43  ;;  %v5589_v58 = vpop.f32.mrf.mxu3  ;;  %v10539_v23 = vor.u32 %v11574_v24, %v10538_v32  ;;  %v11510_v32 = vld [vmem:[#allocation8 + $0xbec] sm:$0xf0] }
 0x521   :  { %v5445_v15 = vpop.f32.mrf.mxu0 }
 0x522   :  { %v5446_v22 = vadd.f32 %v5445_v15, %v13440_v36  ;;  %v5494_v21 = vpop.f32.mrf.mxu1  ;;  %v13507_v57 = vadd.f32 %v5589_v58, %v5541_v46  ;;  %v10795_v46 = vor.u32 %v11638_v53, %v10794_v26  ;;  %6092 = vmatpush.bf16.msrb.mxu2 %v10539_v23 }
 0x523   :  { %5640 = vmatmul.bf16.gmra.mxu0 %v14988_v4  ;;  %5689 = vmatmul.bf16.gmra.mxu1 %v14989_v25  ;;  %v10282_v4 = vld [vmem:[#allocation8 + $0xbd0] sm:$0xf] }
 0x524   :  { %v5495_v40 = vadd.f32 %v5494_v21, %v5446_v22  ;;  %5738 = vmatmul.bf16.gmra.mxu2 %v14990_v9  ;;  %6141 = vmatpush.bf16.msrb.mxu3 %v10795_v46  ;;  %v10283_v24 = vor.u32 %v11510_v32, %v10282_v4  ;;  %v14994_v46 = vld [vmem:[#allocation74_spill] sm:$0xff]  ;;  %v10506_v32 = vld [vmem:[#allocation8 + $0xd90] sm:$0xf] }
 0x525   :  { %5787 = vmatmul.bf16.gmra.mxu3 %v14991_v63 }
 0x526   :  { %6043 = vmatpush.bf16.msrb.mxu1 %v10283_v24  ;;  %v11566_v24 = vld [vmem:[#allocation8 + $0xdac] sm:$0xf0] }
 0x527   :  { %v5543_v43 = vpop.f32.mrf.mxu2 }
 0x528   :  { %v5544_v58 = vadd.f32 %v5543_v43, %v5495_v40  ;;  %v5592_v15 = vpop.f32.mrf.mxu3  ;;  %v14992_v43 = vld [vmem:[#allocation72_spill] sm:$0xff] }
 0x529   :  { %v5447_v22 = vpop.f32.mrf.mxu0 }
 0x52a   :  { %v5448_v21 = vadd.f32 %v5447_v22, %v13440_v36  ;;  %v5496_v25 = vpop.f32.mrf.mxu1  ;;  %v13514_v63 = vadd.f32 %v5592_v15, %v5544_v58 }
 0x52c   :  { %v5497_v9 = vadd.f32 %v5496_v25, %v5448_v21  ;;  %v14995_v25 = vld [vmem:[#allocation75_spill] sm:$0xff] }
 0x52f   :  { %v5545_v60 = vpop.f32.mrf.mxu2 }
 0x530   :  { %v5546_v52 = vadd.f32 %v5545_v60, %v5497_v9  ;;  %v5594_v6 = vpop.f32.mrf.mxu3 }
 0x531   :  { %v5450_v13 = vpop.f32.mrf.mxu0 }
 0x532   :  { %v5451_v40 = vadd.f32 %v5450_v13, %v13440_v36  ;;  %v5499_v26 = vpop.f32.mrf.mxu1  ;;  %v13517_v23 = vadd.f32 %v5594_v6, %v5546_v52  ;;  %v9994_v6 = vld [vmem:[#allocation8 + $0x990] sm:$0xf]  ;;  %v10507_v13 = vor.u32 %v11566_v24, %v10506_v32 }
 0x533   :  { %5645 = vmatmul.bf16.gmra.mxu0 %v14992_v43  ;;  %5694 = vmatmul.bf16.gmra.mxu1 %v14993_v31  ;;  %v11630_v31 = vld [vmem:[#allocation8 + $0xfac] sm:$0xf0] }
 0x534   :  { %v5500_v53 = vadd.f32 %v5499_v26, %v5451_v40  ;;  %5743 = vmatmul.bf16.gmra.mxu2 %v14994_v46  ;;  %v11438_v40 = vld [vmem:[#allocation8 + $0x9ac] sm:$0xf0] }
 0x535   :  { %5792 = vmatmul.bf16.gmra.mxu3 %v14995_v25  ;;  %v10762_v26 = vld [vmem:[#allocation8 + $0xf90] sm:$0xf]  ;;  %v9995_v46 = vor.u32 %v11438_v40, %v9994_v6  ;;  %6093 = vmatpush.bf16.msrb.mxu2 %v10507_v13  ;;  %v14999_v6 = vld [vmem:[#allocation22_spill] sm:$0xff] }
 0x536   :  { %v10763_v43 = vor.u32 %v11630_v31, %v10762_v26  ;;  %v10250_v25 = vld [vmem:[#allocation8 + $0xb90] sm:$0xf] }
 0x537   :  { %v5548_v4 = vpop.f32.mrf.mxu2  ;;  %5995 = vmatpush.bf16.msrb.mxu0 %v9995_v46  ;;  %v14997_v24 = vld [vmem:[#allocation20_spill] sm:$0xff]  ;;  %v14998_v31 = vld [vmem:[#allocation21_spill] sm:$0xff] }
 0x538   :  { %v5549_v58 = vadd.f32 %v5548_v4, %v5500_v53  ;;  %v5597_v15 = vpop.f32.mrf.mxu3  ;;  %v10251_v53 = vor.u32 %v11502_v39, %v10250_v25  ;;  %6142 = vmatpush.bf16.msrb.mxu3 %v10763_v43  ;;  %v15000_v39 = vld [vmem:[#allocation23_spill] sm:$0xff]  ;;  %v10474_v46 = vld [vmem:[#allocation8 + $0xd50] sm:$0xf] }
 0x539   :  { %v5452_v60 = vpop.f32.mrf.mxu0  ;;  %v11558_v43 = vld [vmem:[#allocation8 + $0xd6c] sm:$0xf0] }
 0x53a   :  { %v5453_v9 = vadd.f32 %v5452_v60, %v13440_v36  ;;  %v5501_v22 = vpop.f32.mrf.mxu1  ;;  %v13524_v21 = vadd.f32 %v5597_v15, %v5549_v58  ;;  %6044 = vmatpush.bf16.msrb.mxu1 %v10251_v53  ;;  %v9962_v25 = vld [vmem:[#allocation8 + $0x950] sm:$0xf] }
 0x53b   :  { %v11430_v13 = vld [vmem:[#allocation8 + $0x96c] sm:$0xf0] }
 0x53c   :  { %v5502_v52 = vadd.f32 %v5501_v22, %v5453_v9  ;;  %v10730_v40 = vld [vmem:[#allocation8 + $0xf50] sm:$0xf]  ;;  %v9963_v53 = vor.u32 %v11430_v13, %v9962_v25 }
 0x53d   :  { %v11622_v26 = vld [vmem:[#allocation8 + $0xf6c] sm:$0xf0] }
 0x53e   :  { %5996 = vmatpush.bf16.msrb.mxu0 %v9963_v53 }
 0x53f   :  { %v5550_v4 = vpop.f32.mrf.mxu2 }
 0x540   :  { %v5551_v36 = vadd.f32 %v5550_v4, %v5502_v52  ;;  %v5599_v58 = vpop.f32.mrf.mxu3  ;;  %v10475_v52 = vor.u32 %v11558_v43, %v10474_v46  ;;  %v10731_v4 = vor.u32 %v11622_v26, %v10730_v40  ;;  %v11422_v26 = vld [vmem:[#allocation8 + $0x92c] sm:$0xf0] }
 0x541   :  { %v5611_v15 = vpop.f32.mrf.mxu0 }
 0x542   :  { %v5612_v60 = vadd.f32 %v5611_v15, %v13452_v56  ;;  %v5660_v9 = vpop.f32.mrf.mxu1  ;;  %v13527_v22 = vadd.f32 %v5599_v58, %v5551_v36  ;;  %6094 = vmatpush.bf16.msrb.mxu2 %v10475_v52  ;;  %6143 = vmatpush.bf16.msrb.mxu3 %v10731_v4 }
 0x543   :  { %5806 = vmatmul.bf16.vlgmr.msra.gmra.mxu0 %v14997_v24  ;;  %5855 = vmatmul.bf16.vlgmr.msra.gmra.mxu1 %v14998_v31  ;;  %v10218_v31 = vld [vmem:[#allocation8 + $0xb50] sm:$0xf] }
 0x544   :  { %14996 = vst [vmem:[#allocation104_spill] sm:$0xff] %v13527_v22  ;;  %v5661_v32 = vadd.f32 %v5660_v9, %v5612_v60  ;;  %5904 = vmatmul.bf16.vlgmr.msra.gmra.mxu2 %v14999_v6  ;;  %v11494_v24 = vld [vmem:[#allocation8 + $0xb6c] sm:$0xf0] }
 0x545   :  { %5953 = vmatmul.bf16.vlgmr.msra.gmra.mxu3 %v15000_v39  ;;  %v10219_v46 = vor.u32 %v11494_v24, %v10218_v31  ;;  %v11550_v24 = vld [vmem:[#allocation8 + $0xd2c] sm:$0xf0] }
 0x546   :  { %v9930_v31 = vld [vmem:[#allocation8 + $0x910] sm:$0xf] }
 0x547   :  { %v5709_v56 = vpop.f32.mrf.mxu2  ;;  %6045 = vmatpush.bf16.msrb.mxu1 %v10219_v46 }
 0x548   :  { %v5710_v36 = vadd.f32 %v5709_v56, %v5661_v32  ;;  %v5758_v58 = vpop.f32.mrf.mxu3  ;;  %v10698_v56 = vld [vmem:[#allocation8 + $0xf10] sm:$0xf] }
 0x549   :  { %v5613_v15 = vpop.f32.mrf.mxu0 }
 0x54a   :  { %v5614_v60 = vadd.f32 %v5613_v15, %v13457_v61  ;;  %v5662_v9 = vpop.f32.mrf.mxu1  ;;  %v5759_v39 = vadd.f32 %v5758_v58, %v5710_v36  ;;  %v10442_v61 = vld [vmem:[#allocation8 + $0xd10] sm:$0xf] }
 0x54c   :  { %v5663_v6 = vadd.f32 %v5662_v9, %v5614_v60  ;;  %12071 = vtanh.f32 %v5759_v39 }
 0x54f   :  { %v5711_v43 = vpop.f32.mrf.mxu2 }
 0x550   :  { %v5712_v50 = vadd.f32 %v5711_v43, %v5663_v6  ;;  %v5760_v22 = vpop.f32.mrf.mxu3  ;;  %v10443_v6 = vor.u32 %v11550_v24, %v10442_v61 }
 0x551   :  { %v5616_v25 = vpop.f32.mrf.mxu0 }
 0x552   :  { %v5617_v32 = vadd.f32 %v5616_v25, %v13464_v42  ;;  %v5665_v13 = vpop.f32.mrf.mxu1  ;;  %v5761_v40 = vadd.f32 %v5760_v22, %v5712_v50  ;;  %v11614_v42 = vld [vmem:[#allocation8 + $0xf2c] sm:$0xf0]  ;;  %v9931_v50 = vor.u32 %v11422_v26, %v9930_v31  ;;  %6095 = vmatpush.bf16.msrb.mxu2 %v10443_v6  ;;  %v13539_v58 = vpop.eup %12071 }
 0x553   :  { %5811 = vmatmul.bf16.gmra.mxu0 %v12612_v17  ;;  %5860 = vmatmul.bf16.gmra.mxu1 %v12615_v18  ;;  %v10699_v22 = vor.u32 %v11614_v42, %v10698_v56  ;;  %15001 = vst [vmem:[#allocation105_spill] sm:$0xff] %v13539_v58  ;;  %v10410_v42 = vld [vmem:[#allocation8 + $0xcd0] sm:$0xf]  ;;  %v11218_v58 = vld [vmem:[#allocation8 + $0x2d4] sm:$0xf] }
 0x554   :  { %v5666_v52 = vadd.f32 %v5665_v13, %v5617_v32  ;;  %12073 = vtanh.f32 %v5761_v40  ;;  %5909 = vmatmul.bf16.gmra.mxu2 %v12622_v30  ;;  %5997 = vmatpush.bf16.msrb.mxu0 %v9931_v50  ;;  %v10186_v32 = vld [vmem:[#allocation8 + $0xb10] sm:$0xf] }
 0x555   :  { %5958 = vmatmul.bf16.gmra.mxu3 %v12625_v35  ;;  %v11486_v13 = vld [vmem:[#allocation8 + $0xb2c] sm:$0xf0] }
 0x556   :  { %6144 = vmatpush.bf16.msrb.mxu3 %v10699_v22  ;;  %v10187_v40 = vor.u32 %v11486_v13, %v10186_v32  ;;  %v9898_v50 = vld [vmem:[#allocation8 + $0x8d0] sm:$0xf] }
 0x557   :  { %v5714_v53 = vpop.f32.mrf.mxu2 }
 0x558   :  { %v5715_v39 = vadd.f32 %v5714_v53, %v5666_v52  ;;  %v5763_v4 = vpop.f32.mrf.mxu3  ;;  %6046 = vmatpush.bf16.msrb.mxu1 %v10187_v40  ;;  %v11542_v53 = vld [vmem:[#allocation8 + $0xcec] sm:$0xf0] }
 0x559   :  { %v5618_v36 = vpop.f32.mrf.mxu0  ;;  %v10411_v22 = vor.u32 %v11542_v53, %v10410_v42 }
 0x55a   :  { %v5619_v15 = vadd.f32 %v5618_v36, %v13467_v37  ;;  %v5667_v60 = vpop.f32.mrf.mxu1  ;;  %v13542_v9 = vpop.eup %12073  ;;  %v5764_v46 = vadd.f32 %v5763_v4, %v5715_v39  ;;  %v11414_v39 = vld [vmem:[#allocation8 + $0x8ec] sm:$0xf0] }
 0x55b   :  { %15002 = vst [vmem:[#allocation106_spill] sm:$0xff] %v13542_v9  ;;  %v10666_v4 = vld [vmem:[#allocation8 + $0xed0] sm:$0xf]  ;;  %6096 = vmatpush.bf16.msrb.mxu2 %v10411_v22  ;;  %v9132_v9 = vld [vmem:[#allocation8 + $0x2f0] sm:$0xf0] }
 0x55c   :  { %v5668_v25 = vadd.f32 %v5667_v60, %v5619_v15  ;;  %12075 = vtanh.f32 %v5764_v46  ;;  %v9899_v15 = vor.u32 %v11414_v39, %v9898_v50 }
 0x55e   :  { %5998 = vmatpush.bf16.msrb.mxu0 %v9899_v15  ;;  %v11534_v15 = vld [vmem:[#allocation8 + $0xcac] sm:$0xf0] }
 0x55f   :  { %v5716_v52 = vpop.f32.mrf.mxu2 }
 0x560   :  { %v5717_v61 = vadd.f32 %v5716_v52, %v5668_v25  ;;  %v5765_v24 = vpop.f32.mrf.mxu3 }
 0x561   :  { %v5621_v31 = vpop.f32.mrf.mxu0 }
 0x562   :  { %v5622_v37 = vadd.f32 %v5621_v31, %v13474_v41  ;;  %v5670_v6 = vpop.f32.mrf.mxu1  ;;  %v5766_v26 = vadd.f32 %v5765_v24, %v5717_v61  ;;  %v11606_v41 = vld [vmem:[#allocation8 + $0xeec] sm:$0xf0]  ;;  %v13551_v13 = vpop.eup %12075 }
 0x563   :  { %5816 = vmatmul.bf16.gmra.mxu0 %v12632_v5  ;;  %5865 = vmatmul.bf16.gmra.mxu1 %v12635_v7  ;;  %v10667_v60 = vor.u32 %v11606_v41, %v10666_v4  ;;  %15003 = vst [vmem:[#allocation107_spill] sm:$0xff] %v13551_v13 }
 0x564   :  { %v5671_v56 = vadd.f32 %v5670_v6, %v5622_v37  ;;  %12077 = vtanh.f32 %v5766_v26  ;;  %5914 = vmatmul.bf16.gmra.mxu2 %v12642_v20  ;;  %v10154_v6 = vld [vmem:[#allocation8 + $0xad0] sm:$0xf] }
 0x565   :  { %5963 = vmatmul.bf16.gmra.mxu3 %v14842_v48  ;;  %v11478_v26 = vld [vmem:[#allocation8 + $0xaec] sm:$0xf0] }
 0x566   :  { %6145 = vmatpush.bf16.msrb.mxu3 %v10667_v60  ;;  %v9866_v60 = vld [vmem:[#allocation8 + $0x890] sm:$0xf] }
 0x567   :  { %v5719_v36 = vpop.f32.mrf.mxu2 }
 0x568   :  { %v5720_v46 = vadd.f32 %v5719_v36, %v5671_v56  ;;  %v5768_v25 = vpop.f32.mrf.mxu3  ;;  %v10155_v56 = vor.u32 %v11478_v26, %v10154_v6  ;;  %v10378_v36 = vld [vmem:[#allocation8 + $0xc90] sm:$0xf] }
 0x569   :  { %v5623_v32 = vpop.f32.mrf.mxu0 }
 0x56a   :  { %v5624_v40 = vadd.f32 %v5623_v32, %v13477_v1  ;;  %v5672_v52 = vpop.f32.mrf.mxu1  ;;  %v13554_v61 = vpop.eup %12077  ;;  %v5769_v24 = vadd.f32 %v5768_v25, %v5720_v46  ;;  %6047 = vmatpush.bf16.msrb.mxu1 %v10155_v56  ;;  %v10379_v46 = vor.u32 %v11534_v15, %v10378_v36  ;;  %v11406_v25 = vld [vmem:[#allocation8 + $0x8ac] sm:$0xf0] }
 0x56b   :  { %15004 = vst [vmem:[#allocation108_spill] sm:$0xff] %v13554_v61  ;;  %v10634_v32 = vld [vmem:[#allocation8 + $0xe90] sm:$0xf] }
 0x56c   :  { %v5673_v31 = vadd.f32 %v5672_v52, %v5624_v40  ;;  %12079 = vtanh.f32 %v5769_v24  ;;  %v9867_v52 = vor.u32 %v11406_v25, %v9866_v60  ;;  %6097 = vmatpush.bf16.msrb.mxu2 %v10379_v46  ;;  %v11470_v36 = vld [vmem:[#allocation8 + $0xaac] sm:$0xf0] }
 0x56e   :  { %5999 = vmatpush.bf16.msrb.mxu0 %v9867_v52  ;;  %v10346_v52 = vld [vmem:[#allocation8 + $0xc50] sm:$0xf] }
 0x56f   :  { %v5721_v42 = vpop.f32.mrf.mxu2 }
 0x570   :  { %v5722_v53 = vadd.f32 %v5721_v42, %v5673_v31  ;;  %v5770_v50 = vpop.f32.mrf.mxu3 }
 0x571   :  { %v5626_v22 = vpop.f32.mrf.mxu0 }
 0x572   :  { %v5627_v1 = vadd.f32 %v5626_v22, %v13484_v44  ;;  %v5675_v39 = vpop.f32.mrf.mxu1  ;;  %v5771_v4 = vadd.f32 %v5770_v50, %v5722_v53  ;;  %v11598_v44 = vld [vmem:[#allocation8 + $0xeac] sm:$0xf0]  ;;  %v13563_v56 = vpop.eup %12079 }
 0x573   :  { %5821 = vmatmul.bf16.gmra.mxu0 %v14845_v3  ;;  %5870 = vmatmul.bf16.gmra.mxu1 %v14846_v38  ;;  %v10635_v24 = vor.u32 %v11598_v44, %v10634_v32  ;;  %15005 = vst [vmem:[#allocation109_spill] sm:$0xff] %v13563_v56 }
 0x574   :  { %v5676_v41 = vadd.f32 %v5675_v39, %v5627_v1  ;;  %12081 = vtanh.f32 %v5771_v4  ;;  %5919 = vmatmul.bf16.gmra.mxu2 %v14847_v34  ;;  %v10122_v4 = vld [vmem:[#allocation8 + $0xa90] sm:$0xf] }
 0x575   :  { %5968 = vmatmul.bf16.gmra.mxu3 %v14848_v27 }
 0x576   :  { %6146 = vmatpush.bf16.msrb.mxu3 %v10635_v24  ;;  %v11526_v24 = vld [vmem:[#allocation8 + $0xc6c] sm:$0xf0] }
 0x577   :  { %v5724_v40 = vpop.f32.mrf.mxu2 }
 0x578   :  { %v5725_v31 = vadd.f32 %v5724_v40, %v5676_v41  ;;  %v5773_v6 = vpop.f32.mrf.mxu3  ;;  %v10123_v41 = vor.u32 %v11470_v36, %v10122_v4 }
 0x579   :  { %v5628_v26 = vpop.f32.mrf.mxu0 }
 0x57a   :  { %v5629_v42 = vadd.f32 %v5628_v26, %v13487_v59  ;;  %v5677_v53 = vpop.f32.mrf.mxu1  ;;  %v13566_v50 = vpop.eup %12081  ;;  %v5774_v22 = vadd.f32 %v5773_v6, %v5725_v31  ;;  %6048 = vmatpush.bf16.msrb.mxu1 %v10123_v41  ;;  %v9834_v31 = vld [vmem:[#allocation8 + $0x850] sm:$0xf]  ;;  %v10347_v6 = vor.u32 %v11526_v24, %v10346_v52 }
 0x57b   :  { %15006 = vst [vmem:[#allocation110_spill] sm:$0xff] %v13566_v50  ;;  %v11398_v26 = vld [vmem:[#allocation8 + $0x86c] sm:$0xf0] }
 0x57c   :  { %v5678_v1 = vadd.f32 %v5677_v53, %v5629_v42  ;;  %12083 = vtanh.f32 %v5774_v22  ;;  %v10602_v42 = vld [vmem:[#allocation8 + $0xe50] sm:$0xf]  ;;  %6098 = vmatpush.bf16.msrb.mxu2 %v10347_v6 }
 0x57d   :  { %v10090_v52 = vld [vmem:[#allocation8 + $0xa50] sm:$0xf] }
 0x57e   :  { %v11462_v24 = vld [vmem:[#allocation8 + $0xa6c] sm:$0xf0] }
 0x57f   :  { %v5726_v15 = vpop.f32.mrf.mxu2 }
 0x580   :  { %v5727_v60 = vadd.f32 %v5726_v15, %v5678_v1  ;;  %v5775_v46 = vpop.f32.mrf.mxu3  ;;  %v9835_v1 = vor.u32 %v11398_v26, %v9834_v31 }
 0x581   :  { %v5631_v25 = vpop.f32.mrf.mxu0 }
 0x582   :  { %v5632_v59 = vadd.f32 %v5631_v25, %v13494_v2  ;;  %v5680_v32 = vpop.f32.mrf.mxu1  ;;  %v5776_v44 = vadd.f32 %v5775_v46, %v5727_v60  ;;  %v11590_v2 = vld [vmem:[#allocation8 + $0xe6c] sm:$0xf0]  ;;  %v13575_v15 = vpop.eup %12083  ;;  %6000 = vmatpush.bf16.msrb.mxu0 %v9835_v1 }
 0x583   :  { %5826 = vmatmul.bf16.gmra.mxu0 %v14851_v19  ;;  %5875 = vmatmul.bf16.gmra.mxu1 %v14852_v49  ;;  %v10603_v22 = vor.u32 %v11590_v2, %v10602_v42  ;;  %15007 = vst [vmem:[#allocation111_spill] sm:$0xff] %v13575_v15  ;;  %v11226_v15 = vld [vmem:[#allocation8 + $0x314] sm:$0xf] }
 0x584   :  { %v5681_v40 = vadd.f32 %v5680_v32, %v5632_v59  ;;  %12085 = vtanh.f32 %v5776_v44  ;;  %5924 = vmatmul.bf16.gmra.mxu2 %v14853_v0 }
 0x585   :  { %5973 = vmatmul.bf16.gmra.mxu3 %v14854_v8 }
 0x586   :  { %6147 = vmatpush.bf16.msrb.mxu3 %v10603_v22  ;;  %v10314_v22 = vld [vmem:[#allocation8 + $0xc10] sm:$0xf] }
 0x587   :  { %v5729_v53 = vpop.f32.mrf.mxu2 }
 0x588   :  { %v5730_v4 = vadd.f32 %v5729_v53, %v5681_v40  ;;  %v5778_v36 = vpop.f32.mrf.mxu3  ;;  %v10091_v40 = vor.u32 %v11462_v24, %v10090_v52 }
 0x589   :  { %v5633_v41 = vpop.f32.mrf.mxu0 }
 0x58a   :  { %v5634_v60 = vadd.f32 %v5633_v41, %v13497_v54  ;;  %v5682_v46 = vpop.f32.mrf.mxu1  ;;  %v13578_v25 = vpop.eup %12085  ;;  %v5779_v59 = vadd.f32 %v5778_v36, %v5730_v4  ;;  %6049 = vmatpush.bf16.msrb.mxu1 %v10091_v40  ;;  %v11518_v4 = vld [vmem:[#allocation8 + $0xc2c] sm:$0xf0] }
 0x58b   :  { %15008 = vst [vmem:[#allocation112_spill] sm:$0xff] %v13578_v25  ;;  %v9802_v36 = vld [vmem:[#allocation8 + $0x810] sm:$0xf]  ;;  %v10315_v41 = vor.u32 %v11518_v4, %v10314_v22  ;;  %v9164_v25 = vld [vmem:[#allocation8 + $0x330] sm:$0xf0] }
 0x58c   :  { %v5683_v32 = vadd.f32 %v5682_v46, %v5634_v60  ;;  %12087 = vtanh.f32 %v5779_v59  ;;  %v11390_v60 = vld [vmem:[#allocation8 + $0x82c] sm:$0xf0] }
 0x58d   :  { %v10570_v46 = vld [vmem:[#allocation8 + $0xe10] sm:$0xf]  ;;  %v9803_v52 = vor.u32 %v11390_v60, %v9802_v36  ;;  %6099 = vmatpush.bf16.msrb.mxu2 %v10315_v41 }
 0x58e   :  { %v10058_v4 = vld [vmem:[#allocation8 + $0xa10] sm:$0xf] }
 0x58f   :  { %v5731_v31 = vpop.f32.mrf.mxu2  ;;  %6001 = vmatpush.bf16.msrb.mxu0 %v9803_v52  ;;  %v11454_v36 = vld [vmem:[#allocation8 + $0xa2c] sm:$0xf0] }
 0x590   :  { %v5732_v6 = vadd.f32 %v5731_v31, %v5683_v32  ;;  %v5780_v26 = vpop.f32.mrf.mxu3 }
 0x591   :  { %v5636_v42 = vpop.f32.mrf.mxu0 }
 0x592   :  { %v5637_v54 = vadd.f32 %v5636_v42, %v13504_v47  ;;  %v5685_v2 = vpop.f32.mrf.mxu1  ;;  %v5781_v53 = vadd.f32 %v5780_v26, %v5732_v6  ;;  %v11582_v47 = vld [vmem:[#allocation8 + $0xe2c] sm:$0xf0]  ;;  %v13587_v6 = vpop.eup %12087 }
 0x593   :  { %5831 = vmatmul.bf16.gmra.mxu0 %v14857_v29  ;;  %5880 = vmatmul.bf16.gmra.mxu1 %v14858_v10  ;;  %v10571_v59 = vor.u32 %v11582_v47, %v10570_v46  ;;  %15009 = vst [vmem:[#allocation113_spill] sm:$0xff] %v13587_v6 }
 0x594   :  { %v5686_v1 = vadd.f32 %v5685_v2, %v5637_v54  ;;  %12089 = vtanh.f32 %v5781_v53  ;;  %5929 = vmatmul.bf16.gmra.mxu2 %v14859_v28 }
 0x595   :  { %5978 = vmatmul.bf16.gmra.mxu3 %v14901_v33 }
 0x596   :  { %6148 = vmatpush.bf16.msrb.mxu3 %v10571_v59 }
 0x597   :  { %v5734_v32 = vpop.f32.mrf.mxu2 }
 0x598   :  { %v5735_v24 = vadd.f32 %v5734_v32, %v5686_v1  ;;  %v5783_v40 = vpop.f32.mrf.mxu3  ;;  %v10059_v1 = vor.u32 %v11454_v36, %v10058_v4 }
 0x599   :  { %v5638_v31 = vpop.f32.mrf.mxu0 }
 0x59a   :  { %v5639_v26 = vadd.f32 %v5638_v31, %v13507_v57  ;;  %v5687_v42 = vpop.f32.mrf.mxu1  ;;  %v13590_v54 = vpop.eup %12089  ;;  %v5784_v2 = vadd.f32 %v5783_v40, %v5735_v24  ;;  %6050 = vmatpush.bf16.msrb.mxu1 %v10059_v1  ;;  %v11314_v24 = vld [vmem:[#allocation8 + $0x5d4] sm:$0xf] }
 0x59b   :  { %15010 = vst [vmem:[#allocation114_spill] sm:$0xff] %v13590_v54  ;;  %v9516_v40 = vld [vmem:[#allocation8 + $0x5f0] sm:$0xf0] }
 0x59c   :  { %v5688_v53 = vadd.f32 %v5687_v42, %v5639_v26  ;;  %12091 = vtanh.f32 %v5784_v2  ;;  %v11186_v31 = vld [vmem:[#allocation8 + $0x1d4] sm:$0xf]  ;;  %v9519_v26 = vor.u32 %v11314_v24, %v9516_v40 }
 0x59d   :  { %v9004_v42 = vld [vmem:[#allocation8 + $0x1f0] sm:$0xf0] }
 0x59e   :  { %v9007_v36 = vor.u32 %v11186_v31, %v9004_v42  ;;  %6288 = vmatpush.bf16.msra.mxu2 %v9519_v26  ;;  %v11250_v24 = vld [vmem:[#allocation8 + $0x3d4] sm:$0xf] }
 0x59f   :  { %v5736_v60 = vpop.f32.mrf.mxu2  ;;  %v9260_v40 = vld [vmem:[#allocation8 + $0x3f0] sm:$0xf0] }
 0x5a0   :  { %v5737_v41 = vadd.f32 %v5736_v60, %v5688_v53  ;;  %v5785_v46 = vpop.f32.mrf.mxu3  ;;  %v11378_v53 = vld [vmem:[#allocation8 + $0x7d4] sm:$0xf]  ;;  %6190 = vmatpush.bf16.msra.mxu0 %v9007_v36  ;;  %v9263_v44 = vor.u32 %v11250_v24, %v9260_v40 }
 0x5a1   :  { %v5641_v47 = vpop.f32.mrf.mxu0 }
 0x5a2   :  { %v5642_v57 = vadd.f32 %v5641_v47, %v13514_v63  ;;  %v5690_v32 = vpop.f32.mrf.mxu1  ;;  %v5786_v52 = vadd.f32 %v5785_v46, %v5737_v41  ;;  %v9772_v63 = vld [vmem:[#allocation8 + $0x7f0] sm:$0xf0]  ;;  %v13599_v46 = vpop.eup %12091  ;;  %6239 = vmatpush.bf16.msra.mxu1 %v9263_v44 }
 0x5a3   :  { %5836 = vmatmul.bf16.gmra.mxu0 %v14863_v16  ;;  %5885 = vmatmul.bf16.gmra.mxu1 %v14904_v55  ;;  %v9775_v2 = vor.u32 %v11378_v53, %v9772_v63  ;;  %15011 = vst [vmem:[#allocation115_spill] sm:$0xff] %v13599_v46  ;;  %v11306_v44 = vld [vmem:[#allocation8 + $0x594] sm:$0xf] }
 0x5a4   :  { %v5691_v59 = vadd.f32 %v5690_v32, %v5642_v57  ;;  %12093 = vtanh.f32 %v5786_v52  ;;  %5934 = vmatmul.bf16.gmra.mxu2 %v14905_v62 }
 0x5a5   :  { %5983 = vmatmul.bf16.gmra.mxu3 %v14906_v11 }
 0x5a6   :  { %6337 = vmatpush.bf16.msra.mxu3 %v9775_v2  ;;  %v9484_v2 = vld [vmem:[#allocation8 + $0x5b0] sm:$0xf0] }
 0x5a7   :  { %v5739_v4 = vpop.f32.mrf.mxu2 }
 0x5a8   :  { %v5740_v1 = vadd.f32 %v5739_v4, %v5691_v59  ;;  %v5788_v60 = vpop.f32.mrf.mxu3 }
 0x5a9   :  { %v5643_v41 = vpop.f32.mrf.mxu0 }
 0x5aa   :  { %v5644_v47 = vadd.f32 %v5643_v41, %v13517_v23  ;;  %v5692_v57 = vpop.f32.mrf.mxu1  ;;  %v13602_v32 = vpop.eup %12093  ;;  %v5789_v52 = vadd.f32 %v5788_v60, %v5740_v1  ;;  %v9487_v1 = vor.u32 %v11306_v44, %v9484_v2  ;;  %v8972_v60 = vld [vmem:[#allocation8 + $0x1b0] sm:$0xf0] }
 0x5ab   :  { %15012 = vst [vmem:[#allocation116_spill] sm:$0xff] %v13602_v32  ;;  %v11370_v41 = vld [vmem:[#allocation8 + $0x794] sm:$0xf] }
 0x5ac   :  { %v5693_v22 = vadd.f32 %v5692_v57, %v5644_v47  ;;  %12095 = vtanh.f32 %v5789_v52  ;;  %6289 = vmatpush.bf16.msra.mxu2 %v9487_v1  ;;  %v11242_v44 = vld [vmem:[#allocation8 + $0x394] sm:$0xf] }
 0x5ad   :  { %v9228_v2 = vld [vmem:[#allocation8 + $0x3b0] sm:$0xf0] }
 0x5ae   :  { %v9231_v39 = vor.u32 %v11242_v44, %v9228_v2  ;;  %v9452_v44 = vld [vmem:[#allocation8 + $0x570] sm:$0xf0] }
 0x5af   :  { %v5741_v31 = vpop.f32.mrf.mxu2 }
 0x5b0   :  { %v5742_v26 = vadd.f32 %v5741_v31, %v5693_v22  ;;  %v5790_v42 = vpop.f32.mrf.mxu3  ;;  %v11178_v22 = vld [vmem:[#allocation8 + $0x194] sm:$0xf]  ;;  %6240 = vmatpush.bf16.msra.mxu1 %v9231_v39 }
 0x5b1   :  { %v5646_v53 = vpop.f32.mrf.mxu0  ;;  %v8975_v57 = vor.u32 %v11178_v22, %v8972_v60  ;;  %v12234_v22 = vld [vmem:[#allocation10] sm:$0xff]  ;;  %v11298_v39 = vld [vmem:[#allocation8 + $0x554] sm:$0xf] }
 0x5b2   :  { %v5647_v23 = vadd.f32 %v5646_v53, %v13524_v21  ;;  %v5695_v63 = vpop.f32.mrf.mxu1  ;;  %v5791_v4 = vadd.f32 %v5790_v42, %v5742_v26  ;;  %v9740_v21 = vld [vmem:[#allocation8 + $0x7b0] sm:$0xf0]  ;;  %v13611_v26 = vpop.eup %12095  ;;  %v15014_v42 = vld [vmem:[#allocation104_spill] sm:$0xff]  ;;  %v13618_v60 = vperm.slane %v12234_v22, 4  ;;  %v9455_v2 = vor.u32 %v11298_v39, %v9452_v44 }
 0x5b3   :  { %5841 = vmatmul.bf16.gmra.mxu0 %v12735_v12  ;;  %5890 = vmatmul.bf16.gmra.mxu1 %v14869_v45  ;;  %v9743_v52 = vor.u32 %v11370_v41, %v9740_v21  ;;  %15013 = vst [vmem:[#allocation117_spill] sm:$0xff] %v13611_v26  ;;  %v8940_v22 = vld [vmem:[#allocation8 + $0x170] sm:$0xf0] }
 0x5b4   :  { %v5696_v36 = vadd.f32 %v5695_v63, %v5647_v23  ;;  %12097 = vtanh.f32 %v5791_v4  ;;  %5939 = vmatmul.bf16.gmra.mxu2 %v14870_v51  ;;  %6191 = vmatpush.bf16.msra.mxu0 %v8975_v57  ;;  %v11234_v44 = vld [vmem:[#allocation8 + $0x354] sm:$0xf] }
 0x5b5   :  { %5988 = vmatmul.bf16.gmra.mxu3 %v14909_v14  ;;  %6290 = vmatpush.bf16.msra.mxu2 %v9455_v2 }
 0x5b6   :  { %6338 = vmatpush.bf16.msra.mxu3 %v9743_v52 }
 0x5b7   :  { %v5744_v47 = vpop.f32.mrf.mxu2 }
 0x5b8   :  { %v5745_v24 = vadd.f32 %v5744_v47, %v5696_v36  ;;  %v5793_v40 = vpop.f32.mrf.mxu3 }
 0x5b9   :  { %v5648_v31 = vpop.f32.mrf.mxu0 }
 0x5ba   :  { %v5649_v53 = vadd.f32 %v5648_v31, %v15014_v42  ;;  %v5697_v23 = vpop.f32.mrf.mxu1  ;;  %v13614_v63 = vpop.eup %12097  ;;  %v5794_v4 = vadd.f32 %v5793_v40, %v5745_v24  ;;  %v15016_v40 = vld [vmem:[#allocation44_spill] sm:$0xff]  ;;  %v15017_v42 = vld [vmem:[#allocation45_spill] sm:$0xff] }
 0x5bb   :  { %15015 = vst [vmem:[#allocation104_spill] sm:$0xff] %v13614_v63  ;;  %v9196_v63 = vld [vmem:[#allocation8 + $0x370] sm:$0xf0] }
 0x5bc   :  { %v5698_v59 = vadd.f32 %v5697_v23, %v5649_v53  ;;  %12099 = vtanh.f32 %v5794_v4  ;;  %v15018_v53 = vld [vmem:[#allocation46_spill] sm:$0xff]  ;;  %v15019_v23 = vld [vmem:[#allocation47_spill] sm:$0xff] }
 0x5bf   :  { %v5746_v1 = vpop.f32.mrf.mxu2 }
 0x5c0   :  { %v5747_v41 = vadd.f32 %v5746_v1, %v5698_v59  ;;  %v5795_v21 = vpop.f32.mrf.mxu3  ;;  %v11170_v59 = vld [vmem:[#allocation8 + $0x154] sm:$0xf] }
 0x5c1   :  { %v5807_v47 = vpop.f32.mrf.mxu0  ;;  %v11362_v1 = vld [vmem:[#allocation8 + $0x754] sm:$0xf] }
 0x5c2   :  { %v5808_v57 = vadd.f32 %v5807_v47, %v13618_v60  ;;  %v5856_v52 = vpop.f32.mrf.mxu1  ;;  %v5796_v31 = vadd.f32 %v5795_v21, %v5747_v41  ;;  %v9708_v47 = vld [vmem:[#allocation8 + $0x770] sm:$0xf0]  ;;  %v8943_v41 = vor.u32 %v11170_v59, %v8940_v22  ;;  %v9199_v59 = vor.u32 %v11234_v44, %v9196_v63 }
 0x5c3   :  { %6002 = vmatmul.bf16.vlgmr.msrb.gmra.mxu0 %v15016_v40  ;;  %6051 = vmatmul.bf16.vlgmr.msrb.gmra.mxu1 %v15017_v42  ;;  %v9711_v4 = vor.u32 %v11362_v1, %v9708_v47  ;;  %v11290_v63 = vld [vmem:[#allocation8 + $0x514] sm:$0xf] }
 0x5c4   :  { %v5857_v24 = vadd.f32 %v5856_v52, %v5808_v57  ;;  %12101 = vtanh.f32 %v5796_v31  ;;  %6100 = vmatmul.bf16.vlgmr.msrb.gmra.mxu2 %v15018_v53  ;;  %v13625_v31 = vpop.eup %12099  ;;  %6192 = vmatpush.bf16.msra.mxu0 %v8943_v41  ;;  %v9420_v44 = vld [vmem:[#allocation8 + $0x530] sm:$0xf0] }
 0x5c5   :  { %6149 = vmatmul.bf16.vlgmr.msrb.gmra.mxu3 %v15019_v23  ;;  %15020 = vst [vmem:[#allocation118_spill] sm:$0xff] %v13625_v31  ;;  %6241 = vmatpush.bf16.msra.mxu1 %v9199_v59  ;;  %v11162_v59 = vld [vmem:[#allocation8 + $0x114] sm:$0xf] }
 0x5c6   :  { %6339 = vmatpush.bf16.msra.mxu3 %v9711_v4  ;;  %v9676_v31 = vld [vmem:[#allocation8 + $0x730] sm:$0xf0] }
 0x5c7   :  { %v5905_v36 = vpop.f32.mrf.mxu2  ;;  %v10252_v42 = vld [vmem:[#allocation8 + $0xbb0] sm:$0xf0] }
 0x5c8   :  { %v5906_v21 = vadd.f32 %v5905_v36, %v5857_v24  ;;  %v5954_v57 = vpop.f32.mrf.mxu3  ;;  %v11354_v36 = vld [vmem:[#allocation8 + $0x714] sm:$0xf] }
 0x5c9   :  { %v5809_v52 = vpop.f32.mrf.mxu0 }
 0x5ca   :  { %v5810_v37 = vadd.f32 %v5809_v52, %v13618_v60  ;;  %v5858_v43 = vpop.f32.mrf.mxu1  ;;  %v13628_v26 = vpop.eup %12101  ;;  %v13630_v39 = vadd.f32 %v5954_v57, %v5906_v21  ;;  %v15022_v21 = vld [vmem:[#allocation48_spill] sm:$0xff]  ;;  %v15023_v57 = vld [vmem:[#allocation49_spill] sm:$0xff] }
 0x5cb   :  { %15021 = vst [vmem:[#allocation119_spill] sm:$0xff] %v13628_v26 }
 0x5cc   :  { %v5859_v46 = vadd.f32 %v5858_v43, %v5810_v37  ;;  %v15024_v43 = vld [vmem:[#allocation50_spill] sm:$0xff]  ;;  %v15025_v37 = vld [vmem:[#allocation51_spill] sm:$0xff] }
 0x5cf   :  { %v5907_v24 = vpop.f32.mrf.mxu2 }
 0x5d0   :  { %v5908_v2 = vadd.f32 %v5907_v24, %v5859_v46  ;;  %v5956_v22 = vpop.f32.mrf.mxu3  ;;  %v9423_v46 = vor.u32 %v11290_v63, %v9420_v44  ;;  %v8908_v24 = vld [vmem:[#allocation8 + $0x130] sm:$0xf0]  ;;  %v9167_v44 = vor.u32 %v11226_v15, %v9164_v25 }
 0x5d1   :  { %v5812_v1 = vpop.f32.mrf.mxu0  ;;  %v8911_v26 = vor.u32 %v11162_v59, %v8908_v24  ;;  %v11282_v15 = vld [vmem:[#allocation8 + $0x4d4] sm:$0xf] }
 0x5d2   :  { %v5813_v47 = vadd.f32 %v5812_v1, %v13618_v60  ;;  %v5861_v41 = vpop.f32.mrf.mxu1  ;;  %v13635_v4 = vadd.f32 %v5956_v22, %v5908_v2  ;;  %v9679_v2 = vor.u32 %v11354_v36, %v9676_v31  ;;  %6291 = vmatpush.bf16.msra.mxu2 %v9423_v46  ;;  %6242 = vmatpush.bf16.msra.mxu1 %v9167_v44  ;;  %v9388_v25 = vld [vmem:[#allocation8 + $0x4f0] sm:$0xf0] }
 0x5d3   :  { %6007 = vmatmul.bf16.gmra.mxu0 %v15022_v21  ;;  %6056 = vmatmul.bf16.gmra.mxu1 %v15023_v57 }
 0x5d4   :  { %v5862_v52 = vadd.f32 %v5861_v41, %v5813_v47  ;;  %6105 = vmatmul.bf16.gmra.mxu2 %v15024_v43  ;;  %6193 = vmatpush.bf16.msra.mxu0 %v8911_v26  ;;  %v15027_v26 = vld [vmem:[#allocation53_spill] sm:$0xff] }
 0x5d5   :  { %6154 = vmatmul.bf16.gmra.mxu3 %v15025_v37 }
 0x5d6   :  { %6340 = vmatpush.bf16.msra.mxu3 %v9679_v2  ;;  %v15028_v2 = vld [vmem:[#allocation54_spill] sm:$0xff] }
 0x5d7   :  { %v5910_v1 = vpop.f32.mrf.mxu2 }
 0x5d8   :  { %v5911_v22 = vadd.f32 %v5910_v1, %v5862_v52  ;;  %v5959_v47 = vpop.f32.mrf.mxu3  ;;  %v15026_v1 = vld [vmem:[#allocation52_spill] sm:$0xff] }
 0x5d9   :  { %v5814_v41 = vpop.f32.mrf.mxu0 }
 0x5da   :  { %v5815_v32 = vadd.f32 %v5814_v41, %v13618_v60  ;;  %v5863_v6 = vpop.f32.mrf.mxu1  ;;  %v13642_v54 = vadd.f32 %v5959_v47, %v5911_v22  ;;  %v15029_v22 = vld [vmem:[#allocation55_spill] sm:$0xff]  ;;  %v11346_v47 = vld [vmem:[#allocation8 + $0x6d4] sm:$0xf] }
 0x5db   :  { %v9644_v41 = vld [vmem:[#allocation8 + $0x6f0] sm:$0xf0] }
 0x5dc   :  { %v5864_v63 = vadd.f32 %v5863_v6, %v5815_v32  ;;  %v11154_v6 = vld [vmem:[#allocation8 + $0xd4] sm:$0xf] }
 0x5dd   :  { %v8876_v32 = vld [vmem:[#allocation8 + $0xf0] sm:$0xf0] }
 0x5de   :  { %v8879_v44 = vor.u32 %v11154_v6, %v8876_v32 }
 0x5df   :  { %v5912_v56 = vpop.f32.mrf.mxu2 }
 0x5e0   :  { %v5913_v50 = vadd.f32 %v5912_v56, %v5864_v63  ;;  %v5961_v59 = vpop.f32.mrf.mxu3  ;;  %v9391_v56 = vor.u32 %v11282_v15, %v9388_v25  ;;  %6194 = vmatpush.bf16.msra.mxu0 %v8879_v44  ;;  %v9135_v25 = vor.u32 %v11218_v58, %v9132_v9  ;;  %v15031_v44 = vld [vmem:[#allocation57_spill] sm:$0xff] }
 0x5e1   :  { %v5817_v31 = vpop.f32.mrf.mxu0  ;;  %v11274_v58 = vld [vmem:[#allocation8 + $0x494] sm:$0xf] }
 0x5e2   :  { %v5818_v36 = vadd.f32 %v5817_v31, %v13618_v60  ;;  %v5866_v52 = vpop.f32.mrf.mxu1  ;;  %v13645_v46 = vadd.f32 %v5961_v59, %v5913_v50  ;;  %v9647_v50 = vor.u32 %v11346_v47, %v9644_v41  ;;  %6292 = vmatpush.bf16.msra.mxu2 %v9391_v56  ;;  %6243 = vmatpush.bf16.msra.mxu1 %v9135_v25  ;;  %v9356_v9 = vld [vmem:[#allocation8 + $0x4b0] sm:$0xf0] }
 0x5e3   :  { %6012 = vmatmul.bf16.gmra.mxu0 %v15026_v1  ;;  %6061 = vmatmul.bf16.gmra.mxu1 %v15027_v26 }
 0x5e4   :  { %v5867_v24 = vadd.f32 %v5866_v52, %v5818_v36  ;;  %6110 = vmatmul.bf16.gmra.mxu2 %v15028_v2  ;;  %6341 = vmatpush.bf16.msra.mxu3 %v9647_v50  ;;  %v15032_v50 = vld [vmem:[#allocation58_spill] sm:$0xff] }
 0x5e5   :  { %6159 = vmatmul.bf16.gmra.mxu3 %v15029_v22 }
 0x5e7   :  { %v5915_v63 = vpop.f32.mrf.mxu2 }
 0x5e8   :  { %v5916_v59 = vadd.f32 %v5915_v63, %v5867_v24  ;;  %v5964_v31 = vpop.f32.mrf.mxu3  ;;  %v15030_v63 = vld [vmem:[#allocation56_spill] sm:$0xff] }
 0x5e9   :  { %v5819_v36 = vpop.f32.mrf.mxu0 }
 0x5ea   :  { %v5820_v52 = vadd.f32 %v5819_v36, %v13618_v60  ;;  %v5868_v13 = vpop.f32.mrf.mxu1  ;;  %v13652_v61 = vadd.f32 %v5964_v31, %v5916_v59  ;;  %v15033_v59 = vld [vmem:[#allocation59_spill] sm:$0xff]  ;;  %v8844_v31 = vld [vmem:[#allocation8 + $0xb0] sm:$0xf0] }
 0x5eb   :  { %v11338_v36 = vld [vmem:[#allocation8 + $0x694] sm:$0xf] }
 0x5ec   :  { %v5869_v15 = vadd.f32 %v5868_v13, %v5820_v52  ;;  %v11146_v13 = vld [vmem:[#allocation8 + $0x94] sm:$0xf] }
 0x5ed   :  { %v9612_v52 = vld [vmem:[#allocation8 + $0x6b0] sm:$0xf0]  ;;  %v8847_v25 = vor.u32 %v11146_v13, %v8844_v31 }
 0x5ef   :  { %v5917_v22 = vpop.f32.mrf.mxu2  ;;  %6195 = vmatpush.bf16.msra.mxu0 %v8847_v25  ;;  %v15035_v25 = vld [vmem:[#allocation61_spill] sm:$0xff] }
 0x5f0   :  { %v5918_v2 = vadd.f32 %v5917_v22, %v5869_v15  ;;  %v5966_v6 = vpop.f32.mrf.mxu3  ;;  %v9359_v22 = vor.u32 %v11274_v58, %v9356_v9 }
 0x5f1   :  { %v5822_v32 = vpop.f32.mrf.mxu0 }
 0x5f2   :  { %v5823_v24 = vadd.f32 %v5822_v32, %v13618_v60  ;;  %v5871_v47 = vpop.f32.mrf.mxu1  ;;  %v13655_v56 = vadd.f32 %v5966_v6, %v5918_v2  ;;  %v9615_v2 = vor.u32 %v11338_v36, %v9612_v52  ;;  %6293 = vmatpush.bf16.msra.mxu2 %v9359_v22 }
 0x5f3   :  { %6017 = vmatmul.bf16.gmra.mxu0 %v15030_v63  ;;  %6066 = vmatmul.bf16.gmra.mxu1 %v15031_v44  ;;  %v9100_v63 = vld [vmem:[#allocation8 + $0x2b0] sm:$0xf0] }
 0x5f4   :  { %v5872_v41 = vadd.f32 %v5871_v47, %v5823_v24  ;;  %6115 = vmatmul.bf16.gmra.mxu2 %v15032_v50  ;;  %6342 = vmatpush.bf16.msra.mxu3 %v9615_v2  ;;  %v11210_v50 = vld [vmem:[#allocation8 + $0x294] sm:$0xf]  ;;  %v15036_v2 = vld [vmem:[#allocation62_spill] sm:$0xff] }
 0x5f5   :  { %6164 = vmatmul.bf16.gmra.mxu3 %v15033_v59  ;;  %v9103_v9 = vor.u32 %v11210_v50, %v9100_v63  ;;  %v11266_v63 = vld [vmem:[#allocation8 + $0x454] sm:$0xf] }
 0x5f6   :  { %v11138_v50 = vld [vmem:[#allocation8 + $0x54] sm:$0xf] }
 0x5f7   :  { %v5920_v15 = vpop.f32.mrf.mxu2  ;;  %6244 = vmatpush.bf16.msra.mxu1 %v9103_v9 }
 0x5f8   :  { %v5921_v6 = vadd.f32 %v5920_v15, %v5872_v41  ;;  %v5969_v32 = vpop.f32.mrf.mxu3  ;;  %v15034_v15 = vld [vmem:[#allocation60_spill] sm:$0xff] }
 0x5f9   :  { %v5824_v24 = vpop.f32.mrf.mxu0 }
 0x5fa   :  { %v5825_v47 = vadd.f32 %v5824_v24, %v13618_v60  ;;  %v5873_v44 = vpop.f32.mrf.mxu1  ;;  %v13662_v59 = vadd.f32 %v5969_v32, %v5921_v6  ;;  %v15037_v6 = vld [vmem:[#allocation63_spill] sm:$0xff]  ;;  %v8812_v32 = vld [vmem:[#allocation8 + $0x70] sm:$0xf0] }
 0x5fb   :  { %v11330_v24 = vld [vmem:[#allocation8 + $0x654] sm:$0xf]  ;;  %v8815_v9 = vor.u32 %v11138_v50, %v8812_v32 }
 0x5fc   :  { %v5874_v58 = vadd.f32 %v5873_v44, %v5825_v47  ;;  %v9324_v44 = vld [vmem:[#allocation8 + $0x470] sm:$0xf0] }
 0x5fd   :  { %v9580_v47 = vld [vmem:[#allocation8 + $0x670] sm:$0xf0]  ;;  %6196 = vmatpush.bf16.msra.mxu0 %v8815_v9 }
 0x5fe   :  { %v15039_v9 = vld [vmem:[#allocation65_spill] sm:$0xff] }
 0x5ff   :  { %v5922_v26 = vpop.f32.mrf.mxu2 }
 0x600   :  { %v5923_v1 = vadd.f32 %v5922_v26, %v5874_v58  ;;  %v5971_v13 = vpop.f32.mrf.mxu3  ;;  %v9327_v26 = vor.u32 %v11266_v63, %v9324_v44 }
 0x601   :  { %v5827_v31 = vpop.f32.mrf.mxu0 }
 0x602   :  { %v5828_v41 = vadd.f32 %v5827_v31, %v13618_v60  ;;  %v5876_v36 = vpop.f32.mrf.mxu1  ;;  %v13665_v22 = vadd.f32 %v5971_v13, %v5923_v1  ;;  %v9583_v1 = vor.u32 %v11330_v24, %v9580_v47  ;;  %6294 = vmatpush.bf16.msra.mxu2 %v9327_v26 }
 0x603   :  { %6022 = vmatmul.bf16.gmra.mxu0 %v15034_v15  ;;  %6071 = vmatmul.bf16.gmra.mxu1 %v15035_v25  ;;  %v9068_v15 = vld [vmem:[#allocation8 + $0x270] sm:$0xf0] }
 0x604   :  { %v5877_v52 = vadd.f32 %v5876_v36, %v5828_v41  ;;  %6120 = vmatmul.bf16.gmra.mxu2 %v15036_v2  ;;  %6343 = vmatpush.bf16.msra.mxu3 %v9583_v1  ;;  %v11202_v2 = vld [vmem:[#allocation8 + $0x254] sm:$0xf]  ;;  %v15040_v1 = vld [vmem:[#allocation66_spill] sm:$0xff] }
 0x605   :  { %6169 = vmatmul.bf16.gmra.mxu3 %v15037_v6  ;;  %v9071_v44 = vor.u32 %v11202_v2, %v9068_v15  ;;  %v11258_v15 = vld [vmem:[#allocation8 + $0x414] sm:$0xf] }
 0x606   :  { %v11130_v2 = vld [vmem:[#allocation8 + $0x14] sm:$0xf] }
 0x607   :  { %v5925_v58 = vpop.f32.mrf.mxu2  ;;  %6245 = vmatpush.bf16.msra.mxu1 %v9071_v44 }
 0x608   :  { %v5926_v13 = vadd.f32 %v5925_v58, %v5877_v52  ;;  %v5974_v31 = vpop.f32.mrf.mxu3  ;;  %v15038_v58 = vld [vmem:[#allocation64_spill] sm:$0xff] }
 0x609   :  { %v5829_v41 = vpop.f32.mrf.mxu0 }
 0x60a   :  { %v5830_v36 = vadd.f32 %v5829_v41, %v13618_v60  ;;  %v5878_v25 = vpop.f32.mrf.mxu1  ;;  %v13672_v6 = vadd.f32 %v5974_v31, %v5926_v13  ;;  %v15041_v13 = vld [vmem:[#allocation67_spill] sm:$0xff]  ;;  %v8780_v31 = vld [vmem:[#allocation8 + $0x30] sm:$0xf0] }
 0x60b   :  { %v11322_v41 = vld [vmem:[#allocation8 + $0x614] sm:$0xf]  ;;  %v8783_v44 = vor.u32 %v11130_v2, %v8780_v31 }
 0x60c   :  { %v5879_v63 = vadd.f32 %v5878_v25, %v5830_v36  ;;  %v9292_v25 = vld [vmem:[#allocation8 + $0x430] sm:$0xf0] }
 0x60d   :  { %v9548_v36 = vld [vmem:[#allocation8 + $0x630] sm:$0xf0]  ;;  %6197 = vmatpush.bf16.msra.mxu0 %v8783_v44 }
 0x60e   :  { %v15043_v44 = vld [vmem:[#allocation69_spill] sm:$0xff] }
 0x60f   :  { %v5927_v37 = vpop.f32.mrf.mxu2 }
 0x610   :  { %v5928_v43 = vadd.f32 %v5927_v37, %v5879_v63  ;;  %v5976_v50 = vpop.f32.mrf.mxu3  ;;  %v9295_v37 = vor.u32 %v11258_v15, %v9292_v25 }
 0x611   :  { %v5832_v32 = vpop.f32.mrf.mxu0 }
 0x612   :  { %v5833_v52 = vadd.f32 %v5832_v32, %v13618_v60  ;;  %v5881_v24 = vpop.f32.mrf.mxu1  ;;  %v13675_v26 = vadd.f32 %v5976_v50, %v5928_v43  ;;  %v9551_v43 = vor.u32 %v11322_v41, %v9548_v36  ;;  %6295 = vmatpush.bf16.msra.mxu2 %v9295_v37 }
 0x613   :  { %6027 = vmatmul.bf16.gmra.mxu0 %v15038_v58  ;;  %6076 = vmatmul.bf16.gmra.mxu1 %v15039_v9  ;;  %v9036_v58 = vld [vmem:[#allocation8 + $0x230] sm:$0xf0] }
 0x614   :  { %v5882_v47 = vadd.f32 %v5881_v24, %v5833_v52  ;;  %6125 = vmatmul.bf16.gmra.mxu2 %v15040_v1  ;;  %6344 = vmatpush.bf16.msra.mxu3 %v9551_v43  ;;  %v11194_v1 = vld [vmem:[#allocation8 + $0x214] sm:$0xf]  ;;  %v15044_v43 = vld [vmem:[#allocation70_spill] sm:$0xff] }
 0x615   :  { %6174 = vmatmul.bf16.gmra.mxu3 %v15041_v13  ;;  %v9039_v25 = vor.u32 %v11194_v1, %v9036_v58  ;;  %v11570_v58 = vld [vmem:[#allocation8 + $0xdd4] sm:$0xf] }
 0x616   :  { %v11442_v1 = vld [vmem:[#allocation8 + $0x9d4] sm:$0xf] }
 0x617   :  { %v5930_v63 = vpop.f32.mrf.mxu2  ;;  %6246 = vmatpush.bf16.msra.mxu1 %v9039_v25 }
 0x618   :  { %v5931_v50 = vadd.f32 %v5930_v63, %v5882_v47  ;;  %v5979_v32 = vpop.f32.mrf.mxu3  ;;  %v15042_v63 = vld [vmem:[#allocation68_spill] sm:$0xff] }
 0x619   :  { %v5834_v52 = vpop.f32.mrf.mxu0 }
 0x61a   :  { %v5835_v24 = vadd.f32 %v5834_v52, %v13618_v60  ;;  %v5883_v9 = vpop.f32.mrf.mxu1  ;;  %v13682_v13 = vadd.f32 %v5979_v32, %v5931_v50  ;;  %v15045_v50 = vld [vmem:[#allocation71_spill] sm:$0xff]  ;;  %v10028_v32 = vld [vmem:[#allocation8 + $0x9f0] sm:$0xf0] }
 0x61b   :  { %v11634_v52 = vld [vmem:[#allocation8 + $0xfd4] sm:$0xf]  ;;  %v10031_v25 = vor.u32 %v11442_v1, %v10028_v32 }
 0x61c   :  { %v5884_v15 = vadd.f32 %v5883_v9, %v5835_v24  ;;  %v10540_v9 = vld [vmem:[#allocation8 + $0xdf0] sm:$0xf0] }
 0x61d   :  { %v10796_v24 = vld [vmem:[#allocation8 + $0xff0] sm:$0xf0]  ;;  %6386 = vmatpush.bf16.msrb.mxu0 %v10031_v25 }
 0x61e   :  { %v15047_v25 = vld [vmem:[#allocation73_spill] sm:$0xff] }
 0x61f   :  { %v5932_v57 = vpop.f32.mrf.mxu2 }
 0x620   :  { %v5933_v21 = vadd.f32 %v5932_v57, %v5884_v15  ;;  %v5981_v2 = vpop.f32.mrf.mxu3  ;;  %v10543_v57 = vor.u32 %v11570_v58, %v10540_v9  ;;  %v10284_v58 = vld [vmem:[#allocation8 + $0xbf0] sm:$0xf0] }
 0x621   :  { %v5837_v31 = vpop.f32.mrf.mxu0 }
 0x622   :  { %v5838_v47 = vadd.f32 %v5837_v31, %v13618_v60  ;;  %v5886_v41 = vpop.f32.mrf.mxu1  ;;  %v13685_v37 = vadd.f32 %v5981_v2, %v5933_v21  ;;  %v10799_v21 = vor.u32 %v11634_v52, %v10796_v24  ;;  %6484 = vmatpush.bf16.msrb.mxu2 %v10543_v57 }
 0x623   :  { %6032 = vmatmul.bf16.gmra.mxu0 %v15042_v63  ;;  %6081 = vmatmul.bf16.gmra.mxu1 %v15043_v44  ;;  %v11506_v63 = vld [vmem:[#allocation8 + $0xbd4] sm:$0xf] }
 0x624   :  { %v5887_v36 = vadd.f32 %v5886_v41, %v5838_v47  ;;  %6130 = vmatmul.bf16.gmra.mxu2 %v15044_v43  ;;  %6533 = vmatpush.bf16.msrb.mxu3 %v10799_v21  ;;  %v10287_v9 = vor.u32 %v11506_v63, %v10284_v58  ;;  %v15048_v21 = vld [vmem:[#allocation74_spill] sm:$0xff]  ;;  %v11562_v58 = vld [vmem:[#allocation8 + $0xd94] sm:$0xf] }
 0x625   :  { %6179 = vmatmul.bf16.gmra.mxu3 %v15045_v50 }
 0x626   :  { %6435 = vmatpush.bf16.msrb.mxu1 %v10287_v9  ;;  %v10508_v9 = vld [vmem:[#allocation8 + $0xdb0] sm:$0xf0] }
 0x627   :  { %v5935_v15 = vpop.f32.mrf.mxu2 }
 0x628   :  { %v5936_v2 = vadd.f32 %v5935_v15, %v5887_v36  ;;  %v5984_v31 = vpop.f32.mrf.mxu3  ;;  %v15046_v15 = vld [vmem:[#allocation72_spill] sm:$0xff] }
 0x629   :  { %v5839_v47 = vpop.f32.mrf.mxu0 }
 0x62a   :  { %v5840_v41 = vadd.f32 %v5839_v47, %v13618_v60  ;;  %v5888_v44 = vpop.f32.mrf.mxu1  ;;  %v13692_v50 = vadd.f32 %v5984_v31, %v5936_v2 }
 0x62c   :  { %v5889_v43 = vadd.f32 %v5888_v44, %v5840_v41  ;;  %v15049_v44 = vld [vmem:[#allocation75_spill] sm:$0xff] }
 0x62f   :  { %v5937_v23 = vpop.f32.mrf.mxu2 }
 0x630   :  { %v5938_v53 = vadd.f32 %v5937_v23, %v5889_v43  ;;  %v5986_v1 = vpop.f32.mrf.mxu3 }
 0x631   :  { %v5842_v32 = vpop.f32.mrf.mxu0 }
 0x632   :  { %v5843_v36 = vadd.f32 %v5842_v32, %v13618_v60  ;;  %v5891_v52 = vpop.f32.mrf.mxu1  ;;  %v13695_v57 = vadd.f32 %v5986_v1, %v5938_v53  ;;  %v11434_v1 = vld [vmem:[#allocation8 + $0x994] sm:$0xf]  ;;  %v10511_v32 = vor.u32 %v11562_v58, %v10508_v9  ;;  %v15051_v9 = vld [vmem:[#allocation20_spill] sm:$0xff] }
 0x633   :  { %6037 = vmatmul.bf16.gmra.mxu0 %v15046_v15  ;;  %6086 = vmatmul.bf16.gmra.mxu1 %v15047_v25  ;;  %v10764_v25 = vld [vmem:[#allocation8 + $0xfb0] sm:$0xf0] }
 0x634   :  { %v5892_v24 = vadd.f32 %v5891_v52, %v5843_v36  ;;  %6135 = vmatmul.bf16.gmra.mxu2 %v15048_v21  ;;  %v9996_v36 = vld [vmem:[#allocation8 + $0x9b0] sm:$0xf0] }
 0x635   :  { %6184 = vmatmul.bf16.gmra.mxu3 %v15049_v44  ;;  %v11626_v52 = vld [vmem:[#allocation8 + $0xf94] sm:$0xf]  ;;  %v9999_v21 = vor.u32 %v11434_v1, %v9996_v36  ;;  %6485 = vmatpush.bf16.msrb.mxu2 %v10511_v32  ;;  %v15053_v1 = vld [vmem:[#allocation22_spill] sm:$0xff] }
 0x636   :  { %v10767_v15 = vor.u32 %v11626_v52, %v10764_v25  ;;  %v11498_v44 = vld [vmem:[#allocation8 + $0xb94] sm:$0xf] }
 0x637   :  { %v5940_v63 = vpop.f32.mrf.mxu2  ;;  %6387 = vmatpush.bf16.msrb.mxu0 %v9999_v21  ;;  %v15052_v25 = vld [vmem:[#allocation21_spill] sm:$0xff] }
 0x638   :  { %v5941_v2 = vadd.f32 %v5940_v63, %v5892_v24  ;;  %v5989_v31 = vpop.f32.mrf.mxu3  ;;  %v10255_v24 = vor.u32 %v11498_v44, %v10252_v42  ;;  %6534 = vmatpush.bf16.msrb.mxu3 %v10767_v15  ;;  %v15054_v42 = vld [vmem:[#allocation23_spill] sm:$0xff]  ;;  %v11554_v21 = vld [vmem:[#allocation8 + $0xd54] sm:$0xf] }
 0x639   :  { %v5844_v23 = vpop.f32.mrf.mxu0  ;;  %v10476_v15 = vld [vmem:[#allocation8 + $0xd70] sm:$0xf0] }
 0x63a   :  { %v5845_v43 = vadd.f32 %v5844_v23, %v13618_v60  ;;  %v5893_v47 = vpop.f32.mrf.mxu1  ;;  %v13702_v41 = vadd.f32 %v5989_v31, %v5941_v2  ;;  %6436 = vmatpush.bf16.msrb.mxu1 %v10255_v24  ;;  %v11426_v44 = vld [vmem:[#allocation8 + $0x954] sm:$0xf] }
 0x63b   :  { %v9964_v32 = vld [vmem:[#allocation8 + $0x970] sm:$0xf0] }
 0x63c   :  { %v5894_v53 = vadd.f32 %v5893_v47, %v5845_v43  ;;  %v11618_v36 = vld [vmem:[#allocation8 + $0xf54] sm:$0xf]  ;;  %v9967_v24 = vor.u32 %v11426_v44, %v9964_v32 }
 0x63d   :  { %v10732_v52 = vld [vmem:[#allocation8 + $0xf70] sm:$0xf0] }
 0x63e   :  { %6388 = vmatpush.bf16.msrb.mxu0 %v9967_v24 }
 0x63f   :  { %v5942_v63 = vpop.f32.mrf.mxu2 }
 0x640   :  { %v5943_v60 = vadd.f32 %v5942_v63, %v5894_v53  ;;  %v5991_v2 = vpop.f32.mrf.mxu3  ;;  %v10479_v53 = vor.u32 %v11554_v21, %v10476_v15  ;;  %v10735_v63 = vor.u32 %v11618_v36, %v10732_v52  ;;  %v9932_v52 = vld [vmem:[#allocation8 + $0x930] sm:$0xf0] }
 0x641   :  { %v6003_v31 = vpop.f32.mrf.mxu0 }
 0x642   :  { %v6004_v23 = vadd.f32 %v6003_v31, %v13630_v39  ;;  %v6052_v43 = vpop.f32.mrf.mxu1  ;;  %v13705_v47 = vadd.f32 %v5991_v2, %v5943_v60  ;;  %6486 = vmatpush.bf16.msrb.mxu2 %v10479_v53  ;;  %6535 = vmatpush.bf16.msrb.mxu3 %v10735_v63 }
 0x643   :  { %6198 = vmatmul.bf16.vlgmr.msra.gmra.mxu0 %v15051_v9  ;;  %6247 = vmatmul.bf16.vlgmr.msra.gmra.mxu1 %v15052_v25  ;;  %v11490_v25 = vld [vmem:[#allocation8 + $0xb54] sm:$0xf] }
 0x644   :  { %15050 = vst [vmem:[#allocation120_spill] sm:$0xff] %v13705_v47  ;;  %v6053_v58 = vadd.f32 %v6052_v43, %v6004_v23  ;;  %6296 = vmatmul.bf16.vlgmr.msra.gmra.mxu2 %v15053_v1  ;;  %v10220_v9 = vld [vmem:[#allocation8 + $0xb70] sm:$0xf0] }
 0x645   :  { %6345 = vmatmul.bf16.vlgmr.msra.gmra.mxu3 %v15054_v42  ;;  %v10223_v21 = vor.u32 %v11490_v25, %v10220_v9  ;;  %v10444_v9 = vld [vmem:[#allocation8 + $0xd30] sm:$0xf0] }
 0x646   :  { %v11418_v25 = vld [vmem:[#allocation8 + $0x914] sm:$0xf] }
 0x647   :  { %v6101_v39 = vpop.f32.mrf.mxu2  ;;  %6437 = vmatpush.bf16.msrb.mxu1 %v10223_v21 }
 0x648   :  { %v6102_v60 = vadd.f32 %v6101_v39, %v6053_v58  ;;  %v6150_v2 = vpop.f32.mrf.mxu3  ;;  %v11610_v39 = vld [vmem:[#allocation8 + $0xf14] sm:$0xf] }
 0x649   :  { %v6005_v31 = vpop.f32.mrf.mxu0 }
 0x64a   :  { %v6006_v23 = vadd.f32 %v6005_v31, %v13635_v4  ;;  %v6054_v43 = vpop.f32.mrf.mxu1  ;;  %v6151_v42 = vadd.f32 %v6150_v2, %v6102_v60  ;;  %v11546_v4 = vld [vmem:[#allocation8 + $0xd14] sm:$0xf] }
 0x64c   :  { %v6055_v1 = vadd.f32 %v6054_v43, %v6006_v23  ;;  %12103 = vtanh.f32 %v6151_v42 }
 0x64f   :  { %v6103_v15 = vpop.f32.mrf.mxu2 }
 0x650   :  { %v6104_v40 = vadd.f32 %v6103_v15, %v6055_v1  ;;  %v6152_v47 = vpop.f32.mrf.mxu3  ;;  %v10447_v1 = vor.u32 %v11546_v4, %v10444_v9 }
 0x651   :  { %v6008_v44 = vpop.f32.mrf.mxu0 }
 0x652   :  { %v6009_v58 = vadd.f32 %v6008_v44, %v13642_v54  ;;  %v6057_v32 = vpop.f32.mrf.mxu1  ;;  %v6153_v36 = vadd.f32 %v6152_v47, %v6104_v40  ;;  %v10700_v54 = vld [vmem:[#allocation8 + $0xf30] sm:$0xf0]  ;;  %v9935_v40 = vor.u32 %v11418_v25, %v9932_v52  ;;  %6487 = vmatpush.bf16.msrb.mxu2 %v10447_v1  ;;  %v13717_v2 = vpop.eup %12103 }
 0x653   :  { %6203 = vmatmul.bf16.gmra.mxu0 %v12612_v17  ;;  %6252 = vmatmul.bf16.gmra.mxu1 %v12615_v18  ;;  %v10703_v47 = vor.u32 %v11610_v39, %v10700_v54  ;;  %15055 = vst [vmem:[#allocation121_spill] sm:$0xff] %v13717_v2  ;;  %v11538_v54 = vld [vmem:[#allocation8 + $0xcd4] sm:$0xf]  ;;  %v9138_v2 = vld [vmem:[#allocation8 + $0x2d8] sm:$0xf] }
 0x654   :  { %v6058_v53 = vadd.f32 %v6057_v32, %v6009_v58  ;;  %12105 = vtanh.f32 %v6153_v36  ;;  %6301 = vmatmul.bf16.gmra.mxu2 %v12622_v30  ;;  %6389 = vmatpush.bf16.msrb.mxu0 %v9935_v40  ;;  %v11482_v58 = vld [vmem:[#allocation8 + $0xb14] sm:$0xf] }
 0x655   :  { %6350 = vmatmul.bf16.gmra.mxu3 %v12625_v35  ;;  %v10188_v32 = vld [vmem:[#allocation8 + $0xb30] sm:$0xf0] }
 0x656   :  { %6536 = vmatpush.bf16.msrb.mxu3 %v10703_v47  ;;  %v10191_v36 = vor.u32 %v11482_v58, %v10188_v32  ;;  %v11410_v40 = vld [vmem:[#allocation8 + $0x8d4] sm:$0xf] }
 0x657   :  { %v6106_v24 = vpop.f32.mrf.mxu2 }
 0x658   :  { %v6107_v42 = vadd.f32 %v6106_v24, %v6058_v53  ;;  %v6155_v63 = vpop.f32.mrf.mxu3  ;;  %6438 = vmatpush.bf16.msrb.mxu1 %v10191_v36  ;;  %v10412_v24 = vld [vmem:[#allocation8 + $0xcf0] sm:$0xf0] }
 0x659   :  { %v6010_v60 = vpop.f32.mrf.mxu0  ;;  %v10415_v47 = vor.u32 %v11538_v54, %v10412_v24 }
 0x65a   :  { %v6011_v31 = vadd.f32 %v6010_v60, %v13645_v46  ;;  %v6059_v23 = vpop.f32.mrf.mxu1  ;;  %v13720_v43 = vpop.eup %12105  ;;  %v6156_v21 = vadd.f32 %v6155_v63, %v6107_v42  ;;  %v9900_v42 = vld [vmem:[#allocation8 + $0x8f0] sm:$0xf0] }
 0x65b   :  { %15056 = vst [vmem:[#allocation122_spill] sm:$0xff] %v13720_v43  ;;  %v11602_v63 = vld [vmem:[#allocation8 + $0xed4] sm:$0xf]  ;;  %6488 = vmatpush.bf16.msrb.mxu2 %v10415_v47  ;;  %v11223_v43 = vld [vmem:[#allocation8 + $0x2f4] sm:$0xf0] }
 0x65c   :  { %v6060_v44 = vadd.f32 %v6059_v23, %v6011_v31  ;;  %12107 = vtanh.f32 %v6156_v21  ;;  %v9903_v31 = vor.u32 %v11410_v40, %v9900_v42 }
 0x65e   :  { %6390 = vmatpush.bf16.msrb.mxu0 %v9903_v31  ;;  %v10380_v31 = vld [vmem:[#allocation8 + $0xcb0] sm:$0xf0] }
 0x65f   :  { %v6108_v53 = vpop.f32.mrf.mxu2 }
 0x660   :  { %v6109_v4 = vadd.f32 %v6108_v53, %v6060_v44  ;;  %v6157_v9 = vpop.f32.mrf.mxu3 }
 0x661   :  { %v6013_v25 = vpop.f32.mrf.mxu0 }
 0x662   :  { %v6014_v46 = vadd.f32 %v6013_v25, %v13652_v61  ;;  %v6062_v1 = vpop.f32.mrf.mxu1  ;;  %v6158_v52 = vadd.f32 %v6157_v9, %v6109_v4  ;;  %v10668_v61 = vld [vmem:[#allocation8 + $0xef0] sm:$0xf0]  ;;  %v13729_v32 = vpop.eup %12107 }
 0x663   :  { %6208 = vmatmul.bf16.gmra.mxu0 %v12632_v5  ;;  %6257 = vmatmul.bf16.gmra.mxu1 %v12635_v7  ;;  %v10671_v23 = vor.u32 %v11602_v63, %v10668_v61  ;;  %15057 = vst [vmem:[#allocation123_spill] sm:$0xff] %v13729_v32 }
 0x664   :  { %v6063_v39 = vadd.f32 %v6062_v1, %v6014_v46  ;;  %12109 = vtanh.f32 %v6158_v52  ;;  %6306 = vmatmul.bf16.gmra.mxu2 %v12642_v20  ;;  %v11474_v1 = vld [vmem:[#allocation8 + $0xad4] sm:$0xf] }
 0x665   :  { %6355 = vmatmul.bf16.gmra.mxu3 %v14842_v48  ;;  %v10156_v52 = vld [vmem:[#allocation8 + $0xaf0] sm:$0xf0] }
 0x666   :  { %6537 = vmatpush.bf16.msrb.mxu3 %v10671_v23  ;;  %v11402_v23 = vld [vmem:[#allocation8 + $0x894] sm:$0xf] }
 0x667   :  { %v6111_v60 = vpop.f32.mrf.mxu2 }
 0x668   :  { %v6112_v21 = vadd.f32 %v6111_v60, %v6063_v39  ;;  %v6160_v44 = vpop.f32.mrf.mxu3  ;;  %v10159_v39 = vor.u32 %v11474_v1, %v10156_v52  ;;  %v11530_v60 = vld [vmem:[#allocation8 + $0xc94] sm:$0xf] }
 0x669   :  { %v6015_v58 = vpop.f32.mrf.mxu0 }
 0x66a   :  { %v6016_v36 = vadd.f32 %v6015_v58, %v13655_v56  ;;  %v6064_v53 = vpop.f32.mrf.mxu1  ;;  %v13732_v4 = vpop.eup %12109  ;;  %v6161_v9 = vadd.f32 %v6160_v44, %v6112_v21  ;;  %6439 = vmatpush.bf16.msrb.mxu1 %v10159_v39  ;;  %v10383_v21 = vor.u32 %v11530_v60, %v10380_v31  ;;  %v9868_v44 = vld [vmem:[#allocation8 + $0x8b0] sm:$0xf0] }
 0x66b   :  { %15058 = vst [vmem:[#allocation124_spill] sm:$0xff] %v13732_v4  ;;  %v11594_v58 = vld [vmem:[#allocation8 + $0xe94] sm:$0xf] }
 0x66c   :  { %v6065_v25 = vadd.f32 %v6064_v53, %v6016_v36  ;;  %12111 = vtanh.f32 %v6161_v9  ;;  %v9871_v53 = vor.u32 %v11402_v23, %v9868_v44  ;;  %6489 = vmatpush.bf16.msrb.mxu2 %v10383_v21  ;;  %v10124_v60 = vld [vmem:[#allocation8 + $0xab0] sm:$0xf0] }
 0x66e   :  { %6391 = vmatpush.bf16.msrb.mxu0 %v9871_v53  ;;  %v11522_v53 = vld [vmem:[#allocation8 + $0xc54] sm:$0xf] }
 0x66f   :  { %v6113_v54 = vpop.f32.mrf.mxu2 }
 0x670   :  { %v6114_v24 = vadd.f32 %v6113_v54, %v6065_v25  ;;  %v6162_v40 = vpop.f32.mrf.mxu3 }
 0x671   :  { %v6018_v47 = vpop.f32.mrf.mxu0 }
 0x672   :  { %v6019_v56 = vadd.f32 %v6018_v47, %v13662_v59  ;;  %v6067_v42 = vpop.f32.mrf.mxu1  ;;  %v6163_v63 = vadd.f32 %v6162_v40, %v6114_v24  ;;  %v10636_v59 = vld [vmem:[#allocation8 + $0xeb0] sm:$0xf0]  ;;  %v13741_v39 = vpop.eup %12111 }
 0x673   :  { %6213 = vmatmul.bf16.gmra.mxu0 %v14845_v3  ;;  %6262 = vmatmul.bf16.gmra.mxu1 %v14846_v38  ;;  %v10639_v9 = vor.u32 %v11594_v58, %v10636_v59  ;;  %15059 = vst [vmem:[#allocation125_spill] sm:$0xff] %v13741_v39 }
 0x674   :  { %v6068_v61 = vadd.f32 %v6067_v42, %v6019_v56  ;;  %12113 = vtanh.f32 %v6163_v63  ;;  %6311 = vmatmul.bf16.gmra.mxu2 %v14847_v34  ;;  %v11466_v63 = vld [vmem:[#allocation8 + $0xa94] sm:$0xf] }
 0x675   :  { %6360 = vmatmul.bf16.gmra.mxu3 %v14848_v27 }
 0x676   :  { %6538 = vmatpush.bf16.msrb.mxu3 %v10639_v9  ;;  %v10348_v9 = vld [vmem:[#allocation8 + $0xc70] sm:$0xf0] }
 0x677   :  { %v6116_v36 = vpop.f32.mrf.mxu2 }
 0x678   :  { %v6117_v25 = vadd.f32 %v6116_v36, %v6068_v61  ;;  %v6165_v1 = vpop.f32.mrf.mxu3  ;;  %v10127_v61 = vor.u32 %v11466_v63, %v10124_v60 }
 0x679   :  { %v6020_v52 = vpop.f32.mrf.mxu0 }
 0x67a   :  { %v6021_v54 = vadd.f32 %v6020_v52, %v13665_v22  ;;  %v6069_v24 = vpop.f32.mrf.mxu1  ;;  %v13744_v40 = vpop.eup %12113  ;;  %v6166_v47 = vadd.f32 %v6165_v1, %v6117_v25  ;;  %6440 = vmatpush.bf16.msrb.mxu1 %v10127_v61  ;;  %v11394_v25 = vld [vmem:[#allocation8 + $0x854] sm:$0xf]  ;;  %v10351_v1 = vor.u32 %v11522_v53, %v10348_v9 }
 0x67b   :  { %15060 = vst [vmem:[#allocation126_spill] sm:$0xff] %v13744_v40  ;;  %v9836_v52 = vld [vmem:[#allocation8 + $0x870] sm:$0xf0] }
 0x67c   :  { %v6070_v56 = vadd.f32 %v6069_v24, %v6021_v54  ;;  %12115 = vtanh.f32 %v6166_v47  ;;  %v11586_v54 = vld [vmem:[#allocation8 + $0xe54] sm:$0xf]  ;;  %6490 = vmatpush.bf16.msrb.mxu2 %v10351_v1 }
 0x67d   :  { %v11458_v53 = vld [vmem:[#allocation8 + $0xa54] sm:$0xf] }
 0x67e   :  { %v10092_v9 = vld [vmem:[#allocation8 + $0xa70] sm:$0xf0] }
 0x67f   :  { %v6118_v31 = vpop.f32.mrf.mxu2 }
 0x680   :  { %v6119_v23 = vadd.f32 %v6118_v31, %v6070_v56  ;;  %v6167_v21 = vpop.f32.mrf.mxu3  ;;  %v9839_v56 = vor.u32 %v11394_v25, %v9836_v52 }
 0x681   :  { %v6023_v44 = vpop.f32.mrf.mxu0 }
 0x682   :  { %v6024_v22 = vadd.f32 %v6023_v44, %v13672_v6  ;;  %v6072_v58 = vpop.f32.mrf.mxu1  ;;  %v6168_v59 = vadd.f32 %v6167_v21, %v6119_v23  ;;  %v10604_v6 = vld [vmem:[#allocation8 + $0xe70] sm:$0xf0]  ;;  %v13753_v31 = vpop.eup %12115  ;;  %6392 = vmatpush.bf16.msrb.mxu0 %v9839_v56 }
 0x683   :  { %6218 = vmatmul.bf16.gmra.mxu0 %v14851_v19  ;;  %6267 = vmatmul.bf16.gmra.mxu1 %v14852_v49  ;;  %v10607_v47 = vor.u32 %v11586_v54, %v10604_v6  ;;  %15061 = vst [vmem:[#allocation127_spill] sm:$0xff] %v13753_v31  ;;  %v9170_v31 = vld [vmem:[#allocation8 + $0x318] sm:$0xf] }
 0x684   :  { %v6073_v36 = vadd.f32 %v6072_v58, %v6024_v22  ;;  %12117 = vtanh.f32 %v6168_v59  ;;  %6316 = vmatmul.bf16.gmra.mxu2 %v14853_v0 }
 0x685   :  { %6365 = vmatmul.bf16.gmra.mxu3 %v14854_v8 }
 0x686   :  { %6539 = vmatpush.bf16.msrb.mxu3 %v10607_v47  ;;  %v11514_v47 = vld [vmem:[#allocation8 + $0xc14] sm:$0xf] }
 0x687   :  { %v6121_v24 = vpop.f32.mrf.mxu2 }
 0x688   :  { %v6122_v63 = vadd.f32 %v6121_v24, %v6073_v36  ;;  %v6170_v60 = vpop.f32.mrf.mxu3  ;;  %v10095_v36 = vor.u32 %v11458_v53, %v10092_v9 }
 0x689   :  { %v6025_v61 = vpop.f32.mrf.mxu0 }
 0x68a   :  { %v6026_v23 = vadd.f32 %v6025_v61, %v13675_v26  ;;  %v6074_v21 = vpop.f32.mrf.mxu1  ;;  %v13756_v44 = vpop.eup %12117  ;;  %v6171_v22 = vadd.f32 %v6170_v60, %v6122_v63  ;;  %6441 = vmatpush.bf16.msrb.mxu1 %v10095_v36  ;;  %v10316_v63 = vld [vmem:[#allocation8 + $0xc30] sm:$0xf0] }
 0x68b   :  { %15062 = vst [vmem:[#allocation128_spill] sm:$0xff] %v13756_v44  ;;  %v11386_v60 = vld [vmem:[#allocation8 + $0x814] sm:$0xf]  ;;  %v10319_v61 = vor.u32 %v11514_v47, %v10316_v63  ;;  %v11231_v44 = vld [vmem:[#allocation8 + $0x334] sm:$0xf0] }
 0x68c   :  { %v6075_v58 = vadd.f32 %v6074_v21, %v6026_v23  ;;  %12119 = vtanh.f32 %v6171_v22  ;;  %v9804_v23 = vld [vmem:[#allocation8 + $0x830] sm:$0xf0] }
 0x68d   :  { %v11578_v21 = vld [vmem:[#allocation8 + $0xe14] sm:$0xf]  ;;  %v9807_v53 = vor.u32 %v11386_v60, %v9804_v23  ;;  %6491 = vmatpush.bf16.msrb.mxu2 %v10319_v61 }
 0x68e   :  { %v11450_v63 = vld [vmem:[#allocation8 + $0xa14] sm:$0xf] }
 0x68f   :  { %v6123_v25 = vpop.f32.mrf.mxu2  ;;  %6393 = vmatpush.bf16.msrb.mxu0 %v9807_v53  ;;  %v10060_v60 = vld [vmem:[#allocation8 + $0xa30] sm:$0xf0] }
 0x690   :  { %v6124_v1 = vadd.f32 %v6123_v25, %v6075_v58  ;;  %v6172_v52 = vpop.f32.mrf.mxu3 }
 0x691   :  { %v6028_v54 = vpop.f32.mrf.mxu0 }
 0x692   :  { %v6029_v26 = vadd.f32 %v6028_v54, %v13682_v13  ;;  %v6077_v6 = vpop.f32.mrf.mxu1  ;;  %v6173_v24 = vadd.f32 %v6172_v52, %v6124_v1  ;;  %v10572_v13 = vld [vmem:[#allocation8 + $0xe30] sm:$0xf0]  ;;  %v13765_v1 = vpop.eup %12119 }
 0x693   :  { %6223 = vmatmul.bf16.gmra.mxu0 %v14857_v29  ;;  %6272 = vmatmul.bf16.gmra.mxu1 %v14858_v10  ;;  %v10575_v22 = vor.u32 %v11578_v21, %v10572_v13  ;;  %15063 = vst [vmem:[#allocation129_spill] sm:$0xff] %v13765_v1 }
 0x694   :  { %v6078_v56 = vadd.f32 %v6077_v6, %v6029_v26  ;;  %12121 = vtanh.f32 %v6173_v24  ;;  %6321 = vmatmul.bf16.gmra.mxu2 %v14859_v28 }
 0x695   :  { %6370 = vmatmul.bf16.gmra.mxu3 %v14901_v33 }
 0x696   :  { %6540 = vmatpush.bf16.msrb.mxu3 %v10575_v22 }
 0x697   :  { %v6126_v58 = vpop.f32.mrf.mxu2 }
 0x698   :  { %v6127_v9 = vadd.f32 %v6126_v58, %v6078_v56  ;;  %v6175_v36 = vpop.f32.mrf.mxu3  ;;  %v10063_v56 = vor.u32 %v11450_v63, %v10060_v60 }
 0x699   :  { %v6030_v25 = vpop.f32.mrf.mxu0 }
 0x69a   :  { %v6031_v52 = vadd.f32 %v6030_v25, %v13685_v37  ;;  %v6079_v54 = vpop.f32.mrf.mxu1  ;;  %v13768_v26 = vpop.eup %12121  ;;  %v6176_v6 = vadd.f32 %v6175_v36, %v6127_v9  ;;  %6442 = vmatpush.bf16.msrb.mxu1 %v10063_v56  ;;  %v9522_v9 = vld [vmem:[#allocation8 + $0x5d8] sm:$0xf] }
 0x69b   :  { %15064 = vst [vmem:[#allocation130_spill] sm:$0xff] %v13768_v26  ;;  %v11319_v36 = vld [vmem:[#allocation8 + $0x5f4] sm:$0xf0] }
 0x69c   :  { %v6080_v24 = vadd.f32 %v6079_v54, %v6031_v52  ;;  %12123 = vtanh.f32 %v6176_v6  ;;  %v9010_v25 = vld [vmem:[#allocation8 + $0x1d8] sm:$0xf]  ;;  %v9523_v52 = vor.u32 %v11319_v36, %v9522_v9 }
 0x69d   :  { %v11191_v54 = vld [vmem:[#allocation8 + $0x1f4] sm:$0xf0] }
 0x69e   :  { %v9011_v60 = vor.u32 %v11191_v54, %v9010_v25  ;;  %6680 = vmatpush.bf16.msra.mxu2 %v9523_v52  ;;  %v9266_v9 = vld [vmem:[#allocation8 + $0x3d8] sm:$0xf] }
 0x69f   :  { %v6128_v23 = vpop.f32.mrf.mxu2  ;;  %v11255_v36 = vld [vmem:[#allocation8 + $0x3f4] sm:$0xf0] }
 0x6a0   :  { %v6129_v61 = vadd.f32 %v6128_v23, %v6080_v24  ;;  %v6177_v21 = vpop.f32.mrf.mxu3  ;;  %v9778_v24 = vld [vmem:[#allocation8 + $0x7d8] sm:$0xf]  ;;  %6582 = vmatpush.bf16.msra.mxu0 %v9011_v60  ;;  %v9267_v59 = vor.u32 %v11255_v36, %v9266_v9 }
 0x6a1   :  { %v6033_v13 = vpop.f32.mrf.mxu0 }
 0x6a2   :  { %v6034_v37 = vadd.f32 %v6033_v13, %v13692_v50  ;;  %v6082_v58 = vpop.f32.mrf.mxu1  ;;  %v6178_v53 = vadd.f32 %v6177_v21, %v6129_v61  ;;  %v11383_v50 = vld [vmem:[#allocation8 + $0x7f4] sm:$0xf0]  ;;  %v13777_v21 = vpop.eup %12123  ;;  %6631 = vmatpush.bf16.msra.mxu1 %v9267_v59 }
 0x6a3   :  { %6228 = vmatmul.bf16.gmra.mxu0 %v14863_v16  ;;  %6277 = vmatmul.bf16.gmra.mxu1 %v14904_v55  ;;  %v9779_v6 = vor.u32 %v11383_v50, %v9778_v24  ;;  %15065 = vst [vmem:[#allocation131_spill] sm:$0xff] %v13777_v21  ;;  %v9490_v59 = vld [vmem:[#allocation8 + $0x598] sm:$0xf] }
 0x6a4   :  { %v6083_v22 = vadd.f32 %v6082_v58, %v6034_v37  ;;  %12125 = vtanh.f32 %v6178_v53  ;;  %6326 = vmatmul.bf16.gmra.mxu2 %v14905_v62 }
 0x6a5   :  { %6375 = vmatmul.bf16.gmra.mxu3 %v14906_v11 }
 0x6a6   :  { %6729 = vmatpush.bf16.msra.mxu3 %v9779_v6  ;;  %v11311_v6 = vld [vmem:[#allocation8 + $0x5b4] sm:$0xf0] }
 0x6a7   :  { %v6131_v63 = vpop.f32.mrf.mxu2 }
 0x6a8   :  { %v6132_v56 = vadd.f32 %v6131_v63, %v6083_v22  ;;  %v6180_v23 = vpop.f32.mrf.mxu3 }
 0x6a9   :  { %v6035_v61 = vpop.f32.mrf.mxu0 }
 0x6aa   :  { %v6036_v13 = vadd.f32 %v6035_v61, %v13695_v57  ;;  %v6084_v37 = vpop.f32.mrf.mxu1  ;;  %v13780_v58 = vpop.eup %12125  ;;  %v6181_v53 = vadd.f32 %v6180_v23, %v6132_v56  ;;  %v9491_v56 = vor.u32 %v11311_v6, %v9490_v59  ;;  %v11183_v23 = vld [vmem:[#allocation8 + $0x1b4] sm:$0xf0] }
 0x6ab   :  { %15066 = vst [vmem:[#allocation132_spill] sm:$0xff] %v13780_v58  ;;  %v9746_v61 = vld [vmem:[#allocation8 + $0x798] sm:$0xf] }
 0x6ac   :  { %v6085_v47 = vadd.f32 %v6084_v37, %v6036_v13  ;;  %12127 = vtanh.f32 %v6181_v53  ;;  %6681 = vmatpush.bf16.msra.mxu2 %v9491_v56  ;;  %v9234_v59 = vld [vmem:[#allocation8 + $0x398] sm:$0xf] }
 0x6ad   :  { %v11247_v6 = vld [vmem:[#allocation8 + $0x3b4] sm:$0xf0] }
 0x6ae   :  { %v9235_v42 = vor.u32 %v11247_v6, %v9234_v59  ;;  %v11303_v59 = vld [vmem:[#allocation8 + $0x574] sm:$0xf0] }
 0x6af   :  { %v6133_v25 = vpop.f32.mrf.mxu2 }
 0x6b0   :  { %v6134_v52 = vadd.f32 %v6133_v25, %v6085_v47  ;;  %v6182_v54 = vpop.f32.mrf.mxu3  ;;  %v8978_v47 = vld [vmem:[#allocation8 + $0x198] sm:$0xf]  ;;  %6632 = vmatpush.bf16.msra.mxu1 %v9235_v42 }
 0x6b1   :  { %v6038_v24 = vpop.f32.mrf.mxu0  ;;  %v8979_v37 = vor.u32 %v11183_v23, %v8978_v47  ;;  %v12235_v47 = vld [vmem:[#allocation10] sm:$0xff]  ;;  %v9458_v42 = vld [vmem:[#allocation8 + $0x558] sm:$0xf] }
 0x6b2   :  { %v6039_v57 = vadd.f32 %v6038_v24, %v13702_v41  ;;  %v6087_v50 = vpop.f32.mrf.mxu1  ;;  %v6183_v63 = vadd.f32 %v6182_v54, %v6134_v52  ;;  %v11375_v41 = vld [vmem:[#allocation8 + $0x7b4] sm:$0xf0]  ;;  %v13789_v52 = vpop.eup %12127  ;;  %v15068_v54 = vld [vmem:[#allocation120_spill] sm:$0xff]  ;;  %v13796_v23 = vperm.slane %v12235_v47, 5  ;;  %v9459_v6 = vor.u32 %v11303_v59, %v9458_v42 }
 0x6b3   :  { %6233 = vmatmul.bf16.gmra.mxu0 %v12735_v12  ;;  %6282 = vmatmul.bf16.gmra.mxu1 %v14869_v45  ;;  %v9747_v53 = vor.u32 %v11375_v41, %v9746_v61  ;;  %15067 = vst [vmem:[#allocation133_spill] sm:$0xff] %v13789_v52  ;;  %v11175_v47 = vld [vmem:[#allocation8 + $0x174] sm:$0xf0] }
 0x6b4   :  { %v6088_v60 = vadd.f32 %v6087_v50, %v6039_v57  ;;  %12129 = vtanh.f32 %v6183_v63  ;;  %6331 = vmatmul.bf16.gmra.mxu2 %v14870_v51  ;;  %6583 = vmatpush.bf16.msra.mxu0 %v8979_v37  ;;  %v9202_v59 = vld [vmem:[#allocation8 + $0x358] sm:$0xf] }
 0x6b5   :  { %6380 = vmatmul.bf16.gmra.mxu3 %v14909_v14  ;;  %6682 = vmatpush.bf16.msra.mxu2 %v9459_v6 }
 0x6b6   :  { %6730 = vmatpush.bf16.msra.mxu3 %v9747_v53 }
 0x6b7   :  { %v6136_v13 = vpop.f32.mrf.mxu2 }
 0x6b8   :  { %v6137_v9 = vadd.f32 %v6136_v13, %v6088_v60  ;;  %v6185_v36 = vpop.f32.mrf.mxu3 }
 0x6b9   :  { %v6040_v25 = vpop.f32.mrf.mxu0 }
 0x6ba   :  { %v6041_v24 = vadd.f32 %v6040_v25, %v15068_v54  ;;  %v6089_v57 = vpop.f32.mrf.mxu1  ;;  %v13792_v50 = vpop.eup %12129  ;;  %v6186_v63 = vadd.f32 %v6185_v36, %v6137_v9  ;;  %v15070_v36 = vld [vmem:[#allocation44_spill] sm:$0xff]  ;;  %v15071_v54 = vld [vmem:[#allocation45_spill] sm:$0xff] }
 0x6bb   :  { %15069 = vst [vmem:[#allocation120_spill] sm:$0xff] %v13792_v50  ;;  %v11239_v50 = vld [vmem:[#allocation8 + $0x374] sm:$0xf0] }
 0x6bc   :  { %v6090_v22 = vadd.f32 %v6089_v57, %v6041_v24  ;;  %12131 = vtanh.f32 %v6186_v63  ;;  %v15072_v24 = vld [vmem:[#allocation46_spill] sm:$0xff]  ;;  %v15073_v57 = vld [vmem:[#allocation47_spill] sm:$0xff] }
 0x6bf   :  { %v6138_v56 = vpop.f32.mrf.mxu2 }
 0x6c0   :  { %v6139_v61 = vadd.f32 %v6138_v56, %v6090_v22  ;;  %v6187_v41 = vpop.f32.mrf.mxu3  ;;  %v8946_v22 = vld [vmem:[#allocation8 + $0x158] sm:$0xf] }
 0x6c1   :  { %v6199_v13 = vpop.f32.mrf.mxu0  ;;  %v9714_v56 = vld [vmem:[#allocation8 + $0x758] sm:$0xf] }
 0x6c2   :  { %v6200_v37 = vadd.f32 %v6199_v13, %v13796_v23  ;;  %v6248_v53 = vpop.f32.mrf.mxu1  ;;  %v6188_v25 = vadd.f32 %v6187_v41, %v6139_v61  ;;  %v11367_v13 = vld [vmem:[#allocation8 + $0x774] sm:$0xf0]  ;;  %v8947_v61 = vor.u32 %v11175_v47, %v8946_v22  ;;  %v9203_v22 = vor.u32 %v11239_v50, %v9202_v59 }
 0x6c3   :  { %6394 = vmatmul.bf16.vlgmr.msrb.gmra.mxu0 %v15070_v36  ;;  %6443 = vmatmul.bf16.vlgmr.msrb.gmra.mxu1 %v15071_v54  ;;  %v9715_v63 = vor.u32 %v11367_v13, %v9714_v56  ;;  %v9426_v50 = vld [vmem:[#allocation8 + $0x518] sm:$0xf] }
 0x6c4   :  { %v6249_v9 = vadd.f32 %v6248_v53, %v6200_v37  ;;  %12133 = vtanh.f32 %v6188_v25  ;;  %6492 = vmatmul.bf16.vlgmr.msrb.gmra.mxu2 %v15072_v24  ;;  %v13803_v25 = vpop.eup %12131  ;;  %6584 = vmatpush.bf16.msra.mxu0 %v8947_v61  ;;  %v11295_v59 = vld [vmem:[#allocation8 + $0x534] sm:$0xf0] }
 0x6c5   :  { %6541 = vmatmul.bf16.vlgmr.msrb.gmra.mxu3 %v15073_v57  ;;  %15074 = vst [vmem:[#allocation134_spill] sm:$0xff] %v13803_v25  ;;  %6633 = vmatpush.bf16.msra.mxu1 %v9203_v22  ;;  %v8914_v22 = vld [vmem:[#allocation8 + $0x118] sm:$0xf] }
 0x6c6   :  { %6731 = vmatpush.bf16.msra.mxu3 %v9715_v63  ;;  %v11359_v25 = vld [vmem:[#allocation8 + $0x734] sm:$0xf0] }
 0x6c7   :  { %v6297_v60 = vpop.f32.mrf.mxu2  ;;  %v11503_v54 = vld [vmem:[#allocation8 + $0xbb4] sm:$0xf0] }
 0x6c8   :  { %v6298_v41 = vadd.f32 %v6297_v60, %v6249_v9  ;;  %v6346_v37 = vpop.f32.mrf.mxu3  ;;  %v9682_v60 = vld [vmem:[#allocation8 + $0x718] sm:$0xf] }
 0x6c9   :  { %v6201_v53 = vpop.f32.mrf.mxu0 }
 0x6ca   :  { %v6202_v46 = vadd.f32 %v6201_v53, %v13796_v23  ;;  %v6250_v15 = vpop.f32.mrf.mxu1  ;;  %v13806_v52 = vpop.eup %12133  ;;  %v13808_v42 = vadd.f32 %v6346_v37, %v6298_v41  ;;  %v15076_v41 = vld [vmem:[#allocation48_spill] sm:$0xff]  ;;  %v15077_v37 = vld [vmem:[#allocation49_spill] sm:$0xff] }
 0x6cb   :  { %15075 = vst [vmem:[#allocation135_spill] sm:$0xff] %v13806_v52 }
 0x6cc   :  { %v6251_v21 = vadd.f32 %v6250_v15, %v6202_v46  ;;  %v15078_v15 = vld [vmem:[#allocation50_spill] sm:$0xff]  ;;  %v15079_v46 = vld [vmem:[#allocation51_spill] sm:$0xff] }
 0x6cf   :  { %v6299_v9 = vpop.f32.mrf.mxu2 }
 0x6d0   :  { %v6300_v6 = vadd.f32 %v6299_v9, %v6251_v21  ;;  %v6348_v47 = vpop.f32.mrf.mxu3  ;;  %v9427_v21 = vor.u32 %v11295_v59, %v9426_v50  ;;  %v11167_v9 = vld [vmem:[#allocation8 + $0x134] sm:$0xf0]  ;;  %v9171_v59 = vor.u32 %v11231_v44, %v9170_v31 }
 0x6d1   :  { %v6204_v56 = vpop.f32.mrf.mxu0  ;;  %v8915_v52 = vor.u32 %v11167_v9, %v8914_v22  ;;  %v9394_v31 = vld [vmem:[#allocation8 + $0x4d8] sm:$0xf] }
 0x6d2   :  { %v6205_v13 = vadd.f32 %v6204_v56, %v13796_v23  ;;  %v6253_v61 = vpop.f32.mrf.mxu1  ;;  %v13813_v63 = vadd.f32 %v6348_v47, %v6300_v6  ;;  %v9683_v6 = vor.u32 %v11359_v25, %v9682_v60  ;;  %6683 = vmatpush.bf16.msra.mxu2 %v9427_v21  ;;  %6634 = vmatpush.bf16.msra.mxu1 %v9171_v59  ;;  %v11287_v44 = vld [vmem:[#allocation8 + $0x4f4] sm:$0xf0] }
 0x6d3   :  { %6399 = vmatmul.bf16.gmra.mxu0 %v15076_v41  ;;  %6448 = vmatmul.bf16.gmra.mxu1 %v15077_v37 }
 0x6d4   :  { %v6254_v53 = vadd.f32 %v6253_v61, %v6205_v13  ;;  %6497 = vmatmul.bf16.gmra.mxu2 %v15078_v15  ;;  %6585 = vmatpush.bf16.msra.mxu0 %v8915_v52  ;;  %v15081_v52 = vld [vmem:[#allocation53_spill] sm:$0xff] }
 0x6d5   :  { %6546 = vmatmul.bf16.gmra.mxu3 %v15079_v46 }
 0x6d6   :  { %6732 = vmatpush.bf16.msra.mxu3 %v9683_v6  ;;  %v15082_v6 = vld [vmem:[#allocation54_spill] sm:$0xff] }
 0x6d7   :  { %v6302_v56 = vpop.f32.mrf.mxu2 }
 0x6d8   :  { %v6303_v47 = vadd.f32 %v6302_v56, %v6254_v53  ;;  %v6351_v13 = vpop.f32.mrf.mxu3  ;;  %v15080_v56 = vld [vmem:[#allocation52_spill] sm:$0xff] }
 0x6d9   :  { %v6206_v61 = vpop.f32.mrf.mxu0 }
 0x6da   :  { %v6207_v58 = vadd.f32 %v6206_v61, %v13796_v23  ;;  %v6255_v1 = vpop.f32.mrf.mxu1  ;;  %v13820_v26 = vadd.f32 %v6351_v13, %v6303_v47  ;;  %v15083_v47 = vld [vmem:[#allocation55_spill] sm:$0xff]  ;;  %v9650_v13 = vld [vmem:[#allocation8 + $0x6d8] sm:$0xf] }
 0x6db   :  { %v11351_v61 = vld [vmem:[#allocation8 + $0x6f4] sm:$0xf0] }
 0x6dc   :  { %v6256_v50 = vadd.f32 %v6255_v1, %v6207_v58  ;;  %v8882_v1 = vld [vmem:[#allocation8 + $0xd8] sm:$0xf] }
 0x6dd   :  { %v11159_v58 = vld [vmem:[#allocation8 + $0xf4] sm:$0xf0] }
 0x6de   :  { %v8883_v59 = vor.u32 %v11159_v58, %v8882_v1 }
 0x6df   :  { %v6304_v39 = vpop.f32.mrf.mxu2 }
 0x6e0   :  { %v6305_v40 = vadd.f32 %v6304_v39, %v6256_v50  ;;  %v6353_v22 = vpop.f32.mrf.mxu3  ;;  %v9395_v39 = vor.u32 %v11287_v44, %v9394_v31  ;;  %6586 = vmatpush.bf16.msra.mxu0 %v8883_v59  ;;  %v9139_v44 = vor.u32 %v11223_v43, %v9138_v2  ;;  %v15085_v59 = vld [vmem:[#allocation57_spill] sm:$0xff] }
 0x6e1   :  { %v6209_v25 = vpop.f32.mrf.mxu0  ;;  %v9362_v2 = vld [vmem:[#allocation8 + $0x498] sm:$0xf] }
 0x6e2   :  { %v6210_v60 = vadd.f32 %v6209_v25, %v13796_v23  ;;  %v6258_v53 = vpop.f32.mrf.mxu1  ;;  %v13823_v21 = vadd.f32 %v6353_v22, %v6305_v40  ;;  %v9651_v40 = vor.u32 %v11351_v61, %v9650_v13  ;;  %6684 = vmatpush.bf16.msra.mxu2 %v9395_v39  ;;  %6635 = vmatpush.bf16.msra.mxu1 %v9139_v44  ;;  %v11279_v43 = vld [vmem:[#allocation8 + $0x4b4] sm:$0xf0] }
 0x6e3   :  { %6404 = vmatmul.bf16.gmra.mxu0 %v15080_v56  ;;  %6453 = vmatmul.bf16.gmra.mxu1 %v15081_v52 }
 0x6e4   :  { %v6259_v9 = vadd.f32 %v6258_v53, %v6210_v60  ;;  %6502 = vmatmul.bf16.gmra.mxu2 %v15082_v6  ;;  %6733 = vmatpush.bf16.msra.mxu3 %v9651_v40  ;;  %v15086_v40 = vld [vmem:[#allocation58_spill] sm:$0xff] }
 0x6e5   :  { %6551 = vmatmul.bf16.gmra.mxu3 %v15083_v47 }
 0x6e7   :  { %v6307_v50 = vpop.f32.mrf.mxu2 }
 0x6e8   :  { %v6308_v22 = vadd.f32 %v6307_v50, %v6259_v9  ;;  %v6356_v25 = vpop.f32.mrf.mxu3  ;;  %v15084_v50 = vld [vmem:[#allocation56_spill] sm:$0xff] }
 0x6e9   :  { %v6211_v60 = vpop.f32.mrf.mxu0 }
 0x6ea   :  { %v6212_v53 = vadd.f32 %v6211_v60, %v13796_v23  ;;  %v6260_v32 = vpop.f32.mrf.mxu1  ;;  %v13830_v4 = vadd.f32 %v6356_v25, %v6308_v22  ;;  %v15087_v22 = vld [vmem:[#allocation59_spill] sm:$0xff]  ;;  %v11151_v25 = vld [vmem:[#allocation8 + $0xb4] sm:$0xf0] }
 0x6eb   :  { %v9618_v60 = vld [vmem:[#allocation8 + $0x698] sm:$0xf] }
 0x6ec   :  { %v6261_v31 = vadd.f32 %v6260_v32, %v6212_v53  ;;  %v8850_v32 = vld [vmem:[#allocation8 + $0x98] sm:$0xf] }
 0x6ed   :  { %v11343_v53 = vld [vmem:[#allocation8 + $0x6b4] sm:$0xf0]  ;;  %v8851_v44 = vor.u32 %v11151_v25, %v8850_v32 }
 0x6ef   :  { %v6309_v47 = vpop.f32.mrf.mxu2  ;;  %6587 = vmatpush.bf16.msra.mxu0 %v8851_v44  ;;  %v15089_v44 = vld [vmem:[#allocation61_spill] sm:$0xff] }
 0x6f0   :  { %v6310_v6 = vadd.f32 %v6309_v47, %v6261_v31  ;;  %v6358_v1 = vpop.f32.mrf.mxu3  ;;  %v9363_v47 = vor.u32 %v11279_v43, %v9362_v2 }
 0x6f1   :  { %v6214_v58 = vpop.f32.mrf.mxu0 }
 0x6f2   :  { %v6215_v9 = vadd.f32 %v6214_v58, %v13796_v23  ;;  %v6263_v13 = vpop.f32.mrf.mxu1  ;;  %v13833_v39 = vadd.f32 %v6358_v1, %v6310_v6  ;;  %v9619_v6 = vor.u32 %v11343_v53, %v9618_v60  ;;  %6685 = vmatpush.bf16.msra.mxu2 %v9363_v47 }
 0x6f3   :  { %6409 = vmatmul.bf16.gmra.mxu0 %v15084_v50  ;;  %6458 = vmatmul.bf16.gmra.mxu1 %v15085_v59  ;;  %v11215_v50 = vld [vmem:[#allocation8 + $0x2b4] sm:$0xf0] }
 0x6f4   :  { %v6264_v61 = vadd.f32 %v6263_v13, %v6215_v9  ;;  %6507 = vmatmul.bf16.gmra.mxu2 %v15086_v40  ;;  %6734 = vmatpush.bf16.msra.mxu3 %v9619_v6  ;;  %v9106_v40 = vld [vmem:[#allocation8 + $0x298] sm:$0xf] }
 0x6f5   :  { %6556 = vmatmul.bf16.gmra.mxu3 %v15087_v22  ;;  %v9107_v43 = vor.u32 %v11215_v50, %v9106_v40  ;;  %v15090_v6 = vld [vmem:[#allocation62_spill] sm:$0xff] }
 0x6f6   :  { %v9330_v50 = vld [vmem:[#allocation8 + $0x458] sm:$0xf] }
 0x6f7   :  { %v6312_v31 = vpop.f32.mrf.mxu2  ;;  %6636 = vmatpush.bf16.msra.mxu1 %v9107_v43  ;;  %v8818_v40 = vld [vmem:[#allocation8 + $0x58] sm:$0xf] }
 0x6f8   :  { %v6313_v1 = vadd.f32 %v6312_v31, %v6264_v61  ;;  %v6361_v58 = vpop.f32.mrf.mxu3  ;;  %v15088_v31 = vld [vmem:[#allocation60_spill] sm:$0xff] }
 0x6f9   :  { %v6216_v9 = vpop.f32.mrf.mxu0 }
 0x6fa   :  { %v6217_v13 = vadd.f32 %v6216_v9, %v13796_v23  ;;  %v6265_v59 = vpop.f32.mrf.mxu1  ;;  %v13840_v22 = vadd.f32 %v6361_v58, %v6313_v1  ;;  %v15091_v1 = vld [vmem:[#allocation63_spill] sm:$0xff]  ;;  %v11143_v58 = vld [vmem:[#allocation8 + $0x74] sm:$0xf0] }
 0x6fb   :  { %v9586_v9 = vld [vmem:[#allocation8 + $0x658] sm:$0xf]  ;;  %v8819_v43 = vor.u32 %v11143_v58, %v8818_v40 }
 0x6fc   :  { %v6266_v2 = vadd.f32 %v6265_v59, %v6217_v13  ;;  %v11271_v59 = vld [vmem:[#allocation8 + $0x474] sm:$0xf0] }
 0x6fd   :  { %v11335_v13 = vld [vmem:[#allocation8 + $0x674] sm:$0xf0]  ;;  %6588 = vmatpush.bf16.msra.mxu0 %v8819_v43 }
 0x6fe   :  { %v15093_v43 = vld [vmem:[#allocation65_spill] sm:$0xff] }
 0x6ff   :  { %v6314_v52 = vpop.f32.mrf.mxu2 }
 0x700   :  { %v6315_v56 = vadd.f32 %v6314_v52, %v6266_v2  ;;  %v6363_v32 = vpop.f32.mrf.mxu3  ;;  %v9331_v52 = vor.u32 %v11271_v59, %v9330_v50 }
 0x701   :  { %v6219_v25 = vpop.f32.mrf.mxu0 }
 0x702   :  { %v6220_v61 = vadd.f32 %v6219_v25, %v13796_v23  ;;  %v6268_v60 = vpop.f32.mrf.mxu1  ;;  %v13843_v47 = vadd.f32 %v6363_v32, %v6315_v56  ;;  %v9587_v56 = vor.u32 %v11335_v13, %v9586_v9  ;;  %6686 = vmatpush.bf16.msra.mxu2 %v9331_v52 }
 0x703   :  { %6414 = vmatmul.bf16.gmra.mxu0 %v15088_v31  ;;  %6463 = vmatmul.bf16.gmra.mxu1 %v15089_v44  ;;  %v11207_v31 = vld [vmem:[#allocation8 + $0x274] sm:$0xf0] }
 0x704   :  { %v6269_v53 = vadd.f32 %v6268_v60, %v6220_v61  ;;  %6512 = vmatmul.bf16.gmra.mxu2 %v15090_v6  ;;  %6735 = vmatpush.bf16.msra.mxu3 %v9587_v56  ;;  %v9074_v6 = vld [vmem:[#allocation8 + $0x258] sm:$0xf] }
 0x705   :  { %6561 = vmatmul.bf16.gmra.mxu3 %v15091_v1  ;;  %v9075_v59 = vor.u32 %v11207_v31, %v9074_v6  ;;  %v15094_v56 = vld [vmem:[#allocation66_spill] sm:$0xff] }
 0x706   :  { %v9298_v31 = vld [vmem:[#allocation8 + $0x418] sm:$0xf] }
 0x707   :  { %v6317_v2 = vpop.f32.mrf.mxu2  ;;  %6637 = vmatpush.bf16.msra.mxu1 %v9075_v59  ;;  %v8786_v6 = vld [vmem:[#allocation8 + $0x18] sm:$0xf] }
 0x708   :  { %v6318_v32 = vadd.f32 %v6317_v2, %v6269_v53  ;;  %v6366_v25 = vpop.f32.mrf.mxu3  ;;  %v15092_v2 = vld [vmem:[#allocation64_spill] sm:$0xff] }
 0x709   :  { %v6221_v61 = vpop.f32.mrf.mxu0 }
 0x70a   :  { %v6222_v60 = vadd.f32 %v6221_v61, %v13796_v23  ;;  %v6270_v44 = vpop.f32.mrf.mxu1  ;;  %v13850_v1 = vadd.f32 %v6366_v25, %v6318_v32  ;;  %v15095_v32 = vld [vmem:[#allocation67_spill] sm:$0xff]  ;;  %v11135_v25 = vld [vmem:[#allocation8 + $0x34] sm:$0xf0] }
 0x70b   :  { %v9554_v61 = vld [vmem:[#allocation8 + $0x618] sm:$0xf]  ;;  %v8787_v59 = vor.u32 %v11135_v25, %v8786_v6 }
 0x70c   :  { %v6271_v50 = vadd.f32 %v6270_v44, %v6222_v60  ;;  %v11263_v44 = vld [vmem:[#allocation8 + $0x434] sm:$0xf0] }
 0x70d   :  { %v11327_v60 = vld [vmem:[#allocation8 + $0x634] sm:$0xf0]  ;;  %6589 = vmatpush.bf16.msra.mxu0 %v8787_v59 }
 0x70e   :  { %v15097_v59 = vld [vmem:[#allocation69_spill] sm:$0xff] }
 0x70f   :  { %v6319_v46 = vpop.f32.mrf.mxu2 }
 0x710   :  { %v6320_v15 = vadd.f32 %v6319_v46, %v6271_v50  ;;  %v6368_v40 = vpop.f32.mrf.mxu3  ;;  %v9299_v46 = vor.u32 %v11263_v44, %v9298_v31 }
 0x711   :  { %v6224_v58 = vpop.f32.mrf.mxu0 }
 0x712   :  { %v6225_v53 = vadd.f32 %v6224_v58, %v13796_v23  ;;  %v6273_v9 = vpop.f32.mrf.mxu1  ;;  %v13853_v52 = vadd.f32 %v6368_v40, %v6320_v15  ;;  %v9555_v15 = vor.u32 %v11327_v60, %v9554_v61  ;;  %6687 = vmatpush.bf16.msra.mxu2 %v9299_v46 }
 0x713   :  { %6419 = vmatmul.bf16.gmra.mxu0 %v15092_v2  ;;  %6468 = vmatmul.bf16.gmra.mxu1 %v15093_v43  ;;  %v11199_v2 = vld [vmem:[#allocation8 + $0x234] sm:$0xf0] }
 0x714   :  { %v6274_v13 = vadd.f32 %v6273_v9, %v6225_v53  ;;  %6517 = vmatmul.bf16.gmra.mxu2 %v15094_v56  ;;  %6736 = vmatpush.bf16.msra.mxu3 %v9555_v15  ;;  %v9042_v56 = vld [vmem:[#allocation8 + $0x218] sm:$0xf] }
 0x715   :  { %6566 = vmatmul.bf16.gmra.mxu3 %v15095_v32  ;;  %v9043_v44 = vor.u32 %v11199_v2, %v9042_v56  ;;  %v15098_v15 = vld [vmem:[#allocation70_spill] sm:$0xff] }
 0x716   :  { %v10546_v2 = vld [vmem:[#allocation8 + $0xdd8] sm:$0xf] }
 0x717   :  { %v6322_v50 = vpop.f32.mrf.mxu2  ;;  %6638 = vmatpush.bf16.msra.mxu1 %v9043_v44  ;;  %v10034_v56 = vld [vmem:[#allocation8 + $0x9d8] sm:$0xf] }
 0x718   :  { %v6323_v40 = vadd.f32 %v6322_v50, %v6274_v13  ;;  %v6371_v58 = vpop.f32.mrf.mxu3  ;;  %v15096_v50 = vld [vmem:[#allocation68_spill] sm:$0xff] }
 0x719   :  { %v6226_v53 = vpop.f32.mrf.mxu0 }
 0x71a   :  { %v6227_v9 = vadd.f32 %v6226_v53, %v13796_v23  ;;  %v6275_v43 = vpop.f32.mrf.mxu1  ;;  %v13860_v32 = vadd.f32 %v6371_v58, %v6323_v40  ;;  %v15099_v40 = vld [vmem:[#allocation71_spill] sm:$0xff]  ;;  %v11447_v58 = vld [vmem:[#allocation8 + $0x9f4] sm:$0xf0] }
 0x71b   :  { %v10802_v53 = vld [vmem:[#allocation8 + $0xfd8] sm:$0xf]  ;;  %v10035_v44 = vor.u32 %v11447_v58, %v10034_v56 }
 0x71c   :  { %v6276_v31 = vadd.f32 %v6275_v43, %v6227_v9  ;;  %v11575_v43 = vld [vmem:[#allocation8 + $0xdf4] sm:$0xf0] }
 0x71d   :  { %v11639_v9 = vld [vmem:[#allocation8 + $0xff4] sm:$0xf0]  ;;  %6778 = vmatpush.bf16.msrb.mxu0 %v10035_v44 }
 0x71e   :  { %v15101_v44 = vld [vmem:[#allocation73_spill] sm:$0xff] }
 0x71f   :  { %v6324_v37 = vpop.f32.mrf.mxu2 }
 0x720   :  { %v6325_v41 = vadd.f32 %v6324_v37, %v6276_v31  ;;  %v6373_v6 = vpop.f32.mrf.mxu3  ;;  %v10547_v37 = vor.u32 %v11575_v43, %v10546_v2  ;;  %v11511_v2 = vld [vmem:[#allocation8 + $0xbf4] sm:$0xf0] }
 0x721   :  { %v6229_v25 = vpop.f32.mrf.mxu0 }
 0x722   :  { %v6230_v13 = vadd.f32 %v6229_v25, %v13796_v23  ;;  %v6278_v61 = vpop.f32.mrf.mxu1  ;;  %v13863_v46 = vadd.f32 %v6373_v6, %v6325_v41  ;;  %v10803_v41 = vor.u32 %v11639_v9, %v10802_v53  ;;  %6876 = vmatpush.bf16.msrb.mxu2 %v10547_v37 }
 0x723   :  { %6424 = vmatmul.bf16.gmra.mxu0 %v15096_v50  ;;  %6473 = vmatmul.bf16.gmra.mxu1 %v15097_v59  ;;  %v10290_v50 = vld [vmem:[#allocation8 + $0xbd8] sm:$0xf] }
 0x724   :  { %v6279_v60 = vadd.f32 %v6278_v61, %v6230_v13  ;;  %6522 = vmatmul.bf16.gmra.mxu2 %v15098_v15  ;;  %6925 = vmatpush.bf16.msrb.mxu3 %v10803_v41  ;;  %v10291_v43 = vor.u32 %v11511_v2, %v10290_v50  ;;  %v15102_v41 = vld [vmem:[#allocation74_spill] sm:$0xff] }
 0x725   :  { %6571 = vmatmul.bf16.gmra.mxu3 %v15099_v40  ;;  %v10514_v2 = vld [vmem:[#allocation8 + $0xd98] sm:$0xf] }
 0x726   :  { %6827 = vmatpush.bf16.msrb.mxu1 %v10291_v43  ;;  %v11567_v43 = vld [vmem:[#allocation8 + $0xdb4] sm:$0xf0] }
 0x727   :  { %v6327_v31 = vpop.f32.mrf.mxu2 }
 0x728   :  { %v6328_v6 = vadd.f32 %v6327_v31, %v6279_v60  ;;  %v6376_v25 = vpop.f32.mrf.mxu3  ;;  %v15100_v31 = vld [vmem:[#allocation72_spill] sm:$0xff] }
 0x729   :  { %v6231_v13 = vpop.f32.mrf.mxu0 }
 0x72a   :  { %v6232_v61 = vadd.f32 %v6231_v13, %v13796_v23  ;;  %v6280_v59 = vpop.f32.mrf.mxu1  ;;  %v13870_v40 = vadd.f32 %v6376_v25, %v6328_v6 }
 0x72c   :  { %v6281_v15 = vadd.f32 %v6280_v59, %v6232_v61  ;;  %v15103_v59 = vld [vmem:[#allocation75_spill] sm:$0xff] }
 0x72f   :  { %v6329_v57 = vpop.f32.mrf.mxu2 }
 0x730   :  { %v6330_v24 = vadd.f32 %v6329_v57, %v6281_v15  ;;  %v6378_v56 = vpop.f32.mrf.mxu3 }
 0x731   :  { %v6234_v58 = vpop.f32.mrf.mxu0 }
 0x732   :  { %v6235_v60 = vadd.f32 %v6234_v58, %v13796_v23  ;;  %v6283_v53 = vpop.f32.mrf.mxu1  ;;  %v13873_v37 = vadd.f32 %v6378_v56, %v6330_v24  ;;  %v10002_v56 = vld [vmem:[#allocation8 + $0x998] sm:$0xf]  ;;  %v10515_v58 = vor.u32 %v11567_v43, %v10514_v2  ;;  %v15105_v43 = vld [vmem:[#allocation20_spill] sm:$0xff] }
 0x733   :  { %6429 = vmatmul.bf16.gmra.mxu0 %v15100_v31  ;;  %6478 = vmatmul.bf16.gmra.mxu1 %v15101_v44  ;;  %v11631_v44 = vld [vmem:[#allocation8 + $0xfb4] sm:$0xf0] }
 0x734   :  { %v6284_v9 = vadd.f32 %v6283_v53, %v6235_v60  ;;  %6527 = vmatmul.bf16.gmra.mxu2 %v15102_v41  ;;  %v11439_v60 = vld [vmem:[#allocation8 + $0x9b4] sm:$0xf0] }
 0x735   :  { %6576 = vmatmul.bf16.gmra.mxu3 %v15103_v59  ;;  %v10770_v53 = vld [vmem:[#allocation8 + $0xf98] sm:$0xf]  ;;  %v10003_v41 = vor.u32 %v11439_v60, %v10002_v56  ;;  %6877 = vmatpush.bf16.msrb.mxu2 %v10515_v58 }
 0x736   :  { %v10771_v31 = vor.u32 %v11631_v44, %v10770_v53  ;;  %v10258_v59 = vld [vmem:[#allocation8 + $0xb98] sm:$0xf] }
 0x737   :  { %v6332_v50 = vpop.f32.mrf.mxu2  ;;  %6779 = vmatpush.bf16.msrb.mxu0 %v10003_v41  ;;  %v15106_v44 = vld [vmem:[#allocation21_spill] sm:$0xff]  ;;  %v15107_v56 = vld [vmem:[#allocation22_spill] sm:$0xff] }
 0x738   :  { %v6333_v6 = vadd.f32 %v6332_v50, %v6284_v9  ;;  %v6381_v25 = vpop.f32.mrf.mxu3  ;;  %v10259_v9 = vor.u32 %v11503_v54, %v10258_v59  ;;  %6926 = vmatpush.bf16.msrb.mxu3 %v10771_v31  ;;  %v15108_v54 = vld [vmem:[#allocation23_spill] sm:$0xff]  ;;  %v10482_v41 = vld [vmem:[#allocation8 + $0xd58] sm:$0xf] }
 0x739   :  { %v6236_v57 = vpop.f32.mrf.mxu0  ;;  %v11559_v31 = vld [vmem:[#allocation8 + $0xd74] sm:$0xf0] }
 0x73a   :  { %v6237_v15 = vadd.f32 %v6236_v57, %v13796_v23  ;;  %v6285_v13 = vpop.f32.mrf.mxu1  ;;  %v13880_v61 = vadd.f32 %v6381_v25, %v6333_v6  ;;  %6828 = vmatpush.bf16.msrb.mxu1 %v10259_v9  ;;  %v9970_v59 = vld [vmem:[#allocation8 + $0x958] sm:$0xf] }
 0x73b   :  { %v11431_v58 = vld [vmem:[#allocation8 + $0x974] sm:$0xf0] }
 0x73c   :  { %v6286_v24 = vadd.f32 %v6285_v13, %v6237_v15  ;;  %v10738_v60 = vld [vmem:[#allocation8 + $0xf58] sm:$0xf]  ;;  %v9971_v9 = vor.u32 %v11431_v58, %v9970_v59 }
 0x73d   :  { %v11623_v53 = vld [vmem:[#allocation8 + $0xf74] sm:$0xf0] }
 0x73e   :  { %6780 = vmatpush.bf16.msrb.mxu0 %v9971_v9 }
 0x73f   :  { %v6334_v50 = vpop.f32.mrf.mxu2 }
 0x740   :  { %v6335_v23 = vadd.f32 %v6334_v50, %v6286_v24  ;;  %v6383_v6 = vpop.f32.mrf.mxu3  ;;  %v10483_v24 = vor.u32 %v11559_v31, %v10482_v41  ;;  %v10739_v50 = vor.u32 %v11623_v53, %v10738_v60  ;;  %v11423_v53 = vld [vmem:[#allocation8 + $0x934] sm:$0xf0] }
 0x741   :  { %v6395_v25 = vpop.f32.mrf.mxu0 }
 0x742   :  { %v6396_v57 = vadd.f32 %v6395_v25, %v13808_v42  ;;  %v6444_v15 = vpop.f32.mrf.mxu1  ;;  %v13883_v13 = vadd.f32 %v6383_v6, %v6335_v23  ;;  %6878 = vmatpush.bf16.msrb.mxu2 %v10483_v24  ;;  %6927 = vmatpush.bf16.msrb.mxu3 %v10739_v50 }
 0x743   :  { %6590 = vmatmul.bf16.vlgmr.msra.gmra.mxu0 %v15105_v43  ;;  %6639 = vmatmul.bf16.vlgmr.msra.gmra.mxu1 %v15106_v44  ;;  %v10226_v44 = vld [vmem:[#allocation8 + $0xb58] sm:$0xf] }
 0x744   :  { %15104 = vst [vmem:[#allocation136_spill] sm:$0xff] %v13883_v13  ;;  %v6445_v2 = vadd.f32 %v6444_v15, %v6396_v57  ;;  %6688 = vmatmul.bf16.vlgmr.msra.gmra.mxu2 %v15107_v56  ;;  %v11495_v43 = vld [vmem:[#allocation8 + $0xb74] sm:$0xf0] }
 0x745   :  { %6737 = vmatmul.bf16.vlgmr.msra.gmra.mxu3 %v15108_v54  ;;  %v10227_v41 = vor.u32 %v11495_v43, %v10226_v44  ;;  %v11551_v43 = vld [vmem:[#allocation8 + $0xd34] sm:$0xf0] }
 0x746   :  { %v9938_v44 = vld [vmem:[#allocation8 + $0x918] sm:$0xf] }
 0x747   :  { %v6493_v42 = vpop.f32.mrf.mxu2  ;;  %6829 = vmatpush.bf16.msrb.mxu1 %v10227_v41 }
 0x748   :  { %v6494_v23 = vadd.f32 %v6493_v42, %v6445_v2  ;;  %v6542_v6 = vpop.f32.mrf.mxu3  ;;  %v10706_v42 = vld [vmem:[#allocation8 + $0xf18] sm:$0xf] }
 0x749   :  { %v6397_v25 = vpop.f32.mrf.mxu0 }
 0x74a   :  { %v6398_v57 = vadd.f32 %v6397_v25, %v13813_v63  ;;  %v6446_v15 = vpop.f32.mrf.mxu1  ;;  %v6543_v54 = vadd.f32 %v6542_v6, %v6494_v23  ;;  %v10450_v63 = vld [vmem:[#allocation8 + $0xd18] sm:$0xf] }
 0x74c   :  { %v6447_v56 = vadd.f32 %v6446_v15, %v6398_v57  ;;  %12135 = vtanh.f32 %v6543_v54 }
 0x74f   :  { %v6495_v31 = vpop.f32.mrf.mxu2 }
 0x750   :  { %v6496_v36 = vadd.f32 %v6495_v31, %v6447_v56  ;;  %v6544_v13 = vpop.f32.mrf.mxu3  ;;  %v10451_v56 = vor.u32 %v11551_v43, %v10450_v63 }
 0x751   :  { %v6400_v59 = vpop.f32.mrf.mxu0 }
 0x752   :  { %v6401_v2 = vadd.f32 %v6400_v59, %v13820_v26  ;;  %v6449_v58 = vpop.f32.mrf.mxu1  ;;  %v6545_v60 = vadd.f32 %v6544_v13, %v6496_v36  ;;  %v11615_v26 = vld [vmem:[#allocation8 + $0xf34] sm:$0xf0]  ;;  %v9939_v36 = vor.u32 %v11423_v53, %v9938_v44  ;;  %6879 = vmatpush.bf16.msrb.mxu2 %v10451_v56  ;;  %v13895_v6 = vpop.eup %12135 }
 0x753   :  { %6595 = vmatmul.bf16.gmra.mxu0 %v12612_v17  ;;  %6644 = vmatmul.bf16.gmra.mxu1 %v12615_v18  ;;  %v10707_v13 = vor.u32 %v11615_v26, %v10706_v42  ;;  %15109 = vst [vmem:[#allocation137_spill] sm:$0xff] %v13895_v6  ;;  %v10418_v26 = vld [vmem:[#allocation8 + $0xcd8] sm:$0xf]  ;;  %v11219_v6 = vld [vmem:[#allocation8 + $0x2dc] sm:$0xf] }
 0x754   :  { %v6450_v24 = vadd.f32 %v6449_v58, %v6401_v2  ;;  %12137 = vtanh.f32 %v6545_v60  ;;  %6693 = vmatmul.bf16.gmra.mxu2 %v12622_v30  ;;  %6781 = vmatpush.bf16.msrb.mxu0 %v9939_v36  ;;  %v10194_v2 = vld [vmem:[#allocation8 + $0xb18] sm:$0xf] }
 0x755   :  { %6742 = vmatmul.bf16.gmra.mxu3 %v12625_v35  ;;  %v11487_v58 = vld [vmem:[#allocation8 + $0xb34] sm:$0xf0] }
 0x756   :  { %6928 = vmatpush.bf16.msrb.mxu3 %v10707_v13  ;;  %v10195_v60 = vor.u32 %v11487_v58, %v10194_v2  ;;  %v9906_v36 = vld [vmem:[#allocation8 + $0x8d8] sm:$0xf] }
 0x757   :  { %v6498_v9 = vpop.f32.mrf.mxu2 }
 0x758   :  { %v6499_v54 = vadd.f32 %v6498_v9, %v6450_v24  ;;  %v6547_v50 = vpop.f32.mrf.mxu3  ;;  %6830 = vmatpush.bf16.msrb.mxu1 %v10195_v60  ;;  %v11543_v9 = vld [vmem:[#allocation8 + $0xcf4] sm:$0xf0] }
 0x759   :  { %v6402_v23 = vpop.f32.mrf.mxu0  ;;  %v10419_v13 = vor.u32 %v11543_v9, %v10418_v26 }
 0x75a   :  { %v6403_v25 = vadd.f32 %v6402_v23, %v13823_v21  ;;  %v6451_v57 = vpop.f32.mrf.mxu1  ;;  %v13898_v15 = vpop.eup %12137  ;;  %v6548_v41 = vadd.f32 %v6547_v50, %v6499_v54  ;;  %v11415_v54 = vld [vmem:[#allocation8 + $0x8f4] sm:$0xf0] }
 0x75b   :  { %15110 = vst [vmem:[#allocation138_spill] sm:$0xff] %v13898_v15  ;;  %v10674_v50 = vld [vmem:[#allocation8 + $0xed8] sm:$0xf]  ;;  %6880 = vmatpush.bf16.msrb.mxu2 %v10419_v13  ;;  %v9140_v15 = vld [vmem:[#allocation8 + $0x2f8] sm:$0xf0] }
 0x75c   :  { %v6452_v59 = vadd.f32 %v6451_v57, %v6403_v25  ;;  %12139 = vtanh.f32 %v6548_v41  ;;  %v9907_v25 = vor.u32 %v11415_v54, %v9906_v36 }
 0x75e   :  { %6782 = vmatpush.bf16.msrb.mxu0 %v9907_v25  ;;  %v11535_v25 = vld [vmem:[#allocation8 + $0xcb4] sm:$0xf0] }
 0x75f   :  { %v6500_v24 = vpop.f32.mrf.mxu2 }
 0x760   :  { %v6501_v63 = vadd.f32 %v6500_v24, %v6452_v59  ;;  %v6549_v43 = vpop.f32.mrf.mxu3 }
 0x761   :  { %v6405_v44 = vpop.f32.mrf.mxu0 }
 0x762   :  { %v6406_v21 = vadd.f32 %v6405_v44, %v13830_v4  ;;  %v6454_v56 = vpop.f32.mrf.mxu1  ;;  %v6550_v53 = vadd.f32 %v6549_v43, %v6501_v63  ;;  %v11607_v4 = vld [vmem:[#allocation8 + $0xef4] sm:$0xf0]  ;;  %v13907_v58 = vpop.eup %12139 }
 0x763   :  { %6600 = vmatmul.bf16.gmra.mxu0 %v12632_v5  ;;  %6649 = vmatmul.bf16.gmra.mxu1 %v12635_v7  ;;  %v10675_v57 = vor.u32 %v11607_v4, %v10674_v50  ;;  %15111 = vst [vmem:[#allocation139_spill] sm:$0xff] %v13907_v58 }
 0x764   :  { %v6455_v42 = vadd.f32 %v6454_v56, %v6406_v21  ;;  %12141 = vtanh.f32 %v6550_v53  ;;  %6698 = vmatmul.bf16.gmra.mxu2 %v12642_v20  ;;  %v10162_v56 = vld [vmem:[#allocation8 + $0xad8] sm:$0xf] }
 0x765   :  { %6747 = vmatmul.bf16.gmra.mxu3 %v14842_v48  ;;  %v11479_v53 = vld [vmem:[#allocation8 + $0xaf4] sm:$0xf0] }
 0x766   :  { %6929 = vmatpush.bf16.msrb.mxu3 %v10675_v57  ;;  %v9874_v57 = vld [vmem:[#allocation8 + $0x898] sm:$0xf] }
 0x767   :  { %v6503_v23 = vpop.f32.mrf.mxu2 }
 0x768   :  { %v6504_v41 = vadd.f32 %v6503_v23, %v6455_v42  ;;  %v6552_v59 = vpop.f32.mrf.mxu3  ;;  %v10163_v42 = vor.u32 %v11479_v53, %v10162_v56  ;;  %v10386_v23 = vld [vmem:[#allocation8 + $0xc98] sm:$0xf] }
 0x769   :  { %v6407_v2 = vpop.f32.mrf.mxu0 }
 0x76a   :  { %v6408_v60 = vadd.f32 %v6407_v2, %v13833_v39  ;;  %v6456_v24 = vpop.f32.mrf.mxu1  ;;  %v13910_v63 = vpop.eup %12141  ;;  %v6553_v43 = vadd.f32 %v6552_v59, %v6504_v41  ;;  %6831 = vmatpush.bf16.msrb.mxu1 %v10163_v42  ;;  %v10387_v41 = vor.u32 %v11535_v25, %v10386_v23  ;;  %v11407_v59 = vld [vmem:[#allocation8 + $0x8b4] sm:$0xf0] }
 0x76b   :  { %15112 = vst [vmem:[#allocation140_spill] sm:$0xff] %v13910_v63  ;;  %v10642_v2 = vld [vmem:[#allocation8 + $0xe98] sm:$0xf] }
 0x76c   :  { %v6457_v44 = vadd.f32 %v6456_v24, %v6408_v60  ;;  %12143 = vtanh.f32 %v6553_v43  ;;  %v9875_v24 = vor.u32 %v11407_v59, %v9874_v57  ;;  %6881 = vmatpush.bf16.msrb.mxu2 %v10387_v41  ;;  %v11471_v23 = vld [vmem:[#allocation8 + $0xab4] sm:$0xf0] }
 0x76e   :  { %6783 = vmatpush.bf16.msrb.mxu0 %v9875_v24  ;;  %v10354_v24 = vld [vmem:[#allocation8 + $0xc58] sm:$0xf] }
 0x76f   :  { %v6505_v26 = vpop.f32.mrf.mxu2 }
 0x770   :  { %v6506_v9 = vadd.f32 %v6505_v26, %v6457_v44  ;;  %v6554_v36 = vpop.f32.mrf.mxu3 }
 0x771   :  { %v6410_v13 = vpop.f32.mrf.mxu0 }
 0x772   :  { %v6411_v39 = vadd.f32 %v6410_v13, %v13840_v22  ;;  %v6459_v54 = vpop.f32.mrf.mxu1  ;;  %v6555_v50 = vadd.f32 %v6554_v36, %v6506_v9  ;;  %v11599_v22 = vld [vmem:[#allocation8 + $0xeb4] sm:$0xf0]  ;;  %v13919_v42 = vpop.eup %12143 }
 0x773   :  { %6605 = vmatmul.bf16.gmra.mxu0 %v14845_v3  ;;  %6654 = vmatmul.bf16.gmra.mxu1 %v14846_v38  ;;  %v10643_v43 = vor.u32 %v11599_v22, %v10642_v2  ;;  %15113 = vst [vmem:[#allocation141_spill] sm:$0xff] %v13919_v42 }
 0x774   :  { %v6460_v4 = vadd.f32 %v6459_v54, %v6411_v39  ;;  %12145 = vtanh.f32 %v6555_v50  ;;  %6703 = vmatmul.bf16.gmra.mxu2 %v14847_v34  ;;  %v10130_v50 = vld [vmem:[#allocation8 + $0xa98] sm:$0xf] }
 0x775   :  { %6752 = vmatmul.bf16.gmra.mxu3 %v14848_v27 }
 0x776   :  { %6930 = vmatpush.bf16.msrb.mxu3 %v10643_v43  ;;  %v11527_v43 = vld [vmem:[#allocation8 + $0xc74] sm:$0xf0] }
 0x777   :  { %v6508_v60 = vpop.f32.mrf.mxu2 }
 0x778   :  { %v6509_v44 = vadd.f32 %v6508_v60, %v6460_v4  ;;  %v6557_v56 = vpop.f32.mrf.mxu3  ;;  %v10131_v4 = vor.u32 %v11471_v23, %v10130_v50 }
 0x779   :  { %v6412_v53 = vpop.f32.mrf.mxu0 }
 0x77a   :  { %v6413_v26 = vadd.f32 %v6412_v53, %v13843_v47  ;;  %v6461_v9 = vpop.f32.mrf.mxu1  ;;  %v13922_v36 = vpop.eup %12145  ;;  %v6558_v13 = vadd.f32 %v6557_v56, %v6509_v44  ;;  %6832 = vmatpush.bf16.msrb.mxu1 %v10131_v4  ;;  %v9842_v44 = vld [vmem:[#allocation8 + $0x858] sm:$0xf]  ;;  %v10355_v56 = vor.u32 %v11527_v43, %v10354_v24 }
 0x77b   :  { %15114 = vst [vmem:[#allocation142_spill] sm:$0xff] %v13922_v36  ;;  %v11399_v53 = vld [vmem:[#allocation8 + $0x874] sm:$0xf0] }
 0x77c   :  { %v6462_v39 = vadd.f32 %v6461_v9, %v6413_v26  ;;  %12147 = vtanh.f32 %v6558_v13  ;;  %v10610_v26 = vld [vmem:[#allocation8 + $0xe58] sm:$0xf]  ;;  %6882 = vmatpush.bf16.msrb.mxu2 %v10355_v56 }
 0x77d   :  { %v10098_v24 = vld [vmem:[#allocation8 + $0xa58] sm:$0xf] }
 0x77e   :  { %v11463_v43 = vld [vmem:[#allocation8 + $0xa74] sm:$0xf0] }
 0x77f   :  { %v6510_v25 = vpop.f32.mrf.mxu2 }
 0x780   :  { %v6511_v57 = vadd.f32 %v6510_v25, %v6462_v39  ;;  %v6559_v41 = vpop.f32.mrf.mxu3  ;;  %v9843_v39 = vor.u32 %v11399_v53, %v9842_v44 }
 0x781   :  { %v6415_v59 = vpop.f32.mrf.mxu0 }
 0x782   :  { %v6416_v47 = vadd.f32 %v6415_v59, %v13850_v1  ;;  %v6464_v2 = vpop.f32.mrf.mxu1  ;;  %v6560_v22 = vadd.f32 %v6559_v41, %v6511_v57  ;;  %v11591_v1 = vld [vmem:[#allocation8 + $0xe74] sm:$0xf0]  ;;  %v13931_v25 = vpop.eup %12147  ;;  %6784 = vmatpush.bf16.msrb.mxu0 %v9843_v39 }
 0x783   :  { %6610 = vmatmul.bf16.gmra.mxu0 %v14851_v19  ;;  %6659 = vmatmul.bf16.gmra.mxu1 %v14852_v49  ;;  %v10611_v13 = vor.u32 %v11591_v1, %v10610_v26  ;;  %15115 = vst [vmem:[#allocation143_spill] sm:$0xff] %v13931_v25  ;;  %v11227_v25 = vld [vmem:[#allocation8 + $0x31c] sm:$0xf] }
 0x784   :  { %v6465_v60 = vadd.f32 %v6464_v2, %v6416_v47  ;;  %12149 = vtanh.f32 %v6560_v22  ;;  %6708 = vmatmul.bf16.gmra.mxu2 %v14853_v0 }
 0x785   :  { %6757 = vmatmul.bf16.gmra.mxu3 %v14854_v8 }
 0x786   :  { %6931 = vmatpush.bf16.msrb.mxu3 %v10611_v13  ;;  %v10322_v13 = vld [vmem:[#allocation8 + $0xc18] sm:$0xf] }
 0x787   :  { %v6513_v9 = vpop.f32.mrf.mxu2 }
 0x788   :  { %v6514_v50 = vadd.f32 %v6513_v9, %v6465_v60  ;;  %v6562_v23 = vpop.f32.mrf.mxu3  ;;  %v10099_v60 = vor.u32 %v11463_v43, %v10098_v24 }
 0x789   :  { %v6417_v4 = vpop.f32.mrf.mxu0 }
 0x78a   :  { %v6418_v57 = vadd.f32 %v6417_v4, %v13853_v52  ;;  %v6466_v41 = vpop.f32.mrf.mxu1  ;;  %v13934_v59 = vpop.eup %12149  ;;  %v6563_v47 = vadd.f32 %v6562_v23, %v6514_v50  ;;  %6833 = vmatpush.bf16.msrb.mxu1 %v10099_v60  ;;  %v11519_v50 = vld [vmem:[#allocation8 + $0xc34] sm:$0xf0] }
 0x78b   :  { %15116 = vst [vmem:[#allocation144_spill] sm:$0xff] %v13934_v59  ;;  %v9810_v23 = vld [vmem:[#allocation8 + $0x818] sm:$0xf]  ;;  %v10323_v4 = vor.u32 %v11519_v50, %v10322_v13  ;;  %v9172_v59 = vld [vmem:[#allocation8 + $0x338] sm:$0xf0] }
 0x78c   :  { %v6467_v2 = vadd.f32 %v6466_v41, %v6418_v57  ;;  %12151 = vtanh.f32 %v6563_v47  ;;  %v11391_v57 = vld [vmem:[#allocation8 + $0x834] sm:$0xf0] }
 0x78d   :  { %v10578_v41 = vld [vmem:[#allocation8 + $0xe18] sm:$0xf]  ;;  %v9811_v24 = vor.u32 %v11391_v57, %v9810_v23  ;;  %6883 = vmatpush.bf16.msrb.mxu2 %v10323_v4 }
 0x78e   :  { %v10066_v50 = vld [vmem:[#allocation8 + $0xa18] sm:$0xf] }
 0x78f   :  { %v6515_v44 = vpop.f32.mrf.mxu2  ;;  %6785 = vmatpush.bf16.msrb.mxu0 %v9811_v24  ;;  %v11455_v23 = vld [vmem:[#allocation8 + $0xa34] sm:$0xf0] }
 0x790   :  { %v6516_v56 = vadd.f32 %v6515_v44, %v6467_v2  ;;  %v6564_v53 = vpop.f32.mrf.mxu3 }
 0x791   :  { %v6420_v26 = vpop.f32.mrf.mxu0 }
 0x792   :  { %v6421_v52 = vadd.f32 %v6420_v26, %v13860_v32  ;;  %v6469_v1 = vpop.f32.mrf.mxu1  ;;  %v6565_v9 = vadd.f32 %v6564_v53, %v6516_v56  ;;  %v11583_v32 = vld [vmem:[#allocation8 + $0xe34] sm:$0xf0]  ;;  %v13943_v56 = vpop.eup %12151 }
 0x793   :  { %6615 = vmatmul.bf16.gmra.mxu0 %v14857_v29  ;;  %6664 = vmatmul.bf16.gmra.mxu1 %v14858_v10  ;;  %v10579_v47 = vor.u32 %v11583_v32, %v10578_v41  ;;  %15117 = vst [vmem:[#allocation145_spill] sm:$0xff] %v13943_v56 }
 0x794   :  { %v6470_v39 = vadd.f32 %v6469_v1, %v6421_v52  ;;  %12153 = vtanh.f32 %v6565_v9  ;;  %6713 = vmatmul.bf16.gmra.mxu2 %v14859_v28 }
 0x795   :  { %6762 = vmatmul.bf16.gmra.mxu3 %v14901_v33 }
 0x796   :  { %6932 = vmatpush.bf16.msrb.mxu3 %v10579_v47 }
 0x797   :  { %v6518_v2 = vpop.f32.mrf.mxu2 }
 0x798   :  { %v6519_v43 = vadd.f32 %v6518_v2, %v6470_v39  ;;  %v6567_v60 = vpop.f32.mrf.mxu3  ;;  %v10067_v39 = vor.u32 %v11455_v23, %v10066_v50 }
 0x799   :  { %v6422_v44 = vpop.f32.mrf.mxu0 }
 0x79a   :  { %v6423_v53 = vadd.f32 %v6422_v44, %v13863_v46  ;;  %v6471_v26 = vpop.f32.mrf.mxu1  ;;  %v13946_v52 = vpop.eup %12153  ;;  %v6568_v1 = vadd.f32 %v6567_v60, %v6519_v43  ;;  %6834 = vmatpush.bf16.msrb.mxu1 %v10067_v39  ;;  %v11315_v43 = vld [vmem:[#allocation8 + $0x5dc] sm:$0xf] }
 0x79b   :  { %15118 = vst [vmem:[#allocation146_spill] sm:$0xff] %v13946_v52  ;;  %v9524_v60 = vld [vmem:[#allocation8 + $0x5f8] sm:$0xf0] }
 0x79c   :  { %v6472_v9 = vadd.f32 %v6471_v26, %v6423_v53  ;;  %12155 = vtanh.f32 %v6568_v1  ;;  %v11187_v44 = vld [vmem:[#allocation8 + $0x1dc] sm:$0xf]  ;;  %v9527_v53 = vor.u32 %v11315_v43, %v9524_v60 }
 0x79d   :  { %v9012_v26 = vld [vmem:[#allocation8 + $0x1f8] sm:$0xf0] }
 0x79e   :  { %v9015_v23 = vor.u32 %v11187_v44, %v9012_v26  ;;  %7072 = vmatpush.bf16.msra.mxu2 %v9527_v53  ;;  %v11251_v43 = vld [vmem:[#allocation8 + $0x3dc] sm:$0xf] }
 0x79f   :  { %v6520_v57 = vpop.f32.mrf.mxu2  ;;  %v9268_v60 = vld [vmem:[#allocation8 + $0x3f8] sm:$0xf0] }
 0x7a0   :  { %v6521_v4 = vadd.f32 %v6520_v57, %v6472_v9  ;;  %v6569_v41 = vpop.f32.mrf.mxu3  ;;  %v11379_v9 = vld [vmem:[#allocation8 + $0x7dc] sm:$0xf]  ;;  %6974 = vmatpush.bf16.msra.mxu0 %v9015_v23  ;;  %v9271_v22 = vor.u32 %v11251_v43, %v9268_v60 }
 0x7a1   :  { %v6425_v32 = vpop.f32.mrf.mxu0 }
 0x7a2   :  { %v6426_v46 = vadd.f32 %v6425_v32, %v13870_v40  ;;  %v6474_v2 = vpop.f32.mrf.mxu1  ;;  %v6570_v24 = vadd.f32 %v6569_v41, %v6521_v4  ;;  %v9780_v40 = vld [vmem:[#allocation8 + $0x7f8] sm:$0xf0]  ;;  %v13955_v41 = vpop.eup %12155  ;;  %7023 = vmatpush.bf16.msra.mxu1 %v9271_v22 }
 0x7a3   :  { %6620 = vmatmul.bf16.gmra.mxu0 %v14863_v16  ;;  %6669 = vmatmul.bf16.gmra.mxu1 %v14904_v55  ;;  %v9783_v1 = vor.u32 %v11379_v9, %v9780_v40  ;;  %15119 = vst [vmem:[#allocation147_spill] sm:$0xff] %v13955_v41  ;;  %v11307_v22 = vld [vmem:[#allocation8 + $0x59c] sm:$0xf] }
 0x7a4   :  { %v6475_v47 = vadd.f32 %v6474_v2, %v6426_v46  ;;  %12157 = vtanh.f32 %v6570_v24  ;;  %6718 = vmatmul.bf16.gmra.mxu2 %v14905_v62 }
 0x7a5   :  { %6767 = vmatmul.bf16.gmra.mxu3 %v14906_v11 }
 0x7a6   :  { %7121 = vmatpush.bf16.msra.mxu3 %v9783_v1  ;;  %v9492_v1 = vld [vmem:[#allocation8 + $0x5b8] sm:$0xf0] }
 0x7a7   :  { %v6523_v50 = vpop.f32.mrf.mxu2 }
 0x7a8   :  { %v6524_v39 = vadd.f32 %v6523_v50, %v6475_v47  ;;  %v6572_v57 = vpop.f32.mrf.mxu3 }
 0x7a9   :  { %v6427_v4 = vpop.f32.mrf.mxu0 }
 0x7aa   :  { %v6428_v32 = vadd.f32 %v6427_v4, %v13873_v37  ;;  %v6476_v46 = vpop.f32.mrf.mxu1  ;;  %v13958_v2 = vpop.eup %12157  ;;  %v6573_v24 = vadd.f32 %v6572_v57, %v6524_v39  ;;  %v9495_v39 = vor.u32 %v11307_v22, %v9492_v1  ;;  %v8980_v57 = vld [vmem:[#allocation8 + $0x1b8] sm:$0xf0] }
 0x7ab   :  { %15120 = vst [vmem:[#allocation148_spill] sm:$0xff] %v13958_v2  ;;  %v11371_v4 = vld [vmem:[#allocation8 + $0x79c] sm:$0xf] }
 0x7ac   :  { %v6477_v13 = vadd.f32 %v6476_v46, %v6428_v32  ;;  %12159 = vtanh.f32 %v6573_v24  ;;  %7073 = vmatpush.bf16.msra.mxu2 %v9495_v39  ;;  %v11243_v22 = vld [vmem:[#allocation8 + $0x39c] sm:$0xf] }
 0x7ad   :  { %v9236_v1 = vld [vmem:[#allocation8 + $0x3b8] sm:$0xf0] }
 0x7ae   :  { %v9239_v54 = vor.u32 %v11243_v22, %v9236_v1  ;;  %v9460_v22 = vld [vmem:[#allocation8 + $0x578] sm:$0xf0] }
 0x7af   :  { %v6525_v44 = vpop.f32.mrf.mxu2 }
 0x7b0   :  { %v6526_v53 = vadd.f32 %v6525_v44, %v6477_v13  ;;  %v6574_v26 = vpop.f32.mrf.mxu3  ;;  %v11179_v13 = vld [vmem:[#allocation8 + $0x19c] sm:$0xf]  ;;  %7024 = vmatpush.bf16.msra.mxu1 %v9239_v54 }
 0x7b1   :  { %v6430_v9 = vpop.f32.mrf.mxu0  ;;  %v8983_v46 = vor.u32 %v11179_v13, %v8980_v57  ;;  %v12236_v13 = vld [vmem:[#allocation10] sm:$0xff]  ;;  %v11299_v54 = vld [vmem:[#allocation8 + $0x55c] sm:$0xf] }
 0x7b2   :  { %v6431_v37 = vadd.f32 %v6430_v9, %v13880_v61  ;;  %v6479_v40 = vpop.f32.mrf.mxu1  ;;  %v6575_v50 = vadd.f32 %v6574_v26, %v6526_v53  ;;  %v9748_v61 = vld [vmem:[#allocation8 + $0x7b8] sm:$0xf0]  ;;  %v13967_v53 = vpop.eup %12159  ;;  %v15122_v26 = vld [vmem:[#allocation136_spill] sm:$0xff]  ;;  %v13974_v57 = vperm.slane %v12236_v13, 6  ;;  %v9463_v1 = vor.u32 %v11299_v54, %v9460_v22 }
 0x7b3   :  { %6625 = vmatmul.bf16.gmra.mxu0 %v12735_v12  ;;  %6674 = vmatmul.bf16.gmra.mxu1 %v14869_v45  ;;  %v9751_v24 = vor.u32 %v11371_v4, %v9748_v61  ;;  %15121 = vst [vmem:[#allocation149_spill] sm:$0xff] %v13967_v53  ;;  %v8948_v13 = vld [vmem:[#allocation8 + $0x178] sm:$0xf0] }
 0x7b4   :  { %v6480_v23 = vadd.f32 %v6479_v40, %v6431_v37  ;;  %12161 = vtanh.f32 %v6575_v50  ;;  %6723 = vmatmul.bf16.gmra.mxu2 %v14870_v51  ;;  %6975 = vmatpush.bf16.msra.mxu0 %v8983_v46  ;;  %v11235_v22 = vld [vmem:[#allocation8 + $0x35c] sm:$0xf] }
 0x7b5   :  { %6772 = vmatmul.bf16.gmra.mxu3 %v14909_v14  ;;  %7074 = vmatpush.bf16.msra.mxu2 %v9463_v1 }
 0x7b6   :  { %7122 = vmatpush.bf16.msra.mxu3 %v9751_v24 }
 0x7b7   :  { %v6528_v32 = vpop.f32.mrf.mxu2 }
 0x7b8   :  { %v6529_v43 = vadd.f32 %v6528_v32, %v6480_v23  ;;  %v6577_v60 = vpop.f32.mrf.mxu3 }
 0x7b9   :  { %v6432_v44 = vpop.f32.mrf.mxu0 }
 0x7ba   :  { %v6433_v9 = vadd.f32 %v6432_v44, %v15122_v26  ;;  %v6481_v37 = vpop.f32.mrf.mxu1  ;;  %v13970_v40 = vpop.eup %12161  ;;  %v6578_v50 = vadd.f32 %v6577_v60, %v6529_v43  ;;  %v15124_v60 = vld [vmem:[#allocation44_spill] sm:$0xff]  ;;  %v15125_v26 = vld [vmem:[#allocation45_spill] sm:$0xff] }
 0x7bb   :  { %15123 = vst [vmem:[#allocation136_spill] sm:$0xff] %v13970_v40  ;;  %v9204_v40 = vld [vmem:[#allocation8 + $0x378] sm:$0xf0] }
 0x7bc   :  { %v6482_v47 = vadd.f32 %v6481_v37, %v6433_v9  ;;  %12163 = vtanh.f32 %v6578_v50  ;;  %v15126_v9 = vld [vmem:[#allocation46_spill] sm:$0xff]  ;;  %v15127_v37 = vld [vmem:[#allocation47_spill] sm:$0xff] }
 0x7bf   :  { %v6530_v39 = vpop.f32.mrf.mxu2 }
 0x7c0   :  { %v6531_v4 = vadd.f32 %v6530_v39, %v6482_v47  ;;  %v6579_v61 = vpop.f32.mrf.mxu3  ;;  %v11171_v47 = vld [vmem:[#allocation8 + $0x15c] sm:$0xf] }
 0x7c1   :  { %v6591_v32 = vpop.f32.mrf.mxu0  ;;  %v11363_v39 = vld [vmem:[#allocation8 + $0x75c] sm:$0xf] }
 0x7c2   :  { %v6592_v46 = vadd.f32 %v6591_v32, %v13974_v57  ;;  %v6640_v24 = vpop.f32.mrf.mxu1  ;;  %v6580_v44 = vadd.f32 %v6579_v61, %v6531_v4  ;;  %v9716_v32 = vld [vmem:[#allocation8 + $0x778] sm:$0xf0]  ;;  %v8951_v4 = vor.u32 %v11171_v47, %v8948_v13  ;;  %v9207_v47 = vor.u32 %v11235_v22, %v9204_v40 }
 0x7c3   :  { %6786 = vmatmul.bf16.vlgmr.msrb.gmra.mxu0 %v15124_v60  ;;  %6835 = vmatmul.bf16.vlgmr.msrb.gmra.mxu1 %v15125_v26  ;;  %v9719_v50 = vor.u32 %v11363_v39, %v9716_v32  ;;  %v11291_v40 = vld [vmem:[#allocation8 + $0x51c] sm:$0xf] }
 0x7c4   :  { %v6641_v43 = vadd.f32 %v6640_v24, %v6592_v46  ;;  %12165 = vtanh.f32 %v6580_v44  ;;  %6884 = vmatmul.bf16.vlgmr.msrb.gmra.mxu2 %v15126_v9  ;;  %v13981_v44 = vpop.eup %12163  ;;  %6976 = vmatpush.bf16.msra.mxu0 %v8951_v4  ;;  %v9428_v22 = vld [vmem:[#allocation8 + $0x538] sm:$0xf0] }
 0x7c5   :  { %6933 = vmatmul.bf16.vlgmr.msrb.gmra.mxu3 %v15127_v37  ;;  %15128 = vst [vmem:[#allocation150_spill] sm:$0xff] %v13981_v44  ;;  %7025 = vmatpush.bf16.msra.mxu1 %v9207_v47  ;;  %v11163_v47 = vld [vmem:[#allocation8 + $0x11c] sm:$0xf] }
 0x7c6   :  { %7123 = vmatpush.bf16.msra.mxu3 %v9719_v50  ;;  %v9684_v44 = vld [vmem:[#allocation8 + $0x738] sm:$0xf0] }
 0x7c7   :  { %v6689_v23 = vpop.f32.mrf.mxu2  ;;  %v10260_v26 = vld [vmem:[#allocation8 + $0xbb8] sm:$0xf0] }
 0x7c8   :  { %v6690_v61 = vadd.f32 %v6689_v23, %v6641_v43  ;;  %v6738_v46 = vpop.f32.mrf.mxu3  ;;  %v11355_v23 = vld [vmem:[#allocation8 + $0x71c] sm:$0xf] }
 0x7c9   :  { %v6593_v24 = vpop.f32.mrf.mxu0 }
 0x7ca   :  { %v6594_v21 = vadd.f32 %v6593_v24, %v13974_v57  ;;  %v6642_v31 = vpop.f32.mrf.mxu1  ;;  %v13984_v53 = vpop.eup %12165  ;;  %v13986_v54 = vadd.f32 %v6738_v46, %v6690_v61  ;;  %v15130_v61 = vld [vmem:[#allocation48_spill] sm:$0xff]  ;;  %v15131_v46 = vld [vmem:[#allocation49_spill] sm:$0xff] }
 0x7cb   :  { %15129 = vst [vmem:[#allocation151_spill] sm:$0xff] %v13984_v53 }
 0x7cc   :  { %v6643_v41 = vadd.f32 %v6642_v31, %v6594_v21  ;;  %v15132_v31 = vld [vmem:[#allocation50_spill] sm:$0xff]  ;;  %v15133_v21 = vld [vmem:[#allocation51_spill] sm:$0xff] }
 0x7cf   :  { %v6691_v43 = vpop.f32.mrf.mxu2 }
 0x7d0   :  { %v6692_v1 = vadd.f32 %v6691_v43, %v6643_v41  ;;  %v6740_v13 = vpop.f32.mrf.mxu3  ;;  %v9431_v41 = vor.u32 %v11291_v40, %v9428_v22  ;;  %v8916_v43 = vld [vmem:[#allocation8 + $0x138] sm:$0xf0]  ;;  %v9175_v22 = vor.u32 %v11227_v25, %v9172_v59 }
 0x7d1   :  { %v6596_v39 = vpop.f32.mrf.mxu0  ;;  %v8919_v53 = vor.u32 %v11163_v47, %v8916_v43  ;;  %v11283_v25 = vld [vmem:[#allocation8 + $0x4dc] sm:$0xf] }
 0x7d2   :  { %v6597_v32 = vadd.f32 %v6596_v39, %v13974_v57  ;;  %v6645_v4 = vpop.f32.mrf.mxu1  ;;  %v13991_v50 = vadd.f32 %v6740_v13, %v6692_v1  ;;  %v9687_v1 = vor.u32 %v11355_v23, %v9684_v44  ;;  %7075 = vmatpush.bf16.msra.mxu2 %v9431_v41  ;;  %7026 = vmatpush.bf16.msra.mxu1 %v9175_v22  ;;  %v9396_v59 = vld [vmem:[#allocation8 + $0x4f8] sm:$0xf0] }
 0x7d3   :  { %6791 = vmatmul.bf16.gmra.mxu0 %v15130_v61  ;;  %6840 = vmatmul.bf16.gmra.mxu1 %v15131_v46 }
 0x7d4   :  { %v6646_v24 = vadd.f32 %v6645_v4, %v6597_v32  ;;  %6889 = vmatmul.bf16.gmra.mxu2 %v15132_v31  ;;  %6977 = vmatpush.bf16.msra.mxu0 %v8919_v53  ;;  %v15135_v53 = vld [vmem:[#allocation53_spill] sm:$0xff] }
 0x7d5   :  { %6938 = vmatmul.bf16.gmra.mxu3 %v15133_v21 }
 0x7d6   :  { %7124 = vmatpush.bf16.msra.mxu3 %v9687_v1  ;;  %v15136_v1 = vld [vmem:[#allocation54_spill] sm:$0xff] }
 0x7d7   :  { %v6694_v39 = vpop.f32.mrf.mxu2 }
 0x7d8   :  { %v6695_v13 = vadd.f32 %v6694_v39, %v6646_v24  ;;  %v6743_v32 = vpop.f32.mrf.mxu3  ;;  %v15134_v39 = vld [vmem:[#allocation52_spill] sm:$0xff] }
 0x7d9   :  { %v6598_v4 = vpop.f32.mrf.mxu0 }
 0x7da   :  { %v6599_v2 = vadd.f32 %v6598_v4, %v13974_v57  ;;  %v6647_v56 = vpop.f32.mrf.mxu1  ;;  %v13998_v52 = vadd.f32 %v6743_v32, %v6695_v13  ;;  %v15137_v13 = vld [vmem:[#allocation55_spill] sm:$0xff]  ;;  %v11347_v32 = vld [vmem:[#allocation8 + $0x6dc] sm:$0xf] }
 0x7db   :  { %v9652_v4 = vld [vmem:[#allocation8 + $0x6f8] sm:$0xf0] }
 0x7dc   :  { %v6648_v40 = vadd.f32 %v6647_v56, %v6599_v2  ;;  %v11155_v56 = vld [vmem:[#allocation8 + $0xdc] sm:$0xf] }
 0x7dd   :  { %v8884_v2 = vld [vmem:[#allocation8 + $0xf8] sm:$0xf0] }
 0x7de   :  { %v8887_v22 = vor.u32 %v11155_v56, %v8884_v2 }
 0x7df   :  { %v6696_v42 = vpop.f32.mrf.mxu2 }
 0x7e0   :  { %v6697_v36 = vadd.f32 %v6696_v42, %v6648_v40  ;;  %v6745_v47 = vpop.f32.mrf.mxu3  ;;  %v9399_v42 = vor.u32 %v11283_v25, %v9396_v59  ;;  %6978 = vmatpush.bf16.msra.mxu0 %v8887_v22  ;;  %v9143_v59 = vor.u32 %v11219_v6, %v9140_v15  ;;  %v15139_v22 = vld [vmem:[#allocation57_spill] sm:$0xff]  ;;  %v11275_v6 = vld [vmem:[#allocation8 + $0x49c] sm:$0xf] }
 0x7e1   :  { %v6601_v44 = vpop.f32.mrf.mxu0  ;;  %v9364_v15 = vld [vmem:[#allocation8 + $0x4b8] sm:$0xf0] }
 0x7e2   :  { %v6602_v23 = vadd.f32 %v6601_v44, %v13974_v57  ;;  %v6650_v24 = vpop.f32.mrf.mxu1  ;;  %v14001_v41 = vadd.f32 %v6745_v47, %v6697_v36  ;;  %v9655_v36 = vor.u32 %v11347_v32, %v9652_v4  ;;  %7076 = vmatpush.bf16.msra.mxu2 %v9399_v42  ;;  %7027 = vmatpush.bf16.msra.mxu1 %v9143_v59 }
 0x7e3   :  { %6796 = vmatmul.bf16.gmra.mxu0 %v15134_v39  ;;  %6845 = vmatmul.bf16.gmra.mxu1 %v15135_v53 }
 0x7e4   :  { %v6651_v43 = vadd.f32 %v6650_v24, %v6602_v23  ;;  %6894 = vmatmul.bf16.gmra.mxu2 %v15136_v1  ;;  %7125 = vmatpush.bf16.msra.mxu3 %v9655_v36  ;;  %v15140_v36 = vld [vmem:[#allocation58_spill] sm:$0xff] }
 0x7e5   :  { %6943 = vmatmul.bf16.gmra.mxu3 %v15137_v13 }
 0x7e7   :  { %v6699_v40 = vpop.f32.mrf.mxu2 }
 0x7e8   :  { %v6700_v47 = vadd.f32 %v6699_v40, %v6651_v43  ;;  %v6748_v44 = vpop.f32.mrf.mxu3  ;;  %v15138_v40 = vld [vmem:[#allocation56_spill] sm:$0xff] }
 0x7e9   :  { %v6603_v23 = vpop.f32.mrf.mxu0 }
 0x7ea   :  { %v6604_v24 = vadd.f32 %v6603_v23, %v13974_v57  ;;  %v6652_v58 = vpop.f32.mrf.mxu1  ;;  %v14008_v63 = vadd.f32 %v6748_v44, %v6700_v47  ;;  %v15141_v47 = vld [vmem:[#allocation59_spill] sm:$0xff]  ;;  %v8852_v44 = vld [vmem:[#allocation8 + $0xb8] sm:$0xf0] }
 0x7eb   :  { %v11339_v23 = vld [vmem:[#allocation8 + $0x69c] sm:$0xf] }
 0x7ec   :  { %v6653_v25 = vadd.f32 %v6652_v58, %v6604_v24  ;;  %v11147_v58 = vld [vmem:[#allocation8 + $0x9c] sm:$0xf] }
 0x7ed   :  { %v9620_v24 = vld [vmem:[#allocation8 + $0x6b8] sm:$0xf0]  ;;  %v8855_v59 = vor.u32 %v11147_v58, %v8852_v44 }
 0x7ef   :  { %v6701_v13 = vpop.f32.mrf.mxu2  ;;  %6979 = vmatpush.bf16.msra.mxu0 %v8855_v59  ;;  %v15143_v59 = vld [vmem:[#allocation61_spill] sm:$0xff] }
 0x7f0   :  { %v6702_v1 = vadd.f32 %v6701_v13, %v6653_v25  ;;  %v6750_v56 = vpop.f32.mrf.mxu3  ;;  %v9367_v13 = vor.u32 %v11275_v6, %v9364_v15 }
 0x7f1   :  { %v6606_v2 = vpop.f32.mrf.mxu0 }
 0x7f2   :  { %v6607_v43 = vadd.f32 %v6606_v2, %v13974_v57  ;;  %v6655_v32 = vpop.f32.mrf.mxu1  ;;  %v14011_v42 = vadd.f32 %v6750_v56, %v6702_v1  ;;  %v9623_v1 = vor.u32 %v11339_v23, %v9620_v24  ;;  %7077 = vmatpush.bf16.msra.mxu2 %v9367_v13 }
 0x7f3   :  { %6801 = vmatmul.bf16.gmra.mxu0 %v15138_v40  ;;  %6850 = vmatmul.bf16.gmra.mxu1 %v15139_v22  ;;  %v9108_v40 = vld [vmem:[#allocation8 + $0x2b8] sm:$0xf0] }
 0x7f4   :  { %v6656_v4 = vadd.f32 %v6655_v32, %v6607_v43  ;;  %6899 = vmatmul.bf16.gmra.mxu2 %v15140_v36  ;;  %7126 = vmatpush.bf16.msra.mxu3 %v9623_v1  ;;  %v11211_v36 = vld [vmem:[#allocation8 + $0x29c] sm:$0xf] }
 0x7f5   :  { %6948 = vmatmul.bf16.gmra.mxu3 %v15141_v47  ;;  %v9111_v15 = vor.u32 %v11211_v36, %v9108_v40  ;;  %v15144_v1 = vld [vmem:[#allocation62_spill] sm:$0xff] }
 0x7f6   :  { %v11267_v40 = vld [vmem:[#allocation8 + $0x45c] sm:$0xf] }
 0x7f7   :  { %v6704_v25 = vpop.f32.mrf.mxu2  ;;  %7028 = vmatpush.bf16.msra.mxu1 %v9111_v15  ;;  %v11139_v36 = vld [vmem:[#allocation8 + $0x5c] sm:$0xf] }
 0x7f8   :  { %v6705_v56 = vadd.f32 %v6704_v25, %v6656_v4  ;;  %v6753_v2 = vpop.f32.mrf.mxu3  ;;  %v15142_v25 = vld [vmem:[#allocation60_spill] sm:$0xff] }
 0x7f9   :  { %v6608_v43 = vpop.f32.mrf.mxu0 }
 0x7fa   :  { %v6609_v32 = vadd.f32 %v6608_v43, %v13974_v57  ;;  %v6657_v22 = vpop.f32.mrf.mxu1  ;;  %v14018_v47 = vadd.f32 %v6753_v2, %v6705_v56  ;;  %v15145_v56 = vld [vmem:[#allocation63_spill] sm:$0xff]  ;;  %v8820_v2 = vld [vmem:[#allocation8 + $0x78] sm:$0xf0] }
 0x7fb   :  { %v11331_v43 = vld [vmem:[#allocation8 + $0x65c] sm:$0xf]  ;;  %v8823_v15 = vor.u32 %v11139_v36, %v8820_v2 }
 0x7fc   :  { %v6658_v6 = vadd.f32 %v6657_v22, %v6609_v32  ;;  %v9332_v22 = vld [vmem:[#allocation8 + $0x478] sm:$0xf0] }
 0x7fd   :  { %v9588_v32 = vld [vmem:[#allocation8 + $0x678] sm:$0xf0]  ;;  %6980 = vmatpush.bf16.msra.mxu0 %v8823_v15  ;;  %v15147_v15 = vld [vmem:[#allocation65_spill] sm:$0xff] }
 0x7ff   :  { %v6706_v53 = vpop.f32.mrf.mxu2 }
 0x800   :  { %v6707_v39 = vadd.f32 %v6706_v53, %v6658_v6  ;;  %v6755_v58 = vpop.f32.mrf.mxu3  ;;  %v9335_v53 = vor.u32 %v11267_v40, %v9332_v22 }
 0x801   :  { %v6611_v44 = vpop.f32.mrf.mxu0 }
 0x802   :  { %v6612_v4 = vadd.f32 %v6611_v44, %v13974_v57  ;;  %v6660_v23 = vpop.f32.mrf.mxu1  ;;  %v14021_v13 = vadd.f32 %v6755_v58, %v6707_v39  ;;  %v9591_v39 = vor.u32 %v11331_v43, %v9588_v32  ;;  %7078 = vmatpush.bf16.msra.mxu2 %v9335_v53 }
 0x803   :  { %6806 = vmatmul.bf16.gmra.mxu0 %v15142_v25  ;;  %6855 = vmatmul.bf16.gmra.mxu1 %v15143_v59  ;;  %v9076_v25 = vld [vmem:[#allocation8 + $0x278] sm:$0xf0] }
 0x804   :  { %v6661_v24 = vadd.f32 %v6660_v23, %v6612_v4  ;;  %6904 = vmatmul.bf16.gmra.mxu2 %v15144_v1  ;;  %7127 = vmatpush.bf16.msra.mxu3 %v9591_v39  ;;  %v11203_v1 = vld [vmem:[#allocation8 + $0x25c] sm:$0xf] }
 0x805   :  { %6953 = vmatmul.bf16.gmra.mxu3 %v15145_v56  ;;  %v9079_v22 = vor.u32 %v11203_v1, %v9076_v25  ;;  %v15148_v39 = vld [vmem:[#allocation66_spill] sm:$0xff] }
 0x806   :  { %v11259_v25 = vld [vmem:[#allocation8 + $0x41c] sm:$0xf] }
 0x807   :  { %v6709_v6 = vpop.f32.mrf.mxu2  ;;  %7029 = vmatpush.bf16.msra.mxu1 %v9079_v22  ;;  %v11131_v1 = vld [vmem:[#allocation8 + $0x1c] sm:$0xf] }
 0x808   :  { %v6710_v58 = vadd.f32 %v6709_v6, %v6661_v24  ;;  %v6758_v44 = vpop.f32.mrf.mxu3  ;;  %v15146_v6 = vld [vmem:[#allocation64_spill] sm:$0xff] }
 0x809   :  { %v6613_v4 = vpop.f32.mrf.mxu0 }
 0x80a   :  { %v6614_v23 = vadd.f32 %v6613_v4, %v13974_v57  ;;  %v6662_v59 = vpop.f32.mrf.mxu1  ;;  %v14028_v56 = vadd.f32 %v6758_v44, %v6710_v58  ;;  %v15149_v58 = vld [vmem:[#allocation67_spill] sm:$0xff]  ;;  %v8788_v44 = vld [vmem:[#allocation8 + $0x38] sm:$0xf0] }
 0x80b   :  { %v11323_v4 = vld [vmem:[#allocation8 + $0x61c] sm:$0xf]  ;;  %v8791_v22 = vor.u32 %v11131_v1, %v8788_v44 }
 0x80c   :  { %v6663_v40 = vadd.f32 %v6662_v59, %v6614_v23  ;;  %v9300_v59 = vld [vmem:[#allocation8 + $0x438] sm:$0xf0] }
 0x80d   :  { %v9556_v23 = vld [vmem:[#allocation8 + $0x638] sm:$0xf0]  ;;  %6981 = vmatpush.bf16.msra.mxu0 %v8791_v22  ;;  %v15151_v22 = vld [vmem:[#allocation69_spill] sm:$0xff] }
 0x80f   :  { %v6711_v21 = vpop.f32.mrf.mxu2 }
 0x810   :  { %v6712_v31 = vadd.f32 %v6711_v21, %v6663_v40  ;;  %v6760_v36 = vpop.f32.mrf.mxu3  ;;  %v9303_v21 = vor.u32 %v11259_v25, %v9300_v59 }
 0x811   :  { %v6616_v2 = vpop.f32.mrf.mxu0 }
 0x812   :  { %v6617_v24 = vadd.f32 %v6616_v2, %v13974_v57  ;;  %v6665_v43 = vpop.f32.mrf.mxu1  ;;  %v14031_v53 = vadd.f32 %v6760_v36, %v6712_v31  ;;  %v9559_v31 = vor.u32 %v11323_v4, %v9556_v23  ;;  %7079 = vmatpush.bf16.msra.mxu2 %v9303_v21 }
 0x813   :  { %6811 = vmatmul.bf16.gmra.mxu0 %v15146_v6  ;;  %6860 = vmatmul.bf16.gmra.mxu1 %v15147_v15  ;;  %v9044_v6 = vld [vmem:[#allocation8 + $0x238] sm:$0xf0] }
 0x814   :  { %v6666_v32 = vadd.f32 %v6665_v43, %v6617_v24  ;;  %6909 = vmatmul.bf16.gmra.mxu2 %v15148_v39  ;;  %7128 = vmatpush.bf16.msra.mxu3 %v9559_v31  ;;  %v11195_v39 = vld [vmem:[#allocation8 + $0x21c] sm:$0xf] }
 0x815   :  { %6958 = vmatmul.bf16.gmra.mxu3 %v15149_v58  ;;  %v9047_v59 = vor.u32 %v11195_v39, %v9044_v6  ;;  %v15152_v31 = vld [vmem:[#allocation70_spill] sm:$0xff] }
 0x816   :  { %v11571_v6 = vld [vmem:[#allocation8 + $0xddc] sm:$0xf] }
 0x817   :  { %v6714_v40 = vpop.f32.mrf.mxu2  ;;  %7030 = vmatpush.bf16.msra.mxu1 %v9047_v59  ;;  %v11443_v39 = vld [vmem:[#allocation8 + $0x9dc] sm:$0xf] }
 0x818   :  { %v6715_v36 = vadd.f32 %v6714_v40, %v6666_v32  ;;  %v6763_v2 = vpop.f32.mrf.mxu3  ;;  %v15150_v40 = vld [vmem:[#allocation68_spill] sm:$0xff] }
 0x819   :  { %v6618_v24 = vpop.f32.mrf.mxu0 }
 0x81a   :  { %v6619_v43 = vadd.f32 %v6618_v24, %v13974_v57  ;;  %v6667_v15 = vpop.f32.mrf.mxu1  ;;  %v14038_v58 = vadd.f32 %v6763_v2, %v6715_v36  ;;  %v15153_v36 = vld [vmem:[#allocation71_spill] sm:$0xff]  ;;  %v10036_v2 = vld [vmem:[#allocation8 + $0x9f8] sm:$0xf0] }
 0x81b   :  { %v11635_v24 = vld [vmem:[#allocation8 + $0xfdc] sm:$0xf]  ;;  %v10039_v59 = vor.u32 %v11443_v39, %v10036_v2 }
 0x81c   :  { %v6668_v25 = vadd.f32 %v6667_v15, %v6619_v43  ;;  %v10548_v15 = vld [vmem:[#allocation8 + $0xdf8] sm:$0xf0] }
 0x81d   :  { %v10804_v43 = vld [vmem:[#allocation8 + $0xff8] sm:$0xf0]  ;;  %7170 = vmatpush.bf16.msrb.mxu0 %v10039_v59  ;;  %v15155_v59 = vld [vmem:[#allocation73_spill] sm:$0xff] }
 0x81f   :  { %v6716_v46 = vpop.f32.mrf.mxu2 }
 0x820   :  { %v6717_v61 = vadd.f32 %v6716_v46, %v6668_v25  ;;  %v6765_v1 = vpop.f32.mrf.mxu3  ;;  %v10551_v46 = vor.u32 %v11571_v6, %v10548_v15  ;;  %v10292_v6 = vld [vmem:[#allocation8 + $0xbf8] sm:$0xf0] }
 0x821   :  { %v6621_v44 = vpop.f32.mrf.mxu0 }
 0x822   :  { %v6622_v32 = vadd.f32 %v6621_v44, %v13974_v57  ;;  %v6670_v4 = vpop.f32.mrf.mxu1  ;;  %v14041_v21 = vadd.f32 %v6765_v1, %v6717_v61  ;;  %v10807_v61 = vor.u32 %v11635_v24, %v10804_v43  ;;  %7268 = vmatpush.bf16.msrb.mxu2 %v10551_v46 }
 0x823   :  { %6816 = vmatmul.bf16.gmra.mxu0 %v15150_v40  ;;  %6865 = vmatmul.bf16.gmra.mxu1 %v15151_v22  ;;  %v11507_v40 = vld [vmem:[#allocation8 + $0xbdc] sm:$0xf] }
 0x824   :  { %v6671_v23 = vadd.f32 %v6670_v4, %v6622_v32  ;;  %6914 = vmatmul.bf16.gmra.mxu2 %v15152_v31  ;;  %7317 = vmatpush.bf16.msrb.mxu3 %v10807_v61  ;;  %v10295_v15 = vor.u32 %v11507_v40, %v10292_v6  ;;  %v15156_v61 = vld [vmem:[#allocation74_spill] sm:$0xff] }
 0x825   :  { %6963 = vmatmul.bf16.gmra.mxu3 %v15153_v36  ;;  %v11563_v6 = vld [vmem:[#allocation8 + $0xd9c] sm:$0xf] }
 0x826   :  { %7219 = vmatpush.bf16.msrb.mxu1 %v10295_v15  ;;  %v10516_v15 = vld [vmem:[#allocation8 + $0xdb8] sm:$0xf0] }
 0x827   :  { %v6719_v25 = vpop.f32.mrf.mxu2 }
 0x828   :  { %v6720_v1 = vadd.f32 %v6719_v25, %v6671_v23  ;;  %v6768_v44 = vpop.f32.mrf.mxu3  ;;  %v15154_v25 = vld [vmem:[#allocation72_spill] sm:$0xff] }
 0x829   :  { %v6623_v32 = vpop.f32.mrf.mxu0 }
 0x82a   :  { %v6624_v4 = vadd.f32 %v6623_v32, %v13974_v57  ;;  %v6672_v22 = vpop.f32.mrf.mxu1  ;;  %v14048_v36 = vadd.f32 %v6768_v44, %v6720_v1 }
 0x82c   :  { %v6673_v31 = vadd.f32 %v6672_v22, %v6624_v4  ;;  %v15157_v22 = vld [vmem:[#allocation75_spill] sm:$0xff] }
 0x82f   :  { %v6721_v37 = vpop.f32.mrf.mxu2 }
 0x830   :  { %v6722_v9 = vadd.f32 %v6721_v37, %v6673_v31  ;;  %v6770_v39 = vpop.f32.mrf.mxu3 }
 0x831   :  { %v6626_v2 = vpop.f32.mrf.mxu0 }
 0x832   :  { %v6627_v23 = vadd.f32 %v6626_v2, %v13974_v57  ;;  %v6675_v24 = vpop.f32.mrf.mxu1  ;;  %v14051_v46 = vadd.f32 %v6770_v39, %v6722_v9  ;;  %v11435_v39 = vld [vmem:[#allocation8 + $0x99c] sm:$0xf]  ;;  %v10519_v2 = vor.u32 %v11563_v6, %v10516_v15  ;;  %v15159_v15 = vld [vmem:[#allocation20_spill] sm:$0xff] }
 0x833   :  { %6821 = vmatmul.bf16.gmra.mxu0 %v15154_v25  ;;  %6870 = vmatmul.bf16.gmra.mxu1 %v15155_v59  ;;  %v10772_v59 = vld [vmem:[#allocation8 + $0xfb8] sm:$0xf0] }
 0x834   :  { %v6676_v43 = vadd.f32 %v6675_v24, %v6627_v23  ;;  %6919 = vmatmul.bf16.gmra.mxu2 %v15156_v61  ;;  %v10004_v23 = vld [vmem:[#allocation8 + $0x9b8] sm:$0xf0] }
 0x835   :  { %6968 = vmatmul.bf16.gmra.mxu3 %v15157_v22  ;;  %v11627_v24 = vld [vmem:[#allocation8 + $0xf9c] sm:$0xf]  ;;  %v10007_v61 = vor.u32 %v11435_v39, %v10004_v23  ;;  %7269 = vmatpush.bf16.msrb.mxu2 %v10519_v2 }
 0x836   :  { %v10775_v25 = vor.u32 %v11627_v24, %v10772_v59  ;;  %v11499_v22 = vld [vmem:[#allocation8 + $0xb9c] sm:$0xf]  ;;  %v15160_v59 = vld [vmem:[#allocation21_spill] sm:$0xff] }
 0x837   :  { %v6724_v40 = vpop.f32.mrf.mxu2  ;;  %7171 = vmatpush.bf16.msrb.mxu0 %v10007_v61  ;;  %v15161_v39 = vld [vmem:[#allocation22_spill] sm:$0xff] }
 0x838   :  { %v6725_v1 = vadd.f32 %v6724_v40, %v6676_v43  ;;  %v6773_v44 = vpop.f32.mrf.mxu3  ;;  %v10263_v43 = vor.u32 %v11499_v22, %v10260_v26  ;;  %7318 = vmatpush.bf16.msrb.mxu3 %v10775_v25  ;;  %v15162_v26 = vld [vmem:[#allocation23_spill] sm:$0xff]  ;;  %v11555_v61 = vld [vmem:[#allocation8 + $0xd5c] sm:$0xf] }
 0x839   :  { %v6628_v37 = vpop.f32.mrf.mxu0  ;;  %v10484_v25 = vld [vmem:[#allocation8 + $0xd78] sm:$0xf0] }
 0x83a   :  { %v6629_v31 = vadd.f32 %v6628_v37, %v13974_v57  ;;  %v6677_v32 = vpop.f32.mrf.mxu1  ;;  %v14058_v4 = vadd.f32 %v6773_v44, %v6725_v1  ;;  %7220 = vmatpush.bf16.msrb.mxu1 %v10263_v43  ;;  %v11427_v22 = vld [vmem:[#allocation8 + $0x95c] sm:$0xf] }
 0x83b   :  { %v9972_v2 = vld [vmem:[#allocation8 + $0x978] sm:$0xf0] }
 0x83c   :  { %v6678_v9 = vadd.f32 %v6677_v32, %v6629_v31  ;;  %v11619_v23 = vld [vmem:[#allocation8 + $0xf5c] sm:$0xf]  ;;  %v9975_v43 = vor.u32 %v11427_v22, %v9972_v2 }
 0x83d   :  { %v10740_v24 = vld [vmem:[#allocation8 + $0xf78] sm:$0xf0] }
 0x83e   :  { %7172 = vmatpush.bf16.msrb.mxu0 %v9975_v43 }
 0x83f   :  { %v6726_v40 = vpop.f32.mrf.mxu2 }
 0x840   :  { %v6727_v57 = vadd.f32 %v6726_v40, %v6678_v9  ;;  %v6775_v1 = vpop.f32.mrf.mxu3  ;;  %v10487_v9 = vor.u32 %v11555_v61, %v10484_v25  ;;  %v10743_v40 = vor.u32 %v11619_v23, %v10740_v24  ;;  %v10452_v24 = vld [vmem:[#allocation8 + $0xd38] sm:$0xf0] }
 0x841   :  { %v6787_v44 = vpop.f32.mrf.mxu0 }
 0x842   :  { %v6788_v37 = vadd.f32 %v6787_v44, %v13986_v54  ;;  %v6836_v31 = vpop.f32.mrf.mxu1  ;;  %v14061_v32 = vadd.f32 %v6775_v1, %v6727_v57  ;;  %7270 = vmatpush.bf16.msrb.mxu2 %v10487_v9  ;;  %7319 = vmatpush.bf16.msrb.mxu3 %v10743_v40  ;;  %v9940_v40 = vld [vmem:[#allocation8 + $0x938] sm:$0xf0] }
 0x843   :  { %6982 = vmatmul.bf16.vlgmr.msra.gmra.mxu0 %v15159_v15  ;;  %7031 = vmatmul.bf16.vlgmr.msra.gmra.mxu1 %v15160_v59 }
 0x844   :  { %15158 = vst [vmem:[#allocation152_spill] sm:$0xff] %v14061_v32  ;;  %v6837_v6 = vadd.f32 %v6836_v31, %v6788_v37  ;;  %7080 = vmatmul.bf16.vlgmr.msra.gmra.mxu2 %v15161_v39  ;;  %v11491_v39 = vld [vmem:[#allocation8 + $0xb5c] sm:$0xf] }
 0x845   :  { %7129 = vmatmul.bf16.vlgmr.msra.gmra.mxu3 %v15162_v26  ;;  %v10228_v26 = vld [vmem:[#allocation8 + $0xb78] sm:$0xf0] }
 0x846   :  { %v10231_v61 = vor.u32 %v11491_v39, %v10228_v26  ;;  %v11483_v26 = vld [vmem:[#allocation8 + $0xb1c] sm:$0xf] }
 0x847   :  { %v6885_v54 = vpop.f32.mrf.mxu2 }
 0x848   :  { %v6886_v57 = vadd.f32 %v6885_v54, %v6837_v6  ;;  %v6934_v1 = vpop.f32.mrf.mxu3  ;;  %7221 = vmatpush.bf16.msrb.mxu1 %v10231_v61  ;;  %v11419_v54 = vld [vmem:[#allocation8 + $0x91c] sm:$0xf] }
 0x849   :  { %v6789_v44 = vpop.f32.mrf.mxu0  ;;  %v10196_v61 = vld [vmem:[#allocation8 + $0xb38] sm:$0xf0] }
 0x84a   :  { %v6790_v37 = vadd.f32 %v6789_v44, %v13991_v50  ;;  %v6838_v31 = vpop.f32.mrf.mxu1  ;;  %v6935_v15 = vadd.f32 %v6934_v1, %v6886_v57  ;;  %v11547_v50 = vld [vmem:[#allocation8 + $0xd1c] sm:$0xf] }
 0x84b   :  { %v10455_v43 = vor.u32 %v11547_v50, %v10452_v24  ;;  %v11611_v57 = vld [vmem:[#allocation8 + $0xf1c] sm:$0xf] }
 0x84c   :  { %v6839_v59 = vadd.f32 %v6838_v31, %v6790_v37  ;;  %12167 = vtanh.f32 %v6935_v15 }
 0x84d   :  { %7271 = vmatpush.bf16.msrb.mxu2 %v10455_v43  ;;  %v10420_v43 = vld [vmem:[#allocation8 + $0xcf8] sm:$0xf0] }
 0x84f   :  { %v6887_v25 = vpop.f32.mrf.mxu2 }
 0x850   :  { %v6888_v60 = vadd.f32 %v6887_v25, %v6839_v59  ;;  %v6936_v32 = vpop.f32.mrf.mxu3  ;;  %v10199_v25 = vor.u32 %v11483_v26, %v10196_v61  ;;  %v11475_v26 = vld [vmem:[#allocation8 + $0xadc] sm:$0xf] }
 0x851   :  { %v6792_v22 = vpop.f32.mrf.mxu0  ;;  %v10164_v61 = vld [vmem:[#allocation8 + $0xaf8] sm:$0xf0] }
 0x852   :  { %v6793_v6 = vadd.f32 %v6792_v22, %v13998_v52  ;;  %v6841_v2 = vpop.f32.mrf.mxu1  ;;  %v6937_v23 = vadd.f32 %v6936_v32, %v6888_v60  ;;  %v10708_v52 = vld [vmem:[#allocation8 + $0xf38] sm:$0xf0]  ;;  %v9943_v60 = vor.u32 %v11419_v54, %v9940_v40  ;;  %v14073_v31 = vpop.eup %12167  ;;  %7222 = vmatpush.bf16.msrb.mxu1 %v10199_v25  ;;  %v10167_v25 = vor.u32 %v11475_v26, %v10164_v61 }
 0x853   :  { %6987 = vmatmul.bf16.gmra.mxu0 %v12612_v17  ;;  %7036 = vmatmul.bf16.gmra.mxu1 %v12615_v18  ;;  %v10711_v32 = vor.u32 %v11611_v57, %v10708_v52  ;;  %v11539_v54 = vld [vmem:[#allocation8 + $0xcdc] sm:$0xf] }
 0x854   :  { %v6842_v9 = vadd.f32 %v6841_v2, %v6793_v6  ;;  %12169 = vtanh.f32 %v6937_v23  ;;  %7085 = vmatmul.bf16.gmra.mxu2 %v12622_v30  ;;  %7173 = vmatpush.bf16.msrb.mxu0 %v9943_v60  ;;  %v11411_v40 = vld [vmem:[#allocation8 + $0x8dc] sm:$0xf]  ;;  %v10423_v57 = vor.u32 %v11539_v54, %v10420_v43 }
 0x855   :  { %7134 = vmatmul.bf16.gmra.mxu3 %v12625_v35  ;;  %v9908_v52 = vld [vmem:[#allocation8 + $0x8f8] sm:$0xf0] }
 0x856   :  { %7320 = vmatpush.bf16.msrb.mxu3 %v10711_v32  ;;  %v9911_v32 = vor.u32 %v11411_v40, %v9908_v52  ;;  %7272 = vmatpush.bf16.msrb.mxu2 %v10423_v57  ;;  %v10388_v54 = vld [vmem:[#allocation8 + $0xcb8] sm:$0xf0] }
 0x857   :  { %v6890_v1 = vpop.f32.mrf.mxu2  ;;  %7223 = vmatpush.bf16.msrb.mxu1 %v10167_v25  ;;  %v11403_v43 = vld [vmem:[#allocation8 + $0x89c] sm:$0xf] }
 0x858   :  { %v6891_v44 = vadd.f32 %v6890_v1, %v6842_v9  ;;  %v6939_v37 = vpop.f32.mrf.mxu3  ;;  %v11603_v1 = vld [vmem:[#allocation8 + $0xedc] sm:$0xf]  ;;  %7174 = vmatpush.bf16.msrb.mxu0 %v9911_v32 }
 0x859   :  { %v6794_v17 = vpop.f32.mrf.mxu0  ;;  %v9876_v57 = vld [vmem:[#allocation8 + $0x8b8] sm:$0xf0] }
 0x85a   :  { %v6795_v18 = vadd.f32 %v6794_v17, %v14001_v41  ;;  %v6843_v30 = vpop.f32.mrf.mxu1  ;;  %v14076_v35 = vpop.eup %12169  ;;  %v6940_v15 = vadd.f32 %v6939_v37, %v6891_v44  ;;  %v11595_v52 = vld [vmem:[#allocation8 + $0xe9c] sm:$0xf] }
 0x85b   :  { %v7500_v59 = vpack.c.bf16 %v14076_v35, %v14073_v31 }
 0x85c   :  { %v6844_v39 = vadd.f32 %v6843_v30, %v6795_v18  ;;  %12171 = vtanh.f32 %v6940_v15 }
 0x85f   :  { %v6892_v22 = vpop.f32.mrf.mxu2 }
 0x860   :  { %v6893_v6 = vadd.f32 %v6892_v22, %v6844_v39  ;;  %v6941_v2 = vpop.f32.mrf.mxu3 }
 0x861   :  { %v6797_v23 = vpop.f32.mrf.mxu0 }
 0x862   :  { %v6798_v41 = vadd.f32 %v6797_v23, %v14008_v63  ;;  %v6846_v9 = vpop.f32.mrf.mxu1  ;;  %v6942_v50 = vadd.f32 %v6941_v2, %v6893_v6  ;;  %v10676_v63 = vld [vmem:[#allocation8 + $0xef8] sm:$0xf0]  ;;  %v14085_v18 = vpop.eup %12171 }
 0x863   :  { %6992 = vmatmul.bf16.gmra.mxu0 %v12632_v5  ;;  %7041 = vmatmul.bf16.gmra.mxu1 %v12635_v7  ;;  %v10679_v44 = vor.u32 %v11603_v1, %v10676_v63  ;;  %v9879_v63 = vor.u32 %v11403_v43, %v9876_v57 }
 0x864   :  { %v6847_v24 = vadd.f32 %v6846_v9, %v6798_v41  ;;  %12173 = vtanh.f32 %v6942_v50  ;;  %7090 = vmatmul.bf16.gmra.mxu2 %v12642_v20 }
 0x865   :  { %7139 = vmatmul.bf16.gmra.mxu3 %v14842_v48  ;;  %7175 = vmatpush.bf16.msrb.mxu0 %v9879_v63 }
 0x866   :  { %7321 = vmatpush.bf16.msrb.mxu3 %v10679_v44 }
 0x867   :  { %v6895_v60 = vpop.f32.mrf.mxu2 }
 0x868   :  { %v6896_v37 = vadd.f32 %v6895_v60, %v6847_v24  ;;  %v6944_v17 = vpop.f32.mrf.mxu3  ;;  %v11531_v24 = vld [vmem:[#allocation8 + $0xc9c] sm:$0xf] }
 0x869   :  { %v6799_v5 = vpop.f32.mrf.mxu0  ;;  %v10391_v40 = vor.u32 %v11531_v24, %v10388_v54  ;;  %v9844_v24 = vld [vmem:[#allocation8 + $0x878] sm:$0xf0] }
 0x86a   :  { %v6800_v7 = vadd.f32 %v6799_v5, %v14011_v42  ;;  %v6848_v20 = vpop.f32.mrf.mxu1  ;;  %v14088_v48 = vpop.eup %12173  ;;  %v6945_v30 = vadd.f32 %v6944_v17, %v6896_v37  ;;  %v11587_v54 = vld [vmem:[#allocation8 + $0xe5c] sm:$0xf] }
 0x86b   :  { %v7508_v39 = vpack.c.bf16 %v14088_v48, %v14085_v18  ;;  %7273 = vmatpush.bf16.msrb.mxu2 %v10391_v40 }
 0x86c   :  { %v6849_v15 = vadd.f32 %v6848_v20, %v6800_v7  ;;  %12175 = vtanh.f32 %v6945_v30  ;;  %v11467_v20 = vld [vmem:[#allocation8 + $0xa9c] sm:$0xf] }
 0x86d   :  { %v10132_v30 = vld [vmem:[#allocation8 + $0xab8] sm:$0xf0] }
 0x86f   :  { %v6897_v22 = vpop.f32.mrf.mxu2 }
 0x870   :  { %v6898_v6 = vadd.f32 %v6897_v22, %v6849_v15  ;;  %v6946_v2 = vpop.f32.mrf.mxu3  ;;  %v10135_v15 = vor.u32 %v11467_v20, %v10132_v30 }
 0x871   :  { %v6802_v23 = vpop.f32.mrf.mxu0 }
 0x872   :  { %v6803_v42 = vadd.f32 %v6802_v23, %v14018_v47  ;;  %v6851_v41 = vpop.f32.mrf.mxu1  ;;  %v6947_v9 = vadd.f32 %v6946_v2, %v6898_v6  ;;  %v10644_v47 = vld [vmem:[#allocation8 + $0xeb8] sm:$0xf0]  ;;  %v14097_v37 = vpop.eup %12175  ;;  %7224 = vmatpush.bf16.msrb.mxu1 %v10135_v15 }
 0x873   :  { %6997 = vmatmul.bf16.gmra.mxu0 %v14845_v3  ;;  %7046 = vmatmul.bf16.gmra.mxu1 %v14846_v38  ;;  %v10647_v60 = vor.u32 %v11595_v52, %v10644_v47 }
 0x874   :  { %v6852_v50 = vadd.f32 %v6851_v41, %v6803_v42  ;;  %12177 = vtanh.f32 %v6947_v9  ;;  %7095 = vmatmul.bf16.gmra.mxu2 %v14847_v34  ;;  %v11523_v42 = vld [vmem:[#allocation8 + $0xc5c] sm:$0xf] }
 0x875   :  { %7144 = vmatmul.bf16.gmra.mxu3 %v14848_v27  ;;  %v10356_v41 = vld [vmem:[#allocation8 + $0xc78] sm:$0xf0] }
 0x876   :  { %7322 = vmatpush.bf16.msrb.mxu3 %v10647_v60  ;;  %v11395_v9 = vld [vmem:[#allocation8 + $0x85c] sm:$0xf] }
 0x877   :  { %v6900_v1 = vpop.f32.mrf.mxu2  ;;  %v9847_v40 = vor.u32 %v11395_v9, %v9844_v24 }
 0x878   :  { %v6901_v32 = vadd.f32 %v6900_v1, %v6852_v50  ;;  %v6949_v44 = vpop.f32.mrf.mxu3  ;;  %v10359_v50 = vor.u32 %v11523_v42, %v10356_v41 }
 0x879   :  { %v6804_v3 = vpop.f32.mrf.mxu0  ;;  %7176 = vmatpush.bf16.msrb.mxu0 %v9847_v40  ;;  %v11451_v40 = vld [vmem:[#allocation8 + $0xa1c] sm:$0xf] }
 0x87a   :  { %v6805_v38 = vadd.f32 %v6804_v3, %v14021_v13  ;;  %v6853_v34 = vpop.f32.mrf.mxu1  ;;  %v14100_v27 = vpop.eup %12177  ;;  %v6950_v17 = vadd.f32 %v6949_v44, %v6901_v32  ;;  %7274 = vmatpush.bf16.msrb.mxu2 %v10359_v50  ;;  %v11459_v44 = vld [vmem:[#allocation8 + $0xa5c] sm:$0xf] }
 0x87b   :  { %v7516_v7 = vpack.c.bf16 %v14100_v27, %v14097_v37  ;;  %v10100_v3 = vld [vmem:[#allocation8 + $0xa78] sm:$0xf0] }
 0x87c   :  { %v6854_v5 = vadd.f32 %v6853_v34, %v6805_v38  ;;  %12179 = vtanh.f32 %v6950_v17  ;;  %v10103_v38 = vor.u32 %v11459_v44, %v10100_v3  ;;  %v11663_v3 = vld [vmem:[#allocation11 + $0xb8] sm:$0xff] }
 0x87e   :  { %7225 = vmatpush.bf16.msrb.mxu1 %v10103_v38  ;;  %v11647_v38 = vld [vmem:[#allocation11 + $0x38] sm:$0xff] }
 0x87f   :  { %v6902_v26 = vpop.f32.mrf.mxu2 }
 0x880   :  { %v6903_v61 = vadd.f32 %v6902_v26, %v6854_v5  ;;  %v6951_v25 = vpop.f32.mrf.mxu3 }
 0x881   :  { %v6807_v22 = vpop.f32.mrf.mxu0 }
 0x882   :  { %v6808_v13 = vadd.f32 %v6807_v22, %v14028_v56  ;;  %v6856_v6 = vpop.f32.mrf.mxu1  ;;  %v6952_v2 = vadd.f32 %v6951_v25, %v6903_v61  ;;  %v10612_v56 = vld [vmem:[#allocation8 + $0xe78] sm:$0xf0]  ;;  %v14109_v1 = vpop.eup %12179 }
 0x883   :  { %7002 = vmatmul.bf16.gmra.mxu0 %v14851_v19  ;;  %7051 = vmatmul.bf16.gmra.mxu1 %v14852_v49  ;;  %v10615_v57 = vor.u32 %v11587_v54, %v10612_v56  ;;  %v11515_v61 = vld [vmem:[#allocation8 + $0xc1c] sm:$0xf] }
 0x884   :  { %v6857_v23 = vadd.f32 %v6856_v6, %v6808_v13  ;;  %12181 = vtanh.f32 %v6952_v2  ;;  %7100 = vmatmul.bf16.gmra.mxu2 %v14853_v0  ;;  %v10324_v25 = vld [vmem:[#allocation8 + $0xc38] sm:$0xf0] }
 0x885   :  { %7149 = vmatmul.bf16.gmra.mxu3 %v14854_v8  ;;  %v11387_v22 = vld [vmem:[#allocation8 + $0x81c] sm:$0xf]  ;;  %v10327_v13 = vor.u32 %v11515_v61, %v10324_v25 }
 0x886   :  { %7323 = vmatpush.bf16.msrb.mxu3 %v10615_v57  ;;  %v9812_v6 = vld [vmem:[#allocation8 + $0x838] sm:$0xf0] }
 0x887   :  { %v6905_v43 = vpop.f32.mrf.mxu2  ;;  %v11579_v2 = vld [vmem:[#allocation8 + $0xe1c] sm:$0xf]  ;;  %v9815_v42 = vor.u32 %v11387_v22, %v9812_v6  ;;  %7275 = vmatpush.bf16.msrb.mxu2 %v10327_v13 }
 0x888   :  { %v6906_v52 = vadd.f32 %v6905_v43, %v6857_v23  ;;  %v6954_v47 = vpop.f32.mrf.mxu3  ;;  %v10068_v57 = vld [vmem:[#allocation8 + $0xa38] sm:$0xf0] }
 0x889   :  { %v6809_v19 = vpop.f32.mrf.mxu0  ;;  %7177 = vmatpush.bf16.msrb.mxu0 %v9815_v42  ;;  %v11646_v42 = vld [vmem:[#allocation11 + $0x30] sm:$0xff] }
 0x88a   :  { %v6810_v49 = vadd.f32 %v6809_v19, %v14031_v53  ;;  %v6858_v0 = vpop.f32.mrf.mxu1  ;;  %v14112_v8 = vpop.eup %12181  ;;  %v6955_v63 = vadd.f32 %v6954_v47, %v6906_v52  ;;  %v10071_v52 = vor.u32 %v11451_v40, %v10068_v57  ;;  %v12237_v57 = vld [vmem:[#allocation10] sm:$0xff] }
 0x88b   :  { %v7524_v32 = vpack.c.bf16 %v14112_v8, %v14109_v1  ;;  %8172 = vmatpush.bf16.msra.mxu2 %v11663_v3  ;;  %v15164_v3 = vld [vmem:[#allocation44_spill] sm:$0xff] }
 0x88c   :  { %v6859_v60 = vadd.f32 %v6858_v0, %v6810_v49  ;;  %12183 = vtanh.f32 %v6955_v63  ;;  %7226 = vmatpush.bf16.msrb.mxu1 %v10071_v52  ;;  %v14152_v52 = vperm.slane %v12237_v57, 7  ;;  %v11668_v57 = vld [vmem:[#allocation11 + $0xe0] sm:$0xff] }
 0x88d   :  { %8074 = vmatpush.bf16.msra.mxu0 %v11647_v38  ;;  %v15165_v38 = vld [vmem:[#allocation45_spill] sm:$0xff] }
 0x88f   :  { %v6907_v34 = vpop.f32.mrf.mxu2 }
 0x890   :  { %v6908_v17 = vadd.f32 %v6907_v34, %v6859_v60  ;;  %v6956_v5 = vpop.f32.mrf.mxu3  ;;  %v11671_v34 = vld [vmem:[#allocation11 + $0xf8] sm:$0xff] }
 0x891   :  { %v6812_v20 = vpop.f32.mrf.mxu0  ;;  %8075 = vmatpush.bf16.msra.mxu0 %v11646_v42 }
 0x892   :  { %v6813_v53 = vadd.f32 %v6812_v20, %v14038_v58  ;;  %v6861_v30 = vpop.f32.mrf.mxu1  ;;  %v6957_v15 = vadd.f32 %v6956_v5, %v6908_v17  ;;  %v10580_v58 = vld [vmem:[#allocation8 + $0xe38] sm:$0xf0]  ;;  %v14121_v24 = vpop.eup %12183 }
 0x893   :  { %7007 = vmatmul.bf16.gmra.mxu0 %v14857_v29  ;;  %7056 = vmatmul.bf16.gmra.mxu1 %v14858_v10  ;;  %v10583_v41 = vor.u32 %v11579_v2, %v10580_v58 }
 0x894   :  { %v6862_v26 = vadd.f32 %v6861_v30, %v6813_v53  ;;  %12185 = vtanh.f32 %v6957_v15  ;;  %7105 = vmatmul.bf16.gmra.mxu2 %v14859_v28  ;;  %v11655_v15 = vld [vmem:[#allocation11 + $0x78] sm:$0xff] }
 0x895   :  { %7154 = vmatmul.bf16.gmra.mxu3 %v14901_v33  ;;  %8123 = vmatpush.bf16.msra.mxu1 %v11655_v15 }
 0x896   :  { %7324 = vmatpush.bf16.msrb.mxu3 %v10583_v41  ;;  %v11670_v41 = vld [vmem:[#allocation11 + $0xf0] sm:$0xff] }
 0x897   :  { %v6910_v23 = vpop.f32.mrf.mxu2 }
 0x898   :  { %v6911_v9 = vadd.f32 %v6910_v23, %v6862_v26  ;;  %v6959_v50 = vpop.f32.mrf.mxu3  ;;  %v11662_v23 = vld [vmem:[#allocation11 + $0xb0] sm:$0xff] }
 0x899   :  { %v6814_v29 = vpop.f32.mrf.mxu0  ;;  %8173 = vmatpush.bf16.msra.mxu2 %v11662_v23 }
 0x89a   :  { %v6815_v10 = vadd.f32 %v6814_v29, %v14041_v21  ;;  %v6863_v28 = vpop.f32.mrf.mxu1  ;;  %v14124_v33 = vpop.eup %12185  ;;  %v6960_v54 = vadd.f32 %v6959_v50, %v6911_v9  ;;  %8221 = vmatpush.bf16.msra.mxu3 %v11671_v34  ;;  %v15166_v34 = vld [vmem:[#allocation46_spill] sm:$0xff] }
 0x89b   :  { %v7532_v43 = vpack.c.bf16 %v14124_v33, %v14121_v24 }
 0x89c   :  { %v6864_v56 = vadd.f32 %v6863_v28, %v6815_v10  ;;  %12187 = vtanh.f32 %v6960_v54 }
 0x89e   :  { %8222 = vmatpush.bf16.msra.mxu3 %v11670_v41 }
 0x89f   :  { %v6912_v47 = vpop.f32.mrf.mxu2 }
 0x8a0   :  { %v6913_v19 = vadd.f32 %v6912_v47, %v6864_v56  ;;  %v6961_v49 = vpop.f32.mrf.mxu3  ;;  %v11654_v56 = vld [vmem:[#allocation11 + $0x70] sm:$0xff] }
 0x8a1   :  { %v6817_v0 = vpop.f32.mrf.mxu0  ;;  %8124 = vmatpush.bf16.msra.mxu1 %v11654_v56  ;;  %v11660_v56 = vld [vmem:[#allocation11 + $0xa0] sm:$0xff] }
 0x8a2   :  { %v6818_v21 = vadd.f32 %v6817_v0, %v14048_v36  ;;  %v6866_v63 = vpop.f32.mrf.mxu1  ;;  %v6962_v60 = vadd.f32 %v6961_v49, %v6913_v19  ;;  %v14133_v53 = vpop.eup %12187 }
 0x8a3   :  { %7012 = vmatmul.bf16.gmra.mxu0 %v14863_v16  ;;  %7061 = vmatmul.bf16.gmra.mxu1 %v14904_v55 }
 0x8a4   :  { %v6867_v44 = vadd.f32 %v6866_v63, %v6818_v21  ;;  %12189 = vtanh.f32 %v6962_v60  ;;  %7110 = vmatmul.bf16.gmra.mxu2 %v14905_v62 }
 0x8a5   :  { %7159 = vmatmul.bf16.gmra.mxu3 %v14906_v11 }
 0x8a7   :  { %v6915_v17 = vpop.f32.mrf.mxu2 }
 0x8a8   :  { %v6916_v36 = vadd.f32 %v6915_v17, %v6867_v44  ;;  %v6964_v5 = vpop.f32.mrf.mxu3  ;;  %v15167_v17 = vld [vmem:[#allocation47_spill] sm:$0xff] }
 0x8a9   :  { %v6819_v20 = vpop.f32.mrf.mxu0 }
 0x8aa   :  { %v6820_v16 = vadd.f32 %v6819_v20, %v14051_v46  ;;  %v6868_v30 = vpop.f32.mrf.mxu1  ;;  %v14136_v55 = vpop.eup %12189  ;;  %v6965_v62 = vadd.f32 %v6964_v5, %v6916_v36  ;;  %v11661_v36 = vld [vmem:[#allocation11 + $0xa8] sm:$0xff] }
 0x8ab   :  { %v7540_v26 = vpack.c.bf16 %v14136_v55, %v14133_v53  ;;  %v11645_v5 = vld [vmem:[#allocation11 + $0x28] sm:$0xff]  ;;  %8174 = vmatpush.bf16.msra.mxu2 %v11661_v36 }
 0x8ac   :  { %v6869_v11 = vadd.f32 %v6868_v30, %v6820_v16  ;;  %12191 = vtanh.f32 %v6965_v62  ;;  %v11669_v20 = vld [vmem:[#allocation11 + $0xe8] sm:$0xff]  ;;  %8076 = vmatpush.bf16.msra.mxu0 %v11645_v5 }
 0x8ad   :  { %8223 = vmatpush.bf16.msra.mxu3 %v11669_v20 }
 0x8af   :  { %v6917_v61 = vpop.f32.mrf.mxu2  ;;  %8175 = vmatpush.bf16.msra.mxu2 %v11660_v56 }
 0x8b0   :  { %v6918_v25 = vadd.f32 %v6917_v61, %v6869_v11  ;;  %v6966_v22 = vpop.f32.mrf.mxu3 }
 0x8b1   :  { %v6822_v13 = vpop.f32.mrf.mxu0  ;;  %8224 = vmatpush.bf16.msra.mxu3 %v11668_v57 }
 0x8b2   :  { %v6823_v6 = vadd.f32 %v6822_v13, %v14058_v4  ;;  %v6871_v2 = vpop.f32.mrf.mxu1  ;;  %v6967_v58 = vadd.f32 %v6966_v22, %v6918_v25  ;;  %v14145_v10 = vpop.eup %12191 }
 0x8b3   :  { %7017 = vmatmul.bf16.gmra.mxu0 %v12735_v12  ;;  %7066 = vmatmul.bf16.gmra.mxu1 %v14869_v45  ;;  %v15163_v12 = vld [vmem:[#allocation152_spill] sm:$0xff] }
 0x8b4   :  { %v6872_v46 = vadd.f32 %v6871_v2, %v6823_v6  ;;  %12193 = vtanh.f32 %v6967_v58  ;;  %7115 = vmatmul.bf16.gmra.mxu2 %v14870_v51  ;;  %v11653_v6 = vld [vmem:[#allocation11 + $0x68] sm:$0xff] }
 0x8b5   :  { %7164 = vmatmul.bf16.gmra.mxu3 %v14909_v14  ;;  %8125 = vmatpush.bf16.msra.mxu1 %v11653_v6  ;;  %v11659_v6 = vld [vmem:[#allocation11 + $0x98] sm:$0xff] }
 0x8b6   :  { %8176 = vmatpush.bf16.msra.mxu2 %v11659_v6 }
 0x8b7   :  { %v6920_v9 = vpop.f32.mrf.mxu2 }
 0x8b8   :  { %v6921_v4 = vadd.f32 %v6920_v9, %v6872_v46  ;;  %v6969_v50 = vpop.f32.mrf.mxu3 }
 0x8b9   :  { %v6824_v29 = vpop.f32.mrf.mxu0 }
 0x8ba   :  { %v6825_v28 = vadd.f32 %v6824_v29, %v15163_v12  ;;  %v6873_v54 = vpop.f32.mrf.mxu1  ;;  %v14148_v45 = vpop.eup %12193  ;;  %v6970_v51 = vadd.f32 %v6969_v50, %v6921_v4  ;;  %v15168_v12 = vld [vmem:[#allocation48_spill] sm:$0xff] }
 0x8bb   :  { %v7548_v40 = vpack.c.bf16 %v14148_v45, %v14145_v10 }
 0x8bc   :  { %v6874_v14 = vadd.f32 %v6873_v54, %v6825_v28  ;;  %12195 = vtanh.f32 %v6970_v51  ;;  %v15169_v28 = vld [vmem:[#allocation49_spill] sm:$0xff]  ;;  %v15170_v54 = vld [vmem:[#allocation50_spill] sm:$0xff]  ;;  %v15171_v51 = vld [vmem:[#allocation51_spill] sm:$0xff] }
 0x8bf   :  { %v6922_v47 = vpop.f32.mrf.mxu2 }
 0x8c0   :  { %v6923_v19 = vadd.f32 %v6922_v47, %v6874_v14  ;;  %v6971_v49 = vpop.f32.mrf.mxu3  ;;  %v11644_v14 = vld [vmem:[#allocation11 + $0x20] sm:$0xff] }
 0x8c1   :  { %v6983_v0 = vpop.f32.mrf.mxu0  ;;  %8077 = vmatpush.bf16.msra.mxu0 %v11644_v14 }
 0x8c2   :  { %v6984_v21 = vadd.f32 %v6983_v0, %v14152_v52  ;;  %v7032_v63 = vpop.f32.mrf.mxu1  ;;  %v6972_v60 = vadd.f32 %v6971_v49, %v6923_v19  ;;  %v14159_v11 = vpop.eup %12195 }
 0x8c3   :  { %7178 = vmatmul.bf16.vlgmr.msrb.gmra.mxu0 %v15164_v3  ;;  %7227 = vmatmul.bf16.vlgmr.msrb.gmra.mxu1 %v15165_v38 }
 0x8c4   :  { %v7033_v44 = vadd.f32 %v7032_v63, %v6984_v21  ;;  %12197 = vtanh.f32 %v6972_v60  ;;  %7276 = vmatmul.bf16.vlgmr.msrb.gmra.mxu2 %v15166_v34 }
 0x8c5   :  { %7325 = vmatmul.bf16.vlgmr.msrb.gmra.mxu3 %v15167_v17 }
 0x8c7   :  { %v7081_v16 = vpop.f32.mrf.mxu2 }
 0x8c8   :  { %v7082_v30 = vadd.f32 %v7081_v16, %v7033_v44  ;;  %v7130_v62 = vpop.f32.mrf.mxu3  ;;  %v11652_v44 = vld [vmem:[#allocation11 + $0x60] sm:$0xff] }
 0x8c9   :  { %v6985_v15 = vpop.f32.mrf.mxu0  ;;  %8126 = vmatpush.bf16.msra.mxu1 %v11652_v44  ;;  %v15178_v44 = vld [vmem:[#allocation58_spill] sm:$0xff] }
 0x8ca   :  { %v6986_v61 = vadd.f32 %v6985_v15, %v14152_v52  ;;  %v7034_v25 = vpop.f32.mrf.mxu1  ;;  %v14162_v22 = vpop.eup %12197  ;;  %v14164_v13 = vadd.f32 %v7130_v62, %v7082_v30  ;;  %v15172_v62 = vld [vmem:[#allocation52_spill] sm:$0xff]  ;;  %v15173_v15 = vld [vmem:[#allocation53_spill] sm:$0xff] }
 0x8cb   :  { %v7556_v58 = vpack.c.bf16 %v14162_v22, %v14159_v11 }
 0x8cc   :  { %v7035_v2 = vadd.f32 %v7034_v25, %v6986_v61  ;;  %v15174_v61 = vld [vmem:[#allocation54_spill] sm:$0xff]  ;;  %v15175_v25 = vld [vmem:[#allocation55_spill] sm:$0xff] }
 0x8cf   :  { %v7083_v46 = vpop.f32.mrf.mxu2 }
 0x8d0   :  { %v7084_v23 = vadd.f32 %v7083_v46, %v7035_v2  ;;  %v7132_v42 = vpop.f32.mrf.mxu3  ;;  %v11643_v2 = vld [vmem:[#allocation11 + $0x18] sm:$0xff] }
 0x8d1   :  { %v6988_v41 = vpop.f32.mrf.mxu0  ;;  %v11667_v46 = vld [vmem:[#allocation11 + $0xd8] sm:$0xff]  ;;  %8078 = vmatpush.bf16.msra.mxu0 %v11643_v2 }
 0x8d2   :  { %v6989_v9 = vadd.f32 %v6988_v41, %v14152_v52  ;;  %v7037_v4 = vpop.f32.mrf.mxu1  ;;  %v14169_v50 = vadd.f32 %v7132_v42, %v7084_v23  ;;  %8225 = vmatpush.bf16.msra.mxu3 %v11667_v46 }
 0x8d3   :  { %7183 = vmatmul.bf16.gmra.mxu0 %v15168_v12  ;;  %7232 = vmatmul.bf16.gmra.mxu1 %v15169_v28  ;;  %v11651_v28 = vld [vmem:[#allocation11 + $0x58] sm:$0xff] }
 0x8d4   :  { %v7038_v29 = vadd.f32 %v7037_v4, %v6989_v9  ;;  %7281 = vmatmul.bf16.gmra.mxu2 %v15170_v54  ;;  %8127 = vmatpush.bf16.msra.mxu1 %v11651_v28  ;;  %v15180_v28 = vld [vmem:[#allocation60_spill] sm:$0xff] }
 0x8d5   :  { %7330 = vmatmul.bf16.gmra.mxu3 %v15171_v51 }
 0x8d7   :  { %v7086_v47 = vpop.f32.mrf.mxu2 }
 0x8d8   :  { %v7087_v19 = vadd.f32 %v7086_v47, %v7038_v29  ;;  %v7135_v49 = vpop.f32.mrf.mxu3 }
 0x8d9   :  { %v6990_v0 = vpop.f32.mrf.mxu0 }
 0x8da   :  { %v6991_v21 = vadd.f32 %v6990_v0, %v14152_v52  ;;  %v7039_v63 = vpop.f32.mrf.mxu1  ;;  %v14176_v60 = vadd.f32 %v7135_v49, %v7087_v19 }
 0x8dc   :  { %v7040_v3 = vadd.f32 %v7039_v63, %v6991_v21  ;;  %v15176_v21 = vld [vmem:[#allocation56_spill] sm:$0xff]  ;;  %v15177_v63 = vld [vmem:[#allocation57_spill] sm:$0xff] }
 0x8df   :  { %v7088_v38 = vpop.f32.mrf.mxu2 }
 0x8e0   :  { %v7089_v34 = vadd.f32 %v7088_v38, %v7040_v3  ;;  %v7137_v17 = vpop.f32.mrf.mxu3  ;;  %v15179_v3 = vld [vmem:[#allocation59_spill] sm:$0xff]  ;;  %v11658_v38 = vld [vmem:[#allocation11 + $0x90] sm:$0xff] }
 0x8e1   :  { %v6993_v36 = vpop.f32.mrf.mxu0  ;;  %8177 = vmatpush.bf16.msra.mxu2 %v11658_v38 }
 0x8e2   :  { %v6994_v5 = vadd.f32 %v6993_v36, %v14152_v52  ;;  %v7042_v20 = vpop.f32.mrf.mxu1  ;;  %v14179_v16 = vadd.f32 %v7137_v17, %v7089_v34  ;;  %v11642_v34 = vld [vmem:[#allocation11 + $0x10] sm:$0xff] }
 0x8e3   :  { %7188 = vmatmul.bf16.gmra.mxu0 %v15172_v62  ;;  %7237 = vmatmul.bf16.gmra.mxu1 %v15173_v15  ;;  %v11666_v17 = vld [vmem:[#allocation11 + $0xd0] sm:$0xff] }
 0x8e4   :  { %v7043_v30 = vadd.f32 %v7042_v20, %v6994_v5  ;;  %7286 = vmatmul.bf16.gmra.mxu2 %v15174_v61  ;;  %8079 = vmatpush.bf16.msra.mxu0 %v11642_v34  ;;  %v11649_v34 = vld [vmem:[#allocation11 + $0x48] sm:$0xff] }
 0x8e5   :  { %7335 = vmatmul.bf16.gmra.mxu3 %v15175_v25  ;;  %v11650_v25 = vld [vmem:[#allocation11 + $0x50] sm:$0xff] }
 0x8e6   :  { %8226 = vmatpush.bf16.msra.mxu3 %v11666_v17  ;;  %8128 = vmatpush.bf16.msra.mxu1 %v11650_v25 }
 0x8e7   :  { %v7091_v23 = vpop.f32.mrf.mxu2 }
 0x8e8   :  { %v7092_v42 = vadd.f32 %v7091_v23, %v7043_v30  ;;  %v7140_v41 = vpop.f32.mrf.mxu3 }
 0x8e9   :  { %v6995_v9 = vpop.f32.mrf.mxu0 }
 0x8ea   :  { %v6996_v4 = vadd.f32 %v6995_v9, %v14152_v52  ;;  %v7044_v29 = vpop.f32.mrf.mxu1  ;;  %v14186_v12 = vadd.f32 %v7140_v41, %v7092_v42  ;;  %8129 = vmatpush.bf16.msra.mxu1 %v11649_v34 }
 0x8ec   :  { %v7045_v54 = vadd.f32 %v7044_v29, %v6996_v4 }
 0x8ef   :  { %v7093_v51 = vpop.f32.mrf.mxu2 }
 0x8f0   :  { %v7094_v56 = vadd.f32 %v7093_v51, %v7045_v54  ;;  %v7142_v14 = vpop.f32.mrf.mxu3  ;;  %v15181_v54 = vld [vmem:[#allocation61_spill] sm:$0xff]  ;;  %v15182_v51 = vld [vmem:[#allocation62_spill] sm:$0xff] }
 0x8f1   :  { %v6998_v57 = vpop.f32.mrf.mxu0 }
 0x8f2   :  { %v6999_v47 = vadd.f32 %v6998_v57, %v14152_v52  ;;  %v7047_v19 = vpop.f32.mrf.mxu1  ;;  %v14189_v49 = vadd.f32 %v7142_v14, %v7094_v56  ;;  %v15183_v56 = vld [vmem:[#allocation63_spill] sm:$0xff]  ;;  %v11657_v14 = vld [vmem:[#allocation11 + $0x88] sm:$0xff] }
 0x8f3   :  { %7193 = vmatmul.bf16.gmra.mxu0 %v15176_v21  ;;  %7242 = vmatmul.bf16.gmra.mxu1 %v15177_v63  ;;  %v11641_v57 = vld [vmem:[#allocation11 + $0x8] sm:$0xff] }
 0x8f4   :  { %v7048_v0 = vadd.f32 %v7047_v19, %v6999_v47  ;;  %7291 = vmatmul.bf16.gmra.mxu2 %v15178_v44  ;;  %v11665_v47 = vld [vmem:[#allocation11 + $0xc8] sm:$0xff]  ;;  %8080 = vmatpush.bf16.msra.mxu0 %v11641_v57 }
 0x8f5   :  { %7340 = vmatmul.bf16.gmra.mxu3 %v15179_v3  ;;  %8178 = vmatpush.bf16.msra.mxu2 %v11657_v14 }
 0x8f6   :  { %8227 = vmatpush.bf16.msra.mxu3 %v11665_v47 }
 0x8f7   :  { %v7096_v36 = vpop.f32.mrf.mxu2 }
 0x8f8   :  { %v7097_v5 = vadd.f32 %v7096_v36, %v7048_v0  ;;  %v7145_v20 = vpop.f32.mrf.mxu3 }
 0x8f9   :  { %v7000_v30 = vpop.f32.mrf.mxu0 }
 0x8fa   :  { %v7001_v62 = vadd.f32 %v7000_v30, %v14152_v52  ;;  %v7049_v15 = vpop.f32.mrf.mxu1  ;;  %v14196_v61 = vadd.f32 %v7145_v20, %v7097_v5 }
 0x8fc   :  { %v7050_v6 = vadd.f32 %v7049_v15, %v7001_v62 }
 0x8ff   :  { %v7098_v2 = vpop.f32.mrf.mxu2 }
 0x900   :  { %v7099_v46 = vadd.f32 %v7098_v2, %v7050_v6  ;;  %v7147_v23 = vpop.f32.mrf.mxu3  ;;  %v15184_v2 = vld [vmem:[#allocation64_spill] sm:$0xff] }
 0x901   :  { %v7003_v42 = vpop.f32.mrf.mxu0 }
 0x902   :  { %v7004_v41 = vadd.f32 %v7003_v42, %v14152_v52  ;;  %v7052_v9 = vpop.f32.mrf.mxu1  ;;  %v14199_v4 = vadd.f32 %v7147_v23, %v7099_v46  ;;  %v15185_v46 = vld [vmem:[#allocation65_spill] sm:$0xff]  ;;  %v15186_v23 = vld [vmem:[#allocation66_spill] sm:$0xff]  ;;  %v15187_v42 = vld [vmem:[#allocation67_spill] sm:$0xff] }
 0x903   :  { %7198 = vmatmul.bf16.gmra.mxu0 %v15180_v28  ;;  %7247 = vmatmul.bf16.gmra.mxu1 %v15181_v54 }
 0x904   :  { %v7053_v29 = vadd.f32 %v7052_v9, %v7004_v41  ;;  %7296 = vmatmul.bf16.gmra.mxu2 %v15182_v51  ;;  %v11656_v41 = vld [vmem:[#allocation11 + $0x80] sm:$0xff] }
 0x905   :  { %7345 = vmatmul.bf16.gmra.mxu3 %v15183_v56  ;;  %v11640_v9 = vld [vmem:[#allocation11] sm:$0xff]  ;;  %8179 = vmatpush.bf16.msra.mxu2 %v11656_v41 }
 0x906   :  { %8081 = vmatpush.bf16.msra.mxu0 %v11640_v9 }
 0x907   :  { %v7101_v19 = vpop.f32.mrf.mxu2 }
 0x908   :  { %v7102_v0 = vadd.f32 %v7101_v19, %v7053_v29  ;;  %v7150_v21 = vpop.f32.mrf.mxu3  ;;  %v11664_v29 = vld [vmem:[#allocation11 + $0xc0] sm:$0xff] }
 0x909   :  { %v7005_v63 = vpop.f32.mrf.mxu0  ;;  %8228 = vmatpush.bf16.msra.mxu3 %v11664_v29  ;;  %v11648_v19 = vld [vmem:[#allocation11 + $0x40] sm:$0xff] }
 0x90a   :  { %v7006_v44 = vadd.f32 %v7005_v63, %v14152_v52  ;;  %v7054_v3 = vpop.f32.mrf.mxu1  ;;  %v14206_v38 = vadd.f32 %v7150_v21, %v7102_v0  ;;  %8130 = vmatpush.bf16.msra.mxu1 %v11648_v19 }
 0x90c   :  { %v7055_v17 = vadd.f32 %v7054_v3, %v7006_v44 }
 0x90f   :  { %v7103_v36 = vpop.f32.mrf.mxu2 }
 0x910   :  { %v7104_v5 = vadd.f32 %v7103_v36, %v7055_v17  ;;  %v7152_v20 = vpop.f32.mrf.mxu3 }
 0x911   :  { %v7008_v30 = vpop.f32.mrf.mxu0 }
 0x912   :  { %v7009_v62 = vadd.f32 %v7008_v30, %v14152_v52  ;;  %v7057_v15 = vpop.f32.mrf.mxu1  ;;  %v14209_v25 = vadd.f32 %v7152_v20, %v7104_v5  ;;  %v15188_v20 = vld [vmem:[#allocation68_spill] sm:$0xff]  ;;  %v15189_v30 = vld [vmem:[#allocation69_spill] sm:$0xff] }
 0x913   :  { %7203 = vmatmul.bf16.gmra.mxu0 %v15184_v2  ;;  %7252 = vmatmul.bf16.gmra.mxu1 %v15185_v46  ;;  %v11679_v2 = vld [vmem:[#allocation11 + $0x138] sm:$0xff] }
 0x914   :  { %v7058_v6 = vadd.f32 %v7057_v15, %v7009_v62  ;;  %7301 = vmatmul.bf16.gmra.mxu2 %v15186_v23  ;;  %v15190_v62 = vld [vmem:[#allocation70_spill] sm:$0xff]  ;;  %v15191_v15 = vld [vmem:[#allocation71_spill] sm:$0xff]  ;;  %8270 = vmatpush.bf16.msrb.mxu0 %v11679_v2 }
 0x915   :  { %7350 = vmatmul.bf16.gmra.mxu3 %v15187_v42  ;;  %v11703_v46 = vld [vmem:[#allocation11 + $0x1f8] sm:$0xff] }
 0x916   :  { %8417 = vmatpush.bf16.msrb.mxu3 %v11703_v46 }
 0x917   :  { %v7106_v28 = vpop.f32.mrf.mxu2 }
 0x918   :  { %v7107_v54 = vadd.f32 %v7106_v28, %v7058_v6  ;;  %v7155_v51 = vpop.f32.mrf.mxu3  ;;  %v11695_v6 = vld [vmem:[#allocation11 + $0x1b8] sm:$0xff] }
 0x919   :  { %v7010_v56 = vpop.f32.mrf.mxu0  ;;  %8368 = vmatpush.bf16.msrb.mxu2 %v11695_v6 }
 0x91a   :  { %v7011_v14 = vadd.f32 %v7010_v56, %v14152_v52  ;;  %v7059_v57 = vpop.f32.mrf.mxu1  ;;  %v14216_v47 = vadd.f32 %v7155_v51, %v7107_v54  ;;  %v11687_v56 = vld [vmem:[#allocation11 + $0x178] sm:$0xff] }
 0x91b   :  { %8319 = vmatpush.bf16.msrb.mxu1 %v11687_v56 }
 0x91c   :  { %v7060_v0 = vadd.f32 %v7059_v57, %v7011_v14 }
 0x91f   :  { %v7108_v21 = vpop.f32.mrf.mxu2 }
 0x920   :  { %v7109_v63 = vadd.f32 %v7108_v21, %v7060_v0  ;;  %v7157_v44 = vpop.f32.mrf.mxu3 }
 0x921   :  { %v7013_v3 = vpop.f32.mrf.mxu0 }
 0x922   :  { %v7014_v34 = vadd.f32 %v7013_v3, %v14152_v52  ;;  %v7062_v17 = vpop.f32.mrf.mxu1  ;;  %v14219_v36 = vadd.f32 %v7157_v44, %v7109_v63 }
 0x923   :  { %7208 = vmatmul.bf16.gmra.mxu0 %v15188_v20  ;;  %7257 = vmatmul.bf16.gmra.mxu1 %v15189_v30  ;;  %v15195_v20 = vld [vmem:[#allocation75_spill] sm:$0xff] }
 0x924   :  { %v7063_v5 = vadd.f32 %v7062_v17, %v7014_v34  ;;  %7306 = vmatmul.bf16.gmra.mxu2 %v15190_v62  ;;  %v15192_v34 = vld [vmem:[#allocation72_spill] sm:$0xff]  ;;  %v15193_v17 = vld [vmem:[#allocation73_spill] sm:$0xff] }
 0x925   :  { %7355 = vmatmul.bf16.gmra.mxu3 %v15191_v15 }
 0x927   :  { %v7111_v23 = vpop.f32.mrf.mxu2 }
 0x928   :  { %v7112_v42 = vadd.f32 %v7111_v23, %v7063_v5  ;;  %v7160_v41 = vpop.f32.mrf.mxu3  ;;  %v15194_v5 = vld [vmem:[#allocation74_spill] sm:$0xff] }
 0x929   :  { %v7015_v9 = vpop.f32.mrf.mxu0 }
 0x92a   :  { %v7016_v29 = vadd.f32 %v7015_v9, %v14152_v52  ;;  %v7064_v28 = vpop.f32.mrf.mxu1  ;;  %v14226_v54 = vadd.f32 %v7160_v41, %v7112_v42  ;;  %v11694_v41 = vld [vmem:[#allocation11 + $0x1b0] sm:$0xff] }
 0x92b   :  { %v11678_v9 = vld [vmem:[#allocation11 + $0x130] sm:$0xff]  ;;  %8369 = vmatpush.bf16.msrb.mxu2 %v11694_v41  ;;  %v11701_v41 = vld [vmem:[#allocation11 + $0x1e8] sm:$0xff] }
 0x92c   :  { %v7065_v51 = vadd.f32 %v7064_v28, %v7016_v29  ;;  %v11702_v29 = vld [vmem:[#allocation11 + $0x1f0] sm:$0xff]  ;;  %8271 = vmatpush.bf16.msrb.mxu0 %v11678_v9 }
 0x92d   :  { %v11686_v28 = vld [vmem:[#allocation11 + $0x170] sm:$0xff]  ;;  %8418 = vmatpush.bf16.msrb.mxu3 %v11702_v29 }
 0x92e   :  { %8320 = vmatpush.bf16.msrb.mxu1 %v11686_v28 }
 0x92f   :  { %v7113_v14 = vpop.f32.mrf.mxu2 }
 0x930   :  { %v7114_v57 = vadd.f32 %v7113_v14, %v7065_v51  ;;  %v7162_v19 = vpop.f32.mrf.mxu3 }
 0x931   :  { %v7018_v0 = vpop.f32.mrf.mxu0  ;;  %8419 = vmatpush.bf16.msrb.mxu3 %v11701_v41 }
 0x932   :  { %v7019_v21 = vadd.f32 %v7018_v0, %v14152_v52  ;;  %v7067_v63 = vpop.f32.mrf.mxu1  ;;  %v14229_v44 = vadd.f32 %v7162_v19, %v7114_v57 }
 0x933   :  { %7213 = vmatmul.bf16.gmra.mxu0 %v15192_v34  ;;  %7262 = vmatmul.bf16.gmra.mxu1 %v15193_v17  ;;  %v15199_v17 = vld [vmem:[#allocation42_spill] sm:$0xff] }
 0x934   :  { %v7068_v3 = vadd.f32 %v7067_v63, %v7019_v21  ;;  %7311 = vmatmul.bf16.gmra.mxu2 %v15194_v5  ;;  %v15196_v63 = vld [vmem:[#allocation77_spill] sm:$0xff] }
 0x935   :  { %7360 = vmatmul.bf16.gmra.mxu3 %v15195_v20  ;;  %v15200_v5 = vld [vmem:[#allocation41_spill] sm:$0xff] }
 0x936   :  { %v15201_v20 = vpack.c.bf16 %v15199_v17, %v15200_v5 }
 0x937   :  { %v7116_v30 = vpop.f32.mrf.mxu2 }
 0x938   :  { %v7117_v62 = vadd.f32 %v7116_v30, %v7068_v3  ;;  %v7165_v15 = vpop.f32.mrf.mxu3  ;;  %v15197_v3 = vld [vmem:[#allocation76_spill] sm:$0xff]  ;;  %v15202_v30 = vld [vmem:[#allocation90_spill] sm:$0xff] }
 0x939   :  { %v7020_v6 = vpop.f32.mrf.mxu0  ;;  %v15198_v34 = vpack.c.bf16 %v15196_v63, %v15197_v3 }
 0x93a   :  { %v7021_v2 = vadd.f32 %v7020_v6, %v14152_v52  ;;  %v7069_v46 = vpop.f32.mrf.mxu1  ;;  %v14236_v23 = vadd.f32 %v7165_v15, %v7117_v62  ;;  %v15203_v62 = vld [vmem:[#allocation89_spill] sm:$0xff]  ;;  %v15205_v6 = vld [vmem:[#allocation106_spill] sm:$0xff] }
 0x93b   :  { %v15204_v15 = vpack.c.bf16 %v15202_v30, %v15203_v62  ;;  %v15208_v62 = vld [vmem:[#allocation78_spill] sm:$0xff] }
 0x93c   :  { %v7070_v42 = vadd.f32 %v7069_v46, %v7021_v2  ;;  %v15206_v2 = vld [vmem:[#allocation105_spill] sm:$0xff] }
 0x93d   :  { %v15207_v46 = vpack.c.bf16 %v15205_v6, %v15206_v2  ;;  %v15212_v2 = vld [vmem:[#allocation79_spill] sm:$0xff] }
 0x93f   :  { %v7118_v51 = vpop.f32.mrf.mxu2 }
 0x940   :  { %v7119_v56 = vadd.f32 %v7118_v51, %v7070_v42  ;;  %v7167_v14 = vpop.f32.mrf.mxu3  ;;  %v11677_v42 = vld [vmem:[#allocation11 + $0x128] sm:$0xff] }
 0x941   :  { %v7179_v57 = vpop.f32.mrf.mxu0  ;;  %8272 = vmatpush.bf16.msrb.mxu0 %v11677_v42  ;;  %v15215_v42 = vld [vmem:[#allocation91_spill] sm:$0xff] }
 0x942   :  { %v7180_v19 = vadd.f32 %v7179_v57, %v14164_v13  ;;  %v7228_v0 = vpop.f32.mrf.mxu1  ;;  %v14239_v52 = vadd.f32 %v7167_v14, %v7119_v56  ;;  %v11693_v13 = vld [vmem:[#allocation11 + $0x1a8] sm:$0xff] }
 0x943   :  { %8082 = vmatmul.bf16.vlgmr.msra.gmra.mxu0 %v15198_v34  ;;  %8131 = vmatmul.bf16.vlgmr.msra.gmra.mxu1 %v15201_v20 }
 0x944   :  { %v7229_v21 = vadd.f32 %v7228_v0, %v7180_v19  ;;  %8180 = vmatmul.bf16.vlgmr.msra.gmra.mxu2 %v15204_v15  ;;  %v11685_v0 = vld [vmem:[#allocation11 + $0x168] sm:$0xff] }
 0x945   :  { %8229 = vmatmul.bf16.vlgmr.msra.gmra.mxu3 %v15207_v46  ;;  %8370 = vmatpush.bf16.msrb.mxu2 %v11693_v13  ;;  %v15209_v15 = vld [vmem:[#allocation24_spill] sm:$0xff] }
 0x946   :  { %8321 = vmatpush.bf16.msrb.mxu1 %v11685_v0  ;;  %v15210_v6 = vpack.c.bf16 %v15208_v62, %v15209_v15  ;;  %v15214_v13 = vld [vmem:[#allocation92_spill] sm:$0xff] }
 0x947   :  { %v7277_v9 = vpop.f32.mrf.mxu2  ;;  %v15216_v41 = vpack.c.bf16 %v15214_v13, %v15215_v42  ;;  %v11684_v62 = vld [vmem:[#allocation11 + $0x160] sm:$0xff]  ;;  %v15220_v42 = vld [vmem:[#allocation26_spill] sm:$0xff] }
 0x948   :  { %v7278_v29 = vadd.f32 %v7277_v9, %v7229_v21  ;;  %v7326_v28 = vpop.f32.mrf.mxu3  ;;  %v15217_v9 = vld [vmem:[#allocation108_spill] sm:$0xff] }
 0x949   :  { %v7181_v51 = vpop.f32.mrf.mxu0 }
 0x94a   :  { %v7182_v56 = vadd.f32 %v7181_v51, %v14169_v50  ;;  %v7230_v14 = vpop.f32.mrf.mxu1  ;;  %v7327_v57 = vadd.f32 %v7326_v28, %v7278_v29  ;;  %v15211_v50 = vld [vmem:[#allocation80_spill] sm:$0xff]  ;;  %v15218_v29 = vld [vmem:[#allocation107_spill] sm:$0xff]  ;;  %8322 = vmatpush.bf16.msrb.mxu1 %v11684_v62 }
 0x94b   :  { %v15213_v46 = vpack.c.bf16 %v15211_v50, %v15212_v2  ;;  %v11692_v28 = vld [vmem:[#allocation11 + $0x1a0] sm:$0xff] }
 0x94c   :  { %v7231_v19 = vadd.f32 %v7230_v14, %v7182_v56  ;;  %12199 = vtanh.f32 %v7327_v57  ;;  %v11676_v51 = vld [vmem:[#allocation11 + $0x120] sm:$0xff]  ;;  %8371 = vmatpush.bf16.msrb.mxu2 %v11692_v28 }
 0x94d   :  { %v11700_v56 = vld [vmem:[#allocation11 + $0x1e0] sm:$0xff]  ;;  %8273 = vmatpush.bf16.msrb.mxu0 %v11676_v51  ;;  %v15226_v51 = vld [vmem:[#allocation94_spill] sm:$0xff] }
 0x94e   :  { %8420 = vmatpush.bf16.msrb.mxu3 %v11700_v56  ;;  %v15227_v56 = vld [vmem:[#allocation93_spill] sm:$0xff] }
 0x94f   :  { %v7279_v63 = vpop.f32.mrf.mxu2 }
 0x950   :  { %v7280_v3 = vadd.f32 %v7279_v63, %v7231_v19  ;;  %v7328_v34 = vpop.f32.mrf.mxu3 }
 0x951   :  { %v7184_v17 = vpop.f32.mrf.mxu0 }
 0x952   :  { %v7185_v5 = vadd.f32 %v7184_v17, %v14176_v60  ;;  %v7233_v20 = vpop.f32.mrf.mxu1  ;;  %v7329_v30 = vadd.f32 %v7328_v34, %v7280_v3  ;;  %v15219_v60 = vpack.c.bf16 %v15217_v9, %v15218_v29  ;;  %v14267_v63 = vpop.eup %12199  ;;  %v15223_v29 = vld [vmem:[#allocation82_spill] sm:$0xff] }
 0x953   :  { %8087 = vmatmul.bf16.gmra.mxu0 %v15210_v6  ;;  %8136 = vmatmul.bf16.gmra.mxu1 %v15213_v46 }
 0x954   :  { %v7234_v21 = vadd.f32 %v7233_v20, %v7185_v5  ;;  %12201 = vtanh.f32 %v7329_v30  ;;  %8185 = vmatmul.bf16.gmra.mxu2 %v15216_v41  ;;  %v15221_v41 = vld [vmem:[#allocation25_spill] sm:$0xff] }
 0x955   :  { %8234 = vmatmul.bf16.gmra.mxu3 %v15219_v60  ;;  %v15222_v9 = vpack.c.bf16 %v15220_v42, %v15221_v41  ;;  %v15224_v60 = vld [vmem:[#allocation81_spill] sm:$0xff]  ;;  %v11683_v41 = vld [vmem:[#allocation11 + $0x158] sm:$0xff] }
 0x956   :  { %v15225_v28 = vpack.c.bf16 %v15223_v29, %v15224_v60  ;;  %8323 = vmatpush.bf16.msrb.mxu1 %v11683_v41 }
 0x957   :  { %v7282_v14 = vpop.f32.mrf.mxu2 }
 0x958   :  { %v7283_v57 = vadd.f32 %v7282_v14, %v7234_v21  ;;  %v7331_v19 = vpop.f32.mrf.mxu3  ;;  %v15228_v14 = vpack.c.bf16 %v15226_v51, %v15227_v56 }
 0x959   :  { %v7186_v0 = vpop.f32.mrf.mxu0 }
 0x95a   :  { %v7187_v3 = vadd.f32 %v7186_v0, %v14179_v16  ;;  %v7235_v34 = vpop.f32.mrf.mxu1  ;;  %v14270_v17 = vpop.eup %12201  ;;  %v7332_v5 = vadd.f32 %v7331_v19, %v7283_v57  ;;  %v15229_v57 = vld [vmem:[#allocation110_spill] sm:$0xff]  ;;  %v15230_v19 = vld [vmem:[#allocation109_spill] sm:$0xff] }
 0x95b   :  { %v7501_v20 = vpack.c.bf16 %v14270_v17, %v14267_v63  ;;  %v11691_v0 = vld [vmem:[#allocation11 + $0x198] sm:$0xff] }
 0x95c   :  { %v7236_v30 = vadd.f32 %v7235_v34, %v7187_v3  ;;  %12203 = vtanh.f32 %v7332_v5  ;;  %v11675_v3 = vld [vmem:[#allocation11 + $0x118] sm:$0xff]  ;;  %8372 = vmatpush.bf16.msrb.mxu2 %v11691_v0 }
 0x95d   :  { %v11699_v34 = vld [vmem:[#allocation11 + $0x1d8] sm:$0xff]  ;;  %8274 = vmatpush.bf16.msrb.mxu0 %v11675_v3 }
 0x95e   :  { %8421 = vmatpush.bf16.msrb.mxu3 %v11699_v34  ;;  %v15236_v0 = vld [vmem:[#allocation83_spill] sm:$0xff]  ;;  %v15238_v34 = vld [vmem:[#allocation96_spill] sm:$0xff] }
 0x95f   :  { %v7284_v15 = vpop.f32.mrf.mxu2 }
 0x960   :  { %v7285_v6 = vadd.f32 %v7284_v15, %v7236_v30  ;;  %v7333_v21 = vpop.f32.mrf.mxu3 }
 0x961   :  { %v7189_v50 = vpop.f32.mrf.mxu0 }
 0x962   :  { %v7190_v2 = vadd.f32 %v7189_v50, %v14186_v12  ;;  %v7238_v46 = vpop.f32.mrf.mxu1  ;;  %v7334_v13 = vadd.f32 %v7333_v21, %v7285_v6  ;;  %v15231_v12 = vpack.c.bf16 %v15229_v57, %v15230_v19  ;;  %v14287_v6 = vpop.eup %12203  ;;  %v15233_v57 = vld [vmem:[#allocation27_spill] sm:$0xff] }
 0x963   :  { %8092 = vmatmul.bf16.gmra.mxu0 %v15222_v9  ;;  %8141 = vmatmul.bf16.gmra.mxu1 %v15225_v28 }
 0x964   :  { %v7239_v16 = vadd.f32 %v7238_v46, %v7190_v2  ;;  %12205 = vtanh.f32 %v7334_v13  ;;  %8190 = vmatmul.bf16.gmra.mxu2 %v15228_v14  ;;  %v15232_v14 = vld [vmem:[#allocation28_spill] sm:$0xff] }
 0x965   :  { %8239 = vmatmul.bf16.gmra.mxu3 %v15231_v12  ;;  %v15234_v19 = vpack.c.bf16 %v15232_v14, %v15233_v57  ;;  %v15235_v12 = vld [vmem:[#allocation84_spill] sm:$0xff] }
 0x966   :  { %v15237_v3 = vpack.c.bf16 %v15235_v12, %v15236_v0 }
 0x967   :  { %v7287_v5 = vpop.f32.mrf.mxu2 }
 0x968   :  { %v7288_v30 = vadd.f32 %v7287_v5, %v7239_v16  ;;  %v7336_v62 = vpop.f32.mrf.mxu3  ;;  %v15239_v5 = vld [vmem:[#allocation95_spill] sm:$0xff] }
 0x969   :  { %v7191_v15 = vpop.f32.mrf.mxu0 }
 0x96a   :  { %v7192_v21 = vadd.f32 %v7191_v15, %v14189_v49  ;;  %v7240_v50 = vpop.f32.mrf.mxu1  ;;  %v14290_v2 = vpop.eup %12205  ;;  %v7337_v46 = vadd.f32 %v7336_v62, %v7288_v30  ;;  %v15240_v30 = vpack.c.bf16 %v15238_v34, %v15239_v5  ;;  %v15241_v62 = vld [vmem:[#allocation112_spill] sm:$0xff]  ;;  %v15242_v15 = vld [vmem:[#allocation111_spill] sm:$0xff] }
 0x96b   :  { %v7509_v42 = vpack.c.bf16 %v14290_v2, %v14287_v6  ;;  %v15304_v2 = vld [vmem:[#allocation126_spill] sm:$0xff] }
 0x96c   :  { %v7241_v13 = vadd.f32 %v7240_v50, %v7192_v21  ;;  %12207 = vtanh.f32 %v7337_v46  ;;  %v11690_v21 = vld [vmem:[#allocation11 + $0x190] sm:$0xff] }
 0x96d   :  { %v11674_v50 = vld [vmem:[#allocation11 + $0x110] sm:$0xff]  ;;  %8373 = vmatpush.bf16.msrb.mxu2 %v11690_v21 }
 0x96e   :  { %v11698_v46 = vld [vmem:[#allocation11 + $0x1d0] sm:$0xff]  ;;  %8275 = vmatpush.bf16.msrb.mxu0 %v11674_v50  ;;  %v15248_v50 = vld [vmem:[#allocation36_spill] sm:$0xff] }
 0x96f   :  { %v7289_v9 = vpop.f32.mrf.mxu2  ;;  %8422 = vmatpush.bf16.msrb.mxu3 %v11698_v46  ;;  %v15247_v21 = vld [vmem:[#allocation85_spill] sm:$0xff] }
 0x970   :  { %v7290_v29 = vadd.f32 %v7289_v9, %v7241_v13  ;;  %v7338_v16 = vpop.f32.mrf.mxu3  ;;  %v15249_v46 = vpack.c.bf16 %v15247_v21, %v15248_v50  ;;  %v11681_v21 = vld [vmem:[#allocation11 + $0x148] sm:$0xff] }
 0x971   :  { %v7194_v60 = vpop.f32.mrf.mxu0 }
 0x972   :  { %v7195_v28 = vadd.f32 %v7194_v60, %v14196_v61  ;;  %v7243_v51 = vpop.f32.mrf.mxu1  ;;  %v7339_v56 = vadd.f32 %v7338_v16, %v7290_v29  ;;  %v15243_v61 = vpack.c.bf16 %v15241_v62, %v15242_v15  ;;  %v14307_v16 = vpop.eup %12207  ;;  %v15244_v62 = vld [vmem:[#allocation30_spill] sm:$0xff]  ;;  %v15245_v15 = vld [vmem:[#allocation29_spill] sm:$0xff] }
 0x973   :  { %8097 = vmatmul.bf16.gmra.mxu0 %v15234_v19  ;;  %8146 = vmatmul.bf16.gmra.mxu1 %v15237_v3  ;;  %v11682_v19 = vld [vmem:[#allocation11 + $0x150] sm:$0xff] }
 0x974   :  { %v7244_v49 = vadd.f32 %v7243_v51, %v7195_v28  ;;  %12209 = vtanh.f32 %v7339_v56  ;;  %8195 = vmatmul.bf16.gmra.mxu2 %v15240_v30  ;;  %8324 = vmatpush.bf16.msrb.mxu1 %v11682_v19 }
 0x975   :  { %8244 = vmatmul.bf16.gmra.mxu3 %v15243_v61  ;;  %v15246_v61 = vpack.c.bf16 %v15244_v62, %v15245_v15 }
 0x977   :  { %v7292_v13 = vpop.f32.mrf.mxu2 }
 0x978   :  { %v7293_v41 = vadd.f32 %v7292_v13, %v7244_v49  ;;  %v7341_v9 = vpop.f32.mrf.mxu3  ;;  %v15250_v13 = vld [vmem:[#allocation98_spill] sm:$0xff]  ;;  %8325 = vmatpush.bf16.msrb.mxu1 %v11681_v21  ;;  %v11696_v21 = vld [vmem:[#allocation11 + $0x1c0] sm:$0xff] }
 0x979   :  { %v7196_v29 = vpop.f32.mrf.mxu0 }
 0x97a   :  { %v7197_v60 = vadd.f32 %v7196_v29, %v14199_v4  ;;  %v7245_v28 = vpop.f32.mrf.mxu1  ;;  %v14310_v51 = vpop.eup %12209  ;;  %v7342_v56 = vadd.f32 %v7341_v9, %v7293_v41  ;;  %v15251_v41 = vld [vmem:[#allocation97_spill] sm:$0xff]  ;;  %v15253_v29 = vld [vmem:[#allocation114_spill] sm:$0xff] }
 0x97b   :  { %v7517_v57 = vpack.c.bf16 %v14310_v51, %v14307_v16  ;;  %v15252_v9 = vpack.c.bf16 %v15250_v13, %v15251_v41  ;;  %v15310_v51 = vld [vmem:[#allocation128_spill] sm:$0xff] }
 0x97c   :  { %v7246_v14 = vadd.f32 %v7245_v28, %v7197_v60  ;;  %12211 = vtanh.f32 %v7342_v56  ;;  %v15254_v60 = vld [vmem:[#allocation113_spill] sm:$0xff] }
 0x97d   :  { %v11689_v28 = vld [vmem:[#allocation11 + $0x188] sm:$0xff] }
 0x97e   :  { %v11673_v56 = vld [vmem:[#allocation11 + $0x108] sm:$0xff]  ;;  %8374 = vmatpush.bf16.msrb.mxu2 %v11689_v28 }
 0x97f   :  { %v7294_v12 = vpop.f32.mrf.mxu2  ;;  %8276 = vmatpush.bf16.msrb.mxu0 %v11673_v56  ;;  %v15259_v56 = vld [vmem:[#allocation39_spill] sm:$0xff] }
 0x980   :  { %v7295_v0 = vadd.f32 %v7294_v12, %v7246_v14  ;;  %v7343_v49 = vpop.f32.mrf.mxu3  ;;  %v11697_v14 = vld [vmem:[#allocation11 + $0x1c8] sm:$0xff] }
 0x981   :  { %v7199_v3 = vpop.f32.mrf.mxu0  ;;  %8423 = vmatpush.bf16.msrb.mxu3 %v11697_v14  ;;  %v15260_v14 = vld [vmem:[#allocation38_spill] sm:$0xff] }
 0x982   :  { %v7200_v34 = vadd.f32 %v7199_v3, %v14206_v38  ;;  %v7248_v5 = vpop.f32.mrf.mxu1  ;;  %v7344_v30 = vadd.f32 %v7343_v49, %v7295_v0  ;;  %v15255_v38 = vpack.c.bf16 %v15253_v29, %v15254_v60  ;;  %v14327_v3 = vpop.eup %12211  ;;  %v15256_v60 = vld [vmem:[#allocation32_spill] sm:$0xff] }
 0x983   :  { %8102 = vmatmul.bf16.gmra.mxu0 %v15246_v61  ;;  %8151 = vmatmul.bf16.gmra.mxu1 %v15249_v46 }
 0x984   :  { %v7249_v4 = vadd.f32 %v7248_v5, %v7200_v34  ;;  %12213 = vtanh.f32 %v7344_v30  ;;  %8200 = vmatmul.bf16.gmra.mxu2 %v15252_v9 }
 0x985   :  { %8249 = vmatmul.bf16.gmra.mxu3 %v15255_v38  ;;  %v15257_v38 = vld [vmem:[#allocation31_spill] sm:$0xff] }
 0x986   :  { %v15258_v28 = vpack.c.bf16 %v15256_v60, %v15257_v38  ;;  %8424 = vmatpush.bf16.msrb.mxu3 %v11696_v21  ;;  %v15271_v21 = vld [vmem:[#allocation43_spill] sm:$0xff] }
 0x987   :  { %v7297_v19 = vpop.f32.mrf.mxu2 }
 0x988   :  { %v7298_v12 = vadd.f32 %v7297_v19, %v7249_v4  ;;  %v7346_v0 = vpop.f32.mrf.mxu3  ;;  %v15261_v19 = vpack.c.bf16 %v15259_v56, %v15260_v14  ;;  %v11680_v14 = vld [vmem:[#allocation11 + $0x140] sm:$0xff] }
 0x989   :  { %v7201_v49 = vpop.f32.mrf.mxu0  ;;  %8326 = vmatpush.bf16.msrb.mxu1 %v11680_v14 }
 0x98a   :  { %v7202_v34 = vadd.f32 %v7201_v49, %v14209_v25  ;;  %v7250_v5 = vpop.f32.mrf.mxu1  ;;  %v14330_v30 = vpop.eup %12213  ;;  %v7347_v62 = vadd.f32 %v7346_v0, %v7298_v12  ;;  %v15262_v12 = vld [vmem:[#allocation100_spill] sm:$0xff]  ;;  %v15263_v0 = vld [vmem:[#allocation99_spill] sm:$0xff] }
 0x98b   :  { %v7525_v61 = vpack.c.bf16 %v14330_v30, %v14327_v3  ;;  %v15264_v49 = vpack.c.bf16 %v15262_v12, %v15263_v0  ;;  %v15316_v30 = vld [vmem:[#allocation130_spill] sm:$0xff] }
 0x98c   :  { %v7251_v15 = vadd.f32 %v7250_v5, %v7202_v34  ;;  %12215 = vtanh.f32 %v7347_v62  ;;  %v15265_v34 = vld [vmem:[#allocation116_spill] sm:$0xff]  ;;  %v15266_v5 = vld [vmem:[#allocation115_spill] sm:$0xff] }
 0x98d   :  { %v11672_v62 = vld [vmem:[#allocation11 + $0x100] sm:$0xff] }
 0x98e   :  { %8277 = vmatpush.bf16.msrb.mxu0 %v11672_v62 }
 0x98f   :  { %v7299_v50 = vpop.f32.mrf.mxu2 }
 0x990   :  { %v7300_v46 = vadd.f32 %v7299_v50, %v7251_v15  ;;  %v7348_v4 = vpop.f32.mrf.mxu3  ;;  %v11688_v15 = vld [vmem:[#allocation11 + $0x180] sm:$0xff] }
 0x991   :  { %v7204_v13 = vpop.f32.mrf.mxu0  ;;  %8375 = vmatpush.bf16.msrb.mxu2 %v11688_v15  ;;  %v15269_v15 = vld [vmem:[#allocation33_spill] sm:$0xff] }
 0x992   :  { %v7205_v41 = vadd.f32 %v7204_v13, %v14216_v47  ;;  %v7253_v9 = vpop.f32.mrf.mxu1  ;;  %v7349_v29 = vadd.f32 %v7348_v4, %v7300_v46  ;;  %v15267_v47 = vpack.c.bf16 %v15265_v34, %v15266_v5 }
 0x993   :  { %8107 = vmatmul.bf16.gmra.mxu0 %v15258_v28  ;;  %8156 = vmatmul.bf16.gmra.mxu1 %v15261_v19 }
 0x994   :  { %v7254_v25 = vadd.f32 %v7253_v9, %v7205_v41  ;;  %12217 = vtanh.f32 %v7349_v29  ;;  %8205 = vmatmul.bf16.gmra.mxu2 %v15264_v49  ;;  %v14347_v41 = vpop.eup %12215 }
 0x995   :  { %8254 = vmatmul.bf16.gmra.mxu3 %v15267_v47  ;;  %v15268_v47 = vld [vmem:[#allocation34_spill] sm:$0xff] }
 0x996   :  { %v15270_v62 = vpack.c.bf16 %v15268_v47, %v15269_v15 }
 0x997   :  { %v7302_v50 = vpop.f32.mrf.mxu2 }
 0x998   :  { %v7303_v46 = vadd.f32 %v7302_v50, %v7254_v25  ;;  %v7351_v4 = vpop.f32.mrf.mxu3  ;;  %v15272_v50 = vld [vmem:[#allocation40_spill] sm:$0xff] }
 0x999   :  { %v7206_v13 = vpop.f32.mrf.mxu0 }
 0x99a   :  { %v7207_v9 = vadd.f32 %v7206_v13, %v14219_v36  ;;  %v7255_v29 = vpop.f32.mrf.mxu1  ;;  %v14350_v60 = vpop.eup %12217  ;;  %v7352_v38 = vadd.f32 %v7351_v4, %v7303_v46  ;;  %v15273_v46 = vpack.c.bf16 %v15271_v21, %v15272_v50  ;;  %v15274_v4 = vld [vmem:[#allocation88_spill] sm:$0xff]  ;;  %v15275_v13 = vld [vmem:[#allocation101_spill] sm:$0xff] }
 0x99b   :  { %v7533_v56 = vpack.c.bf16 %v14350_v60, %v14347_v41  ;;  %v15322_v60 = vld [vmem:[#allocation132_spill] sm:$0xff] }
 0x99c   :  { %v7256_v28 = vadd.f32 %v7255_v29, %v7207_v9  ;;  %12219 = vtanh.f32 %v7352_v38  ;;  %v15276_v9 = vpack.c.bf16 %v15274_v4, %v15275_v13  ;;  %v15277_v29 = vld [vmem:[#allocation104_spill] sm:$0xff] }
 0x99f   :  { %v7304_v19 = vpop.f32.mrf.mxu2 }
 0x9a0   :  { %v7305_v12 = vadd.f32 %v7304_v19, %v7256_v28  ;;  %v7353_v25 = vpop.f32.mrf.mxu3  ;;  %v15278_v28 = vld [vmem:[#allocation117_spill] sm:$0xff] }
 0x9a1   :  { %v7209_v0 = vpop.f32.mrf.mxu0 }
 0x9a2   :  { %v7210_v49 = vadd.f32 %v7209_v0, %v14226_v54  ;;  %v7258_v34 = vpop.f32.mrf.mxu1  ;;  %v7354_v5 = vadd.f32 %v7353_v25, %v7305_v12  ;;  %v15279_v54 = vpack.c.bf16 %v15277_v29, %v15278_v28  ;;  %v14367_v25 = vpop.eup %12219  ;;  %v15280_v29 = vld [vmem:[#allocation37_spill] sm:$0xff] }
 0x9a3   :  { %8112 = vmatmul.bf16.gmra.mxu0 %v15270_v62  ;;  %8161 = vmatmul.bf16.gmra.mxu1 %v15273_v46 }
 0x9a4   :  { %v7259_v36 = vadd.f32 %v7258_v34, %v7210_v49  ;;  %12221 = vtanh.f32 %v7354_v5  ;;  %8210 = vmatmul.bf16.gmra.mxu2 %v15276_v9 }
 0x9a5   :  { %8259 = vmatmul.bf16.gmra.mxu3 %v15279_v54  ;;  %v15283_v54 = vld [vmem:[#allocation87_spill] sm:$0xff] }
 0x9a7   :  { %v7307_v14 = vpop.f32.mrf.mxu2 }
 0x9a8   :  { %v7308_v38 = vadd.f32 %v7307_v14, %v7259_v36  ;;  %v7356_v19 = vpop.f32.mrf.mxu3  ;;  %v15284_v14 = vld [vmem:[#allocation86_spill] sm:$0xff] }
 0x9a9   :  { %v7211_v12 = vpop.f32.mrf.mxu0 }
 0x9aa   :  { %v7212_v0 = vadd.f32 %v7211_v12, %v14229_v44  ;;  %v7260_v49 = vpop.f32.mrf.mxu1  ;;  %v14370_v34 = vpop.eup %12221  ;;  %v7357_v5 = vadd.f32 %v7356_v19, %v7308_v38  ;;  %v15281_v44 = vld [vmem:[#allocation35_spill] sm:$0xff]  ;;  %v15285_v38 = vpack.c.bf16 %v15283_v54, %v15284_v14  ;;  %v15287_v12 = vld [vmem:[#allocation102_spill] sm:$0xff] }
 0x9ab   :  { %v7541_v15 = vpack.c.bf16 %v14370_v34, %v14367_v25  ;;  %v15282_v28 = vpack.c.bf16 %v15280_v29, %v15281_v44  ;;  %v15286_v19 = vld [vmem:[#allocation103_spill] sm:$0xff]  ;;  %v15328_v34 = vld [vmem:[#allocation120_spill] sm:$0xff] }
 0x9ac   :  { %v7261_v47 = vadd.f32 %v7260_v49, %v7212_v0  ;;  %12223 = vtanh.f32 %v7357_v5  ;;  %v15288_v0 = vpack.c.bf16 %v15286_v19, %v15287_v12  ;;  %v15289_v49 = vld [vmem:[#allocation119_spill] sm:$0xff] }
 0x9ad   :  { %v14394_v54 = vld [vmem:[#allocation13] ss:$0 sm:$0xff] }
 0x9af   :  { %v7309_v62 = vpop.f32.mrf.mxu2 }
 0x9b0   :  { %v7310_v21 = vadd.f32 %v7309_v62, %v7261_v47  ;;  %v7358_v50 = vpop.f32.mrf.mxu3  ;;  %v15290_v47 = vld [vmem:[#allocation118_spill] sm:$0xff] }
 0x9b1   :  { %v7214_v46 = vpop.f32.mrf.mxu0 }
 0x9b2   :  { %v7215_v36 = vadd.f32 %v7214_v46, %v14236_v23  ;;  %v7263_v4 = vpop.f32.mrf.mxu1  ;;  %v7359_v13 = vadd.f32 %v7358_v50, %v7310_v21  ;;  %v15291_v23 = vpack.c.bf16 %v15289_v49, %v15290_v47  ;;  %v14387_v46 = vpop.eup %12223  ;;  %v15292_v47 = vld [vmem:[#allocation122_spill] sm:$0xff] }
 0x9b3   :  { %8117 = vmatmul.bf16.gmra.mxu0 %v15282_v28  ;;  %8166 = vmatmul.bf16.gmra.mxu1 %v15285_v38 }
 0x9b4   :  { %v7264_v9 = vadd.f32 %v7263_v4, %v7215_v36  ;;  %12225 = vtanh.f32 %v7359_v13  ;;  %8215 = vmatmul.bf16.gmra.mxu2 %v15288_v0 }
 0x9b5   :  { %8264 = vmatmul.bf16.gmra.mxu3 %v15291_v23  ;;  %v15293_v23 = vld [vmem:[#allocation121_spill] sm:$0xff] }
 0x9b7   :  { %v7312_v62 = vpop.f32.mrf.mxu2 }
 0x9b8   :  { %v7313_v5 = vadd.f32 %v7312_v62, %v7264_v9  ;;  %v7361_v21 = vpop.f32.mrf.mxu3  ;;  %v15294_v62 = vpack.c.bf16 %v15292_v47, %v15293_v23  ;;  %v15298_v23 = vld [vmem:[#allocation124_spill] sm:$0xff] }
 0x9b9   :  { %v7216_v50 = vpop.f32.mrf.mxu0 }
 0x9ba   :  { %v7217_v36 = vadd.f32 %v7216_v50, %v14239_v52  ;;  %v7265_v4 = vpop.f32.mrf.mxu1  ;;  %v14390_v13 = vpop.eup %12225  ;;  %v7362_v29 = vadd.f32 %v7361_v21, %v7313_v5  ;;  %v15295_v5 = vld [vmem:[#allocation138_spill] sm:$0xff]  ;;  %v15296_v21 = vld [vmem:[#allocation137_spill] sm:$0xff] }
 0x9bb   :  { %v7549_v28 = vpack.c.bf16 %v14390_v13, %v14387_v46  ;;  %v15297_v50 = vpack.c.bf16 %v15295_v5, %v15296_v21  ;;  %v15301_v21 = vld [vmem:[#allocation140_spill] sm:$0xff]  ;;  %v15334_v13 = vld [vmem:[#allocation135_spill] sm:$0xff] }
 0x9bc   :  { %v7266_v44 = vadd.f32 %v7265_v4, %v7217_v36  ;;  %12227 = vtanh.f32 %v7362_v29 }
 0x9bf   :  { %v7314_v14 = vpop.f32.mrf.mxu2 }
 0x9c0   :  { %v7315_v38 = vadd.f32 %v7314_v14, %v7266_v44  ;;  %v7363_v19 = vpop.f32.mrf.mxu3 }
 0x9c1   :  { %v8083_v9 = vpop.f32.mrf.mxu0 }
 0x9c2   :  { %v8084_v12 = vadd.f32 %v14394_v54, %v8083_v9  ;;  %v8132_v0 = vpop.f32.mrf.mxu1  ;;  %v7364_v49 = vadd.f32 %v7363_v19, %v7315_v38  ;;  %v14409_v14 = vpop.eup %12227 }
 0x9c3   :  { %8278 = vmatmul.bf16.vlgmr.msrb.gmra.mxu0 %v15294_v62  ;;  %8327 = vmatmul.bf16.vlgmr.msrb.gmra.mxu1 %v15297_v50  ;;  %v15299_v62 = vld [vmem:[#allocation123_spill] sm:$0xff] }
 0x9c4   :  { %v8133_v52 = vadd.f32 %v8132_v0, %v8084_v12  ;;  %12229 = vtanh.f32 %v7364_v49  ;;  %8376 = vmatmul.bf16.vlgmr.msrb.gmra.mxu2 %v7500_v59  ;;  %v15300_v5 = vpack.c.bf16 %v15298_v23, %v15299_v62  ;;  %v15302_v50 = vld [vmem:[#allocation139_spill] sm:$0xff]  ;;  %v15307_v23 = vld [vmem:[#allocation142_spill] sm:$0xff]  ;;  %v15308_v62 = vld [vmem:[#allocation141_spill] sm:$0xff] }
 0x9c5   :  { %8425 = vmatmul.bf16.vlgmr.msrb.gmra.mxu3 %v7501_v20 }
 0x9c7   :  { %v8181_v36 = vpop.f32.mrf.mxu2 }
 0x9c8   :  { %v8182_v4 = vadd.f32 %v8181_v36, %v8133_v52  ;;  %v8230_v29 = vpop.f32.mrf.mxu3  ;;  %v15303_v36 = vpack.c.bf16 %v15301_v21, %v15302_v50 }
 0x9c9   :  { %v8085_v44 = vpop.f32.mrf.mxu0 }
 0x9ca   :  { %v8086_v38 = vadd.f32 %v14394_v54, %v8085_v44  ;;  %v8134_v19 = vpop.f32.mrf.mxu1  ;;  %v14412_v9 = vpop.eup %12229  ;;  %v14414_v12 = vadd.f32 %v8230_v29, %v8182_v4 }
 0x9cb   :  { %v7557_v31 = vpack.c.bf16 %v14412_v9, %v14409_v14 }
 0x9cc   :  { %v8135_v0 = vadd.f32 %v8134_v19, %v8086_v38 }
 0x9cf   :  { %v8183_v35 = vpop.f32.mrf.mxu2 }
 0x9d0   :  { %v8184_v59 = vadd.f32 %v8183_v35, %v8135_v0  ;;  %v8232_v63 = vpop.f32.mrf.mxu3 }
 0x9d1   :  { %v8088_v17 = vpop.f32.mrf.mxu0 }
 0x9d2   :  { %v8089_v20 = vadd.f32 %v14394_v54, %v8088_v17  ;;  %v8137_v49 = vpop.f32.mrf.mxu1  ;;  %v14419_v52 = vadd.f32 %v8232_v63, %v8184_v59 }
 0x9d3   :  { %8283 = vmatmul.bf16.gmra.mxu0 %v15300_v5  ;;  %8332 = vmatmul.bf16.gmra.mxu1 %v15303_v36  ;;  %v15309_v5 = vpack.c.bf16 %v15307_v23, %v15308_v62 }
 0x9d4   :  { %v8138_v47 = vadd.f32 %v8137_v49, %v8089_v20  ;;  %8381 = vmatmul.bf16.gmra.mxu2 %v7508_v39 }
 0x9d5   :  { %8430 = vmatmul.bf16.gmra.mxu3 %v7509_v42  ;;  %v15305_v42 = vld [vmem:[#allocation125_spill] sm:$0xff] }
 0x9d7   :  { %v8186_v4 = vpop.f32.mrf.mxu2 }
 0x9d8   :  { %v8187_v29 = vadd.f32 %v8186_v4, %v8138_v47  ;;  %v8235_v44 = vpop.f32.mrf.mxu3  ;;  %v15306_v47 = vpack.c.bf16 %v15304_v2, %v15305_v42 }
 0x9d9   :  { %v8090_v38 = vpop.f32.mrf.mxu0 }
 0x9da   :  { %v8091_v19 = vadd.f32 %v14394_v54, %v8090_v38  ;;  %v8139_v0 = vpop.f32.mrf.mxu1  ;;  %v14434_v35 = vadd.f32 %v8235_v44, %v8187_v29 }
 0x9dc   :  { %v8140_v59 = vadd.f32 %v8139_v0, %v8091_v19 }
 0x9df   :  { %v8188_v63 = vpop.f32.mrf.mxu2 }
 0x9e0   :  { %v8189_v17 = vadd.f32 %v8188_v63, %v8140_v59  ;;  %v8237_v20 = vpop.f32.mrf.mxu3 }
 0x9e1   :  { %v8093_v49 = vpop.f32.mrf.mxu0 }
 0x9e2   :  { %v8094_v18 = vadd.f32 %v14394_v54, %v8093_v49  ;;  %v8142_v48 = vpop.f32.mrf.mxu1  ;;  %v14437_v39 = vadd.f32 %v8237_v20, %v8189_v17  ;;  %v15313_v49 = vld [vmem:[#allocation144_spill] sm:$0xff] }
 0x9e3   :  { %8288 = vmatmul.bf16.gmra.mxu0 %v15306_v47  ;;  %8337 = vmatmul.bf16.gmra.mxu1 %v15309_v5 }
 0x9e4   :  { %v8143_v6 = vadd.f32 %v8142_v48, %v8094_v18  ;;  %8386 = vmatmul.bf16.gmra.mxu2 %v7516_v7  ;;  %v15314_v18 = vld [vmem:[#allocation143_spill] sm:$0xff] }
 0x9e5   :  { %8435 = vmatmul.bf16.gmra.mxu3 %v7517_v57  ;;  %v15311_v57 = vld [vmem:[#allocation127_spill] sm:$0xff]  ;;  %v15315_v48 = vpack.c.bf16 %v15313_v49, %v15314_v18 }
 0x9e6   :  { %v15312_v20 = vpack.c.bf16 %v15310_v51, %v15311_v57 }
 0x9e7   :  { %v8191_v21 = vpop.f32.mrf.mxu2 }
 0x9e8   :  { %v8192_v50 = vadd.f32 %v8191_v21, %v8143_v6  ;;  %v8240_v36 = vpop.f32.mrf.mxu3 }
 0x9e9   :  { %v8095_v4 = vpop.f32.mrf.mxu0 }
 0x9ea   :  { %v8096_v29 = vadd.f32 %v14394_v54, %v8095_v4  ;;  %v8144_v44 = vpop.f32.mrf.mxu1  ;;  %v14452_v38 = vadd.f32 %v8240_v36, %v8192_v50 }
 0x9ec   :  { %v8145_v19 = vadd.f32 %v8144_v44, %v8096_v29 }
 0x9ef   :  { %v8193_v0 = vpop.f32.mrf.mxu2 }
 0x9f0   :  { %v8194_v59 = vadd.f32 %v8193_v0, %v8145_v19  ;;  %v8242_v63 = vpop.f32.mrf.mxu3  ;;  %v15319_v19 = vld [vmem:[#allocation146_spill] sm:$0xff]  ;;  %v15320_v0 = vld [vmem:[#allocation145_spill] sm:$0xff] }
 0x9f1   :  { %v8098_v17 = vpop.f32.mrf.mxu0 }
 0x9f2   :  { %v8099_v37 = vadd.f32 %v14394_v54, %v8098_v17  ;;  %v8147_v27 = vpop.f32.mrf.mxu1  ;;  %v14455_v7 = vadd.f32 %v8242_v63, %v8194_v59  ;;  %v15321_v59 = vpack.c.bf16 %v15319_v19, %v15320_v0  ;;  %v15331_v0 = vld [vmem:[#allocation136_spill] sm:$0xff] }
 0x9f3   :  { %8293 = vmatmul.bf16.gmra.mxu0 %v15312_v20  ;;  %8342 = vmatmul.bf16.gmra.mxu1 %v15315_v48 }
 0x9f4   :  { %v8148_v16 = vadd.f32 %v8147_v27, %v8099_v37  ;;  %8391 = vmatmul.bf16.gmra.mxu2 %v7524_v32 }
 0x9f5   :  { %8440 = vmatmul.bf16.gmra.mxu3 %v7525_v61  ;;  %v15317_v61 = vld [vmem:[#allocation129_spill] sm:$0xff] }
 0x9f6   :  { %v15318_v44 = vpack.c.bf16 %v15316_v30, %v15317_v61 }
 0x9f7   :  { %v8196_v6 = vpop.f32.mrf.mxu2 }
 0x9f8   :  { %v8197_v2 = vadd.f32 %v8196_v6, %v8148_v16  ;;  %v8245_v42 = vpop.f32.mrf.mxu3 }
 0x9f9   :  { %v8100_v47 = vpop.f32.mrf.mxu0 }
 0x9fa   :  { %v8101_v23 = vadd.f32 %v14394_v54, %v8100_v47  ;;  %v8149_v62 = vpop.f32.mrf.mxu1  ;;  %v14470_v5 = vadd.f32 %v8245_v42, %v8197_v2  ;;  %v15325_v42 = vld [vmem:[#allocation148_spill] sm:$0xff]  ;;  %v15326_v47 = vld [vmem:[#allocation147_spill] sm:$0xff] }
 0x9fc   :  { %v8150_v21 = vadd.f32 %v8149_v62, %v8101_v23  ;;  %v15327_v23 = vpack.c.bf16 %v15325_v42, %v15326_v47 }
 0x9ff   :  { %v8198_v50 = vpop.f32.mrf.mxu2 }
 0xa00   :  { %v8199_v36 = vadd.f32 %v8198_v50, %v8150_v21  ;;  %v8247_v4 = vpop.f32.mrf.mxu3 }
 0xa01   :  { %v8103_v29 = vpop.f32.mrf.mxu0 }
 0xa02   :  { %v8104_v1 = vadd.f32 %v14394_v54, %v8103_v29  ;;  %v8152_v8 = vpop.f32.mrf.mxu1  ;;  %v14473_v32 = vadd.f32 %v8247_v4, %v8199_v36 }
 0xa03   :  { %8298 = vmatmul.bf16.gmra.mxu0 %v15318_v44  ;;  %8347 = vmatmul.bf16.gmra.mxu1 %v15321_v59  ;;  %v15332_v59 = vld [vmem:[#allocation149_spill] sm:$0xff] }
 0xa04   :  { %v8153_v3 = vadd.f32 %v8152_v8, %v8104_v1  ;;  %8396 = vmatmul.bf16.gmra.mxu2 %v7532_v43 }
 0xa05   :  { %8445 = vmatmul.bf16.gmra.mxu3 %v7533_v56  ;;  %v15323_v56 = vld [vmem:[#allocation131_spill] sm:$0xff] }
 0xa06   :  { %v15324_v2 = vpack.c.bf16 %v15322_v60, %v15323_v56  ;;  %v15337_v60 = vld [vmem:[#allocation151_spill] sm:$0xff]  ;;  %v15338_v56 = vld [vmem:[#allocation150_spill] sm:$0xff] }
 0xa07   :  { %v8201_v63 = vpop.f32.mrf.mxu2 }
 0xa08   :  { %v8202_v17 = vadd.f32 %v8201_v63, %v8153_v3  ;;  %v8250_v37 = vpop.f32.mrf.mxu3  ;;  %v15333_v63 = vpack.c.bf16 %v15331_v0, %v15332_v59 }
 0xa09   :  { %v8105_v27 = vpop.f32.mrf.mxu0 }
 0xa0a   :  { %v8106_v16 = vadd.f32 %v14394_v54, %v8105_v27  ;;  %v8154_v51 = vpop.f32.mrf.mxu1  ;;  %v14488_v57 = vadd.f32 %v8250_v37, %v8202_v17 }
 0xa0c   :  { %v8155_v20 = vadd.f32 %v8154_v51, %v8106_v16 }
 0xa0f   :  { %v8203_v49 = vpop.f32.mrf.mxu2 }
 0xa10   :  { %v8204_v18 = vadd.f32 %v8203_v49, %v8155_v20  ;;  %v8252_v48 = vpop.f32.mrf.mxu3 }
 0xa11   :  { %v8108_v6 = vpop.f32.mrf.mxu0 }
 0xa12   :  { %v8109_v24 = vadd.f32 %v14394_v54, %v8108_v6  ;;  %v8157_v33 = vpop.f32.mrf.mxu1  ;;  %v14491_v43 = vadd.f32 %v8252_v48, %v8204_v18 }
 0xa13   :  { %8303 = vmatmul.bf16.gmra.mxu0 %v15324_v2  ;;  %8352 = vmatmul.bf16.gmra.mxu1 %v15327_v23  ;;  %v15339_v2 = vpack.c.bf16 %v15337_v60, %v15338_v56 }
 0xa14   :  { %v8158_v41 = vadd.f32 %v8157_v33, %v8109_v24  ;;  %8401 = vmatmul.bf16.gmra.mxu2 %v7540_v26 }
 0xa15   :  { %8450 = vmatmul.bf16.gmra.mxu3 %v7541_v15  ;;  %v15329_v15 = vld [vmem:[#allocation133_spill] sm:$0xff] }
 0xa16   :  { %v15330_v19 = vpack.c.bf16 %v15328_v34, %v15329_v15 }
 0xa17   :  { %v8206_v62 = vpop.f32.mrf.mxu2 }
 0xa18   :  { %v8207_v21 = vadd.f32 %v8206_v62, %v8158_v41  ;;  %v8255_v50 = vpop.f32.mrf.mxu3 }
 0xa19   :  { %v8110_v36 = vpop.f32.mrf.mxu0 }
 0xa1a   :  { %v8111_v4 = vadd.f32 %v14394_v54, %v8110_v36  ;;  %v8159_v29 = vpop.f32.mrf.mxu1  ;;  %v14506_v1 = vadd.f32 %v8255_v50, %v8207_v21 }
 0xa1c   :  { %v8160_v8 = vadd.f32 %v8159_v29, %v8111_v4 }
 0xa1f   :  { %v8208_v3 = vpop.f32.mrf.mxu2 }
 0xa20   :  { %v8209_v30 = vadd.f32 %v8208_v3, %v8160_v8  ;;  %v8257_v61 = vpop.f32.mrf.mxu3 }
 0xa21   :  { %v8113_v44 = vpop.f32.mrf.mxu0 }
 0xa22   :  { %v8114_v53 = vadd.f32 %v14394_v54, %v8113_v44  ;;  %v8162_v55 = vpop.f32.mrf.mxu1  ;;  %v14509_v26 = vadd.f32 %v8257_v61, %v8209_v30 }
 0xa23   :  { %8308 = vmatmul.bf16.gmra.mxu0 %v15330_v19  ;;  %8357 = vmatmul.bf16.gmra.mxu1 %v15333_v63 }
 0xa24   :  { %v8163_v25 = vadd.f32 %v8162_v55, %v8114_v53  ;;  %8406 = vmatmul.bf16.gmra.mxu2 %v7548_v40 }
 0xa25   :  { %8455 = vmatmul.bf16.gmra.mxu3 %v7549_v28  ;;  %v15335_v28 = vld [vmem:[#allocation134_spill] sm:$0xff] }
 0xa26   :  { %v15336_v41 = vpack.c.bf16 %v15334_v13, %v15335_v28 }
 0xa27   :  { %v8211_v17 = vpop.f32.mrf.mxu2 }
 0xa28   :  { %v8212_v37 = vadd.f32 %v8211_v17, %v8163_v25  ;;  %v8260_v27 = vpop.f32.mrf.mxu3 }
 0xa29   :  { %v8115_v16 = vpop.f32.mrf.mxu0 }
 0xa2a   :  { %v8116_v51 = vadd.f32 %v14394_v54, %v8115_v16  ;;  %v8164_v20 = vpop.f32.mrf.mxu1  ;;  %v14524_v49 = vadd.f32 %v8260_v27, %v8212_v37 }
 0xa2c   :  { %v8165_v18 = vadd.f32 %v8164_v20, %v8116_v51 }
 0xa2f   :  { %v8213_v48 = vpop.f32.mrf.mxu2 }
 0xa30   :  { %v8214_v6 = vadd.f32 %v8213_v48, %v8165_v18  ;;  %v8262_v24 = vpop.f32.mrf.mxu3 }
 0xa31   :  { %v8118_v33 = vpop.f32.mrf.mxu0 }
 0xa32   :  { %v8119_v10 = vadd.f32 %v14394_v54, %v8118_v33  ;;  %v8167_v45 = vpop.f32.mrf.mxu1  ;;  %v14527_v40 = vadd.f32 %v8262_v24, %v8214_v6 }
 0xa33   :  { %8313 = vmatmul.bf16.gmra.mxu0 %v15336_v41  ;;  %8362 = vmatmul.bf16.gmra.mxu1 %v15339_v2 }
 0xa34   :  { %v8168_v46 = vadd.f32 %v8167_v45, %v8119_v10  ;;  %8411 = vmatmul.bf16.gmra.mxu2 %v7556_v58 }
 0xa35   :  { %8460 = vmatmul.bf16.gmra.mxu3 %v7557_v31 }
 0xa37   :  { %v8216_v42 = vpop.f32.mrf.mxu2 }
 0xa38   :  { %v8217_v47 = vadd.f32 %v8216_v42, %v8168_v46  ;;  %v8265_v23 = vpop.f32.mrf.mxu3 }
 0xa39   :  { %v8120_v62 = vpop.f32.mrf.mxu0 }
 0xa3a   :  { %v8121_v21 = vadd.f32 %v14394_v54, %v8120_v62  ;;  %v8169_v50 = vpop.f32.mrf.mxu1  ;;  %v14542_v36 = vadd.f32 %v8265_v23, %v8217_v47 }
 0xa3c   :  { %v8170_v4 = vadd.f32 %v8169_v50, %v8121_v21 }
 0xa3f   :  { %v8218_v29 = vpop.f32.mrf.mxu2 }
 0xa40   :  { %v8219_v8 = vadd.f32 %v8218_v29, %v8170_v4  ;;  %v8267_v3 = vpop.f32.mrf.mxu3 }
 0xa41   :  { %v8279_v30 = vpop.f32.mrf.mxu0 }
 0xa42   :  { %v8328_v11 = vpop.f32.mrf.mxu1  ;;  %v14544_v22 = vadd.f32 %v8267_v3, %v8219_v8  ;;  %v8280_v58 = vadd.f32 %v8279_v30, %v14414_v12 }
 0xa44   :  { %v8329_v14 = vadd.f32 %v8328_v11, %v8280_v58 }
 0xa47   :  { %v8377_v9 = vpop.f32.mrf.mxu2 }
 0xa48   :  { %v8378_v31 = vadd.f32 %v8377_v9, %v8329_v14  ;;  %v8426_v61 = vpop.f32.mrf.mxu3 }
 0xa49   :  { %v8281_v44 = vpop.f32.mrf.mxu0 }
 0xa4a   :  { %v8330_v53 = vpop.f32.mrf.mxu1  ;;  %v8427_v54 = vadd.f32 %v8426_v61, %v8378_v31  ;;  %v8282_v55 = vadd.f32 %v8281_v44, %v14419_v52 }
 0xa4c   :  { %8466 = vst [vmem:[#allocation14] sm:$0xff] %v8427_v54  ;;  %v8331_v25 = vadd.f32 %v8330_v53, %v8282_v55 }
 0xa4f   :  { %v8379_v34 = vpop.f32.mrf.mxu2 }
 0xa50   :  { %v8380_v15 = vadd.f32 %v8379_v34, %v8331_v25  ;;  %v8428_v19 = vpop.f32.mrf.mxu3 }
 0xa51   :  { %v8284_v0 = vpop.f32.mrf.mxu0 }
 0xa52   :  { %v8333_v59 = vpop.f32.mrf.mxu1  ;;  %v8429_v63 = vadd.f32 %v8428_v19, %v8380_v15  ;;  %v8285_v17 = vadd.f32 %v8284_v0, %v14434_v35 }
 0xa54   :  { %8467 = vst [vmem:[#allocation14 + $0x8] sm:$0xff] %v8429_v63  ;;  %v8334_v12 = vadd.f32 %v8333_v59, %v8285_v17 }
 0xa57   :  { %v8382_v37 = vpop.f32.mrf.mxu2 }
 0xa58   :  { %v8383_v27 = vadd.f32 %v8382_v37, %v8334_v12  ;;  %v8431_v16 = vpop.f32.mrf.mxu3 }
 0xa59   :  { %v8286_v51 = vpop.f32.mrf.mxu0 }
 0xa5a   :  { %v8335_v20 = vpop.f32.mrf.mxu1  ;;  %v8432_v18 = vadd.f32 %v8431_v16, %v8383_v27  ;;  %v8287_v52 = vadd.f32 %v8286_v51, %v14437_v39 }
 0xa5c   :  { %8468 = vst [vmem:[#allocation14 + $0x10] sm:$0xff] %v8432_v18  ;;  %v8336_v48 = vadd.f32 %v8335_v20, %v8287_v52 }
 0xa5f   :  { %v8384_v6 = vpop.f32.mrf.mxu2 }
 0xa60   :  { %v8385_v24 = vadd.f32 %v8384_v6, %v8336_v48  ;;  %v8433_v33 = vpop.f32.mrf.mxu3 }
 0xa61   :  { %v8289_v10 = vpop.f32.mrf.mxu0 }
 0xa62   :  { %v8338_v45 = vpop.f32.mrf.mxu1  ;;  %v8434_v46 = vadd.f32 %v8433_v33, %v8385_v24  ;;  %v8290_v35 = vadd.f32 %v8289_v10, %v14452_v38 }
 0xa64   :  { %8469 = vst [vmem:[#allocation14 + $0x18] sm:$0xff] %v8434_v46  ;;  %v8339_v13 = vadd.f32 %v8338_v45, %v8290_v35 }
 0xa67   :  { %v8387_v28 = vpop.f32.mrf.mxu2 }
 0xa68   :  { %v8388_v41 = vadd.f32 %v8387_v28, %v8339_v13  ;;  %v8436_v60 = vpop.f32.mrf.mxu3 }
 0xa69   :  { %v8291_v56 = vpop.f32.mrf.mxu0 }
 0xa6a   :  { %v8340_v2 = vpop.f32.mrf.mxu1  ;;  %v8437_v42 = vadd.f32 %v8436_v60, %v8388_v41  ;;  %v8292_v39 = vadd.f32 %v8291_v56, %v14455_v7 }
 0xa6c   :  { %8470 = vst [vmem:[#allocation14 + $0x20] sm:$0xff] %v8437_v42  ;;  %v8341_v47 = vadd.f32 %v8340_v2, %v8292_v39 }
 0xa6f   :  { %v8389_v23 = vpop.f32.mrf.mxu2 }
 0xa70   :  { %v8390_v62 = vadd.f32 %v8389_v23, %v8341_v47  ;;  %v8438_v21 = vpop.f32.mrf.mxu3 }
 0xa71   :  { %v8294_v50 = vpop.f32.mrf.mxu0 }
 0xa72   :  { %v8343_v4 = vpop.f32.mrf.mxu1  ;;  %v8439_v29 = vadd.f32 %v8438_v21, %v8390_v62  ;;  %v8295_v38 = vadd.f32 %v8294_v50, %v14470_v5 }
 0xa74   :  { %8471 = vst [vmem:[#allocation14 + $0x28] sm:$0xff] %v8439_v29  ;;  %v8344_v8 = vadd.f32 %v8343_v4, %v8295_v38 }
 0xa77   :  { %v8392_v3 = vpop.f32.mrf.mxu2 }
 0xa78   :  { %v8393_v30 = vadd.f32 %v8392_v3, %v8344_v8  ;;  %v8441_v11 = vpop.f32.mrf.mxu3 }
 0xa79   :  { %v8296_v58 = vpop.f32.mrf.mxu0 }
 0xa7a   :  { %v8345_v14 = vpop.f32.mrf.mxu1  ;;  %v8442_v9 = vadd.f32 %v8441_v11, %v8393_v30  ;;  %v8297_v7 = vadd.f32 %v8296_v58, %v14473_v32 }
 0xa7c   :  { %8472 = vst [vmem:[#allocation14 + $0x30] sm:$0xff] %v8442_v9  ;;  %v8346_v31 = vadd.f32 %v8345_v14, %v8297_v7 }
 0xa7f   :  { %v8394_v61 = vpop.f32.mrf.mxu2 }
 0xa80   :  { %v8395_v44 = vadd.f32 %v8394_v61, %v8346_v31  ;;  %v8443_v53 = vpop.f32.mrf.mxu3 }
 0xa81   :  { %v8299_v54 = vpop.f32.mrf.mxu0 }
 0xa82   :  { %v8348_v55 = vpop.f32.mrf.mxu1  ;;  %v8444_v25 = vadd.f32 %v8443_v53, %v8395_v44  ;;  %v8300_v5 = vadd.f32 %v8299_v54, %v14488_v57 }
 0xa84   :  { %8473 = vst [vmem:[#allocation14 + $0x38] sm:$0xff] %v8444_v25  ;;  %v8349_v34 = vadd.f32 %v8348_v55, %v8300_v5 }
 0xa87   :  { %v8397_v15 = vpop.f32.mrf.mxu2 }
 0xa88   :  { %v8398_v19 = vadd.f32 %v8397_v15, %v8349_v34  ;;  %v8446_v0 = vpop.f32.mrf.mxu3 }
 0xa89   :  { %v8301_v59 = vpop.f32.mrf.mxu0 }
 0xa8a   :  { %v8350_v63 = vpop.f32.mrf.mxu1  ;;  %v8447_v17 = vadd.f32 %v8446_v0, %v8398_v19  ;;  %v8302_v32 = vadd.f32 %v8301_v59, %v14491_v43 }
 0xa8c   :  { %8474 = vst [vmem:[#allocation14 + $0x40] sm:$0xff] %v8447_v17  ;;  %v8351_v12 = vadd.f32 %v8350_v63, %v8302_v32 }
 0xa8f   :  { %v8399_v37 = vpop.f32.mrf.mxu2 }
 0xa90   :  { %v8400_v27 = vadd.f32 %v8399_v37, %v8351_v12  ;;  %v8448_v16 = vpop.f32.mrf.mxu3 }
 0xa91   :  { %v8304_v51 = vpop.f32.mrf.mxu0 }
 0xa92   :  { %v8353_v20 = vpop.f32.mrf.mxu1  ;;  %v8449_v18 = vadd.f32 %v8448_v16, %v8400_v27  ;;  %v8305_v57 = vadd.f32 %v8304_v51, %v14506_v1 }
 0xa94   :  { %8475 = vst [vmem:[#allocation14 + $0x48] sm:$0xff] %v8449_v18  ;;  %v8354_v52 = vadd.f32 %v8353_v20, %v8305_v57 }
 0xa97   :  { %v8402_v48 = vpop.f32.mrf.mxu2 }
 0xa98   :  { %v8403_v6 = vadd.f32 %v8402_v48, %v8354_v52  ;;  %v8451_v24 = vpop.f32.mrf.mxu3 }
 0xa99   :  { %v8306_v33 = vpop.f32.mrf.mxu0 }
 0xa9a   :  { %v8355_v10 = vpop.f32.mrf.mxu1  ;;  %v8452_v45 = vadd.f32 %v8451_v24, %v8403_v6  ;;  %v8307_v43 = vadd.f32 %v8306_v33, %v14509_v26 }
 0xa9c   :  { %8476 = vst [vmem:[#allocation14 + $0x50] sm:$0xff] %v8452_v45  ;;  %v8356_v46 = vadd.f32 %v8355_v10, %v8307_v43 }
 0xa9f   :  { %v8404_v35 = vpop.f32.mrf.mxu2 }
 0xaa0   :  { %v8405_v13 = vadd.f32 %v8404_v35, %v8356_v46  ;;  %v8453_v28 = vpop.f32.mrf.mxu3 }
 0xaa1   :  { %v8309_v41 = vpop.f32.mrf.mxu0 }
 0xaa2   :  { %v8358_v60 = vpop.f32.mrf.mxu1  ;;  %v8454_v56 = vadd.f32 %v8453_v28, %v8405_v13  ;;  %v8310_v1 = vadd.f32 %v8309_v41, %v14524_v49 }
 0xaa4   :  { %8477 = vst [vmem:[#allocation14 + $0x58] sm:$0xff] %v8454_v56  ;;  %v8359_v2 = vadd.f32 %v8358_v60, %v8310_v1 }
 0xaa7   :  { %v8407_v42 = vpop.f32.mrf.mxu2 }
 0xaa8   :  { %v8408_v39 = vadd.f32 %v8407_v42, %v8359_v2  ;;  %v8456_v47 = vpop.f32.mrf.mxu3 }
 0xaa9   :  { %v8311_v23 = vpop.f32.mrf.mxu0 }
 0xaaa   :  { %v8360_v62 = vpop.f32.mrf.mxu1  ;;  %v8457_v21 = vadd.f32 %v8456_v47, %v8408_v39  ;;  %v8312_v26 = vadd.f32 %v8311_v23, %v14527_v40 }
 0xaac   :  { %8478 = vst [vmem:[#allocation14 + $0x60] sm:$0xff] %v8457_v21  ;;  %v8361_v50 = vadd.f32 %v8360_v62, %v8312_v26 }
 0xaaf   :  { %v8409_v4 = vpop.f32.mrf.mxu2 }
 0xab0   :  { %v8410_v29 = vadd.f32 %v8409_v4, %v8361_v50  ;;  %v8458_v38 = vpop.f32.mrf.mxu3 }
 0xab1   :  { %v8314_v8 = vpop.f32.mrf.mxu0 }
 0xab2   :  { %v8459_v3 = vadd.f32 %v8458_v38, %v8410_v29  ;;  %v8315_v30 = vadd.f32 %v8314_v8, %v14542_v36  ;;  %v8363_v49 = vpop.f32.mrf.mxu1 }
 0xab4   :  { %8479 = vst [vmem:[#allocation14 + $0x68] sm:$0xff] %v8459_v3  ;;  %v8364_v11 = vadd.f32 %v8363_v49, %v8315_v30 }
 0xab7   :  { %v8412_v58 = vpop.f32.mrf.mxu2 }
 0xab8   :  { %v8413_v14 = vadd.f32 %v8412_v58, %v8364_v11  ;;  %v8461_v9 = vpop.f32.mrf.mxu3 }
 0xab9   :  { %v8316_v7 = vpop.f32.mrf.mxu0 }
 0xaba   :  { %v8462_v31 = vadd.f32 %v8461_v9, %v8413_v14  ;;  %v8317_v61 = vadd.f32 %v8316_v7, %v14544_v22  ;;  %v8365_v40 = vpop.f32.mrf.mxu1 }
 0xabc   :  { %8480 = vst [vmem:[#allocation14 + $0x70] sm:$0xff] %v8462_v31  ;;  %v8366_v44 = vadd.f32 %v8365_v40, %v8317_v61 }
 0xabf   :  { %v8414_v53 = vpop.f32.mrf.mxu2 }
 0xac0   :  { %v8415_v36 = vadd.f32 %v8414_v53, %v8366_v44  ;;  %v8463_v54 = vpop.f32.mrf.mxu3 }
 0xac2   :  { %v8464_v55 = vadd.f32 %v8463_v54, %v8415_v36 }
 0xac4   :  { %8481 = vst [vmem:[#allocation14 + $0x78] sm:$0xff] %v8464_v55 }
 0xac5   :  { %8494 = dma.vmem_to_hbm [thread:$0]  %s8487_s6, 2048, %s8489_s1, [#allocation4], %s12448_s23, %s12448_s23, %s12449_s24  }
 0xac6   :  { %12438 = dma.done.wait [#allocation4], 2048  }
 0xac7   :  { %12439 = vsyncadd [#allocation4], 4294965248 }
 0xac8   :  { %8499 = vsyncpa [#allocation3], 1 }
 0xac9   :  { %8500 = vsyncpa [#allocation6], 1 }
 0xaca   :  { %8501 = vsyncpa [#allocation9], 1 }
 0xacb   :  { %8502 = vsyncpa [#allocation12], 1 }
 0xacc   :  { %8503 = vsyncpa [#allocation4], 1 }

</bundles_post_ra>
